<compile_context>
chip_gen: v7x
topology: tpu7x:2x2x1
jax: 0.10.0
libtpu: 0.0.40
codegen_flags: <defaults>
</compile_context>

<pallas_src>
import functools

import jax
import jax.numpy as jnp
from jax.experimental import pallas as pl
from jax.experimental.pallas import tpu as pltpu


N_POOL = 4                       # positions inside a 2x2 max-pool window
VMEM_LIMIT = 32 * 1024 * 1024    # explicit scoped-VMEM budget (fits every gen)


# ----------------------------------------------------------------------------
# Conv (im2col matmul) + 2x2 max-pool + relu: one matmul per layer.
# ----------------------------------------------------------------------------
def conv_pool_relu_kernel(p_ref, w_ref, b_ref, o_ref):
    # p_ref: (4*Mp, K) bf16 im2col patches, pool-position major
    # w_ref: (K, Cpad)  bf16 flattened conv weight (zero-padded to 128 lanes)
    # b_ref: (1, Cpad)  f32 bias (zero-padded)
    # o_ref: (Mp, Cpad) bf16 pooled + relu'd activations
    m = jnp.dot(p_ref[...], w_ref[...], preferred_element_type=jnp.float32)
    mp = m.shape[0] // N_POOL
    m = jnp.max(m.reshape(N_POOL, mp, m.shape[1]), axis=0)   # 2x2 max-pool
    # bias + relu after the max is exact: bias is per-channel, max/relu monotone
    o_ref[...] = jnp.maximum(m + b_ref[...], 0.0).astype(o_ref.dtype)


def _im2col_pooled(x_nhwc, ksize):
    """bf16 patches (4*Mp, K): one contiguous slice per (kh,kw), then a single
    parity transpose groups rows by 2x2-pool position (far fewer XLA ops than
    slicing per pool position)."""
    B, H, W, Cin = x_nhwc.shape
    Ho, Wo = H - ksize + 1, W - ksize + 1
    Hp, Wp = Ho // 2, Wo // 2
    K = ksize * ksize * Cin
    M = B * Hp * Wp
    Mp = ((M + 7) // 8) * 8
    cols = [x_nhwc[:, kh:kh + 2 * Hp, kw:kw + 2 * Wp, :]
            for kh in range(ksize) for kw in range(ksize)]      # (B,2Hp,2Wp,Cin)
    pat = jnp.concatenate(cols, axis=-1)                        # (B,2Hp,2Wp,K), K=(kh,kw,c)
    pat = pat.reshape(B, Hp, 2, Wp, 2, K)                       # i=2*hp+di, j=2*wp+dj
    pat = jnp.transpose(pat, (2, 4, 0, 1, 3, 5)).reshape(N_POOL, M, K)
    pat = jnp.pad(pat, ((0, 0), (0, Mp - M), (0, 0))).astype(jnp.bfloat16)
    return pat.reshape(N_POOL * Mp, K), Hp, Wp, M, Mp


def conv2d_pool2_relu(x_nhwc, w_flat, b_row, ksize, cout):
    """Conv2d(valid, stride 1) -> max_pool(2,2) -> relu, hot path in Pallas."""
    B = x_nhwc.shape[0]
    patches, Hp, Wp, M, Mp = _im2col_pooled(x_nhwc, ksize)
    K = patches.shape[1]
    Cpad = w_flat.shape[1]

    out = pl.pallas_call(
        conv_pool_relu_kernel,
        out_shape=jax.ShapeDtypeStruct((Mp, Cpad), jnp.bfloat16),
        grid_spec=pltpu.PrefetchScalarGridSpec(
            num_scalar_prefetch=0,
            grid=(1,),
            in_specs=[
                pl.BlockSpec((N_POOL * Mp, K), lambda i: (0, 0)),
                pl.BlockSpec((K, Cpad), lambda i: (0, 0)),
                pl.BlockSpec((1, Cpad), lambda i: (0, 0)),
            ],
            out_specs=pl.BlockSpec((Mp, Cpad), lambda i: (0, 0)),
        ),
        compiler_params=pltpu.CompilerParams(
            dimension_semantics=("arbitrary",),
            vmem_limit_bytes=VMEM_LIMIT),
    )(patches, w_flat, b_row)
    return out[:M, :cout].reshape(B, Hp, Wp, cout)


# ----------------------------------------------------------------------------
# Fused fc kernels (bf16 weight streaming, f32 accumulation).
# ----------------------------------------------------------------------------
def fc_fused_kernel(x_ref, w1_ref, b1_ref, w3_ref, b3_ref, w5_ref, b5_ref,
                    o_ref, h1_ref):
    """Single-core path: fc1 (K-tiled) -> relu -> fc3 -> relu -> fc5."""
    k = pl.program_id(0)

    @pl.when(k == 0)
    def _():
        h1_ref[...] = jnp.zeros_like(h1_ref)

    h1_ref[...] += jnp.dot(x_ref[...], w1_ref[...],
                           preferred_element_type=jnp.float32)

    @pl.when(k == pl.num_programs(0) - 1)
    def _():
        h1 = jnp.maximum(h1_ref[...] + b1_ref[...], 0.0)            # (B, 2048)
        h3 = jnp.dot(h1.astype(jnp.bfloat16), w3_ref[...],
                     preferred_element_type=jnp.float32)
        h3 = jnp.maximum(h3 + b3_ref[...], 0.0)                     # (B, 512)
        h5 = jnp.dot(h3.astype(jnp.bfloat16), w5_ref[...],
                     preferred_element_type=jnp.float32)
        o_ref[...] = h5 + b5_ref[...]                               # (B, 128)


def fc_split_kernel(x_ref, w1_ref, b1_ref, w3_ref, o_ref, h1_ref):
    """Two-core path (v7x): each core handles one N-half of fc1 and the matching
    K-half of fc3, producing a partial (B,512) fc3 pre-activation."""
    k = pl.program_id(1)

    @pl.when(k == 0)
    def _():
        h1_ref[...] = jnp.zeros_like(h1_ref)

    h1_ref[...] += jnp.dot(x_ref[...], w1_ref[...],
                           preferred_element_type=jnp.float32)

    @pl.when(k == pl.num_programs(1) - 1)
    def _():
        h1 = jnp.maximum(h1_ref[...] + b1_ref[...], 0.0)            # (B, N1/2)
        o_ref[0] = jnp.dot(h1.astype(jnp.bfloat16), w3_ref[...],
                           preferred_element_type=jnp.float32)      # (B, 512)


def fc_tail_kernel(p_ref, b3_ref, w5_ref, b5_ref, o_ref):
    """Reduce per-core fc3 partials, then relu -> fc5."""
    h3 = jnp.maximum(jnp.sum(p_ref[...], axis=0) + b3_ref[...], 0.0)
    o_ref[...] = jnp.dot(h3.astype(jnp.bfloat16), w5_ref[...],
                         preferred_element_type=jnp.float32) + b5_ref[...]


def fc_stack(x_bf16, kp, *, tk=640, n_split=1):
    B, K1 = x_bf16.shape                 # (B, 3200)
    N1 = kp["fc1_w"].shape[1]            # 2048
    N3 = kp["fc3_w"].shape[1]            # 512
    N5 = kp["fc5_w"].shape[1]            # 128 (padded from 47)
    assert K1 % tk == 0 and tk % 128 == 0
    kt = K1 // tk

    if n_split == 1:
        # Single-TensorCore chips (v5e/v6e): fully fused, one pallas_call.
        return pl.pallas_call(
            fc_fused_kernel,
            out_shape=jax.ShapeDtypeStruct((B, N5), jnp.float32),
            grid_spec=pltpu.PrefetchScalarGridSpec(
                num_scalar_prefetch=0,
                grid=(kt,),
                in_specs=[
                    pl.BlockSpec((B, tk), lambda k: (0, k)),      # x tile
                    pl.BlockSpec((tk, N1), lambda k: (k, 0)),     # fc1 weight tile
                    pl.BlockSpec((1, N1), lambda k: (0, 0)),      # fc1 bias
                    pl.BlockSpec((N1, N3), lambda k: (0, 0)),     # fc3 weight
                    pl.BlockSpec((1, N3), lambda k: (0, 0)),      # fc3 bias
                    pl.BlockSpec((N3, N5), lambda k: (0, 0)),     # fc5 weight
                    pl.BlockSpec((1, N5), lambda k: (0, 0)),      # fc5 bias
                ],
                out_specs=pl.BlockSpec((B, N5), lambda k: (0, 0)),
                scratch_shapes=[pltpu.VMEM((B, N1), jnp.float32)],  # fc1 accumulator
            ),
            compiler_params=pltpu.CompilerParams(
                dimension_semantics=("arbitrary",),
                vmem_limit_bytes=VMEM_LIMIT),
        )(x_bf16, kp["fc1_w"], kp["fc1_b"], kp["fc3_w"], kp["fc3_b"],
          kp["fc5_w"], kp["fc5_b"])

    # Two-TensorCore chips (v7x): split the dominant fc1/fc3 weight stream
    # across the cores with a leading "parallel" grid axis.
    assert N1 % n_split == 0
    N1h = N1 // n_split
    partial = pl.pallas_call(
        fc_split_kernel,
        out_shape=jax.ShapeDtypeStruct((n_split, B, N3), jnp.float32),
        grid_spec=pltpu.PrefetchScalarGridSpec(
            num_scalar_prefetch=0,
            grid=(n_split, kt),
            in_specs=[
                pl.BlockSpec((B, tk), lambda c, k: (0, k)),       # x tile
                pl.BlockSpec((tk, N1h), lambda c, k: (k, c)),     # fc1 weight tile (N-half)
                pl.BlockSpec((1, N1h), lambda c, k: (0, c)),      # fc1 bias half
                pl.BlockSpec((N1h, N3), lambda c, k: (c, 0)),     # fc3 weight (K-half)
            ],
            out_specs=pl.BlockSpec((1, B, N3), lambda c, k: (c, 0, 0)),
            scratch_shapes=[pltpu.VMEM((B, N1h), jnp.float32)],
        ),
        compiler_params=pltpu.CompilerParams(
            dimension_semantics=("parallel", "arbitrary"),
            vmem_limit_bytes=VMEM_LIMIT),
    )(x_bf16, kp["fc1_w"], kp["fc1_b"], kp["fc3_w"])

    return pl.pallas_call(
        fc_tail_kernel,
        out_shape=jax.ShapeDtypeStruct((B, N5), jnp.float32),
        grid_spec=pltpu.PrefetchScalarGridSpec(
            num_scalar_prefetch=0,
            grid=(1,),
            in_specs=[
                pl.BlockSpec((n_split, B, N3), lambda i: (0, 0, 0)),
                pl.BlockSpec((1, N3), lambda i: (0, 0)),
                pl.BlockSpec((N3, N5), lambda i: (0, 0)),
                pl.BlockSpec((1, N5), lambda i: (0, 0)),
            ],
            out_specs=pl.BlockSpec((B, N5), lambda i: (0, 0)),
        ),
        compiler_params=pltpu.CompilerParams(
            dimension_semantics=("arbitrary",),
            vmem_limit_bytes=VMEM_LIMIT),
    )(partial, kp["fc3_b"], kp["fc5_w"], kp["fc5_b"])


# ----------------------------------------------------------------------------
# Parameters: PyTorch-convention init, converted ONCE to kernel-ready layout.
# ----------------------------------------------------------------------------
def init_params(key):
    ks = jax.random.split(key, 10)

    def u(k, shape, fan_in):
        bound = 1.0 / jnp.sqrt(jnp.float32(fan_in))
        return jax.random.uniform(k, shape, jnp.float32, -bound, bound)

    return {
        "conv1_w": u(ks[0], (32, 1, 5, 5), 1 * 25),
        "conv1_b": u(ks[1], (32,), 1 * 25),
        "conv2_w": u(ks[2], (128, 32, 5, 5), 32 * 25),
        "conv2_b": u(ks[3], (128,), 32 * 25),
        "fc1_w": u(ks[4], (2048, 3200), 3200),
        "fc1_b": u(ks[5], (2048,), 3200),
        "fc3_w": u(ks[6], (512, 2048), 2048),
        "fc3_b": u(ks[7], (512,), 2048),
        "fc5_w": u(ks[8], (47, 512), 512),
        "fc5_b": u(ks[9], (47,), 512),
    }


def prepare_params(p):
    """One-time conversion: bf16 pre-flattened conv weights, bf16 pre-transposed
    fc weights, the NCHW flatten order folded into fc1, lane-dense paddings."""
    def conv_flat(w_oihw, b, cout_pad):
        cout, cin, kh, kw = w_oihw.shape
        # (Cout,Cin,KH,KW) -> (KH*KW*Cin, Cout), matching the patch K order
        wf = jnp.transpose(w_oihw, (2, 3, 1, 0)).reshape(kh * kw * cin, cout)
        wf = jnp.pad(wf, ((0, 0), (0, cout_pad - cout)))
        bf = jnp.pad(b, (0, cout_pad - cout)).reshape(1, cout_pad)
        return wf.astype(jnp.bfloat16), bf.astype(jnp.float32)

    def fc_flat(w_oi, b, n_pad=None):
        n = w_oi.shape[0]
        wt = jnp.transpose(w_oi)                       # (K, N)
        bt = b
        if n_pad is not None:
            wt = jnp.pad(wt, ((0, 0), (0, n_pad - n)))
            bt = jnp.pad(b, (0, n_pad - n))
        return wt.astype(jnp.bfloat16), bt.reshape(1, -1).astype(jnp.float32)

    c1w, c1b = conv_flat(p["conv1_w"], p["conv1_b"], 128)
    c2w, c2b = conv_flat(p["conv2_w"], p["conv2_b"], 128)

    # fc1: fold torch's NCHW x.view(-1, 3200) into the weight by permuting its
    # 3200 input rows from (C,H,W) order to (H,W,C) order, so the NHWC conv2
    # output flattens with a plain reshape (no per-forward transpose).
    f1 = p["fc1_w"].reshape(2048, 128, 5, 5)                   # (N, C, H, W)
    f1 = jnp.transpose(f1, (2, 3, 1, 0)).reshape(3200, 2048)    # ((H,W,C), N)
    f1w = f1.astype(jnp.bfloat16)
    f1b = p["fc1_b"].reshape(1, -1).astype(jnp.float32)

    f3w, f3b = fc_flat(p["fc3_w"], p["fc3_b"])
    f5w, f5b = fc_flat(p["fc5_w"], p["fc5_b"], n_pad=128)
    return {
        "conv1_w": c1w, "conv1_b": c1b,
        "conv2_w": c2w, "conv2_b": c2b,
        "fc1_w": f1w, "fc1_b": f1b,
        "fc3_w": f3w, "fc3_b": f3b,
        "fc5_w": f5w, "fc5_b": f5b,
    }


# ----------------------------------------------------------------------------
# Forward pass (eval-mode semantics of the PyTorch Net).
# ----------------------------------------------------------------------------
def net_forward(kp, x_nchw, *, n_split=1):
    # NCHW -> NHWC (channels on lanes); Cin==1 so this is essentially a reshape.
    x = jnp.transpose(x_nchw, (0, 2, 3, 1)).astype(jnp.bfloat16)      # (B,32,32,1)
    x = conv2d_pool2_relu(x, kp["conv1_w"], kp["conv1_b"], 5, 32)     # (B,14,14,32)
    # TODO(synk): Dropout2d / F.dropout are identity in eval mode; training-mode
    # stochastic dropout is not implemented here.
    x = conv2d_pool2_relu(x, kp["conv2_w"], kp["conv2_b"], 5, 128)    # (B,5,5,128)
    B = x.shape[0]
    # fc1_w was permuted to NHWC order in prepare_params -> plain reshape here.
    x = x.reshape(B, 3200)
    out = fc_stack(x, kp, n_split=n_split)                            # (B,128)
    return out[:, :47]


def _num_fc_core_splits():
    """2 on chips with two TensorCores (v7x); 1 on single-TC chips (v5e/v6e)."""
    try:
        kind = jax.devices()[0].device_kind.lower()
    except Exception:
        return 1
    return 2 if "v7" in kind else 1


if __name__ == "__main__":
    key = jax.random.PRNGKey(0)
    pkey, xkey = jax.random.split(key)
    params = init_params(pkey)
    kparams = prepare_params(params)          # one-time weight re-layout

    B = 2
    x = jax.random.normal(xkey, (B, 1, 32, 32), jnp.float32)  # NCHW like PyTorch

    n_split = _num_fc_core_splits()
    fwd = jax.jit(functools.partial(net_forward, n_split=n_split))
    out = jax.block_until_ready(fwd(kparams, x))

    assert out.shape == (B, 47), out.shape
    assert bool(jnp.all(jnp.isfinite(out)))
    print("KERNEL_OK")
</pallas_src>

<mosaic_0001>
module attributes {stable_mosaic.version = 11 : i64} {
  func.func @conv_pool_relu_kernel(%arg0: i32, %arg1: memref<1568x25xbf16, #tpu.memory_space<vmem>>, %arg2: memref<25x128xbf16, #tpu.memory_space<vmem>>, %arg3: memref<1x128xf32, #tpu.memory_space<vmem>>, %arg4: memref<392x128xbf16, #tpu.memory_space<vmem>>) attributes {dimension_semantics = [#tpu.dimension_semantics<arbitrary>], iteration_bounds = array<i64: 1>, scalar_prefetch = 0 : i64, scratch_operands = 0 : i64, tpu.core_type = #tpu.core_type<tc>, window_params = [{pipeline_mode = #tpu.pipeline_mode<synchronous>, transform_indices = @transform_0, window_bounds = array<i64: 1568, 25>}, {pipeline_mode = #tpu.pipeline_mode<synchronous>, transform_indices = @transform_1, window_bounds = array<i64: 25, 128>}, {pipeline_mode = #tpu.pipeline_mode<synchronous>, transform_indices = @transform_2, window_bounds = array<i64: 1, 128>}, {pipeline_mode = #tpu.pipeline_mode<synchronous>, transform_indices = @transform_3, window_bounds = array<i64: 392, 128>}]} {
    %c0 = arith.constant 0 : index
    %c0_0 = arith.constant 0 : index
    %0 = vector.load %arg1[%c0, %c0_0] : memref<1568x25xbf16, #tpu.memory_space<vmem>>, vector<1568x25xbf16>
    %c0_1 = arith.constant 0 : index
    %c0_2 = arith.constant 0 : index
    %1 = vector.load %arg2[%c0_1, %c0_2] : memref<25x128xbf16, #tpu.memory_space<vmem>>, vector<25x128xbf16>
    %cst = arith.constant dense<0.000000e+00> : vector<1568x128xf32>
    %2 = tpu.matmul %0, %1, %cst {dimension_numbers = #tpu.dot_dimension_numbers<[1], [0], [0], [1], [0, 0, 1, 1], [], []>} : vector<1568x25xbf16>, vector<25x128xbf16>, vector<1568x128xf32> -> vector<1568x128xf32>
    %3 = vector.shape_cast %2 : vector<1568x128xf32> to vector<4x392x128xf32>
    %cst_3 = arith.constant dense<0xFF800000> : vector<392x128xf32>
    %4 = vector.multi_reduction <maximumf>, %3, %cst_3 [0] : vector<4x392x128xf32> to vector<392x128xf32>
    %c0_4 = arith.constant 0 : index
    %c0_5 = arith.constant 0 : index
    %5 = vector.load %arg3[%c0_4, %c0_5] : memref<1x128xf32, #tpu.memory_space<vmem>>, vector<1x128xf32>
    %6 = vector.broadcast %5 : vector<1x128xf32> to vector<392x128xf32>
    %7 = arith.addf %4, %6 : vector<392x128xf32>
    %cst_6 = arith.constant 0.000000e+00 : f32
    %8 = vector.broadcast %cst_6 : f32 to vector<392x128xf32>
    %9 = arith.maximumf %7, %8 : vector<392x128xf32>
    %10 = arith.truncf %9 : vector<392x128xf32> to vector<392x128xbf16>
    %c0_7 = arith.constant 0 : index
    %c0_8 = arith.constant 0 : index
    %11 = vector.load %arg4[%c0_7, %c0_8] : memref<392x128xbf16, #tpu.memory_space<vmem>>, vector<392x128xbf16>
    tpu.vector_store %arg4[%c0_7, %c0_8], %10 {strides = array<i32>} : memref<392x128xbf16, #tpu.memory_space<vmem>>, vector<392x128xbf16>,
    return
  }
  func.func @transform_0(%arg0: i32) -> (i32, i32) {
    %c0_i32 = arith.constant 0 : i32
    %c0_i32_0 = arith.constant 0 : i32
    %c0_i32_1 = arith.constant 0 : i32
    return %c0_i32, %c0_i32_0 : i32, i32
  }
  func.func @transform_1(%arg0: i32) -> (i32, i32) {
    %c0_i32 = arith.constant 0 : i32
    %c0_i32_0 = arith.constant 0 : i32
    %c0_i32_1 = arith.constant 0 : i32
    return %c0_i32, %c0_i32_0 : i32, i32
  }
  func.func @transform_2(%arg0: i32) -> (i32, i32) {
    %c0_i32 = arith.constant 0 : i32
    %c0_i32_0 = arith.constant 0 : i32
    %c0_i32_1 = arith.constant 0 : i32
    return %c0_i32, %c0_i32_0 : i32, i32
  }
  func.func @transform_3(%arg0: i32) -> (i32, i32) {
    %c0_i32 = arith.constant 0 : i32
    %c0_i32_0 = arith.constant 0 : i32
    %c0_i32_1 = arith.constant 0 : i32
    return %c0_i32, %c0_i32_0 : i32, i32
  }
}

module attributes {stable_mosaic.version = 11 : i64} {
  func.func @conv_pool_relu_kernel(%arg0: i32, %arg1: memref<224x800xbf16, #tpu.memory_space<vmem>>, %arg2: memref<800x128xbf16, #tpu.memory_space<vmem>>, %arg3: memref<1x128xf32, #tpu.memory_space<vmem>>, %arg4: memref<56x128xbf16, #tpu.memory_space<vmem>>) attributes {dimension_semantics = [#tpu.dimension_semantics<arbitrary>], iteration_bounds = array<i64: 1>, scalar_prefetch = 0 : i64, scratch_operands = 0 : i64, tpu.core_type = #tpu.core_type<tc>, window_params = [{pipeline_mode = #tpu.pipeline_mode<synchronous>, transform_indices = @transform_0, window_bounds = array<i64: 224, 800>}, {pipeline_mode = #tpu.pipeline_mode<synchronous>, transform_indices = @transform_1, window_bounds = array<i64: 800, 128>}, {pipeline_mode = #tpu.pipeline_mode<synchronous>, transform_indices = @transform_2, window_bounds = array<i64: 1, 128>}, {pipeline_mode = #tpu.pipeline_mode<synchronous>, transform_indices = @transform_3, window_bounds = array<i64: 56, 128>}]} {
    %c0 = arith.constant 0 : index
    %c0_0 = arith.constant 0 : index
    %0 = vector.load %arg1[%c0, %c0_0] : memref<224x800xbf16, #tpu.memory_space<vmem>>, vector<224x800xbf16>
    %c0_1 = arith.constant 0 : index
    %c0_2 = arith.constant 0 : index
    %1 = vector.load %arg2[%c0_1, %c0_2] : memref<800x128xbf16, #tpu.memory_space<vmem>>, vector<800x128xbf16>
    %cst = arith.constant dense<0.000000e+00> : vector<224x128xf32>
    %2 = tpu.matmul %0, %1, %cst {dimension_numbers = #tpu.dot_dimension_numbers<[1], [0], [0], [1], [0, 0, 1, 1], [], []>} : vector<224x800xbf16>, vector<800x128xbf16>, vector<224x128xf32> -> vector<224x128xf32>
    %3 = vector.shape_cast %2 : vector<224x128xf32> to vector<4x56x128xf32>
    %cst_3 = arith.constant dense<0xFF800000> : vector<56x128xf32>
    %4 = vector.multi_reduction <maximumf>, %3, %cst_3 [0] : vector<4x56x128xf32> to vector<56x128xf32>
    %c0_4 = arith.constant 0 : index
    %c0_5 = arith.constant 0 : index
    %5 = vector.load %arg3[%c0_4, %c0_5] : memref<1x128xf32, #tpu.memory_space<vmem>>, vector<1x128xf32>
    %6 = vector.broadcast %5 : vector<1x128xf32> to vector<56x128xf32>
    %7 = arith.addf %4, %6 : vector<56x128xf32>
    %cst_6 = arith.constant 0.000000e+00 : f32
    %8 = vector.broadcast %cst_6 : f32 to vector<56x128xf32>
    %9 = arith.maximumf %7, %8 : vector<56x128xf32>
    %10 = arith.truncf %9 : vector<56x128xf32> to vector<56x128xbf16>
    %c0_7 = arith.constant 0 : index
    %c0_8 = arith.constant 0 : index
    %11 = vector.load %arg4[%c0_7, %c0_8] : memref<56x128xbf16, #tpu.memory_space<vmem>>, vector<56x128xbf16>
    tpu.vector_store %arg4[%c0_7, %c0_8], %10 {strides = array<i32>} : memref<56x128xbf16, #tpu.memory_space<vmem>>, vector<56x128xbf16>,
    return
  }
  func.func @transform_0(%arg0: i32) -> (i32, i32) {
    %c0_i32 = arith.constant 0 : i32
    %c0_i32_0 = arith.constant 0 : i32
    %c0_i32_1 = arith.constant 0 : i32
    return %c0_i32, %c0_i32_0 : i32, i32
  }
  func.func @transform_1(%arg0: i32) -> (i32, i32) {
    %c0_i32 = arith.constant 0 : i32
    %c0_i32_0 = arith.constant 0 : i32
    %c0_i32_1 = arith.constant 0 : i32
    return %c0_i32, %c0_i32_0 : i32, i32
  }
  func.func @transform_2(%arg0: i32) -> (i32, i32) {
    %c0_i32 = arith.constant 0 : i32
    %c0_i32_0 = arith.constant 0 : i32
    %c0_i32_1 = arith.constant 0 : i32
    return %c0_i32, %c0_i32_0 : i32, i32
  }
  func.func @transform_3(%arg0: i32) -> (i32, i32) {
    %c0_i32 = arith.constant 0 : i32
    %c0_i32_0 = arith.constant 0 : i32
    %c0_i32_1 = arith.constant 0 : i32
    return %c0_i32, %c0_i32_0 : i32, i32
  }
}

module attributes {stable_mosaic.version = 11 : i64} {
  func.func @fc_fused_kernel(%arg0: i32, %arg1: memref<2x640xbf16, #tpu.memory_space<vmem>>, %arg2: memref<640x2048xbf16, #tpu.memory_space<vmem>>, %arg3: memref<1x2048xf32, #tpu.memory_space<vmem>>, %arg4: memref<2048x512xbf16, #tpu.memory_space<vmem>>, %arg5: memref<1x512xf32, #tpu.memory_space<vmem>>, %arg6: memref<512x128xbf16, #tpu.memory_space<vmem>>, %arg7: memref<1x128xf32, #tpu.memory_space<vmem>>, %arg8: memref<2x128xf32, #tpu.memory_space<vmem>>, %arg9: memref<2x2048xf32, #tpu.memory_space<vmem>>) attributes {dimension_semantics = [#tpu.dimension_semantics<arbitrary>], iteration_bounds = array<i64: 5>, scalar_prefetch = 0 : i64, scratch_operands = 1 : i64, tpu.core_type = #tpu.core_type<tc>, window_params = [{transform_indices = @transform_0, window_bounds = array<i64: 2, 640>}, {transform_indices = @transform_1, window_bounds = array<i64: 640, 2048>}, {pipeline_mode = #tpu.pipeline_mode<synchronous>, transform_indices = @transform_2, window_bounds = array<i64: 1, 2048>}, {pipeline_mode = #tpu.pipeline_mode<synchronous>, transform_indices = @transform_3, window_bounds = array<i64: 2048, 512>}, {pipeline_mode = #tpu.pipeline_mode<synchronous>, transform_indices = @transform_4, window_bounds = array<i64: 1, 512>}, {pipeline_mode = #tpu.pipeline_mode<synchronous>, transform_indices = @transform_5, window_bounds = array<i64: 512, 128>}, {pipeline_mode = #tpu.pipeline_mode<synchronous>, transform_indices = @transform_6, window_bounds = array<i64: 1, 128>}, {pipeline_mode = #tpu.pipeline_mode<synchronous>, transform_indices = @transform_7, window_bounds = array<i64: 2, 128>}]} {
    %c0_i32 = arith.constant 0 : i32
    %0 = arith.cmpi eq, %arg0, %c0_i32 : i32
    %1 = arith.extui %0 : i1 to i32
    %c0_i32_0 = arith.constant 0 : i32
    %2 = arith.cmpi ne, %1, %c0_i32_0 : i32
    scf.if %2 {
      %cst_9 = arith.constant 0.000000e+00 : f32
      %12 = vector.broadcast %cst_9 : f32 to vector<2x2048xf32>
      %c0_10 = arith.constant 0 : index
      %c0_11 = arith.constant 0 : index
      %13 = vector.load %arg9[%c0_10, %c0_11] : memref<2x2048xf32, #tpu.memory_space<vmem>>, vector<2x2048xf32>
      tpu.vector_store %arg9[%c0_10, %c0_11], %12 {strides = array<i32>} : memref<2x2048xf32, #tpu.memory_space<vmem>>, vector<2x2048xf32>,
    } else {
    }
    %c0 = arith.constant 0 : index
    %c0_1 = arith.constant 0 : index
    %3 = vector.load %arg9[%c0, %c0_1] : memref<2x2048xf32, #tpu.memory_space<vmem>>, vector<2x2048xf32>
    %c0_2 = arith.constant 0 : index
    %c0_3 = arith.constant 0 : index
    %4 = vector.load %arg1[%c0_2, %c0_3] : memref<2x640xbf16, #tpu.memory_space<vmem>>, vector<2x640xbf16>
    %c0_4 = arith.constant 0 : index
    %c0_5 = arith.constant 0 : index
    %5 = vector.load %arg2[%c0_4, %c0_5] : memref<640x2048xbf16, #tpu.memory_space<vmem>>, vector<640x2048xbf16>
    %cst = arith.constant dense<0.000000e+00> : vector<2x2048xf32>
    %6 = tpu.matmul %4, %5, %cst {dimension_numbers = #tpu.dot_dimension_numbers<[1], [0], [0], [1], [0, 0, 1, 1], [], []>} : vector<2x640xbf16>, vector<640x2048xbf16>, vector<2x2048xf32> -> vector<2x2048xf32>
    %7 = arith.addf %3, %6 : vector<2x2048xf32>
    %c0_6 = arith.constant 0 : index
    %c0_7 = arith.constant 0 : index
    %8 = vector.load %arg9[%c0_6, %c0_7] : memref<2x2048xf32, #tpu.memory_space<vmem>>, vector<2x2048xf32>
    tpu.vector_store %arg9[%c0_6, %c0_7], %7 {strides = array<i32>} : memref<2x2048xf32, #tpu.memory_space<vmem>>, vector<2x2048xf32>,
    %c4_i32 = arith.constant 4 : i32
    %9 = arith.cmpi eq, %arg0, %c4_i32 : i32
    %10 = arith.extui %9 : i1 to i32
    %c0_i32_8 = arith.constant 0 : i32
    %11 = arith.cmpi ne, %10, %c0_i32_8 : i32
    scf.if %11 {
      %c0_9 = arith.constant 0 : index
      %c0_10 = arith.constant 0 : index
      %12 = vector.load %arg9[%c0_9, %c0_10] : memref<2x2048xf32, #tpu.memory_space<vmem>>, vector<2x2048xf32>
      %c0_11 = arith.constant 0 : index
      %c0_12 = arith.constant 0 : index
      %13 = vector.load %arg3[%c0_11, %c0_12] : memref<1x2048xf32, #tpu.memory_space<vmem>>, vector<1x2048xf32>
      %14 = vector.broadcast %13 : vector<1x2048xf32> to vector<2x2048xf32>
      %15 = arith.addf %12, %14 : vector<2x2048xf32>
      %cst_13 = arith.constant 0.000000e+00 : f32
      %16 = vector.broadcast %cst_13 : f32 to vector<2x2048xf32>
      %17 = arith.maximumf %15, %16 : vector<2x2048xf32>
      %18 = arith.truncf %17 : vector<2x2048xf32> to vector<2x2048xbf16>
      %c0_14 = arith.constant 0 : index
      %c0_15 = arith.constant 0 : index
      %19 = vector.load %arg4[%c0_14, %c0_15] : memref<2048x512xbf16, #tpu.memory_space<vmem>>, vector<2048x512xbf16>
      %cst_16 = arith.constant dense<0.000000e+00> : vector<2x512xf32>
      %20 = tpu.matmul %18, %19, %cst_16 {dimension_numbers = #tpu.dot_dimension_numbers<[1], [0], [0], [1], [0, 0, 1, 1], [], []>} : vector<2x2048xbf16>, vector<2048x512xbf16>, vector<2x512xf32> -> vector<2x512xf32>
      %c0_17 = arith.constant 0 : index
      %c0_18 = arith.constant 0 : index
      %21 = vector.load %arg5[%c0_17, %c0_18] : memref<1x512xf32, #tpu.memory_space<vmem>>, vector<1x512xf32>
      %22 = vector.broadcast %21 : vector<1x512xf32> to vector<2x512xf32>
      %23 = arith.addf %20, %22 : vector<2x512xf32>
      %cst_19 = arith.constant 0.000000e+00 : f32
      %24 = vector.broadcast %cst_19 : f32 to vector<2x512xf32>
      %25 = arith.maximumf %23, %24 : vector<2x512xf32>
      %26 = arith.truncf %25 : vector<2x512xf32> to vector<2x512xbf16>
      %c0_20 = arith.constant 0 : index
      %c0_21 = arith.constant 0 : index
      %27 = vector.load %arg6[%c0_20, %c0_21] : memref<512x128xbf16, #tpu.memory_space<vmem>>, vector<512x128xbf16>
      %cst_22 = arith.constant dense<0.000000e+00> : vector<2x128xf32>
      %28 = tpu.matmul %26, %27, %cst_22 {dimension_numbers = #tpu.dot_dimension_numbers<[1], [0], [0], [1], [0, 0, 1, 1], [], []>} : vector<2x512xbf16>, vector<512x128xbf16>, vector<2x128xf32> -> vector<2x128xf32>
      %c0_23 = arith.constant 0 : index
      %c0_24 = arith.constant 0 : index
      %29 = vector.load %arg7[%c0_23, %c0_24] : memref<1x128xf32, #tpu.memory_space<vmem>>, vector<1x128xf32>
      %30 = vector.broadcast %29 : vector<1x128xf32> to vector<2x128xf32>
      %31 = arith.addf %28, %30 : vector<2x128xf32>
      %c0_25 = arith.constant 0 : index
      %c0_26 = arith.constant 0 : index
      %32 = vector.load %arg8[%c0_25, %c0_26] : memref<2x128xf32, #tpu.memory_space<vmem>>, vector<2x128xf32>
      tpu.vector_store %arg8[%c0_25, %c0_26], %31 {strides = array<i32>} : memref<2x128xf32, #tpu.memory_space<vmem>>, vector<2x128xf32>,
    } else {
    }
    return
  }
  func.func @transform_0(%arg0: i32) -> (i32, i32) {
    %c0_i32 = arith.constant 0 : i32
    %c0_i32_0 = arith.constant 0 : i32
    return %c0_i32, %arg0 : i32, i32
  }
  func.func @transform_1(%arg0: i32) -> (i32, i32) {
    %c0_i32 = arith.constant 0 : i32
    %c0_i32_0 = arith.constant 0 : i32
    return %arg0, %c0_i32 : i32, i32
  }
  func.func @transform_2(%arg0: i32) -> (i32, i32) {
    %c0_i32 = arith.constant 0 : i32
    %c0_i32_0 = arith.constant 0 : i32
    %c0_i32_1 = arith.constant 0 : i32
    return %c0_i32, %c0_i32_0 : i32, i32
  }
  func.func @transform_3(%arg0: i32) -> (i32, i32) {
    %c0_i32 = arith.constant 0 : i32
    %c0_i32_0 = arith.constant 0 : i32
    %c0_i32_1 = arith.constant 0 : i32
    return %c0_i32, %c0_i32_0 : i32, i32
  }
  func.func @transform_4(%arg0: i32) -> (i32, i32) {
    %c0_i32 = arith.constant 0 : i32
    %c0_i32_0 = arith.constant 0 : i32
    %c0_i32_1 = arith.constant 0 : i32
    return %c0_i32, %c0_i32_0 : i32, i32
  }
  func.func @transform_5(%arg0: i32) -> (i32, i32) {
    %c0_i32 = arith.constant 0 : i32
    %c0_i32_0 = arith.constant 0 : i32
    %c0_i32_1 = arith.constant 0 : i32
    return %c0_i32, %c0_i32_0 : i32, i32
  }
  func.func @transform_6(%arg0: i32) -> (i32, i32) {
    %c0_i32 = arith.constant 0 : i32
    %c0_i32_0 = arith.constant 0 : i32
    %c0_i32_1 = arith.constant 0 : i32
    return %c0_i32, %c0_i32_0 : i32, i32
  }
  func.func @transform_7(%arg0: i32) -> (i32, i32) {
    %c0_i32 = arith.constant 0 : i32
    %c0_i32_0 = arith.constant 0 : i32
    %c0_i32_1 = arith.constant 0 : i32
    return %c0_i32, %c0_i32_0 : i32, i32
  }
}

</mosaic_0001>

<bundles_post_ra>
// kernel: net_forward.3
= control target key start
LH: loop header
LB: loop body
LE: loop exit
PB: predicated region body
PF: predicated region fallthrough
CT: control target
= control target key end

     0   :  { %8 = vsyncpa [#allocation3], 0  ;;  %s4135_s0 = inlined_call_operand.vmem [shape: bf16[1568,25], index: 0, kind: input, shape index: {}]   ;;  %s4136_s1 = inlined_call_operand.hbm [shape: bf16[25,128], index: 1, kind: input, shape index: {}]   ;;  %s4137_s2 = inlined_call_operand.hbm [shape: f32[1,128], index: 2, kind: input, shape index: {}]   ;;  %s4138_s3 = inlined_call_operand.vmem [shape: bf16[392,128], index: 3, kind: output, shape index: {}]  }
   0x1   :  { %9 = vsyncpa [#allocation5], 0  ;;  %s3262_s12 = smov [#allocation2]   ;;  %s3214_s16 = scalar_lea.hbm %s4136_s1, 256 }
   0x2   :  { %s17_s13 = sshll.u32 %s3262_s12, 4  ;;  %p3215_p0 = scmp.ne.s32.totalorder %s4136_s1, %s3214_s16  ;;  %s18_s13 = int_to_ptr.vmem [resolvable:$true] %s17_s13 }
   0x3   :  { %p3218_p1 = scmp.lt.u32.totalorder %s3214_s16, %s4136_s1 }
   0x5   :  { %p3220_p2 = pnand %p3218_p1, %p3215_p0 }
   0x7   :  { %3223 = shalt.err (!%p3220_p2)
}
   0x8   :  { %s3224_s21 = scalar_lea.vmem %s18_s13, 256  ;;  %p3229_p4 = scmp.lt.s32.totalorder %s18_s13, %s18_s13 }
   0x9   :  { %p3225_p3 = scmp.ne.s32.totalorder %s18_s13, %s3224_s21  ;;  %p3230_p5 = scmp.lt.s32.totalorder %s3224_s21, %s3224_s21 }
   0xb   :  { %p3231_p6 = por %p3230_p5, %p3229_p4 }
   0xd   :  { %p3232_p7 = pnand %p3231_p6, %p3225_p3 }
   0xf   :  { %3235 = shalt.err (!%p3232_p7)
}
  0x10   :  { %s3263_s22 = smov 64   ;;  %s3264_s23 = smov 4  }
  0x11   :  { %23 = dma.hbm_to_vmem [thread:$0]  %s4136_s1, 256, %s18_s13, [#allocation3], %s3263_s22, %s3263_s22, %s3264_s23  }
  0x12   :  { %s3265_s26 = smov [#allocation4]   ;;  %s3236_s30 = scalar_lea.hbm %s4137_s2, 16 }
  0x13   :  { %s30_s27 = sshll.u32 %s3265_s26, 4  ;;  %p3237_p8 = scmp.ne.s32.totalorder %s4137_s2, %s3236_s30  ;;  %s31_s27 = int_to_ptr.vmem [resolvable:$true] %s30_s27 }
  0x14   :  { %p3240_p9 = scmp.lt.u32.totalorder %s3236_s30, %s4137_s2 }
  0x16   :  { %p3242_p10 = pnand %p3240_p9, %p3237_p8 }
  0x18   :  { %3245 = shalt.err (!%p3242_p10)
}
  0x19   :  { %s3246_s8 = scalar_lea.vmem %s31_s27, 16  ;;  %s3250_s1 = scalar_lea.vmem %s31_s27, 32 }
  0x1a   :  { %p3247_p11 = scmp.ne.s32.totalorder %s31_s27, %s3246_s8  ;;  %p3251_p12 = scmp.lt.s32.totalorder %s31_s27, %s31_s27 }
  0x1b   :  { %p3252_p13 = scmp.lt.s32.totalorder %s3250_s1, %s3246_s8 }
  0x1d   :  { %p3253_p0 = por %p3252_p13, %p3251_p12 }
  0x1f   :  { %p3254_p1 = pnand %p3253_p0, %p3247_p11 }
  0x21   :  { %3257 = shalt.err (!%p3254_p1)
}
  0x22   :  { %33 = dma.hbm_to_vmem [thread:$0]  %s4137_s2, 16, %s31_s27, [#allocation5]  }
  0x23   :  { %3258 = dma.done.wait [#allocation3], 256  }
  0x24   :  { %3259 = vsyncadd [#allocation3], 4294967040 }
  0x25   :  { %3260 = dma.done.wait [#allocation5], 16  }
  0x26   :  { %3261 = vsyncadd [#allocation5], 4294967280  ;;  %vm1037_vm0 = vcmask 1043456   ;;  %vm1038_vm1 = vcmask 1044480   ;;  %v3266_v0 = vmov 65535   ;;  %vm742_vm2 = vcmask 203776  }
  0x27   :  { %v1039_v1 = vsel %vm1037_vm0, 4294967295, %v3266_v0  ;;  %v3114_v2 = vld [vmem:[#allocation2] sm:$0xff]   ;;  %v3115_v4 = vld [vmem:[#allocation2 + $0x8] sm:$0x1f]   ;;  %v3118_v7 = vld [vmem:[%s4135_s0 + $0x190] sm:$0xff]  }
  0x28   :  { %v1040_v3 = vsel %vm1038_vm1, %v1039_v1, 0  ;;  %2905 = vmatprep.subr.bf16.mxu0 %v3114_v2  ;;  %3105 = vmatprep.subr.bf16.mxu1 %v3114_v2  ;;  %v3116_v5 = vld [vmem:[%s4135_s0] sm:$0xff]   ;;  %v3117_v8 = vld [vmem:[%s4135_s0 + $0x8] sm:$0xff]   ;;  %v3119_v9 = vld [vmem:[%s4135_s0 + $0x198] sm:$0xff]  }
  0x29   :  { %2906 = vmatpush3.bf16.msra.mxu0 %v3114_v2  ;;  %3107 = vmatpush3.bf16.msra.mxu1 %v3114_v2  ;;  %v1042_v6 = vand.u32 %v3115_v4, %v1040_v3  ;;  %v3120_v10 = vld [vmem:[%s4135_s0 + $0x10] sm:$0xff]   ;;  %v3122_v11 = vld [vmem:[%s4135_s0 + $0x1a0] sm:$0xff]   ;;  %v3121_v12 = vld [vmem:[%s4135_s0 + $0x18] sm:$0xff]  }
  0x2a   :  { %2909 = vmatprep.mubr.msk.bf16.mxu0 %vm742_vm2, %v3116_v5  ;;  %3009 = vmatprep.mubr.msk.bf16.mxu1 %vm742_vm2, %v3118_v7  ;;  %v3123_v13 = vld [vmem:[%s4135_s0 + $0x1a8] sm:$0xff]   ;;  %v3124_v14 = vld [vmem:[%s4135_s0 + $0x20] sm:$0xff]   ;;  %v3126_v15 = vld [vmem:[%s4135_s0 + $0x1b0] sm:$0xff]  }
  0x2b   :  { %2907 = vmatprep.subr.bf16.mxu0 %v1042_v6  ;;  %3106 = vmatprep.subr.bf16.mxu1 %v1042_v6  ;;  %v3125_v16 = vld [vmem:[%s4135_s0 + $0x28] sm:$0xff]   ;;  %v3127_v17 = vld [vmem:[%s4135_s0 + $0x1b8] sm:$0xff]   ;;  %v3128_v18 = vld [vmem:[%s4135_s0 + $0x30] sm:$0xff]  }
  0x2c   :  { %v3130_v19 = vld [vmem:[%s4135_s0 + $0x1c0] sm:$0xff]   ;;  %v3129_v20 = vld [vmem:[%s4135_s0 + $0x38] sm:$0xff]   ;;  %v3131_v21 = vld [vmem:[%s4135_s0 + $0x1c8] sm:$0xff]  }
  0x2d   :  { %2908 = vmatpush3.bf16.msra.mxu0 %v1042_v6  ;;  %3108 = vmatpush3.bf16.msra.mxu1 %v1042_v6  ;;  %v3132_v22 = vld [vmem:[%s4135_s0 + $0x40] sm:$0xff]   ;;  %v3134_v23 = vld [vmem:[%s4135_s0 + $0x1d0] sm:$0xff]   ;;  %v3133_v24 = vld [vmem:[%s4135_s0 + $0x48] sm:$0xff]  }
  0x2e   :  { %v3135_v25 = vld [vmem:[%s4135_s0 + $0x1d8] sm:$0xff]   ;;  %v3136_v26 = vld [vmem:[%s4135_s0 + $0x50] sm:$0xff]   ;;  %v3138_v27 = vld [vmem:[%s4135_s0 + $0x1e0] sm:$0xff]  }
  0x2f   :  { %v3137_v28 = vld [vmem:[%s4135_s0 + $0x58] sm:$0xff]   ;;  %v3139_v29 = vld [vmem:[%s4135_s0 + $0x1e8] sm:$0xff]   ;;  %v3140_v30 = vld [vmem:[%s4135_s0 + $0x60] sm:$0xff]  }
  0x30   :  { %2910 = vmatmul.mubr.msk.bf16.vlgmr.msra.gmra.mrb[0].mxu0 %vm742_vm2, %v3117_v8  ;;  %3010 = vmatmul.mubr.msk.bf16.vlgmr.msra.gmra.mrb[0].mxu1 %vm742_vm2, %v3119_v9  ;;  %v3142_v31 = vld [vmem:[%s4135_s0 + $0x1f0] sm:$0xff]   ;;  %v3141_v32 = vld [vmem:[%s4135_s0 + $0x68] sm:$0xff]   ;;  %v3143_v33 = vld [vmem:[%s4135_s0 + $0x1f8] sm:$0xff]  }
  0x31   :  { %2913 = vmatprep.mubr.msk.bf16.mxu0 %vm742_vm2, %v3120_v10  ;;  %3013 = vmatprep.mubr.msk.bf16.mxu1 %vm742_vm2, %v3122_v11  ;;  %v3144_v34 = vld [vmem:[%s4135_s0 + $0x70] sm:$0xff]   ;;  %v3146_v35 = vld [vmem:[%s4135_s0 + $0x200] sm:$0xff]   ;;  %v3145_v36 = vld [vmem:[%s4135_s0 + $0x78] sm:$0xff]  }
  0x32   :  { %v3147_v37 = vld [vmem:[%s4135_s0 + $0x208] sm:$0xff]   ;;  %v3148_v38 = vld [vmem:[%s4135_s0 + $0x80] sm:$0xff]   ;;  %v3150_v39 = vld [vmem:[%s4135_s0 + $0x210] sm:$0xff]  }
  0x33   :  { %v3149_v40 = vld [vmem:[%s4135_s0 + $0x88] sm:$0xff]   ;;  %v3151_v41 = vld [vmem:[%s4135_s0 + $0x218] sm:$0xff]   ;;  %v3152_v42 = vld [vmem:[%s4135_s0 + $0x90] sm:$0xff]  }
  0x34   :  { %v3154_v43 = vld [vmem:[%s4135_s0 + $0x220] sm:$0xff]   ;;  %v3153_v44 = vld [vmem:[%s4135_s0 + $0x98] sm:$0xff]   ;;  %v3155_v45 = vld [vmem:[%s4135_s0 + $0x228] sm:$0xff]  }
  0x35   :  { %v3156_v46 = vld [vmem:[%s4135_s0 + $0xa0] sm:$0xff]   ;;  %v3158_v47 = vld [vmem:[%s4135_s0 + $0x230] sm:$0xff]   ;;  %v3157_v48 = vld [vmem:[%s4135_s0 + $0xa8] sm:$0xff]  }
  0x36   :  { %v3159_v49 = vld [vmem:[%s4135_s0 + $0x238] sm:$0xff]   ;;  %v3160_v50 = vld [vmem:[%s4135_s0 + $0xb0] sm:$0xff]   ;;  %v3162_v51 = vld [vmem:[%s4135_s0 + $0x240] sm:$0xff]  }
  0x37   :  { %v3161_v52 = vld [vmem:[%s4135_s0 + $0xb8] sm:$0xff]   ;;  %v3163_v53 = vld [vmem:[%s4135_s0 + $0x248] sm:$0xff]   ;;  %v3164_v54 = vld [vmem:[%s4135_s0 + $0xc0] sm:$0xff]  }
  0x38   :  { %2914 = vmatmul.mubr.msk.bf16.gmra.mrb[4].mxu0 %vm742_vm2, %v3121_v12  ;;  %3014 = vmatmul.mubr.msk.bf16.gmra.mrb[4].mxu1 %vm742_vm2, %v3123_v13  ;;  %v3166_v55 = vld [vmem:[%s4135_s0 + $0x250] sm:$0xff]   ;;  %v3165_v56 = vld [vmem:[%s4135_s0 + $0xc8] sm:$0xff]   ;;  %v3167_v57 = vld [vmem:[%s4135_s0 + $0x258] sm:$0xff]  }
  0x39   :  { %2917 = vmatprep.mubr.msk.bf16.mxu0 %vm742_vm2, %v3124_v14  ;;  %3017 = vmatprep.mubr.msk.bf16.mxu1 %vm742_vm2, %v3126_v15  ;;  %v3168_v58 = vld [vmem:[%s4135_s0 + $0xd0] sm:$0xff]   ;;  %v3170_v59 = vld [vmem:[%s4135_s0 + $0x260] sm:$0xff]   ;;  %v3169_v60 = vld [vmem:[%s4135_s0 + $0xd8] sm:$0xff]  }
  0x3a   :  { %v3171_v61 = vld [vmem:[%s4135_s0 + $0x268] sm:$0xff]   ;;  %v3172_v62 = vld [vmem:[%s4135_s0 + $0xe0] sm:$0xff]   ;;  %v3174_v63 = vld [vmem:[%s4135_s0 + $0x270] sm:$0xff]  }
  0x3b   :  { %v3173_v0 = vld [vmem:[%s4135_s0 + $0xe8] sm:$0xff]   ;;  %v3175_v1 = vld [vmem:[%s4135_s0 + $0x278] sm:$0xff]   ;;  %v3176_v2 = vld [vmem:[%s4135_s0 + $0xf0] sm:$0xff]  }
  0x3c   :  { %v3178_v3 = vld [vmem:[%s4135_s0 + $0x280] sm:$0xff]   ;;  %v3177_v4 = vld [vmem:[%s4135_s0 + $0xf8] sm:$0xff]   ;;  %v3179_v5 = vld [vmem:[%s4135_s0 + $0x288] sm:$0xff]  }
  0x3d   :  { %v3180_v6 = vld [vmem:[%s4135_s0 + $0x100] sm:$0xff]   ;;  %v3182_v7 = vld [vmem:[%s4135_s0 + $0x290] sm:$0xff]   ;;  %v3181_v8 = vld [vmem:[%s4135_s0 + $0x108] sm:$0xff]  }
  0x3e   :  { %v3183_v9 = vld [vmem:[%s4135_s0 + $0x298] sm:$0xff]   ;;  %v3184_v10 = vld [vmem:[%s4135_s0 + $0x110] sm:$0xff]   ;;  %v3186_v11 = vld [vmem:[%s4135_s0 + $0x2a0] sm:$0xff]  }
  0x3f   :  { %v3185_v12 = vld [vmem:[%s4135_s0 + $0x118] sm:$0xff]   ;;  %v3187_v13 = vld [vmem:[%s4135_s0 + $0x2a8] sm:$0xff]   ;;  %v3188_v14 = vld [vmem:[%s4135_s0 + $0x120] sm:$0xff]  }
  0x40   :  { %2918 = vmatmul.mubr.msk.bf16.gmra.mrb[8].mxu0 %vm742_vm2, %v3125_v16  ;;  %3018 = vmatmul.mubr.msk.bf16.gmra.mrb[8].mxu1 %vm742_vm2, %v3127_v17  ;;  %v3190_v15 = vld [vmem:[%s4135_s0 + $0x2b0] sm:$0xff]   ;;  %v3189_v16 = vld [vmem:[%s4135_s0 + $0x128] sm:$0xff]   ;;  %v3191_v17 = vld [vmem:[%s4135_s0 + $0x2b8] sm:$0xff]  }
  0x41   :  { %2921 = vmatprep.mubr.msk.bf16.mxu0 %vm742_vm2, %v3128_v18  ;;  %3021 = vmatprep.mubr.msk.bf16.mxu1 %vm742_vm2, %v3130_v19  ;;  %v3192_v18 = vld [vmem:[%s4135_s0 + $0x130] sm:$0xff]   ;;  %v3194_v19 = vld [vmem:[%s4135_s0 + $0x2c0] sm:$0xff]  }
  0x48   :  { %2922 = vmatmul.mubr.msk.bf16.gmra.mrb[12].mxu0 %vm742_vm2, %v3129_v20  ;;  %3022 = vmatmul.mubr.msk.bf16.gmra.mrb[12].mxu1 %vm742_vm2, %v3131_v21  ;;  %v3193_v20 = vld [vmem:[%s4135_s0 + $0x138] sm:$0xff]   ;;  %v3195_v21 = vld [vmem:[%s4135_s0 + $0x2c8] sm:$0xff]  }
  0x49   :  { %2925 = vmatprep.mubr.msk.bf16.mxu0 %vm742_vm2, %v3132_v22  ;;  %3025 = vmatprep.mubr.msk.bf16.mxu1 %vm742_vm2, %v3134_v23  ;;  %v3196_v22 = vld [vmem:[%s4135_s0 + $0x140] sm:$0xff]   ;;  %v3198_v23 = vld [vmem:[%s4135_s0 + $0x2d0] sm:$0xff]  }
  0x50   :  { %2926 = vmatmul.mubr.msk.bf16.gmra.mrb[16].mxu0 %vm742_vm2, %v3133_v24  ;;  %3026 = vmatmul.mubr.msk.bf16.gmra.mrb[16].mxu1 %vm742_vm2, %v3135_v25  ;;  %v3197_v24 = vld [vmem:[%s4135_s0 + $0x148] sm:$0xff]   ;;  %v3199_v25 = vld [vmem:[%s4135_s0 + $0x2d8] sm:$0xff]  }
  0x51   :  { %2929 = vmatprep.mubr.msk.bf16.mxu0 %vm742_vm2, %v3136_v26  ;;  %3029 = vmatprep.mubr.msk.bf16.mxu1 %vm742_vm2, %v3138_v27  ;;  %v3200_v26 = vld [vmem:[%s4135_s0 + $0x150] sm:$0xff]   ;;  %v3202_v27 = vld [vmem:[%s4135_s0 + $0x2e0] sm:$0xff]  }
  0x58   :  { %2930 = vmatmul.mubr.msk.bf16.gmra.mrb[20].mxu0 %vm742_vm2, %v3137_v28  ;;  %3030 = vmatmul.mubr.msk.bf16.gmra.mrb[20].mxu1 %vm742_vm2, %v3139_v29  ;;  %v3201_v28 = vld [vmem:[%s4135_s0 + $0x158] sm:$0xff]   ;;  %v3203_v29 = vld [vmem:[%s4135_s0 + $0x2e8] sm:$0xff]  }
  0x59   :  { %2933 = vmatprep.mubr.msk.bf16.mxu0 %vm742_vm2, %v3140_v30  ;;  %3033 = vmatprep.mubr.msk.bf16.mxu1 %vm742_vm2, %v3142_v31  ;;  %v3204_v30 = vld [vmem:[%s4135_s0 + $0x160] sm:$0xff]   ;;  %v3206_v31 = vld [vmem:[%s4135_s0 + $0x2f0] sm:$0xff]  }
  0x60   :  { %2934 = vmatmul.mubr.msk.bf16.gmra.mrb[24].mxu0 %vm742_vm2, %v3141_v32  ;;  %3034 = vmatmul.mubr.msk.bf16.gmra.mrb[24].mxu1 %vm742_vm2, %v3143_v33  ;;  %v3205_v32 = vld [vmem:[%s4135_s0 + $0x168] sm:$0xff]   ;;  %v3207_v33 = vld [vmem:[%s4135_s0 + $0x2f8] sm:$0xff]  }
  0x61   :  { %2937 = vmatprep.mubr.msk.bf16.mxu0 %vm742_vm2, %v3144_v34  ;;  %3037 = vmatprep.mubr.msk.bf16.mxu1 %vm742_vm2, %v3146_v35  ;;  %v3208_v34 = vld [vmem:[%s4135_s0 + $0x170] sm:$0xff]   ;;  %v3210_v35 = vld [vmem:[%s4135_s0 + $0x300] sm:$0xff]  }
  0x68   :  { %2938 = vmatmul.mubr.msk.bf16.gmra.mrb[28].mxu0 %vm742_vm2, %v3145_v36  ;;  %3038 = vmatmul.mubr.msk.bf16.gmra.mrb[28].mxu1 %vm742_vm2, %v3147_v37  ;;  %v3209_v36 = vld [vmem:[%s4135_s0 + $0x178] sm:$0xff]   ;;  %v3211_v37 = vld [vmem:[%s4135_s0 + $0x308] sm:$0xff]  }
  0x69   :  { %2941 = vmatprep.mubr.msk.bf16.mxu0 %vm742_vm2, %v3148_v38  ;;  %3041 = vmatprep.mubr.msk.bf16.mxu1 %vm742_vm2, %v3150_v39  ;;  %v3212_v38 = vld [vmem:[%s4135_s0 + $0x180] sm:$0xff]   ;;  %v3213_v39 = vld [vmem:[%s4135_s0 + $0x188] sm:$0xff]  }
  0x70   :  { %2942 = vmatmul.mubr.msk.bf16.gmra.mrb[32].mxu0 %vm742_vm2, %v3149_v40  ;;  %3042 = vmatmul.mubr.msk.bf16.gmra.mrb[32].mxu1 %vm742_vm2, %v3151_v41 }
  0x71   :  { %2945 = vmatprep.mubr.msk.bf16.mxu0 %vm742_vm2, %v3152_v42  ;;  %3045 = vmatprep.mubr.msk.bf16.mxu1 %vm742_vm2, %v3154_v43 }
  0x78   :  { %2946 = vmatmul.mubr.msk.bf16.gmra.mrb[36].mxu0 %vm742_vm2, %v3153_v44  ;;  %3046 = vmatmul.mubr.msk.bf16.gmra.mrb[36].mxu1 %vm742_vm2, %v3155_v45 }
  0x79   :  { %2949 = vmatprep.mubr.msk.bf16.mxu0 %vm742_vm2, %v3156_v46  ;;  %3049 = vmatprep.mubr.msk.bf16.mxu1 %vm742_vm2, %v3158_v47 }
  0x80   :  { %2950 = vmatmul.mubr.msk.bf16.gmra.mrb[40].mxu0 %vm742_vm2, %v3157_v48  ;;  %3050 = vmatmul.mubr.msk.bf16.gmra.mrb[40].mxu1 %vm742_vm2, %v3159_v49 }
  0x81   :  { %2953 = vmatprep.mubr.msk.bf16.mxu0 %vm742_vm2, %v3160_v50  ;;  %3053 = vmatprep.mubr.msk.bf16.mxu1 %vm742_vm2, %v3162_v51 }
  0x88   :  { %2954 = vmatmul.mubr.msk.bf16.gmra.mrb[44].mxu0 %vm742_vm2, %v3161_v52  ;;  %3054 = vmatmul.mubr.msk.bf16.gmra.mrb[44].mxu1 %vm742_vm2, %v3163_v53 }
  0x89   :  { %2957 = vmatprep.mubr.msk.bf16.mxu0 %vm742_vm2, %v3164_v54  ;;  %3057 = vmatprep.mubr.msk.bf16.mxu1 %vm742_vm2, %v3166_v55 }
  0x90   :  { %2958 = vmatmul.mubr.msk.bf16.gmra.mrb[48].mxu0 %vm742_vm2, %v3165_v56  ;;  %3058 = vmatmul.mubr.msk.bf16.gmra.mrb[48].mxu1 %vm742_vm2, %v3167_v57 }
  0x91   :  { %2961 = vmatprep.mubr.msk.bf16.mxu0 %vm742_vm2, %v3168_v58  ;;  %3061 = vmatprep.mubr.msk.bf16.mxu1 %vm742_vm2, %v3170_v59 }
  0x98   :  { %2962 = vmatmul.mubr.msk.bf16.gmra.mrb[52].mxu0 %vm742_vm2, %v3169_v60  ;;  %3062 = vmatmul.mubr.msk.bf16.gmra.mrb[52].mxu1 %vm742_vm2, %v3171_v61 }
  0x99   :  { %2965 = vmatprep.mubr.msk.bf16.mxu0 %vm742_vm2, %v3172_v62  ;;  %3065 = vmatprep.mubr.msk.bf16.mxu1 %vm742_vm2, %v3174_v63 }
  0xa0   :  { %2966 = vmatmul.mubr.msk.bf16.gmra.mrb[56].mxu0 %vm742_vm2, %v3173_v0  ;;  %3066 = vmatmul.mubr.msk.bf16.gmra.mrb[56].mxu1 %vm742_vm2, %v3175_v1 }
  0xa1   :  { %2969 = vmatprep.mubr.msk.bf16.mxu0 %vm742_vm2, %v3176_v2  ;;  %3069 = vmatprep.mubr.msk.bf16.mxu1 %vm742_vm2, %v3178_v3 }
  0xa8   :  { %2970 = vmatmul.mubr.msk.bf16.gmra.mrb[60].mxu0 %vm742_vm2, %v3177_v4  ;;  %3070 = vmatmul.mubr.msk.bf16.gmra.mrb[60].mxu1 %vm742_vm2, %v3179_v5 }
  0xa9   :  { %2973 = vmatprep.mubr.msk.bf16.mxu0 %vm742_vm2, %v3180_v6  ;;  %3073 = vmatprep.mubr.msk.bf16.mxu1 %vm742_vm2, %v3182_v7 }
  0xb0   :  { %2974 = vmatmul.mubr.msk.bf16.gmra.mrb[64].mxu0 %vm742_vm2, %v3181_v8  ;;  %3074 = vmatmul.mubr.msk.bf16.gmra.mrb[64].mxu1 %vm742_vm2, %v3183_v9 }
  0xb1   :  { %2977 = vmatprep.mubr.msk.bf16.mxu0 %vm742_vm2, %v3184_v10  ;;  %3077 = vmatprep.mubr.msk.bf16.mxu1 %vm742_vm2, %v3186_v11 }
  0xb8   :  { %2978 = vmatmul.mubr.msk.bf16.gmra.mrb[68].mxu0 %vm742_vm2, %v3185_v12  ;;  %3078 = vmatmul.mubr.msk.bf16.gmra.mrb[68].mxu1 %vm742_vm2, %v3187_v13 }
  0xb9   :  { %2981 = vmatprep.mubr.msk.bf16.mxu0 %vm742_vm2, %v3188_v14  ;;  %3081 = vmatprep.mubr.msk.bf16.mxu1 %vm742_vm2, %v3190_v15 }
  0xc0   :  { %2982 = vmatmul.mubr.msk.bf16.gmra.mrb[72].mxu0 %vm742_vm2, %v3189_v16  ;;  %3082 = vmatmul.mubr.msk.bf16.gmra.mrb[72].mxu1 %vm742_vm2, %v3191_v17 }
  0xc1   :  { %2985 = vmatprep.mubr.msk.bf16.mxu0 %vm742_vm2, %v3192_v18  ;;  %3085 = vmatprep.mubr.msk.bf16.mxu1 %vm742_vm2, %v3194_v19 }
  0xc8   :  { %2986 = vmatmul.mubr.msk.bf16.gmra.mrb[76].mxu0 %vm742_vm2, %v3193_v20  ;;  %3086 = vmatmul.mubr.msk.bf16.gmra.mrb[76].mxu1 %vm742_vm2, %v3195_v21 }
  0xc9   :  { %2989 = vmatprep.mubr.msk.bf16.mxu0 %vm742_vm2, %v3196_v22  ;;  %3089 = vmatprep.mubr.msk.bf16.mxu1 %vm742_vm2, %v3198_v23 }
  0xd0   :  { %2990 = vmatmul.mubr.msk.bf16.gmra.mrb[80].mxu0 %vm742_vm2, %v3197_v24  ;;  %3090 = vmatmul.mubr.msk.bf16.gmra.mrb[80].mxu1 %vm742_vm2, %v3199_v25 }
  0xd1   :  { %2993 = vmatprep.mubr.msk.bf16.mxu0 %vm742_vm2, %v3200_v26  ;;  %3093 = vmatprep.mubr.msk.bf16.mxu1 %vm742_vm2, %v3202_v27 }
  0xd8   :  { %2994 = vmatmul.mubr.msk.bf16.gmra.mrb[84].mxu0 %vm742_vm2, %v3201_v28  ;;  %3094 = vmatmul.mubr.msk.bf16.gmra.mrb[84].mxu1 %vm742_vm2, %v3203_v29 }
  0xd9   :  { %2997 = vmatprep.mubr.msk.bf16.mxu0 %vm742_vm2, %v3204_v30  ;;  %3097 = vmatprep.mubr.msk.bf16.mxu1 %vm742_vm2, %v3206_v31 }
  0xe0   :  { %2998 = vmatmul.mubr.msk.bf16.gmra.mrb[88].mxu0 %vm742_vm2, %v3205_v32  ;;  %3098 = vmatmul.mubr.msk.bf16.gmra.mrb[88].mxu1 %vm742_vm2, %v3207_v33 }
  0xe1   :  { %3001 = vmatprep.mubr.msk.bf16.mxu0 %vm742_vm2, %v3208_v34  ;;  %3101 = vmatprep.mubr.msk.bf16.mxu1 %vm742_vm2, %v3210_v35 }
  0xe8   :  { %3002 = vmatmul.mubr.msk.bf16.gmra.mrb[92].mxu0 %vm742_vm2, %v3209_v36  ;;  %3102 = vmatmul.mubr.msk.bf16.gmra.mrb[92].mxu1 %vm742_vm2, %v3211_v37 }
  0xe9   :  { %3005 = vmatprep.mubr.msk.bf16.mxu0 %vm742_vm2, %v3212_v38 }
  0xf0   :  { %3006 = vmatmul.mubr.msk.bf16.gmra.mrb[96].mxu0 %vm742_vm2, %v3213_v39 }
 0x103   :  { %v3703_v40 = vpop.f32.mrb[0].mxu0  ;;  %v3705_v41 = vpop.f32.mrb[0].mxu1 }
 0x104   :  { %v3707_v42 = vpop.f32.mrb[1].mxu0  ;;  %v3709_v43 = vpop.f32.mrb[1].mxu1 }
 0x105   :  { %4143 = vst [vmem:[#allocation8_spill] sm:$0xff] %v3707_v42  ;;  %v3711_v44 = vpop.f32.mrb[2].mxu0  ;;  %v3713_v45 = vpop.f32.mrb[2].mxu1 }
 0x106   :  { %v3715_v46 = vpop.f32.mrb[3].mxu0  ;;  %v3717_v47 = vpop.f32.mrb[3].mxu1 }
 0x107   :  { %4144 = vst [vmem:[#allocation9_spill] sm:$0xff] %v3715_v46 }
 0x10b   :  { %v3719_v48 = vpop.f32.mrb[4].mxu0  ;;  %v3721_v49 = vpop.f32.mrb[4].mxu1 }
 0x10c   :  { %v3723_v50 = vpop.f32.mrb[5].mxu0  ;;  %v3725_v51 = vpop.f32.mrb[5].mxu1 }
 0x10d   :  { %v3727_v52 = vpop.f32.mrb[6].mxu0  ;;  %v3729_v53 = vpop.f32.mrb[6].mxu1 }
 0x10e   :  { %v3731_v54 = vpop.f32.mrb[7].mxu0  ;;  %v3733_v55 = vpop.f32.mrb[7].mxu1 }
 0x113   :  { %v3735_v56 = vpop.f32.mrb[8].mxu0  ;;  %v3737_v57 = vpop.f32.mrb[8].mxu1 }
 0x114   :  { %v3739_v58 = vpop.f32.mrb[9].mxu0  ;;  %v3741_v59 = vpop.f32.mrb[9].mxu1 }
 0x115   :  { %v3743_v60 = vpop.f32.mrb[10].mxu0  ;;  %v3745_v61 = vpop.f32.mrb[10].mxu1 }
 0x116   :  { %v3747_v62 = vpop.f32.mrb[11].mxu0  ;;  %v3749_v63 = vpop.f32.mrb[11].mxu1 }
 0x11b   :  { %v3751_v0 = vpop.f32.mrb[12].mxu0  ;;  %v3753_v1 = vpop.f32.mrb[12].mxu1 }
 0x11c   :  { %v3755_v2 = vpop.f32.mrb[13].mxu0  ;;  %v3757_v3 = vpop.f32.mrb[13].mxu1 }
 0x11d   :  { %v3759_v4 = vpop.f32.mrb[14].mxu0  ;;  %v3761_v5 = vpop.f32.mrb[14].mxu1 }
 0x11e   :  { %v3763_v6 = vpop.f32.mrb[15].mxu0  ;;  %v3765_v7 = vpop.f32.mrb[15].mxu1 }
 0x123   :  { %v3767_v8 = vpop.f32.mrb[16].mxu0  ;;  %v3769_v9 = vpop.f32.mrb[16].mxu1 }
 0x124   :  { %v3771_v10 = vpop.f32.mrb[17].mxu0  ;;  %v3773_v11 = vpop.f32.mrb[17].mxu1 }
 0x125   :  { %v3775_v12 = vpop.f32.mrb[18].mxu0  ;;  %v3777_v13 = vpop.f32.mrb[18].mxu1 }
 0x126   :  { %v3779_v14 = vpop.f32.mrb[19].mxu0  ;;  %v3781_v15 = vpop.f32.mrb[19].mxu1 }
 0x12b   :  { %v3783_v16 = vpop.f32.mrb[20].mxu0  ;;  %v3785_v17 = vpop.f32.mrb[20].mxu1 }
 0x12c   :  { %4145 = vst [vmem:[#allocation10_spill] sm:$0xff] %v3785_v17  ;;  %v3787_v18 = vpop.f32.mrb[21].mxu0  ;;  %v3789_v19 = vpop.f32.mrb[21].mxu1 }
 0x12d   :  { %v3791_v20 = vpop.f32.mrb[22].mxu0  ;;  %v3793_v21 = vpop.f32.mrb[22].mxu1 }
 0x12e   :  { %4146 = vst [vmem:[#allocation11_spill] sm:$0xff] %v3793_v21  ;;  %v3795_v22 = vpop.f32.mrb[23].mxu0  ;;  %v3797_v23 = vpop.f32.mrb[23].mxu1 }
 0x12f   :  { %4147 = vst [vmem:[#allocation12_spill] sm:$0xff] %v3797_v23 }
 0x133   :  { %v3799_v24 = vpop.f32.mrb[24].mxu0  ;;  %v3801_v25 = vpop.f32.mrb[24].mxu1 }
 0x134   :  { %4148 = vst [vmem:[#allocation13_spill] sm:$0xff] %v3801_v25  ;;  %v3803_v26 = vpop.f32.mrb[25].mxu0  ;;  %v3805_v27 = vpop.f32.mrb[25].mxu1 }
 0x135   :  { %4149 = vst [vmem:[#allocation14_spill] sm:$0xff] %v3803_v26  ;;  %4150 = vst [vmem:[#allocation15_spill] sm:$0xff] %v3805_v27  ;;  %v3807_v28 = vpop.f32.mrb[26].mxu0  ;;  %v3809_v29 = vpop.f32.mrb[26].mxu1 }
 0x136   :  { %4151 = vst [vmem:[#allocation16_spill] sm:$0xff] %v3807_v28  ;;  %4152 = vst [vmem:[#allocation17_spill] sm:$0xff] %v3809_v29  ;;  %v3811_v30 = vpop.f32.mrb[27].mxu0  ;;  %v3813_v31 = vpop.f32.mrb[27].mxu1 }
 0x137   :  { %4153 = vst [vmem:[#allocation18_spill] sm:$0xff] %v3813_v31 }
 0x13b   :  { %v3815_v32 = vpop.f32.mrb[28].mxu0  ;;  %v3817_v33 = vpop.f32.mrb[28].mxu1 }
 0x13c   :  { %4154 = vst [vmem:[#allocation19_spill] sm:$0xff] %v3815_v32  ;;  %4155 = vst [vmem:[#allocation20_spill] sm:$0xff] %v3817_v33  ;;  %v3819_v34 = vpop.f32.mrb[29].mxu0  ;;  %v3821_v35 = vpop.f32.mrb[29].mxu1 }
 0x13d   :  { %4156 = vst [vmem:[#allocation21_spill] sm:$0xff] %v3819_v34  ;;  %4157 = vst [vmem:[#allocation22_spill] sm:$0xff] %v3821_v35  ;;  %v3823_v36 = vpop.f32.mrb[30].mxu0  ;;  %v3825_v37 = vpop.f32.mrb[30].mxu1 }
 0x13e   :  { %4158 = vst [vmem:[#allocation23_spill] sm:$0xff] %v3823_v36  ;;  %4159 = vst [vmem:[#allocation24_spill] sm:$0xff] %v3825_v37  ;;  %v3827_v38 = vpop.f32.mrb[31].mxu0  ;;  %v3829_v39 = vpop.f32.mrb[31].mxu1 }
 0x13f   :  { %4160 = vst [vmem:[#allocation25_spill] sm:$0xff] %v3827_v38  ;;  %4161 = vst [vmem:[#allocation26_spill] sm:$0xff] %v3829_v39 }
 0x143   :  { %v3831_v25 = vpop.f32.mrb[32].mxu0  ;;  %v3833_v29 = vpop.f32.mrb[32].mxu1 }
 0x144   :  { %4162 = vst [vmem:[#allocation27_spill] sm:$0xff] %v3831_v25  ;;  %4163 = vst [vmem:[#allocation28_spill] sm:$0xff] %v3833_v29  ;;  %v3835_v31 = vpop.f32.mrb[33].mxu0  ;;  %v3837_v32 = vpop.f32.mrb[33].mxu1 }
 0x145   :  { %4164 = vst [vmem:[#allocation29_spill] sm:$0xff] %v3835_v31  ;;  %4165 = vst [vmem:[#allocation30_spill] sm:$0xff] %v3837_v32  ;;  %v3839_v33 = vpop.f32.mrb[34].mxu0  ;;  %v3841_v34 = vpop.f32.mrb[34].mxu1 }
 0x146   :  { %4166 = vst [vmem:[#allocation31_spill] sm:$0xff] %v3839_v33  ;;  %4167 = vst [vmem:[#allocation32_spill] sm:$0xff] %v3841_v34  ;;  %v3843_v35 = vpop.f32.mrb[35].mxu0  ;;  %v3845_v36 = vpop.f32.mrb[35].mxu1 }
 0x147   :  { %4168 = vst [vmem:[#allocation33_spill] sm:$0xff] %v3843_v35  ;;  %4169 = vst [vmem:[#allocation34_spill] sm:$0xff] %v3845_v36 }
 0x14b   :  { %v3847_v37 = vpop.f32.mrb[36].mxu0  ;;  %v3849_v28 = vpop.f32.mrb[36].mxu1 }
 0x14c   :  { %4170 = vst [vmem:[#allocation35_spill] sm:$0xff] %v3847_v37  ;;  %4171 = vst [vmem:[#allocation36_spill] sm:$0xff] %v3849_v28  ;;  %v3851_v39 = vpop.f32.mrb[37].mxu0  ;;  %v3853_v25 = vpop.f32.mrb[37].mxu1 }
 0x14d   :  { %4172 = vst [vmem:[#allocation37_spill] sm:$0xff] %v3851_v39  ;;  %4173 = vst [vmem:[#allocation38_spill] sm:$0xff] %v3853_v25  ;;  %v3855_v29 = vpop.f32.mrb[38].mxu0  ;;  %v3857_v31 = vpop.f32.mrb[38].mxu1 }
 0x14e   :  { %4174 = vst [vmem:[#allocation39_spill] sm:$0xff] %v3855_v29  ;;  %4175 = vst [vmem:[#allocation40_spill] sm:$0xff] %v3857_v31  ;;  %v3859_v32 = vpop.f32.mrb[39].mxu0  ;;  %v3861_v33 = vpop.f32.mrb[39].mxu1 }
 0x14f   :  { %4176 = vst [vmem:[#allocation41_spill] sm:$0xff] %v3859_v32  ;;  %4177 = vst [vmem:[#allocation42_spill] sm:$0xff] %v3861_v33 }
 0x153   :  { %v3863_v34 = vpop.f32.mrb[40].mxu0  ;;  %v3865_v35 = vpop.f32.mrb[40].mxu1 }
 0x154   :  { %4178 = vst [vmem:[#allocation43_spill] sm:$0xff] %v3863_v34  ;;  %4179 = vst [vmem:[#allocation44_spill] sm:$0xff] %v3865_v35  ;;  %v3867_v36 = vpop.f32.mrb[41].mxu0  ;;  %v3869_v37 = vpop.f32.mrb[41].mxu1 }
 0x155   :  { %4180 = vst [vmem:[#allocation45_spill] sm:$0xff] %v3867_v36  ;;  %4181 = vst [vmem:[#allocation46_spill] sm:$0xff] %v3869_v37  ;;  %v3871_v28 = vpop.f32.mrb[42].mxu0  ;;  %v3873_v39 = vpop.f32.mrb[42].mxu1 }
 0x156   :  { %4182 = vst [vmem:[#allocation47_spill] sm:$0xff] %v3871_v28  ;;  %4183 = vst [vmem:[#allocation48_spill] sm:$0xff] %v3873_v39  ;;  %v3875_v25 = vpop.f32.mrb[43].mxu0  ;;  %v3877_v29 = vpop.f32.mrb[43].mxu1 }
 0x157   :  { %4184 = vst [vmem:[#allocation49_spill] sm:$0xff] %v3875_v25  ;;  %4185 = vst [vmem:[#allocation50_spill] sm:$0xff] %v3877_v29 }
 0x15b   :  { %v3879_v31 = vpop.f32.mrb[44].mxu0  ;;  %v3881_v32 = vpop.f32.mrb[44].mxu1 }
 0x15c   :  { %4186 = vst [vmem:[#allocation51_spill] sm:$0xff] %v3879_v31  ;;  %4187 = vst [vmem:[#allocation52_spill] sm:$0xff] %v3881_v32  ;;  %v3883_v33 = vpop.f32.mrb[45].mxu0  ;;  %v3885_v34 = vpop.f32.mrb[45].mxu1 }
 0x15d   :  { %4188 = vst [vmem:[#allocation53_spill] sm:$0xff] %v3883_v33  ;;  %4189 = vst [vmem:[#allocation54_spill] sm:$0xff] %v3885_v34  ;;  %v3887_v35 = vpop.f32.mrb[46].mxu0  ;;  %v3889_v36 = vpop.f32.mrb[46].mxu1 }
 0x15e   :  { %4190 = vst [vmem:[#allocation55_spill] sm:$0xff] %v3887_v35  ;;  %4191 = vst [vmem:[#allocation56_spill] sm:$0xff] %v3889_v36  ;;  %v3891_v37 = vpop.f32.mrb[47].mxu0  ;;  %v3893_v28 = vpop.f32.mrb[47].mxu1 }
 0x15f   :  { %4192 = vst [vmem:[#allocation57_spill] sm:$0xff] %v3891_v37  ;;  %4193 = vst [vmem:[#allocation58_spill] sm:$0xff] %v3893_v28 }
 0x163   :  { %v3895_v39 = vpop.f32.mrb[48].mxu0  ;;  %v3059_v25 = vpop.f32.mrb[48].mxu1 }
 0x164   :  { %4194 = vst [vmem:[#allocation59_spill] sm:$0xff] %v3895_v39  ;;  %v3899_v31 = vpop.f32.mrb[49].mxu0  ;;  %v3901_v32 = vpop.f32.mrb[49].mxu1 }
 0x165   :  { %4195 = vst [vmem:[#allocation60_spill] sm:$0xff] %v3899_v31  ;;  %4196 = vst [vmem:[#allocation61_spill] sm:$0xff] %v3901_v32  ;;  %v2960_v33 = vpop.f32.mrb[50].mxu0  ;;  %v3060_v34 = vpop.f32.mrb[50].mxu1 }
 0x166   :  { %v1867_v35 = vmax.f32 %v3703_v40, %v2960_v33  ;;  %v3904_v38 = vpop.f32.mrb[51].mxu0  ;;  %v1673_v36 = vpop.f32.mrb[51].mxu1  ;;  %v3911_v40 = vld [vmem:[#allocation4] ss:$0 sm:$0xff] }
 0x167   :  { %4197 = vst [vmem:[#allocation62_spill] sm:$0xff] %v3904_v38 }
 0x168   :  { %v1868_v37 = vmax.f32 %v1867_v35, %v3709_v43 }
 0x16a   :  { %v1869_v17 = vmax.f32 %v1868_v37, %v1673_v36 }
 0x16b   :  { %v2963_v27 = vpop.f32.mrb[52].mxu0  ;;  %v3063_v26 = vpop.f32.mrb[52].mxu1 }
 0x16c   :  { %v1876_v29 = vmax.f32 %v3731_v54, %v2963_v27  ;;  %v1286_v31 = vpop.f32.mrb[53].mxu0  ;;  %v1686_v39 = vpop.f32.mrb[53].mxu1  ;;  %v2017_v27 = vadd.f32 %v3911_v40, %v1869_v17 }
 0x16d   :  { %v1870_v32 = vmax.f32 %v3711_v44, %v1286_v31  ;;  %v2964_v46 = vpop.f32.mrb[54].mxu0  ;;  %v3064_v23 = vpop.f32.mrb[54].mxu1 }
 0x16e   :  { %v1879_v33 = vmax.f32 %v3719_v48, %v2964_v46  ;;  %v1289_v21 = vpop.f32.mrb[55].mxu0  ;;  %v1877_v28 = vmax.f32 %v1876_v29, %v3713_v45  ;;  %v1689_v38 = vpop.f32.mrb[55].mxu1 }
 0x16f   :  { %v1871_v43 = vmax.f32 %v1870_v32, %v3717_v47  ;;  %v1873_v35 = vmax.f32 %v3723_v50, %v1289_v21  ;;  %v2066_v21 = vmax.f32 %v2017_v27, 0.0 }
 0x170   :  { %v1878_v36 = vmax.f32 %v1877_v28, %v1686_v39  ;;  %v1880_v54 = vmax.f32 %v1879_v33, %v3725_v51 }
 0x171   :  { %v1872_v44 = vmax.f32 %v1871_v43, %v3059_v25  ;;  %v1874_v31 = vmax.f32 %v1873_v35, %v3705_v41 }
 0x172   :  { %v2020_v37 = vadd.f32 %v3911_v40, %v1878_v36  ;;  %v1881_v42 = vmax.f32 %v1880_v54, %v1689_v38 }
 0x173   :  { %v2018_v46 = vadd.f32 %v3911_v40, %v1872_v44  ;;  %v1875_v48 = vmax.f32 %v1874_v31, %v3060_v34  ;;  %v2967_v45 = vpop.f32.mrb[56].mxu0  ;;  %v3067_v29 = vpop.f32.mrb[56].mxu1 }
 0x174   :  { %v1888_v47 = vmax.f32 %v3747_v62, %v2967_v45  ;;  %v1302_v32 = vpop.f32.mrb[57].mxu0  ;;  %v1702_v50 = vpop.f32.mrb[57].mxu1  ;;  %v2069_v39 = vmax.f32 %v2020_v37, 0.0 }
 0x175   :  { %v2067_v28 = vmax.f32 %v2018_v46, 0.0  ;;  %v2019_v51 = vadd.f32 %v3911_v40, %v1875_v48  ;;  %v1882_v17 = vmax.f32 %v3727_v52, %v1302_v32  ;;  %v2968_v25 = vpop.f32.mrb[58].mxu0  ;;  %v3068_v41 = vpop.f32.mrb[58].mxu1 }
 0x176   :  { %v1891_v38 = vmax.f32 %v3735_v56, %v2968_v25  ;;  %v1305_v33 = vpop.f32.mrb[59].mxu0  ;;  %v1889_v34 = vmax.f32 %v1888_v47, %v3729_v53  ;;  %v1705_v43 = vpop.f32.mrb[59].mxu1  ;;  %v2021_v56 = vadd.f32 %v3911_v40, %v1881_v42 }
 0x177   :  { %v2670_v35 = vpack.c.bf16 %v2067_v28, %v2066_v21  ;;  %v2068_v36 = vmax.f32 %v2019_v51, 0.0  ;;  %v1883_v62 = vmax.f32 %v1882_v17, %v3733_v55  ;;  %v1885_v54 = vmax.f32 %v3739_v58, %v1305_v33 }
 0x178   :  { %v1890_v27 = vmax.f32 %v1889_v34, %v1702_v50  ;;  %v1892_v44 = vmax.f32 %v1891_v38, %v3741_v59  ;;  %v2070_v42 = vmax.f32 %v2021_v56, 0.0 }
 0x179   :  { %2782 = vst [vmem:[%s4138_s3 + $0x8] sm:$0xff] %v2670_v35   ;;  %v2675_v52 = vpack.c.bf16 %v2069_v39, %v2068_v36  ;;  %v1884_v31 = vmax.f32 %v1883_v62, %v3063_v26  ;;  %v1886_v53 = vmax.f32 %v1885_v54, %v3721_v49 }
 0x17a   :  { %v2024_v37 = vadd.f32 %v3911_v40, %v1890_v27  ;;  %v1893_v46 = vmax.f32 %v1892_v44, %v1705_v43 }
 0x17b   :  { %2783 = vst [vmem:[%s4138_s3 + $0x10] sm:$0xff] %v2675_v52   ;;  %v2022_v55 = vadd.f32 %v3911_v40, %v1884_v31  ;;  %v1887_v58 = vmax.f32 %v1886_v53, %v3064_v23  ;;  %v2971_v59 = vpop.f32.mrb[60].mxu0  ;;  %v3071_v48 = vpop.f32.mrb[60].mxu1 }
 0x17c   :  { %v1900_v45 = vmax.f32 %v3763_v6, %v2971_v59  ;;  %v1318_v47 = vpop.f32.mrb[61].mxu0  ;;  %v1718_v32 = vpop.f32.mrb[61].mxu1  ;;  %v2073_v51 = vmax.f32 %v2024_v37, 0.0 }
 0x17d   :  { %v2071_v26 = vmax.f32 %v2022_v55, 0.0  ;;  %v2023_v49 = vadd.f32 %v3911_v40, %v1887_v58  ;;  %v1894_v50 = vmax.f32 %v3743_v60, %v1318_v47  ;;  %v2972_v21 = vpop.f32.mrb[62].mxu0  ;;  %v3072_v28 = vpop.f32.mrb[62].mxu1 }
 0x17e   :  { %v1903_v17 = vmax.f32 %v3751_v0, %v2972_v21  ;;  %v1321_v25 = vpop.f32.mrb[63].mxu0  ;;  %v1901_v23 = vmax.f32 %v1900_v45, %v3745_v61  ;;  %v1721_v39 = vpop.f32.mrb[63].mxu1  ;;  %v2025_v0 = vadd.f32 %v3911_v40, %v1893_v46 }
 0x17f   :  { %v2680_v38 = vpack.c.bf16 %v2071_v26, %v2070_v42  ;;  %v2072_v33 = vmax.f32 %v2023_v49, 0.0  ;;  %v1895_v6 = vmax.f32 %v1894_v50, %v3749_v63  ;;  %v1897_v34 = vmax.f32 %v3755_v2, %v1321_v25 }
 0x180   :  { %v1902_v43 = vmax.f32 %v1901_v23, %v1718_v32  ;;  %v1904_v35 = vmax.f32 %v1903_v17, %v3757_v3  ;;  %v2074_v31 = vmax.f32 %v2025_v0, 0.0 }
 0x181   :  { %2784 = vst [vmem:[%s4138_s3 + $0x18] sm:$0xff] %v2680_v38   ;;  %v2685_v60 = vpack.c.bf16 %v2073_v51, %v2072_v33  ;;  %v1896_v36 = vmax.f32 %v1895_v6, %v3067_v29  ;;  %v1898_v61 = vmax.f32 %v1897_v34, %v3737_v57 }
 0x182   :  { %v2028_v62 = vadd.f32 %v3911_v40, %v1902_v43  ;;  %v1905_v54 = vmax.f32 %v1904_v35, %v1721_v39 }
 0x183   :  { %2785 = vst [vmem:[%s4138_s3 + $0x20] sm:$0xff] %v2685_v60   ;;  %v2026_v63 = vadd.f32 %v3911_v40, %v1896_v36  ;;  %v1899_v2 = vmax.f32 %v1898_v61, %v3068_v41  ;;  %v2975_v3 = vpop.f32.mrb[64].mxu0  ;;  %v3075_v27 = vpop.f32.mrb[64].mxu1 }
 0x184   :  { %v1912_v44 = vmax.f32 %v3779_v14, %v2975_v3  ;;  %v1334_v52 = vpop.f32.mrb[65].mxu0  ;;  %v1734_v56 = vpop.f32.mrb[65].mxu1  ;;  %v2077_v55 = vmax.f32 %v2028_v62, 0.0 }
 0x185   :  { %v2075_v29 = vmax.f32 %v2026_v63, 0.0  ;;  %v2027_v57 = vadd.f32 %v3911_v40, %v1899_v2  ;;  %v1906_v53 = vmax.f32 %v3759_v4, %v1334_v52  ;;  %v2976_v37 = vpop.f32.mrb[66].mxu0  ;;  %v3076_v46 = vpop.f32.mrb[66].mxu1 }
 0x186   :  { %v1915_v58 = vmax.f32 %v3767_v8, %v2976_v37  ;;  %v1337_v59 = vpop.f32.mrb[67].mxu0  ;;  %v1913_v41 = vmax.f32 %v1912_v44, %v3761_v5  ;;  %v1737_v45 = vpop.f32.mrb[67].mxu1  ;;  %v2029_v8 = vadd.f32 %v3911_v40, %v1905_v54 }
 0x187   :  { %v2690_v47 = vpack.c.bf16 %v2075_v29, %v2074_v31  ;;  %v2076_v32 = vmax.f32 %v2027_v57, 0.0  ;;  %v1907_v14 = vmax.f32 %v1906_v53, %v3765_v7  ;;  %v1909_v42 = vmax.f32 %v3771_v10, %v1337_v59 }
 0x188   :  { %v1914_v26 = vmax.f32 %v1913_v41, %v1734_v56  ;;  %v1916_v49 = vmax.f32 %v1915_v58, %v3773_v11  ;;  %v2078_v38 = vmax.f32 %v2029_v8, 0.0  ;;  %v4201_v8 = vld [vmem:[#allocation15_spill] sm:$0xff] }
 0x189   :  { %2786 = vst [vmem:[%s4138_s3 + $0x28] sm:$0xff] %v2690_v47   ;;  %v2695_v4 = vpack.c.bf16 %v2077_v55, %v2076_v32  ;;  %v1908_v50 = vmax.f32 %v1907_v14, %v3071_v48  ;;  %v1910_v5 = vmax.f32 %v1909_v42, %v3753_v1 }
 0x18a   :  { %v2032_v21 = vadd.f32 %v3911_v40, %v1914_v26  ;;  %v1917_v51 = vmax.f32 %v1916_v49, %v1737_v45  ;;  %v4198_v45 = vld [vmem:[#allocation11_spill] sm:$0xff]  ;;  %v4200_v26 = vld [vmem:[#allocation14_spill] sm:$0xff] }
 0x18b   :  { %2787 = vst [vmem:[%s4138_s3 + $0x30] sm:$0xff] %v2695_v4   ;;  %v2030_v7 = vadd.f32 %v3911_v40, %v1908_v50  ;;  %v1911_v10 = vmax.f32 %v1910_v5, %v3072_v28  ;;  %v2979_v11 = vpop.f32.mrb[68].mxu0  ;;  %v3079_v17 = vpop.f32.mrb[68].mxu1 }
 0x18c   :  { %v1924_v25 = vmax.f32 %v3795_v22, %v2979_v11  ;;  %v1350_v23 = vpop.f32.mrb[69].mxu0  ;;  %v1750_v39 = vpop.f32.mrb[69].mxu1  ;;  %v2081_v43 = vmax.f32 %v2032_v21, 0.0  ;;  %v4202_v21 = vld [vmem:[#allocation10_spill] sm:$0xff] }
 0x18d   :  { %v2079_v48 = vmax.f32 %v2030_v7, 0.0  ;;  %v2031_v1 = vadd.f32 %v3911_v40, %v1911_v10  ;;  %v1918_v33 = vmax.f32 %v3775_v12, %v1350_v23  ;;  %v2980_v6 = vpop.f32.mrb[70].mxu0  ;;  %v3080_v34 = vpop.f32.mrb[70].mxu1 }
 0x18e   :  { %v1927_v35 = vmax.f32 %v3783_v16, %v2980_v6  ;;  %v1353_v60 = vpop.f32.mrb[71].mxu0  ;;  %v1925_v28 = vmax.f32 %v1924_v25, %v3777_v13  ;;  %v1753_v0 = vpop.f32.mrb[71].mxu1  ;;  %v2033_v16 = vadd.f32 %v3911_v40, %v1917_v51 }
 0x18f   :  { %v2700_v36 = vpack.c.bf16 %v2079_v48, %v2078_v38  ;;  %v2080_v61 = vmax.f32 %v2031_v1, 0.0  ;;  %v1919_v22 = vmax.f32 %v1918_v33, %v3781_v15  ;;  %v1921_v62 = vmax.f32 %v3787_v18, %v1353_v60  ;;  %v4203_v38 = vld [vmem:[#allocation25_spill] sm:$0xff] }
 0x190   :  { %v1926_v54 = vmax.f32 %v1925_v28, %v1750_v39  ;;  %v1928_v63 = vmax.f32 %v1927_v35, %v3789_v19  ;;  %v2082_v57 = vmax.f32 %v2033_v16, 0.0  ;;  %v4204_v35 = vld [vmem:[#allocation16_spill] sm:$0xff] }
 0x191   :  { %2788 = vst [vmem:[%s4138_s3 + $0x38] sm:$0xff] %v2700_v36   ;;  %v2705_v12 = vpack.c.bf16 %v2081_v43, %v2080_v61  ;;  %v1920_v2 = vmax.f32 %v1919_v22, %v3075_v27  ;;  %v1922_v13 = vmax.f32 %v1921_v62, %v3769_v9  ;;  %v4205_v61 = vld [vmem:[#allocation19_spill] sm:$0xff] }
 0x192   :  { %v2036_v3 = vadd.f32 %v3911_v40, %v1926_v54  ;;  %v1929_v44 = vmax.f32 %v1928_v63, %v1753_v0  ;;  %v4206_v54 = vld [vmem:[#allocation17_spill] sm:$0xff] }
 0x193   :  { %2789 = vst [vmem:[%s4138_s3 + $0x40] sm:$0xff] %v2705_v12   ;;  %v2034_v15 = vadd.f32 %v3911_v40, %v1920_v2  ;;  %v1923_v18 = vmax.f32 %v1922_v13, %v3076_v46  ;;  %v2983_v19 = vpop.f32.mrb[72].mxu0  ;;  %v3083_v52 = vpop.f32.mrb[72].mxu1  ;;  %v4207_v2 = vld [vmem:[#allocation18_spill] sm:$0xff] }
 0x194   :  { %v1936_v56 = vmax.f32 %v3811_v30, %v2983_v19  ;;  %v1366_v31 = vpop.f32.mrb[73].mxu0  ;;  %v1766_v29 = vpop.f32.mrb[73].mxu1  ;;  %v2085_v58 = vmax.f32 %v2036_v3, 0.0  ;;  %v4199_v30 = vld [vmem:[#allocation12_spill] sm:$0xff]  ;;  %v4208_v3 = vld [vmem:[#allocation21_spill] sm:$0xff] }
 0x195   :  { %v2083_v27 = vmax.f32 %v2034_v15, 0.0  ;;  %v2035_v9 = vadd.f32 %v3911_v40, %v1923_v18  ;;  %v1930_v53 = vmax.f32 %v3791_v20, %v1366_v31  ;;  %v2984_v37 = vpop.f32.mrb[74].mxu0  ;;  %v3084_v55 = vpop.f32.mrb[74].mxu1  ;;  %v4209_v18 = vld [vmem:[#allocation22_spill] sm:$0xff] }
 0x196   :  { %v1939_v59 = vmax.f32 %v3799_v24, %v2984_v37  ;;  %v1369_v41 = vpop.f32.mrb[75].mxu0  ;;  %v1937_v46 = vmax.f32 %v1936_v56, %v4198_v45  ;;  %v1769_v47 = vpop.f32.mrb[75].mxu1  ;;  %v2037_v24 = vadd.f32 %v3911_v40, %v1929_v44  ;;  %v4211_v45 = vld [vmem:[#allocation33_spill] sm:$0xff] }
 0x197   :  { %v2710_v32 = vpack.c.bf16 %v2083_v27, %v2082_v57  ;;  %v2084_v14 = vmax.f32 %v2035_v9, 0.0  ;;  %v1931_v42 = vmax.f32 %v1930_v53, %v4199_v30  ;;  %v1933_v49 = vmax.f32 %v4200_v26, %v1369_v41  ;;  %v4210_v57 = vld [vmem:[#allocation13_spill] sm:$0xff] }
 0x198   :  { %v1938_v4 = vmax.f32 %v1937_v46, %v1766_v29  ;;  %v1940_v50 = vmax.f32 %v1939_v59, %v4201_v8  ;;  %v2086_v6 = vmax.f32 %v2037_v24, 0.0 }
 0x199   :  { %2790 = vst [vmem:[%s4138_s3 + $0x48] sm:$0xff] %v2710_v32   ;;  %v2715_v20 = vpack.c.bf16 %v2085_v58, %v2084_v14  ;;  %v1932_v5 = vmax.f32 %v1931_v42, %v3079_v17  ;;  %v1934_v51 = vmax.f32 %v1933_v49, %v4202_v21  ;;  %v4212_v42 = vld [vmem:[#allocation23_spill] sm:$0xff] }
 0x19a   :  { %v2040_v7 = vadd.f32 %v3911_v40, %v1938_v4  ;;  %v1941_v10 = vmax.f32 %v1940_v50, %v1769_v47  ;;  %v4213_v50 = vld [vmem:[#allocation27_spill] sm:$0xff] }
 0x19b   :  { %2791 = vst [vmem:[%s4138_s3 + $0x50] sm:$0xff] %v2715_v20   ;;  %v2038_v11 = vadd.f32 %v3911_v40, %v1932_v5  ;;  %v1935_v25 = vmax.f32 %v1934_v51, %v3080_v34  ;;  %v2987_v23 = vpop.f32.mrb[76].mxu0  ;;  %v3087_v39 = vpop.f32.mrb[76].mxu1  ;;  %v4214_v5 = vld [vmem:[#allocation24_spill] sm:$0xff] }
 0x19c   :  { %v1948_v48 = vmax.f32 %v4203_v38, %v2987_v23  ;;  %v1382_v1 = vpop.f32.mrb[77].mxu0  ;;  %v1782_v33 = vpop.f32.mrb[77].mxu1  ;;  %v2089_v36 = vmax.f32 %v2040_v7, 0.0  ;;  %v2041_v31 = vadd.f32 %v3911_v40, %v1941_v10  ;;  %v4215_v10 = vld [vmem:[#allocation26_spill] sm:$0xff] }
 0x19d   :  { %v2087_v17 = vmax.f32 %v2038_v11, 0.0  ;;  %v2039_v43 = vadd.f32 %v3911_v40, %v1935_v25  ;;  %v1942_v60 = vmax.f32 %v4204_v35, %v1382_v1  ;;  %v2988_v28 = vpop.f32.mrb[78].mxu0  ;;  %v3088_v0 = vpop.f32.mrb[78].mxu1  ;;  %v4216_v25 = vld [vmem:[#allocation29_spill] sm:$0xff] }
 0x19e   :  { %v1951_v22 = vmax.f32 %v4205_v61, %v2988_v28  ;;  %v1385_v62 = vpop.f32.mrb[79].mxu0  ;;  %v1949_v34 = vmax.f32 %v1948_v48, %v4206_v54  ;;  %v1785_v63 = vpop.f32.mrb[79].mxu1  ;;  %v2090_v14 = vmax.f32 %v2041_v31, 0.0  ;;  %v4217_v48 = vld [vmem:[#allocation30_spill] sm:$0xff]  ;;  %v4219_v54 = vld [vmem:[#allocation41_spill] sm:$0xff] }
 0x19f   :  { %v2720_v12 = vpack.c.bf16 %v2087_v17, %v2086_v6  ;;  %v2088_v16 = vmax.f32 %v2039_v43, 0.0  ;;  %v1943_v13 = vmax.f32 %v1942_v60, %v4207_v2  ;;  %v1945_v44 = vmax.f32 %v4208_v3, %v1385_v62  ;;  %v4218_v43 = vld [vmem:[#allocation20_spill] sm:$0xff] }
 0x1a0   :  { %v1950_v15 = vmax.f32 %v1949_v34, %v1782_v33  ;;  %v1952_v19 = vmax.f32 %v1951_v22, %v4209_v18 }
 0x1a1   :  { %2792 = vst [vmem:[%s4138_s3 + $0x58] sm:$0xff] %v2720_v12   ;;  %v2725_v56 = vpack.c.bf16 %v2089_v36, %v2088_v16  ;;  %v1944_v29 = vmax.f32 %v1943_v13, %v3083_v52  ;;  %v1946_v27 = vmax.f32 %v1945_v44, %v4210_v57  ;;  %v4220_v13 = vld [vmem:[#allocation31_spill] sm:$0xff] }
 0x1a2   :  { %v2044_v9 = vadd.f32 %v3911_v40, %v1950_v15  ;;  %v1953_v53 = vmax.f32 %v1952_v19, %v1785_v63  ;;  %v4221_v19 = vld [vmem:[#allocation35_spill] sm:$0xff] }
 0x1a3   :  { %2793 = vst [vmem:[%s4138_s3 + $0x60] sm:$0xff] %v2725_v56   ;;  %v2042_v37 = vadd.f32 %v3911_v40, %v1944_v29  ;;  %v1947_v58 = vmax.f32 %v1946_v27, %v3084_v55  ;;  %v2991_v59 = vpop.f32.mrb[80].mxu0  ;;  %v3091_v41 = vpop.f32.mrb[80].mxu1  ;;  %v4222_v29 = vld [vmem:[#allocation32_spill] sm:$0xff] }
 0x1a4   :  { %v1960_v46 = vmax.f32 %v4211_v45, %v2991_v59  ;;  %v1398_v47 = vpop.f32.mrb[81].mxu0  ;;  %v1798_v32 = vpop.f32.mrb[81].mxu1  ;;  %v2093_v8 = vmax.f32 %v2044_v9, 0.0  ;;  %v2045_v6 = vadd.f32 %v3911_v40, %v1953_v53  ;;  %v4223_v53 = vld [vmem:[#allocation34_spill] sm:$0xff] }
 0x1a5   :  { %v2091_v52 = vmax.f32 %v2042_v37, 0.0  ;;  %v2043_v30 = vadd.f32 %v3911_v40, %v1947_v58  ;;  %v1954_v26 = vmax.f32 %v4212_v42, %v1398_v47  ;;  %v2992_v49 = vpop.f32.mrb[82].mxu0  ;;  %v3092_v4 = vpop.f32.mrb[82].mxu1  ;;  %v4224_v58 = vld [vmem:[#allocation37_spill] sm:$0xff] }
 0x1a6   :  { %v1963_v20 = vmax.f32 %v4213_v50, %v2992_v49  ;;  %v1401_v24 = vpop.f32.mrb[83].mxu0  ;;  %v1961_v55 = vmax.f32 %v1960_v46, %v4214_v5  ;;  %v1801_v21 = vpop.f32.mrb[83].mxu1  ;;  %v2094_v16 = vmax.f32 %v2045_v6, 0.0  ;;  %v4225_v46 = vld [vmem:[#allocation38_spill] sm:$0xff]  ;;  %v4227_v5 = vld [vmem:[#allocation49_spill] sm:$0xff] }
 0x1a7   :  { %v2730_v51 = vpack.c.bf16 %v2091_v52, %v2090_v14  ;;  %v2092_v7 = vmax.f32 %v2043_v30, 0.0  ;;  %v1955_v11 = vmax.f32 %v1954_v26, %v4215_v10  ;;  %v1957_v23 = vmax.f32 %v4216_v25, %v1401_v24  ;;  %v4226_v30 = vld [vmem:[#allocation28_spill] sm:$0xff] }
 0x1a8   :  { %v1962_v38 = vmax.f32 %v1961_v55, %v1798_v32  ;;  %v1964_v1 = vmax.f32 %v1963_v20, %v4217_v48 }
 0x1a9   :  { %2794 = vst [vmem:[%s4138_s3 + $0x68] sm:$0xff] %v2730_v51   ;;  %v2735_v33 = vpack.c.bf16 %v2093_v8, %v2092_v7  ;;  %v1956_v17 = vmax.f32 %v1955_v11, %v3087_v39  ;;  %v1958_v35 = vmax.f32 %v1957_v23, %v4218_v43  ;;  %v4228_v11 = vld [vmem:[#allocation39_spill] sm:$0xff] }
 0x1aa   :  { %v2048_v60 = vadd.f32 %v3911_v40, %v1962_v38  ;;  %v1965_v28 = vmax.f32 %v1964_v1, %v1801_v21  ;;  %v4229_v1 = vld [vmem:[#allocation43_spill] sm:$0xff] }
 0x1ab   :  { %2795 = vst [vmem:[%s4138_s3 + $0x70] sm:$0xff] %v2735_v33   ;;  %v2046_v36 = vadd.f32 %v3911_v40, %v1956_v17  ;;  %v1959_v61 = vmax.f32 %v1958_v35, %v3088_v0  ;;  %v2995_v22 = vpop.f32.mrb[84].mxu0  ;;  %v3095_v62 = vpop.f32.mrb[84].mxu1  ;;  %v4230_v17 = vld [vmem:[#allocation40_spill] sm:$0xff] }
 0x1ac   :  { %v1972_v34 = vmax.f32 %v4219_v54, %v2995_v22  ;;  %v1414_v63 = vpop.f32.mrb[85].mxu0  ;;  %v1814_v12 = vpop.f32.mrb[85].mxu1  ;;  %v2097_v18 = vmax.f32 %v2048_v60, 0.0  ;;  %v2049_v14 = vadd.f32 %v3911_v40, %v1965_v28  ;;  %v4231_v28 = vld [vmem:[#allocation42_spill] sm:$0xff] }
 0x1ad   :  { %v2095_v39 = vmax.f32 %v2046_v36, 0.0  ;;  %v2047_v2 = vadd.f32 %v3911_v40, %v1959_v61  ;;  %v1966_v3 = vmax.f32 %v4220_v13, %v1414_v63  ;;  %v2996_v44 = vpop.f32.mrb[86].mxu0  ;;  %v3096_v15 = vpop.f32.mrb[86].mxu1  ;;  %v4232_v61 = vld [vmem:[#allocation45_spill] sm:$0xff] }
 0x1ae   :  { %v1975_v56 = vmax.f32 %v4221_v19, %v2996_v44  ;;  %v1417_v31 = vpop.f32.mrb[87].mxu0  ;;  %v1973_v0 = vmax.f32 %v1972_v34, %v4222_v29  ;;  %v1817_v57 = vpop.f32.mrb[87].mxu1  ;;  %v2098_v7 = vmax.f32 %v2049_v14, 0.0  ;;  %v4233_v34 = vld [vmem:[#allocation46_spill] sm:$0xff]  ;;  %v4235_v29 = vld [vmem:[#allocation57_spill] sm:$0xff] }
 0x1af   :  { %v2740_v27 = vpack.c.bf16 %v2095_v39, %v2094_v16  ;;  %v2096_v9 = vmax.f32 %v2047_v2, 0.0  ;;  %v1967_v37 = vmax.f32 %v1966_v3, %v4223_v53  ;;  %v1969_v59 = vmax.f32 %v4224_v58, %v1417_v31  ;;  %v4234_v2 = vld [vmem:[#allocation36_spill] sm:$0xff] }
 0x1b0   :  { %v1974_v45 = vmax.f32 %v1973_v0, %v1814_v12  ;;  %v1976_v47 = vmax.f32 %v1975_v56, %v4225_v46 }
 0x1b1   :  { %2796 = vst [vmem:[%s4138_s3 + $0x78] sm:$0xff] %v2740_v27   ;;  %v2745_v32 = vpack.c.bf16 %v2097_v18, %v2096_v9  ;;  %v1968_v52 = vmax.f32 %v1967_v37, %v3091_v41  ;;  %v1970_v42 = vmax.f32 %v1969_v59, %v4226_v30  ;;  %v4236_v37 = vld [vmem:[#allocation47_spill] sm:$0xff] }
 0x1b2   :  { %v2052_v26 = vadd.f32 %v3911_v40, %v1974_v45  ;;  %v1977_v49 = vmax.f32 %v1976_v47, %v1817_v57  ;;  %v4237_v47 = vld [vmem:[#allocation51_spill] sm:$0xff] }
 0x1b3   :  { %2797 = vst [vmem:[%s4138_s3 + $0x80] sm:$0xff] %v2745_v32   ;;  %v2050_v8 = vadd.f32 %v3911_v40, %v1968_v52  ;;  %v1971_v50 = vmax.f32 %v1970_v42, %v3092_v4  ;;  %v2999_v20 = vpop.f32.mrb[88].mxu0  ;;  %v3099_v24 = vpop.f32.mrb[88].mxu1  ;;  %v4238_v52 = vld [vmem:[#allocation48_spill] sm:$0xff] }
 0x1b4   :  { %v1984_v55 = vmax.f32 %v4227_v5, %v2999_v20  ;;  %v1430_v21 = vpop.f32.mrb[89].mxu0  ;;  %v1830_v51 = vpop.f32.mrb[89].mxu1  ;;  %v2101_v48 = vmax.f32 %v2052_v26, 0.0  ;;  %v2053_v16 = vadd.f32 %v3911_v40, %v1977_v49  ;;  %v4239_v49 = vld [vmem:[#allocation50_spill] sm:$0xff] }
 0x1b5   :  { %v2099_v41 = vmax.f32 %v2050_v8, 0.0  ;;  %v2051_v10 = vadd.f32 %v3911_v40, %v1971_v50  ;;  %v1978_v25 = vmax.f32 %v4228_v11, %v1430_v21  ;;  %v3000_v23 = vpop.f32.mrb[90].mxu0  ;;  %v3100_v38 = vpop.f32.mrb[90].mxu1  ;;  %v4240_v50 = vld [vmem:[#allocation53_spill] sm:$0xff] }
 0x1b6   :  { %v1987_v33 = vmax.f32 %v4229_v1, %v3000_v23  ;;  %v1433_v6 = vpop.f32.mrb[91].mxu0  ;;  %v1985_v4 = vmax.f32 %v1984_v55, %v4230_v17  ;;  %v1833_v43 = vpop.f32.mrb[91].mxu1  ;;  %v2102_v9 = vmax.f32 %v2053_v16, 0.0  ;;  %v4241_v55 = vld [vmem:[#allocation54_spill] sm:$0xff]  ;;  %v4249_v16 = vld [vmem:[#allocation59_spill] sm:$0xff] }
 0x1b7   :  { %v2750_v35 = vpack.c.bf16 %v2099_v41, %v2098_v7  ;;  %v2100_v60 = vmax.f32 %v2051_v10, 0.0  ;;  %v1979_v36 = vmax.f32 %v1978_v25, %v4231_v28  ;;  %v1981_v22 = vmax.f32 %v4232_v61, %v1433_v6  ;;  %v4242_v10 = vld [vmem:[#allocation44_spill] sm:$0xff]  ;;  %v4244_v17 = vld [vmem:[#allocation62_spill] sm:$0xff] }
 0x1b8   :  { %v1986_v54 = vmax.f32 %v1985_v4, %v1830_v51  ;;  %v1988_v63 = vmax.f32 %v1987_v33, %v4233_v34  ;;  %v4243_v6 = vld [vmem:[#allocation8_spill] sm:$0xff] }
 0x1b9   :  { %2798 = vst [vmem:[%s4138_s3 + $0x88] sm:$0xff] %v2750_v35   ;;  %v2755_v12 = vpack.c.bf16 %v2101_v48, %v2100_v60  ;;  %v1980_v39 = vmax.f32 %v1979_v36, %v3095_v62  ;;  %v1982_v13 = vmax.f32 %v1981_v22, %v4234_v2  ;;  %v4245_v4 = vmax.f32 %v4243_v6, %v4244_v17  ;;  %v4246_v36 = vld [vmem:[#allocation55_spill] sm:$0xff]  ;;  %v4247_v34 = vld [vmem:[#allocation56_spill] sm:$0xff] }
 0x1ba   :  { %v2056_v3 = vadd.f32 %v3911_v40, %v1986_v54  ;;  %v1989_v44 = vmax.f32 %v1988_v63, %v1833_v43 }
 0x1bb   :  { %2799 = vst [vmem:[%s4138_s3 + $0x90] sm:$0xff] %v2755_v12   ;;  %v2054_v18 = vadd.f32 %v3911_v40, %v1980_v39  ;;  %v1983_v19 = vmax.f32 %v1982_v13, %v3096_v15  ;;  %v3003_v56 = vpop.f32.mrb[92].mxu0  ;;  %v3103_v31 = vpop.f32.mrb[92].mxu1  ;;  %v4248_v12 = vld [vmem:[#allocation9_spill] sm:$0xff] }
 0x1bc   :  { %v1996_v0 = vmax.f32 %v4235_v29, %v3003_v56  ;;  %v1446_v57 = vpop.f32.mrb[93].mxu0  ;;  %v1846_v27 = vpop.f32.mrb[93].mxu1  ;;  %v2105_v46 = vmax.f32 %v2056_v3, 0.0  ;;  %v2057_v7 = vadd.f32 %v3911_v40, %v1989_v44  ;;  %v4250_v39 = vmax.f32 %v4248_v12, %v4249_v16  ;;  %v4251_v44 = vld [vmem:[#allocation58_spill] sm:$0xff] }
 0x1bd   :  { %v2103_v62 = vmax.f32 %v2054_v18, 0.0  ;;  %v2055_v53 = vadd.f32 %v3911_v40, %v1983_v19  ;;  %v1990_v58 = vmax.f32 %v4236_v37, %v1446_v57  ;;  %v3004_v59 = vpop.f32.mrb[94].mxu0  ;;  %v3104_v45 = vpop.f32.mrb[94].mxu1  ;;  %v4252_v19 = vld [vmem:[#allocation60_spill] sm:$0xff] }
 0x1be   :  { %v1999_v32 = vmax.f32 %v4237_v47, %v3004_v59  ;;  %v1449_v14 = vpop.f32.mrb[95].mxu0  ;;  %v1997_v15 = vmax.f32 %v1996_v0, %v4238_v52  ;;  %v1849_v30 = vpop.f32.mrb[95].mxu1  ;;  %v2106_v60 = vmax.f32 %v2057_v7, 0.0  ;;  %v4253_v0 = vld [vmem:[#allocation61_spill] sm:$0xff] }
 0x1bf   :  { %v2760_v42 = vpack.c.bf16 %v2103_v62, %v2102_v9  ;;  %v2104_v26 = vmax.f32 %v2055_v53, 0.0  ;;  %v1991_v8 = vmax.f32 %v1990_v58, %v4239_v49  ;;  %v1993_v20 = vmax.f32 %v4240_v50, %v1449_v14  ;;  %v4254_v53 = vld [vmem:[#allocation52_spill] sm:$0xff] }
 0x1c0   :  { %v1998_v5 = vmax.f32 %v1997_v15, %v1846_v27  ;;  %v2000_v21 = vmax.f32 %v1999_v32, %v4241_v55 }
 0x1c1   :  { %2800 = vst [vmem:[%s4138_s3 + $0x98] sm:$0xff] %v2760_v42   ;;  %v2765_v51 = vpack.c.bf16 %v2105_v46, %v2104_v26  ;;  %v1992_v41 = vmax.f32 %v1991_v8, %v3099_v24  ;;  %v1994_v11 = vmax.f32 %v1993_v20, %v4242_v10 }
 0x1c2   :  { %v2060_v25 = vadd.f32 %v3911_v40, %v1998_v5  ;;  %v2001_v23 = vmax.f32 %v2000_v21, %v1849_v30 }
 0x1c3   :  { %2801 = vst [vmem:[%s4138_s3 + $0xa0] sm:$0xff] %v2765_v51   ;;  %v2058_v48 = vadd.f32 %v3911_v40, %v1992_v41  ;;  %v1995_v1 = vmax.f32 %v1994_v11, %v3100_v38  ;;  %v3007_v33 = vpop.f32.mrb[96].mxu0 }
 0x1c4   :  { %v1862_v43 = vmax.f32 %v4245_v4, %v3007_v33  ;;  %v1462_v35 = vpop.f32.mrb[97].mxu0  ;;  %v2109_v54 = vmax.f32 %v2060_v25, 0.0  ;;  %v2061_v9 = vadd.f32 %v3911_v40, %v2001_v23 }
 0x1c5   :  { %v2107_v24 = vmax.f32 %v2058_v48, 0.0  ;;  %v2059_v28 = vadd.f32 %v3911_v40, %v1995_v1  ;;  %v2002_v61 = vmax.f32 %v4246_v36, %v1462_v35  ;;  %v3008_v22 = vpop.f32.mrb[98].mxu0 }
 0x1c6   :  { %v1863_v63 = vmax.f32 %v1862_v43, %v4247_v34  ;;  %v1865_v38 = vmax.f32 %v4250_v39, %v3008_v22  ;;  %v1465_v2 = vpop.f32.mrb[99].mxu0  ;;  %v2110_v14 = vmax.f32 %v2061_v9, 0.0 }
 0x1c7   :  { %v2770_v13 = vpack.c.bf16 %v2107_v24, %v2106_v60  ;;  %v2108_v3 = vmax.f32 %v2059_v28, 0.0  ;;  %v2003_v18 = vmax.f32 %v2002_v61, %v4251_v44  ;;  %v2005_v56 = vmax.f32 %v4252_v19, %v1465_v2 }
 0x1c8   :  { %v2015_v29 = vadd.f32 %v3911_v40, %v1863_v63  ;;  %v1866_v57 = vmax.f32 %v1865_v38, %v4253_v0 }
 0x1c9   :  { %2802 = vst [vmem:[%s4138_s3 + $0xa8] sm:$0xff] %v2770_v13   ;;  %v2775_v27 = vpack.c.bf16 %v2109_v54, %v2108_v3  ;;  %v2004_v62 = vmax.f32 %v2003_v18, %v3103_v31  ;;  %v2006_v37 = vmax.f32 %v2005_v56, %v4254_v53 }
 0x1ca   :  { %v2016_v58 = vadd.f32 %v3911_v40, %v1866_v57  ;;  %v2064_v47 = vmax.f32 %v2015_v29, 0.0 }
 0x1cb   :  { %2803 = vst [vmem:[%s4138_s3 + $0xb0] sm:$0xff] %v2775_v27   ;;  %v2062_v59 = vadd.f32 %v3911_v40, %v2004_v62  ;;  %v2007_v46 = vmax.f32 %v2006_v37, %v3104_v45 }
 0x1cc   :  { %v2065_v32 = vmax.f32 %v2016_v58, 0.0 }
 0x1cd   :  { %v2111_v52 = vmax.f32 %v2062_v59, 0.0  ;;  %v2063_v15 = vadd.f32 %v3911_v40, %v2007_v46 }
 0x1ce   :  { %v2665_v30 = vpack.c.bf16 %v2065_v32, %v2064_v47 }
 0x1cf   :  { %v2780_v42 = vpack.c.bf16 %v2111_v52, %v2110_v14  ;;  %v2112_v31 = vmax.f32 %v2063_v15, 0.0 }
 0x1d0   :  { %2666 = vst [vmem:[%s4138_s3] sm:$0xff] %v2665_v30  }
 0x1d1   :  { %2804 = vst [vmem:[%s4138_s3 + $0xb8] sm:$0xff] %v2780_v42   ;;  %v2661_v26 = vpack.c.bf16 %v2112_v31, %v2112_v31 }
 0x1d3   :  { %2358 = vst [vmem:[%s4138_s3 + $0xc0] sm:$0xf] %v2661_v26 }
 0x1d4   :  { %2363 = vsyncpa [#allocation3], 1 }
 0x1d5   :  { %2364 = vsyncpa [#allocation5], 1 }

// kernel: net_forward.4
= control target key start
LH: loop header
LB: loop body
LE: loop exit
PB: predicated region body
PF: predicated region fallthrough
CT: control target
= control target key end

     0   :  { %vm1017_vm0 = vcmask 261120   ;;  %s3098_s1 = inlined_call_operand.vmem [shape: bf16[800,128], index: 1, kind: input, shape index: {}]   ;;  %s3099_s0 = inlined_call_operand.vmem [shape: bf16[224,800], index: 0, kind: input, shape index: {}]   ;;  %s3100_s2 = inlined_call_operand.vmem [shape: f32[1,128], index: 2, kind: input, shape index: {}]   ;;  %s3101_s3 = inlined_call_operand.vmem [shape: bf16[56,128], index: 3, kind: output, shape index: {}]  }
   0x1   :  { %v2280_v0 = vld [vmem:[%s3098_s1 + $0x40] sm:$0xff]   ;;  %v2284_v4 = vld [vmem:[%s3098_s1 + $0x48] sm:$0xff]   ;;  %v2288_v8 = vld [vmem:[%s3098_s1 + $0x50] sm:$0xff]  }
   0x2   :  { %v2281_v1 = vld [vmem:[%s3098_s1 + $0xc0] sm:$0xff]   ;;  %1916 = vmatprep.subr.bf16.mxu0 %v2280_v0  ;;  %v2285_v5 = vld [vmem:[%s3098_s1 + $0xc8] sm:$0xff]   ;;  %v2289_v9 = vld [vmem:[%s3098_s1 + $0xd0] sm:$0xff]  }
   0x3   :  { %v2282_v2 = vld [vmem:[%s3098_s1] sm:$0xff]   ;;  %2016 = vmatprep.subr.bf16.mxu1 %v2281_v1  ;;  %v2286_v6 = vld [vmem:[%s3098_s1 + $0x8] sm:$0xff]   ;;  %v2290_v10 = vld [vmem:[%s3098_s1 + $0x10] sm:$0xff]  }
   0x4   :  { %v2283_v3 = vld [vmem:[%s3098_s1 + $0x80] sm:$0xff]   ;;  %1917 = vmatpush3.bf16.msra.mxu0 %v2282_v2  ;;  %v2287_v7 = vld [vmem:[%s3098_s1 + $0x88] sm:$0xff]   ;;  %v2291_v11 = vld [vmem:[%s3098_s1 + $0x90] sm:$0xff]  }
   0x5   :  { %2017 = vmatpush3.bf16.msra.mxu1 %v2283_v3  ;;  %1918 = vmatprep.subr.bf16.mxu0 %v2284_v4  ;;  %v2292_v12 = vld [vmem:[%s3098_s1 + $0x58] sm:$0xff]   ;;  %v2296_v16 = vld [vmem:[%s3098_s1 + $0x60] sm:$0xff]   ;;  %v2300_v20 = vld [vmem:[%s3098_s1 + $0x68] sm:$0xff]  }
   0x6   :  { %2018 = vmatprep.subr.bf16.mxu1 %v2285_v5  ;;  %v2293_v13 = vld [vmem:[%s3098_s1 + $0xd8] sm:$0xff]   ;;  %v2297_v17 = vld [vmem:[%s3098_s1 + $0xe0] sm:$0xff]   ;;  %v2301_v21 = vld [vmem:[%s3098_s1 + $0xe8] sm:$0xff]  }
   0x7   :  { %v2294_v14 = vld [vmem:[%s3098_s1 + $0x18] sm:$0xff]   ;;  %v2298_v18 = vld [vmem:[%s3098_s1 + $0x20] sm:$0xff]   ;;  %v2302_v22 = vld [vmem:[%s3098_s1 + $0x28] sm:$0xff]  }
   0x8   :  { %1919 = vmatpush3.bf16.msra.mxu0 %v2286_v6  ;;  %v2295_v15 = vld [vmem:[%s3098_s1 + $0x98] sm:$0xff]   ;;  %v2299_v19 = vld [vmem:[%s3098_s1 + $0xa0] sm:$0xff]   ;;  %v2303_v23 = vld [vmem:[%s3098_s1 + $0xa8] sm:$0xff]  }
   0x9   :  { %2019 = vmatpush3.bf16.msra.mxu1 %v2287_v7  ;;  %1920 = vmatprep.subr.bf16.mxu0 %v2288_v8  ;;  %v2304_v24 = vld [vmem:[%s3098_s1 + $0x70] sm:$0xff]   ;;  %v2308_v28 = vld [vmem:[%s3098_s1 + $0x78] sm:$0xff]   ;;  %v2314_v33 = vld [vmem:[%s3099_s0 + $0x4] ss:$28 sps:$4 sm:$0xff]  }
   0xa   :  { %2020 = vmatprep.subr.bf16.mxu1 %v2289_v9  ;;  %v2305_v25 = vld [vmem:[%s3098_s1 + $0xf0] sm:$0xff]   ;;  %v2309_v29 = vld [vmem:[%s3098_s1 + $0xf8] sm:$0xff]   ;;  %v2315_v34 = vld [vmem:[%s3099_s0 + $0x8] ss:$28 sps:$4 sm:$0xff]   ;;  %1092 = vmatprep.mubr.bf16.mxu0 %v2314_v33 }
   0xb   :  { %v2306_v26 = vld [vmem:[%s3098_s1 + $0x30] sm:$0xff]   ;;  %v2310_v30 = vld [vmem:[%s3098_s1 + $0x38] sm:$0xff]   ;;  %v2317_v35 = vld [vmem:[%s3099_s0 + $0xc] ss:$28 sps:$4 sm:$0xff]  }
   0xc   :  { %1921 = vmatpush3.bf16.msra.mxu0 %v2290_v10  ;;  %v2307_v27 = vld [vmem:[%s3098_s1 + $0xb0] sm:$0xff]   ;;  %v2311_v31 = vld [vmem:[%s3098_s1 + $0xb8] sm:$0xff]   ;;  %v2318_v36 = vld [vmem:[%s3098_s1 + $0x140] sm:$0xff]   ;;  %1237 = vmatprep.mubr.bf16.mxu1 %v2317_v35 }
   0xd   :  { %2021 = vmatpush3.bf16.msra.mxu1 %v2291_v11  ;;  %1922 = vmatprep.subr.bf16.mxu0 %v2292_v12  ;;  %v2312_v32 = vld [vmem:[%s3099_s0] ss:$28 sps:$4 sm:$0xff]   ;;  %v2324_v40 = vld [vmem:[%s3099_s0 + $0x38] ss:$28 sps:$4 sm:$0xff]   ;;  %v2326_v42 = vld [vmem:[%s3098_s1 + $0x148] sm:$0xff]  }
   0xe   :  { %2022 = vmatprep.subr.bf16.mxu1 %v2293_v13  ;;  %v2319_v37 = vld [vmem:[%s3098_s1 + $0x100] sm:$0xff]   ;;  %v2320_v38 = vld [vmem:[%s3099_s0 + $0x3c] ss:$28 sps:$4 sm:$0xff]   ;;  %v2327_v43 = vld [vmem:[%s3099_s0 + $0x74] ss:$28 sps:$4 sm:$0xff]  }
   0xf   :  { %v2322_v39 = vld [vmem:[%s3099_s0 + $0x44] ss:$28 sps:$4 sm:$0xff]   ;;  %v2329_v44 = vld [vmem:[%s3099_s0 + $0x7c] ss:$28 sps:$4 sm:$0xff]   ;;  %v2331_v45 = vld [vmem:[%s3098_s1 + $0x108] sm:$0xff]  }
  0x10   :  { %1923 = vmatpush3.bf16.msra.mxu0 %v2294_v14  ;;  %v2325_v41 = vld [vmem:[%s3099_s0 + $0x40] ss:$28 sps:$4 sm:$0xff]   ;;  %v2332_v46 = vld [vmem:[%s3099_s0 + $0x70] ss:$28 sps:$4 sm:$0xff]   ;;  %v2333_v47 = vld [vmem:[%s3099_s0 + $0x78] ss:$28 sps:$4 sm:$0xff]  }
  0x11   :  { %2023 = vmatpush3.bf16.msra.mxu1 %v2295_v15  ;;  %1924 = vmatprep.subr.bf16.mxu0 %v2296_v16  ;;  %v2340_v48 = vld [vmem:[%s3098_s1 + $0x150] sm:$0xff]   ;;  %v2334_v50 = vld [vmem:[%s3099_s0 + $0xac] ss:$28 sps:$4 sm:$0xff]   ;;  %v2354_v53 = vld [vmem:[%s3098_s1 + $0x158] sm:$0xff]  }
  0x12   :  { %2024 = vmatprep.subr.bf16.mxu1 %v2297_v17  ;;  %v2341_v49 = vld [vmem:[%s3098_s1 + $0x110] sm:$0xff]   ;;  %v2338_v52 = vld [vmem:[%s3099_s0 + $0xa8] ss:$28 sps:$4 sm:$0xff]   ;;  %v2355_v54 = vld [vmem:[%s3098_s1 + $0x118] sm:$0xff]  }
  0x13   :  { %v2336_v51 = vld [vmem:[%s3099_s0 + $0xb4] ss:$28 sps:$4 sm:$0xff]   ;;  %v2342_v56 = vld [vmem:[%s3099_s0 + $0xe4] ss:$28 sps:$4 sm:$0xff]   ;;  %v2344_v57 = vld [vmem:[%s3099_s0 + $0xec] ss:$28 sps:$4 sm:$0xff]  }
  0x14   :  { %1925 = vmatpush3.bf16.msra.mxu0 %v2298_v18  ;;  %v2339_v55 = vld [vmem:[%s3099_s0 + $0xb0] ss:$28 sps:$4 sm:$0xff]   ;;  %v2368_v58 = vld [vmem:[%s3098_s1 + $0x160] sm:$0xff]   ;;  %v2348_v62 = vld [vmem:[%s3099_s0 + $0x11c] ss:$28 sps:$4 sm:$0xff]  }
  0x15   :  { %2025 = vmatpush3.bf16.msra.mxu1 %v2299_v19  ;;  %1926 = vmatprep.subr.bf16.mxu0 %v2300_v20  ;;  %v2369_v59 = vld [vmem:[%s3098_s1 + $0x120] sm:$0xff]   ;;  %v2376_v0 = vld [vmem:[%s3098_s1 + $0x168] sm:$0xff]   ;;  %v2352_v2 = vld [vmem:[%s3099_s0 + $0x118] ss:$28 sps:$4 sm:$0xff]  }
  0x16   :  { %2026 = vmatprep.subr.bf16.mxu1 %v2301_v21  ;;  %v2346_v60 = vld [vmem:[%s3099_s0 + $0xe0] ss:$28 sps:$4 sm:$0xff]   ;;  %v2347_v61 = vld [vmem:[%s3099_s0 + $0xe8] ss:$28 sps:$4 sm:$0xff]   ;;  %v2356_v4 = vld [vmem:[%s3099_s0 + $0x154] ss:$28 sps:$4 sm:$0xff]  }
  0x17   :  { %v2350_v63 = vld [vmem:[%s3099_s0 + $0x124] ss:$28 sps:$4 sm:$0xff]   ;;  %v2381_v1 = vld [vmem:[%s3098_s1 + $0x128] sm:$0xff]   ;;  %v2358_v5 = vld [vmem:[%s3099_s0 + $0x15c] ss:$28 sps:$4 sm:$0xff]  }
  0x18   :  { %1927 = vmatpush3.bf16.msra.mxu0 %v2302_v22  ;;  %v2353_v3 = vld [vmem:[%s3099_s0 + $0x120] ss:$28 sps:$4 sm:$0xff]   ;;  %v2390_v6 = vld [vmem:[%s3098_s1 + $0x170] sm:$0xff]   ;;  %v2362_v10 = vld [vmem:[%s3099_s0 + $0x18c] ss:$28 sps:$4 sm:$0xff]  }
  0x19   :  { %2027 = vmatpush3.bf16.msra.mxu1 %v2303_v23  ;;  %1928 = vmatprep.subr.bf16.mxu0 %v2304_v24  ;;  %v2391_v7 = vld [vmem:[%s3098_s1 + $0x130] sm:$0xff]   ;;  %v2404_v12 = vld [vmem:[%s3098_s1 + $0x178] sm:$0xff]   ;;  %v2366_v14 = vld [vmem:[%s3099_s0 + $0x188] ss:$28 sps:$4 sm:$0xff]  }
  0x1a   :  { %2028 = vmatprep.subr.bf16.mxu1 %v2305_v25  ;;  %v2360_v8 = vld [vmem:[%s3099_s0 + $0x150] ss:$28 sps:$4 sm:$0xff]   ;;  %v2361_v9 = vld [vmem:[%s3099_s0 + $0x158] ss:$28 sps:$4 sm:$0xff]   ;;  %v2370_v16 = vld [vmem:[%s3099_s0 + $0x1c4] ss:$28 sps:$4 sm:$0xff]  }
  0x1b   :  { %v2364_v11 = vld [vmem:[%s3099_s0 + $0x194] ss:$28 sps:$4 sm:$0xff]   ;;  %v2405_v13 = vld [vmem:[%s3098_s1 + $0x138] sm:$0xff]   ;;  %v2372_v17 = vld [vmem:[%s3099_s0 + $0x1cc] ss:$28 sps:$4 sm:$0xff]  }
  0x1c   :  { %1929 = vmatpush3.bf16.msra.mxu0 %v2306_v26  ;;  %v2367_v15 = vld [vmem:[%s3099_s0 + $0x190] ss:$28 sps:$4 sm:$0xff]   ;;  %v2424_v18 = vld [vmem:[%s3098_s1 + $0x180] sm:$0xff]   ;;  %v2377_v21 = vld [vmem:[%s3099_s0 + $0x1fc] ss:$28 sps:$4 sm:$0xff]  }
  0x1d   :  { %2029 = vmatpush3.bf16.msra.mxu1 %v2307_v27  ;;  %1930 = vmatprep.subr.bf16.mxu0 %v2308_v28  ;;  %v2374_v19 = vld [vmem:[%s3099_s0 + $0x1c0] ss:$28 sps:$4 sm:$0xff]   ;;  %v2375_v20 = vld [vmem:[%s3099_s0 + $0x1c8] ss:$28 sps:$4 sm:$0xff]   ;;  %v2382_v23 = vld [vmem:[%s3099_s0 + $0x1f8] ss:$28 sps:$4 sm:$0xff]  }
  0x1e   :  { %2030 = vmatprep.subr.bf16.mxu1 %v2309_v29  ;;  %v2379_v22 = vld [vmem:[%s3099_s0 + $0x204] ss:$28 sps:$4 sm:$0xff]   ;;  %v2384_v25 = vld [vmem:[%s3099_s0 + $0x234] ss:$28 sps:$4 sm:$0xff]   ;;  %v2386_v26 = vld [vmem:[%s3099_s0 + $0x23c] ss:$28 sps:$4 sm:$0xff]  }
  0x1f   :  { %v2383_v24 = vld [vmem:[%s3099_s0 + $0x200] ss:$28 sps:$4 sm:$0xff]   ;;  %v2388_v27 = vld [vmem:[%s3099_s0 + $0x230] ss:$28 sps:$4 sm:$0xff]   ;;  %v2389_v28 = vld [vmem:[%s3099_s0 + $0x238] ss:$28 sps:$4 sm:$0xff]  }
  0x20   :  { %1931 = vmatpush3.bf16.msra.mxu0 %v2310_v30  ;;  %v2392_v29 = vld [vmem:[%s3099_s0 + $0x26c] ss:$28 sps:$4 sm:$0xff]   ;;  %v2394_v30 = vld [vmem:[%s3099_s0 + $0x274] ss:$28 sps:$4 sm:$0xff]   ;;  %v2398_v33 = vld [vmem:[%s3099_s0 + $0x2a4] ss:$28 sps:$4 sm:$0xff]  }
  0x21   :  { %2031 = vmatpush3.bf16.msra.mxu1 %v2311_v31  ;;  %2116 = vmatprep.subr.bf16.mxu0 %v2318_v36  ;;  %v2396_v31 = vld [vmem:[%s3099_s0 + $0x268] ss:$28 sps:$4 sm:$0xff]   ;;  %v2402_v35 = vld [vmem:[%s3099_s0 + $0x2a0] ss:$28 sps:$4 sm:$0xff]  }
  0x22   :  { %2264 = vmatprep.subr.bf16.mxu1 %v2318_v36  ;;  %v2403_v36 = vld [vmem:[%s3099_s0 + $0x2a8] ss:$28 sps:$4 sm:$0xff]  }
  0x23   :  { %1093 = vmatmul.mubr.bf16.vlgmr.msra.gmra.mrb[0].mxu0 %v2312_v32  ;;  %v2397_v32 = vld [vmem:[%s3099_s0 + $0x270] ss:$28 sps:$4 sm:$0xff]  }
  0x24   :  { %1238 = vmatmul.mubr.bf16.vlgmr.msra.gmra.mrb[0].mxu1 %v2315_v34  ;;  %2117 = vmatpush3.bf16.msra.mxu0 %v2319_v37  ;;  %v2400_v34 = vld [vmem:[%s3099_s0 + $0x2ac] ss:$28 sps:$4 sm:$0xff]  }
  0x25   :  { %1100 = vmatprep.mubr.bf16.mxu0 %v2320_v38  ;;  %2272 = vmatpush3.bf16.msra.mxu1 %v2319_v37  ;;  %v2406_v37 = vld [vmem:[%s3099_s0 + $0x2dc] ss:$28 sps:$4 sm:$0xff]   ;;  %v2408_v38 = vld [vmem:[%s3099_s0 + $0x2e4] ss:$28 sps:$4 sm:$0xff]  }
  0x26   :  { %1245 = vmatprep.mubr.bf16.mxu1 %v2322_v39  ;;  %2118 = vmatprep.subr.bf16.mxu0 %v2326_v42  ;;  %v2410_v39 = vld [vmem:[%s3099_s0 + $0x2d8] ss:$28 sps:$4 sm:$0xff]  }
  0x27   :  { %2265 = vmatprep.subr.bf16.mxu1 %v2326_v42  ;;  %v2417_v42 = vld [vmem:[%s3099_s0 + $0x27c] ss:$28 sps:$4 sm:$0xff]  }
  0x28   :  { %2119 = vmatpush3.bf16.msra.mxu0 %v2331_v45 }
  0x29   :  { %2273 = vmatpush3.bf16.msra.mxu1 %v2331_v45  ;;  %2120 = vmatprep.subr.bf16.mxu0 %v2340_v48  ;;  %v2418_v45 = vld [vmem:[%s3099_s0 + $0x4c] ss:$28 sps:$4 sm:$0xff]  }
  0x2a   :  { %2266 = vmatprep.subr.bf16.mxu1 %v2340_v48  ;;  %v2422_v48 = vld [vmem:[%s3099_s0 + $0x48] ss:$28 sps:$4 sm:$0xff]  }
  0x2b   :  { %1101 = vmatmul.mubr.bf16.gmra.mrb[4].mxu0 %v2324_v40  ;;  %v2411_v40 = vld [vmem:[%s3099_s0 + $0x2e0] ss:$28 sps:$4 sm:$0xff]  }
  0x2c   :  { %1246 = vmatmul.mubr.bf16.gmra.mrb[4].mxu1 %v2325_v41  ;;  %1108 = vmatprep.mubr.bf16.mxu0 %v2327_v43  ;;  %v2414_v41 = vld [vmem:[%s3099_s0 + $0x14] ss:$28 sps:$4 sm:$0xff]  }
  0x2d   :  { %1253 = vmatprep.mubr.bf16.mxu1 %v2329_v44  ;;  %2121 = vmatpush3.bf16.msra.mxu0 %v2341_v49  ;;  %v2412_v43 = vld [vmem:[%s3099_s0 + $0x10] ss:$28 sps:$4 sm:$0xff]   ;;  %v2415_v44 = vld [vmem:[%s3099_s0 + $0x278] ss:$28 sps:$4 sm:$0xff]  }
  0x2e   :  { %2274 = vmatpush3.bf16.msra.mxu1 %v2341_v49  ;;  %2122 = vmatprep.subr.bf16.mxu0 %v2354_v53  ;;  %v2423_v49 = vld [vmem:[%s3099_s0 + $0x2b0] ss:$28 sps:$4 sm:$0xff]  }
  0x2f   :  { %2267 = vmatprep.subr.bf16.mxu1 %v2354_v53  ;;  %v2430_v53 = vld [vmem:[%s3099_s0 + $0x2e8] ss:$28 sps:$4 sm:$0xff]  }
  0x31   :  { %2123 = vmatpush3.bf16.msra.mxu0 %v2355_v54 }
  0x32   :  { %2275 = vmatpush3.bf16.msra.mxu1 %v2355_v54  ;;  %2124 = vmatprep.subr.bf16.mxu0 %v2368_v58  ;;  %v2432_v54 = vld [vmem:[%s3099_s0 + $0xbc] ss:$28 sps:$4 sm:$0xff]  }
  0x33   :  { %1109 = vmatmul.mubr.bf16.gmra.mrb[8].mxu0 %v2332_v46  ;;  %2268 = vmatprep.subr.bf16.mxu1 %v2368_v58  ;;  %v2420_v46 = vld [vmem:[%s3099_s0 + $0x2b4] ss:$28 sps:$4 sm:$0xff]  }
  0x34   :  { %1254 = vmatmul.mubr.bf16.gmra.mrb[8].mxu1 %v2333_v47  ;;  %1116 = vmatprep.mubr.bf16.mxu0 %v2334_v50  ;;  %v2431_v47 = vld [vmem:[%s3098_s1 + $0x188] sm:$0xff]   ;;  %v2425_v50 = vld [vmem:[%s3099_s0 + $0x84] ss:$28 sps:$4 sm:$0xff]   ;;  %v2437_v58 = vld [vmem:[%s3099_s0 + $0xf4] ss:$28 sps:$4 sm:$0xff]  }
  0x35   :  { %1261 = vmatprep.mubr.bf16.mxu1 %v2336_v51  ;;  %2125 = vmatpush3.bf16.msra.mxu0 %v2369_v59  ;;  %v2427_v51 = vld [vmem:[%s3099_s0 + $0x2ec] ss:$28 sps:$4 sm:$0xff]  }
  0x36   :  { %2276 = vmatpush3.bf16.msra.mxu1 %v2369_v59  ;;  %2126 = vmatprep.subr.bf16.mxu0 %v2376_v0  ;;  %v2439_v59 = vld [vmem:[%s3099_s0 + $0x88] ss:$28 sps:$4 sm:$0xff]  }
  0x37   :  { %2269 = vmatprep.subr.bf16.mxu1 %v2376_v0  ;;  %v2445_v0 = vld [vmem:[%s3099_s0 + $0x128] ss:$28 sps:$4 sm:$0xff]  }
  0x39   :  { %2127 = vmatpush3.bf16.msra.mxu0 %v2381_v1 }
  0x3a   :  { %2277 = vmatpush3.bf16.msra.mxu1 %v2381_v1  ;;  %2128 = vmatprep.subr.bf16.mxu0 %v2390_v6  ;;  %v2446_v1 = vld [vmem:[%s3099_s0 + $0x130] ss:$28 sps:$4 sm:$0xff]  }
  0x3b   :  { %1117 = vmatmul.mubr.bf16.gmra.mrb[12].mxu0 %v2338_v52  ;;  %2270 = vmatprep.subr.bf16.mxu1 %v2390_v6  ;;  %v2429_v52 = vld [vmem:[%s3099_s0 + $0x80] ss:$28 sps:$4 sm:$0xff]  }
  0x3c   :  { %1262 = vmatmul.mubr.bf16.gmra.mrb[12].mxu1 %v2339_v55  ;;  %1124 = vmatprep.mubr.bf16.mxu0 %v2342_v56  ;;  %v2434_v55 = vld [vmem:[%s3099_s0 + $0x18] ss:$28 sps:$4 sm:$0xff]  }
  0x3d   :  { %1269 = vmatprep.mubr.bf16.mxu1 %v2344_v57  ;;  %2129 = vmatpush3.bf16.msra.mxu0 %v2391_v7  ;;  %v2435_v56 = vld [vmem:[%s3099_s0 + $0xb8] ss:$28 sps:$4 sm:$0xff]   ;;  %v2436_v57 = vld [vmem:[%s3099_s0 + $0x50] ss:$28 sps:$4 sm:$0xff]  }
  0x3e   :  { %2278 = vmatpush3.bf16.msra.mxu1 %v2391_v7  ;;  %2130 = vmatprep.subr.bf16.mxu0 %v2404_v12  ;;  %v2452_v6 = vld [vmem:[%s3099_s0 + $0x19c] ss:$28 sps:$4 sm:$0xff]  }
  0x3f   :  { %2271 = vmatprep.subr.bf16.mxu1 %v2404_v12  ;;  %v2454_v7 = vld [vmem:[%s3099_s0 + $0x1d8] ss:$28 sps:$4 sm:$0xff]   ;;  %v2460_v12 = vld [vmem:[%s3099_s0 + $0x1d0] ss:$28 sps:$4 sm:$0xff]  }
  0x41   :  { %2131 = vmatpush3.bf16.msra.mxu0 %v2405_v13 }
  0x42   :  { %2279 = vmatpush3.bf16.msra.mxu1 %v2405_v13  ;;  %v2461_v13 = vld [vmem:[%s3099_s0 + $0x280] ss:$28 sps:$4 sm:$0xff]  }
  0x43   :  { %1125 = vmatmul.mubr.bf16.gmra.mrb[16].mxu0 %v2346_v60  ;;  %2232 = vmatprep.subr.bf16.mxu1 %v2424_v18  ;;  %v2440_v60 = vld [vmem:[%s3099_s0 + $0xf0] ss:$28 sps:$4 sm:$0xff]  }
  0x44   :  { %1270 = vmatmul.mubr.bf16.gmra.mrb[16].mxu1 %v2347_v61  ;;  %1132 = vmatprep.mubr.bf16.mxu0 %v2348_v62  ;;  %v2441_v61 = vld [vmem:[%s3099_s0 + $0xc0] ss:$28 sps:$4 sm:$0xff]   ;;  %v2442_v62 = vld [vmem:[%s3099_s0 + $0x12c] ss:$28 sps:$4 sm:$0xff]  }
  0x45   :  { %1277 = vmatprep.mubr.bf16.mxu1 %v2350_v63  ;;  %v2444_v63 = vld [vmem:[%s3099_s0 + $0xf8] ss:$28 sps:$4 sm:$0xff]  }
  0x4b   :  { %1133 = vmatmul.mubr.bf16.gmra.mrb[20].mxu0 %v2352_v2  ;;  %v2447_v2 = vld [vmem:[%s3099_s0 + $0x164] ss:$28 sps:$4 sm:$0xff]  }
  0x4c   :  { %1278 = vmatmul.mubr.bf16.gmra.mrb[20].mxu1 %v2353_v3  ;;  %1140 = vmatprep.mubr.bf16.mxu0 %v2356_v4  ;;  %v2449_v3 = vld [vmem:[%s3099_s0 + $0x168] ss:$28 sps:$4 sm:$0xff]   ;;  %v2450_v4 = vld [vmem:[%s3099_s0 + $0x160] ss:$28 sps:$4 sm:$0xff]  }
  0x4d   :  { %1285 = vmatprep.mubr.bf16.mxu1 %v2358_v5  ;;  %v2451_v5 = vld [vmem:[%s3099_s0 + $0x1a0] ss:$28 sps:$4 sm:$0xff]  }
  0x53   :  { %1141 = vmatmul.mubr.bf16.gmra.mrb[24].mxu0 %v2360_v8  ;;  %v2455_v8 = vld [vmem:[%s3099_s0 + $0x198] ss:$28 sps:$4 sm:$0xff]  }
  0x54   :  { %1286 = vmatmul.mubr.bf16.gmra.mrb[24].mxu1 %v2361_v9  ;;  %1148 = vmatprep.mubr.bf16.mxu0 %v2362_v10  ;;  %v2456_v9 = vld [vmem:[%s3099_s0 + $0x210] ss:$28 sps:$4 sm:$0xff]  }
  0x55   :  { %1293 = vmatprep.mubr.bf16.mxu1 %v2364_v11  ;;  %v2457_v10 = vld [vmem:[%s3099_s0 + $0x1d4] ss:$28 sps:$4 sm:$0xff]   ;;  %v2459_v11 = vld [vmem:[%s3099_s0 + $0x248] ss:$28 sps:$4 sm:$0xff]  }
  0x5b   :  { %1149 = vmatmul.mubr.bf16.gmra.mrb[28].mxu0 %v2366_v14  ;;  %v2462_v14 = vld [vmem:[%s3099_s0 + $0x20c] ss:$28 sps:$4 sm:$0xff]  }
  0x5c   :  { %1294 = vmatmul.mubr.bf16.gmra.mrb[28].mxu1 %v2367_v15  ;;  %1156 = vmatprep.mubr.bf16.mxu0 %v2370_v16  ;;  %v2464_v15 = vld [vmem:[%s3099_s0 + $0x2b8] ss:$28 sps:$4 sm:$0xff]   ;;  %v2465_v16 = vld [vmem:[%s3099_s0 + $0x208] ss:$28 sps:$4 sm:$0xff]  }
  0x5d   :  { %1301 = vmatprep.mubr.bf16.mxu1 %v2372_v17  ;;  %v2466_v17 = vld [vmem:[%s3099_s0 + $0x2f0] ss:$28 sps:$4 sm:$0xff]  }
  0x63   :  { %1157 = vmatmul.mubr.bf16.gmra.mrb[32].mxu0 %v2374_v19  ;;  %v2469_v19 = vld [vmem:[%s3099_s0 + $0x240] ss:$28 sps:$4 sm:$0xff]  }
  0x64   :  { %1302 = vmatmul.mubr.bf16.gmra.mrb[32].mxu1 %v2375_v20  ;;  %1164 = vmatprep.mubr.bf16.mxu0 %v2377_v21 }
  0x65   :  { %1309 = vmatprep.mubr.bf16.mxu1 %v2379_v22 }
  0x6b   :  { %1165 = vmatmul.mubr.bf16.gmra.mrb[36].mxu0 %v2382_v23 }
  0x6c   :  { %1310 = vmatmul.mubr.bf16.gmra.mrb[36].mxu1 %v2383_v24  ;;  %1172 = vmatprep.mubr.bf16.mxu0 %v2384_v25 }
  0x6d   :  { %1317 = vmatprep.mubr.bf16.mxu1 %v2386_v26 }
  0x73   :  { %1173 = vmatmul.mubr.bf16.gmra.mrb[40].mxu0 %v2388_v27 }
  0x74   :  { %1318 = vmatmul.mubr.bf16.gmra.mrb[40].mxu1 %v2389_v28  ;;  %1180 = vmatprep.mubr.bf16.mxu0 %v2392_v29 }
  0x75   :  { %1325 = vmatprep.mubr.bf16.mxu1 %v2394_v30 }
  0x7b   :  { %1181 = vmatmul.mubr.bf16.gmra.mrb[44].mxu0 %v2396_v31 }
  0x7c   :  { %1326 = vmatmul.mubr.bf16.gmra.mrb[44].mxu1 %v2397_v32  ;;  %1188 = vmatprep.mubr.bf16.mxu0 %v2398_v33 }
  0x7d   :  { %1333 = vmatprep.mubr.bf16.mxu1 %v2400_v34 }
  0x83   :  { %1189 = vmatmul.mubr.bf16.gmra.mrb[48].mxu0 %v2402_v35 }
  0x84   :  { %1334 = vmatmul.mubr.bf16.gmra.mrb[48].mxu1 %v2403_v36  ;;  %1196 = vmatprep.mubr.bf16.mxu0 %v2406_v37 }
  0x85   :  { %1341 = vmatprep.mubr.bf16.mxu1 %v2408_v38 }
  0x8b   :  { %1197 = vmatmul.mubr.bf16.gmra.mrb[52].mxu0 %v2410_v39 }
  0x8c   :  { %1342 = vmatmul.mubr.bf16.gmra.mrb[52].mxu1 %v2411_v40  ;;  %1382 = vmatprep.mubr.bf16.mxu0 %v2414_v41 }
  0x8d   :  { %1470 = vmatprep.mubr.bf16.mxu1 %v2417_v42 }
  0x93   :  { %1383 = vmatmul.mubr.bf16.vlgmr.msra.gmra.mrb[56].mxu0 %v2412_v43 }
  0x94   :  { %1471 = vmatmul.mubr.bf16.vlgmr.msra.gmra.mrb[56].mxu1 %v2415_v44  ;;  %1390 = vmatprep.mubr.bf16.mxu0 %v2418_v45 }
  0x95   :  { %1478 = vmatprep.mubr.bf16.mxu1 %v2420_v46  ;;  %2233 = vmatpush3.bf16.msra.mxu1 %v2424_v18  ;;  %v2467_v18 = vld [vmem:[%s3099_s0 + $0x244] ss:$28 sps:$4 sm:$0xff]  }
  0x96   :  { %2234 = vmatprep.subr.bf16.mxu1 %v2431_v47 }
  0x99   :  { %2235 = vmatpush3.bf16.msra.mxu1 %v2431_v47 }
  0x9b   :  { %1391 = vmatmul.mubr.bf16.gmra.mrb[60].mxu0 %v2422_v48 }
  0x9c   :  { %1479 = vmatmul.mubr.bf16.gmra.mrb[60].mxu1 %v2423_v49  ;;  %1398 = vmatprep.mubr.bf16.mxu0 %v2425_v50 }
  0x9d   :  { %1486 = vmatprep.mubr.bf16.mxu1 %v2427_v51 }
  0xa3   :  { %1399 = vmatmul.mubr.bf16.gmra.mrb[64].mxu0 %v2429_v52 }
  0xa4   :  { %1487 = vmatmul.mubr.bf16.gmra.mrb[64].mxu1 %v2430_v53  ;;  %1406 = vmatprep.mubr.bf16.mxu0 %v2432_v54 }
  0xa5   :  { %2236 = vmatprep.mubr.msk.bf16.mxu1 %vm1017_vm0, %v2434_v55 }
  0xab   :  { %1407 = vmatmul.mubr.bf16.gmra.mrb[68].mxu0 %v2435_v56 }
  0xac   :  { %2237 = vmatmul.mubr.msk.bf16.vlgmr.msra.gmra.mrb[68].mxu1 %vm1017_vm0, %v2436_v57  ;;  %1414 = vmatprep.mubr.bf16.mxu0 %v2437_v58 }
  0xad   :  { %2240 = vmatprep.mubr.msk.bf16.mxu1 %vm1017_vm0, %v2439_v59 }
  0xb3   :  { %1415 = vmatmul.mubr.bf16.gmra.mrb[72].mxu0 %v2440_v60 }
  0xb4   :  { %2241 = vmatmul.mubr.msk.bf16.gmra.mrb[72].mxu1 %vm1017_vm0, %v2441_v61  ;;  %1422 = vmatprep.mubr.bf16.mxu0 %v2442_v62 }
  0xb5   :  { %2244 = vmatprep.mubr.msk.bf16.mxu1 %vm1017_vm0, %v2444_v63 }
  0xbb   :  { %1423 = vmatmul.mubr.bf16.gmra.mrb[76].mxu0 %v2445_v0 }
  0xbc   :  { %2245 = vmatmul.mubr.msk.bf16.gmra.mrb[76].mxu1 %vm1017_vm0, %v2446_v1  ;;  %1430 = vmatprep.mubr.bf16.mxu0 %v2447_v2 }
  0xbd   :  { %2248 = vmatprep.mubr.msk.bf16.mxu1 %vm1017_vm0, %v2449_v3 }
  0xc3   :  { %1431 = vmatmul.mubr.bf16.gmra.mrb[80].mxu0 %v2450_v4 }
  0xc4   :  { %2249 = vmatmul.mubr.msk.bf16.gmra.mrb[80].mxu1 %vm1017_vm0, %v2451_v5  ;;  %1438 = vmatprep.mubr.bf16.mxu0 %v2452_v6 }
  0xc5   :  { %2252 = vmatprep.mubr.msk.bf16.mxu1 %vm1017_vm0, %v2454_v7 }
  0xcb   :  { %1439 = vmatmul.mubr.bf16.gmra.mrb[84].mxu0 %v2455_v8 }
  0xcc   :  { %2253 = vmatmul.mubr.msk.bf16.gmra.mrb[84].mxu1 %vm1017_vm0, %v2456_v9  ;;  %1446 = vmatprep.mubr.bf16.mxu0 %v2457_v10 }
  0xcd   :  { %2256 = vmatprep.mubr.msk.bf16.mxu1 %vm1017_vm0, %v2459_v11 }
  0xd3   :  { %1447 = vmatmul.mubr.bf16.gmra.mrb[88].mxu0 %v2460_v12 }
  0xd4   :  { %2257 = vmatmul.mubr.msk.bf16.gmra.mrb[88].mxu1 %vm1017_vm0, %v2461_v13  ;;  %1454 = vmatprep.mubr.bf16.mxu0 %v2462_v14 }
  0xd5   :  { %2260 = vmatprep.mubr.msk.bf16.mxu1 %vm1017_vm0, %v2464_v15 }
  0xdb   :  { %1455 = vmatmul.mubr.bf16.gmra.mrb[92].mxu0 %v2465_v16 }
  0xdc   :  { %2261 = vmatmul.mubr.msk.bf16.gmra.mrb[92].mxu1 %vm1017_vm0, %v2466_v17  ;;  %1462 = vmatprep.mubr.bf16.mxu0 %v2467_v18 }
  0xe3   :  { %1463 = vmatmul.mubr.bf16.gmra.mrb[96].mxu0 %v2469_v19 }
  0xf6   :  { %v1932_v20 = vpop.f32.mrb[0].mxu0 }
  0xf7   :  { %v2032_v21 = vpop.f32.mrb[0].mxu1  ;;  %v1933_v22 = vpop.f32.mrb[1].mxu0 }
  0xf8   :  { %v1934_v23 = vadd.f32 %v1933_v22, %v1932_v20  ;;  %v2033_v24 = vpop.f32.mrb[1].mxu1  ;;  %v1935_v25 = vpop.f32.mrb[2].mxu0 }
  0xf9   :  { %v2034_v26 = vadd.f32 %v2033_v24, %v2032_v21  ;;  %v2035_v27 = vpop.f32.mrb[2].mxu1  ;;  %v1936_v28 = vpop.f32.mrb[3].mxu0 }
  0xfa   :  { %v1937_v29 = vadd.f32 %v1936_v28, %v1935_v25  ;;  %v2036_v30 = vpop.f32.mrb[3].mxu1 }
  0xfb   :  { %v2948_v31 = vadd.f32 %v2034_v26, %v1934_v23  ;;  %v2037_v32 = vadd.f32 %v2036_v30, %v2035_v27 }
  0xfd   :  { %v2950_v33 = vadd.f32 %v2037_v32, %v1937_v29 }
  0xfe   :  { %v1938_v34 = vpop.f32.mrb[4].mxu0 }
  0xff   :  { %v2038_v35 = vpop.f32.mrb[4].mxu1  ;;  %v1939_v36 = vpop.f32.mrb[5].mxu0 }
 0x100   :  { %v1940_v37 = vadd.f32 %v1939_v36, %v1938_v34  ;;  %v2039_v38 = vpop.f32.mrb[5].mxu1  ;;  %v1941_v39 = vpop.f32.mrb[6].mxu0 }
 0x101   :  { %v2040_v40 = vadd.f32 %v2039_v38, %v2038_v35  ;;  %v2041_v41 = vpop.f32.mrb[6].mxu1  ;;  %v1942_v42 = vpop.f32.mrb[7].mxu0 }
 0x102   :  { %v1943_v43 = vadd.f32 %v1942_v42, %v1941_v39  ;;  %v2042_v44 = vpop.f32.mrb[7].mxu1 }
 0x103   :  { %v2952_v45 = vadd.f32 %v2040_v40, %v1940_v37  ;;  %v2043_v46 = vadd.f32 %v2042_v44, %v2041_v41 }
 0x105   :  { %v2954_v47 = vadd.f32 %v2043_v46, %v1943_v43 }
 0x106   :  { %v1944_v48 = vpop.f32.mrb[8].mxu0 }
 0x107   :  { %v2044_v49 = vpop.f32.mrb[8].mxu1  ;;  %v1945_v50 = vpop.f32.mrb[9].mxu0 }
 0x108   :  { %v1946_v51 = vadd.f32 %v1945_v50, %v1944_v48  ;;  %v2045_v52 = vpop.f32.mrb[9].mxu1  ;;  %v1947_v53 = vpop.f32.mrb[10].mxu0 }
 0x109   :  { %v2046_v54 = vadd.f32 %v2045_v52, %v2044_v49  ;;  %v2047_v55 = vpop.f32.mrb[10].mxu1  ;;  %v1948_v56 = vpop.f32.mrb[11].mxu0 }
 0x10a   :  { %v1949_v57 = vadd.f32 %v1948_v56, %v1947_v53  ;;  %v2048_v58 = vpop.f32.mrb[11].mxu1 }
 0x10b   :  { %v2956_v59 = vadd.f32 %v2046_v54, %v1946_v51  ;;  %v2049_v60 = vadd.f32 %v2048_v58, %v2047_v55 }
 0x10d   :  { %v2958_v61 = vadd.f32 %v2049_v60, %v1949_v57 }
 0x10e   :  { %v1950_v62 = vpop.f32.mrb[12].mxu0 }
 0x10f   :  { %v2050_v63 = vpop.f32.mrb[12].mxu1  ;;  %v1951_v0 = vpop.f32.mrb[13].mxu0 }
 0x110   :  { %v1952_v1 = vadd.f32 %v1951_v0, %v1950_v62  ;;  %v2051_v2 = vpop.f32.mrb[13].mxu1  ;;  %v1953_v3 = vpop.f32.mrb[14].mxu0 }
 0x111   :  { %v2052_v4 = vadd.f32 %v2051_v2, %v2050_v63  ;;  %v2053_v5 = vpop.f32.mrb[14].mxu1  ;;  %v1954_v6 = vpop.f32.mrb[15].mxu0 }
 0x112   :  { %v1955_v7 = vadd.f32 %v1954_v6, %v1953_v3  ;;  %v2054_v8 = vpop.f32.mrb[15].mxu1 }
 0x113   :  { %v2960_v9 = vadd.f32 %v2052_v4, %v1952_v1  ;;  %v2055_v10 = vadd.f32 %v2054_v8, %v2053_v5 }
 0x115   :  { %v2962_v11 = vadd.f32 %v2055_v10, %v1955_v7 }
 0x116   :  { %v1956_v12 = vpop.f32.mrb[16].mxu0 }
 0x117   :  { %v2056_v13 = vpop.f32.mrb[16].mxu1  ;;  %v1957_v14 = vpop.f32.mrb[17].mxu0 }
 0x118   :  { %v1958_v15 = vadd.f32 %v1957_v14, %v1956_v12  ;;  %v2057_v16 = vpop.f32.mrb[17].mxu1  ;;  %v1959_v17 = vpop.f32.mrb[18].mxu0 }
 0x119   :  { %v2058_v18 = vadd.f32 %v2057_v16, %v2056_v13  ;;  %v2059_v19 = vpop.f32.mrb[18].mxu1  ;;  %v1960_v20 = vpop.f32.mrb[19].mxu0 }
 0x11a   :  { %v1961_v21 = vadd.f32 %v1960_v20, %v1959_v17  ;;  %v2060_v22 = vpop.f32.mrb[19].mxu1 }
 0x11b   :  { %v2964_v23 = vadd.f32 %v2058_v18, %v1958_v15  ;;  %v2061_v24 = vadd.f32 %v2060_v22, %v2059_v19 }
 0x11d   :  { %v2966_v25 = vadd.f32 %v2061_v24, %v1961_v21 }
 0x11e   :  { %v1962_v26 = vpop.f32.mrb[20].mxu0 }
 0x11f   :  { %v2062_v27 = vpop.f32.mrb[20].mxu1  ;;  %v1963_v28 = vpop.f32.mrb[21].mxu0 }
 0x120   :  { %v1964_v29 = vadd.f32 %v1963_v28, %v1962_v26  ;;  %v2063_v30 = vpop.f32.mrb[21].mxu1  ;;  %v1965_v32 = vpop.f32.mrb[22].mxu0 }
 0x121   :  { %v2064_v34 = vadd.f32 %v2063_v30, %v2062_v27  ;;  %v2065_v35 = vpop.f32.mrb[22].mxu1  ;;  %v1966_v36 = vpop.f32.mrb[23].mxu0 }
 0x122   :  { %v1967_v37 = vadd.f32 %v1966_v36, %v1965_v32  ;;  %v2066_v38 = vpop.f32.mrb[23].mxu1 }
 0x123   :  { %v2968_v39 = vadd.f32 %v2064_v34, %v1964_v29  ;;  %v2067_v40 = vadd.f32 %v2066_v38, %v2065_v35 }
 0x125   :  { %v2970_v41 = vadd.f32 %v2067_v40, %v1967_v37 }
 0x126   :  { %v1968_v42 = vpop.f32.mrb[24].mxu0 }
 0x127   :  { %v2068_v43 = vpop.f32.mrb[24].mxu1  ;;  %v1969_v44 = vpop.f32.mrb[25].mxu0 }
 0x128   :  { %v1970_v46 = vadd.f32 %v1969_v44, %v1968_v42  ;;  %v2069_v48 = vpop.f32.mrb[25].mxu1  ;;  %v1971_v49 = vpop.f32.mrb[26].mxu0 }
 0x129   :  { %v2070_v50 = vadd.f32 %v2069_v48, %v2068_v43  ;;  %v2071_v51 = vpop.f32.mrb[26].mxu1  ;;  %v1972_v52 = vpop.f32.mrb[27].mxu0 }
 0x12a   :  { %v1973_v53 = vadd.f32 %v1972_v52, %v1971_v49  ;;  %v2072_v54 = vpop.f32.mrb[27].mxu1 }
 0x12b   :  { %v2972_v55 = vadd.f32 %v2070_v50, %v1970_v46  ;;  %v2073_v56 = vadd.f32 %v2072_v54, %v2071_v51 }
 0x12d   :  { %v2974_v57 = vadd.f32 %v2073_v56, %v1973_v53 }
 0x12e   :  { %v1974_v58 = vpop.f32.mrb[28].mxu0 }
 0x12f   :  { %v2074_v60 = vpop.f32.mrb[28].mxu1  ;;  %v1975_v62 = vpop.f32.mrb[29].mxu0 }
 0x130   :  { %v1976_v63 = vadd.f32 %v1975_v62, %v1974_v58  ;;  %v2075_v0 = vpop.f32.mrb[29].mxu1  ;;  %v1977_v1 = vpop.f32.mrb[30].mxu0 }
 0x131   :  { %v2076_v2 = vadd.f32 %v2075_v0, %v2074_v60  ;;  %v2077_v3 = vpop.f32.mrb[30].mxu1  ;;  %v1978_v4 = vpop.f32.mrb[31].mxu0 }
 0x132   :  { %v1979_v5 = vadd.f32 %v1978_v4, %v1977_v1  ;;  %v2078_v6 = vpop.f32.mrb[31].mxu1 }
 0x133   :  { %v2976_v7 = vadd.f32 %v2076_v2, %v1976_v63  ;;  %v2079_v8 = vadd.f32 %v2078_v6, %v2077_v3 }
 0x135   :  { %v2978_v10 = vadd.f32 %v2079_v8, %v1979_v5 }
 0x136   :  { %v1980_v12 = vpop.f32.mrb[32].mxu0 }
 0x137   :  { %v2080_v13 = vpop.f32.mrb[32].mxu1  ;;  %v1981_v14 = vpop.f32.mrb[33].mxu0 }
 0x138   :  { %v1982_v15 = vadd.f32 %v1981_v14, %v1980_v12  ;;  %v2081_v16 = vpop.f32.mrb[33].mxu1  ;;  %v1983_v17 = vpop.f32.mrb[34].mxu0 }
 0x139   :  { %v2082_v18 = vadd.f32 %v2081_v16, %v2080_v13  ;;  %v2083_v19 = vpop.f32.mrb[34].mxu1  ;;  %v1984_v20 = vpop.f32.mrb[35].mxu0 }
 0x13a   :  { %v1985_v21 = vadd.f32 %v1984_v20, %v1983_v17  ;;  %v2084_v22 = vpop.f32.mrb[35].mxu1 }
 0x13b   :  { %v2980_v24 = vadd.f32 %v2082_v18, %v1982_v15  ;;  %v2085_v26 = vadd.f32 %v2084_v22, %v2083_v19 }
 0x13d   :  { %v2982_v27 = vadd.f32 %v2085_v26, %v1985_v21 }
 0x13e   :  { %v1986_v28 = vpop.f32.mrb[36].mxu0 }
 0x13f   :  { %v2086_v29 = vpop.f32.mrb[36].mxu1  ;;  %v1987_v30 = vpop.f32.mrb[37].mxu0 }
 0x140   :  { %v1988_v32 = vadd.f32 %v1987_v30, %v1986_v28  ;;  %v2087_v34 = vpop.f32.mrb[37].mxu1  ;;  %v1989_v35 = vpop.f32.mrb[38].mxu0 }
 0x141   :  { %v2088_v36 = vadd.f32 %v2087_v34, %v2086_v29  ;;  %v2089_v37 = vpop.f32.mrb[38].mxu1  ;;  %v1990_v38 = vpop.f32.mrb[39].mxu0 }
 0x142   :  { %v1991_v40 = vadd.f32 %v1990_v38, %v1989_v35  ;;  %v2090_v42 = vpop.f32.mrb[39].mxu1 }
 0x143   :  { %v2984_v43 = vadd.f32 %v2088_v36, %v1988_v32  ;;  %v2091_v44 = vadd.f32 %v2090_v42, %v2089_v37 }
 0x145   :  { %v2986_v46 = vadd.f32 %v2091_v44, %v1991_v40 }
 0x146   :  { %v1992_v48 = vpop.f32.mrb[40].mxu0 }
 0x147   :  { %v2092_v49 = vpop.f32.mrb[40].mxu1  ;;  %v1993_v50 = vpop.f32.mrb[41].mxu0 }
 0x148   :  { %v1994_v51 = vadd.f32 %v1993_v50, %v1992_v48  ;;  %v2093_v52 = vpop.f32.mrb[41].mxu1  ;;  %v1995_v53 = vpop.f32.mrb[42].mxu0 }
 0x149   :  { %v2094_v54 = vadd.f32 %v2093_v52, %v2092_v49  ;;  %v2095_v56 = vpop.f32.mrb[42].mxu1  ;;  %v1996_v58 = vpop.f32.mrb[43].mxu0 }
 0x14a   :  { %v1997_v60 = vadd.f32 %v1996_v58, %v1995_v53  ;;  %v2096_v62 = vpop.f32.mrb[43].mxu1 }
 0x14b   :  { %v2988_v63 = vadd.f32 %v2094_v54, %v1994_v51  ;;  %v2097_v0 = vadd.f32 %v2096_v62, %v2095_v56 }
 0x14d   :  { %v2990_v1 = vadd.f32 %v2097_v0, %v1997_v60 }
 0x14e   :  { %v1998_v2 = vpop.f32.mrb[44].mxu0 }
 0x14f   :  { %v2098_v3 = vpop.f32.mrb[44].mxu1  ;;  %v1999_v4 = vpop.f32.mrb[45].mxu0 }
 0x150   :  { %v2000_v5 = vadd.f32 %v1999_v4, %v1998_v2  ;;  %v2099_v6 = vpop.f32.mrb[45].mxu1  ;;  %v2001_v8 = vpop.f32.mrb[46].mxu0 }
 0x151   :  { %v2100_v12 = vadd.f32 %v2099_v6, %v2098_v3  ;;  %v2101_v13 = vpop.f32.mrb[46].mxu1  ;;  %v2002_v14 = vpop.f32.mrb[47].mxu0 }
 0x152   :  { %v2003_v15 = vadd.f32 %v2002_v14, %v2001_v8  ;;  %v2102_v16 = vpop.f32.mrb[47].mxu1 }
 0x153   :  { %v1328_v17 = vadd.f32 %v2100_v12, %v2000_v5  ;;  %v2103_v18 = vadd.f32 %v2102_v16, %v2101_v13 }
 0x155   :  { %v1331_v19 = vadd.f32 %v2103_v18, %v2003_v15 }
 0x156   :  { %v2004_v20 = vpop.f32.mrb[48].mxu0 }
 0x157   :  { %v2104_v21 = vpop.f32.mrb[48].mxu1  ;;  %v2005_v22 = vpop.f32.mrb[49].mxu0 }
 0x158   :  { %v2006_v26 = vadd.f32 %v2005_v22, %v2004_v20  ;;  %v2105_v28 = vpop.f32.mrb[49].mxu1  ;;  %v2007_v29 = vpop.f32.mrb[50].mxu0 }
 0x159   :  { %v2106_v30 = vadd.f32 %v2105_v28, %v2104_v21  ;;  %v2107_v32 = vpop.f32.mrb[50].mxu1  ;;  %v2008_v34 = vpop.f32.mrb[51].mxu0 }
 0x15a   :  { %v2009_v35 = vadd.f32 %v2008_v34, %v2007_v29  ;;  %v2108_v36 = vpop.f32.mrb[51].mxu1 }
 0x15b   :  { %v1336_v37 = vadd.f32 %v2106_v30, %v2006_v26  ;;  %v2109_v38 = vadd.f32 %v2108_v36, %v2107_v32 }
 0x15d   :  { %v1339_v40 = vadd.f32 %v2109_v38, %v2009_v35 }
 0x15e   :  { %v2010_v42 = vpop.f32.mrb[52].mxu0 }
 0x15f   :  { %v2110_v44 = vpop.f32.mrb[52].mxu1  ;;  %v2011_v48 = vpop.f32.mrb[53].mxu0 }
 0x160   :  { %v2012_v49 = vadd.f32 %v2011_v48, %v2010_v42  ;;  %v2111_v50 = vpop.f32.mrb[53].mxu1  ;;  %v2013_v51 = vpop.f32.mrb[54].mxu0 }
 0x161   :  { %v2112_v52 = vadd.f32 %v2111_v50, %v2110_v44  ;;  %v2113_v53 = vpop.f32.mrb[54].mxu1  ;;  %v2014_v54 = vpop.f32.mrb[55].mxu0 }
 0x162   :  { %v2015_v56 = vadd.f32 %v2014_v54, %v2013_v51  ;;  %v2114_v58 = vpop.f32.mrb[55].mxu1 }
 0x163   :  { %v1344_v60 = vadd.f32 %v2112_v52, %v2012_v49  ;;  %v2115_v62 = vadd.f32 %v2114_v58, %v2113_v53 }
 0x165   :  { %v1347_v0 = vadd.f32 %v2115_v62, %v2015_v56 }
 0x166   :  { %v2132_v2 = vpop.f32.mrb[56].mxu0 }
 0x167   :  { %v2198_v3 = vpop.f32.mrb[56].mxu1  ;;  %v2133_v4 = vpop.f32.mrb[57].mxu0 }
 0x168   :  { %v2134_v5 = vadd.f32 %v2133_v4, %v2132_v2  ;;  %v2199_v6 = vpop.f32.mrb[57].mxu1  ;;  %v2135_v8 = vpop.f32.mrb[58].mxu0 }
 0x169   :  { %v2200_v12 = vadd.f32 %v2199_v6, %v2198_v3  ;;  %v2201_v13 = vpop.f32.mrb[58].mxu1  ;;  %v2136_v14 = vpop.f32.mrb[59].mxu0 }
 0x16a   :  { %v2137_v15 = vadd.f32 %v2136_v14, %v2135_v8  ;;  %v2202_v16 = vpop.f32.mrb[59].mxu1  ;;  %v1385_v18 = vadd.f32 %v2134_v5, %v2948_v31 }
 0x16b   :  { %v2203_v20 = vadd.f32 %v2202_v16, %v2201_v13  ;;  %v2993_v21 = vadd.f32 %v2200_v12, %v1328_v17 }
 0x16c   :  { %v1388_v22 = vadd.f32 %v2137_v15, %v2950_v33 }
 0x16d   :  { %v2996_v26 = vadd.f32 %v2203_v20, %v1331_v19 }
 0x16e   :  { %v2138_v28 = vpop.f32.mrb[60].mxu0 }
 0x16f   :  { %v2204_v29 = vpop.f32.mrb[60].mxu1  ;;  %v2139_v30 = vpop.f32.mrb[61].mxu0 }
 0x170   :  { %v2140_v32 = vadd.f32 %v2139_v30, %v2138_v28  ;;  %v2205_v34 = vpop.f32.mrb[61].mxu1  ;;  %v2141_v35 = vpop.f32.mrb[62].mxu0 }
 0x171   :  { %v2206_v36 = vadd.f32 %v2205_v34, %v2204_v29  ;;  %v2207_v38 = vpop.f32.mrb[62].mxu1  ;;  %v2142_v42 = vpop.f32.mrb[63].mxu0 }
 0x172   :  { %v2143_v44 = vadd.f32 %v2142_v42, %v2141_v35  ;;  %v2208_v48 = vpop.f32.mrb[63].mxu1  ;;  %v1393_v31 = vadd.f32 %v2140_v32, %v2952_v45 }
 0x173   :  { %v2209_v49 = vadd.f32 %v2208_v48, %v2207_v38  ;;  %v2999_v17 = vadd.f32 %v2206_v36, %v1336_v37 }
 0x174   :  { %v1396_v33 = vadd.f32 %v2143_v44, %v2954_v47 }
 0x175   :  { %v3002_v19 = vadd.f32 %v2209_v49, %v1339_v40 }
 0x176   :  { %v2144_v50 = vpop.f32.mrb[64].mxu0 }
 0x177   :  { %v2210_v51 = vpop.f32.mrb[64].mxu1  ;;  %v2145_v52 = vpop.f32.mrb[65].mxu0 }
 0x178   :  { %v2146_v53 = vadd.f32 %v2145_v52, %v2144_v50  ;;  %v2211_v54 = vpop.f32.mrb[65].mxu1  ;;  %v2147_v56 = vpop.f32.mrb[66].mxu0 }
 0x179   :  { %v2212_v58 = vadd.f32 %v2211_v54, %v2210_v51  ;;  %v2213_v62 = vpop.f32.mrb[66].mxu1  ;;  %v2148_v2 = vpop.f32.mrb[67].mxu0 }
 0x17a   :  { %v2149_v3 = vadd.f32 %v2148_v2, %v2147_v56  ;;  %v2214_v4 = vpop.f32.mrb[67].mxu1  ;;  %v1401_v45 = vadd.f32 %v2146_v53, %v2956_v59 }
 0x17b   :  { %v2215_v5 = vadd.f32 %v2214_v4, %v2213_v62  ;;  %v3005_v37 = vadd.f32 %v2212_v58, %v1344_v60 }
 0x17c   :  { %v1404_v47 = vadd.f32 %v2149_v3, %v2958_v61 }
 0x17d   :  { %v3008_v40 = vadd.f32 %v2215_v5, %v1347_v0 }
 0x17e   :  { %v2150_v6 = vpop.f32.mrb[68].mxu0 }
 0x17f   :  { %v2238_v8 = vpop.f32.mrb[68].mxu1  ;;  %v2151_v12 = vpop.f32.mrb[69].mxu0 }
 0x180   :  { %v3010_v13 = vadd.f32 %v2238_v8, %v1393_v31  ;;  %v2152_v14 = vadd.f32 %v2151_v12, %v2150_v6  ;;  %v1529_v15 = vpop.f32.mrb[69].mxu1  ;;  %v2153_v16 = vpop.f32.mrb[70].mxu0 }
 0x181   :  { %v3012_v20 = vadd.f32 %v1529_v15, %v1385_v18  ;;  %v2239_v28 = vpop.f32.mrb[70].mxu1  ;;  %v2154_v29 = vpop.f32.mrb[71].mxu0 }
 0x182   :  { %v3014_v59 = vadd.f32 %v2239_v28, %v1396_v33  ;;  %v2155_v60 = vadd.f32 %v2154_v29, %v2153_v16  ;;  %v1532_v30 = vpop.f32.mrb[71].mxu1  ;;  %v1409_v61 = vadd.f32 %v2152_v14, %v2960_v9 }
 0x183   :  { %v3017_v0 = vadd.f32 %v1532_v30, %v1388_v22 }
 0x184   :  { %v1412_v32 = vadd.f32 %v2155_v60, %v2962_v11 }
 0x186   :  { %v2156_v34 = vpop.f32.mrb[72].mxu0 }
 0x187   :  { %v2242_v35 = vpop.f32.mrb[72].mxu1  ;;  %v2157_v36 = vpop.f32.mrb[73].mxu0 }
 0x188   :  { %v3020_v38 = vadd.f32 %v2242_v35, %v1409_v61  ;;  %v2158_v42 = vadd.f32 %v2157_v36, %v2156_v34  ;;  %v1545_v18 = vpop.f32.mrb[73].mxu1  ;;  %v2159_v44 = vpop.f32.mrb[74].mxu0 }
 0x189   :  { %v3022_v48 = vadd.f32 %v1545_v18, %v1401_v45  ;;  %v2243_v31 = vpop.f32.mrb[74].mxu1  ;;  %v2160_v49 = vpop.f32.mrb[75].mxu0 }
 0x18a   :  { %v1557_v33 = vadd.f32 %v2243_v31, %v1412_v32  ;;  %v2161_v50 = vadd.f32 %v2160_v49, %v2159_v44  ;;  %v1548_v51 = vpop.f32.mrb[75].mxu1  ;;  %v1417_v9 = vadd.f32 %v2158_v42, %v2964_v23 }
 0x18b   :  { %v3025_v22 = vadd.f32 %v1548_v51, %v1404_v47 }
 0x18c   :  { %v1640_v11 = vmax.f32 %v3012_v20, %v1557_v33  ;;  %v1420_v52 = vadd.f32 %v2161_v50, %v2966_v25 }
 0x18e   :  { %v2162_v53 = vpop.f32.mrb[76].mxu0 }
 0x18f   :  { %v2246_v54 = vpop.f32.mrb[76].mxu1  ;;  %v2163_v56 = vpop.f32.mrb[77].mxu0 }
 0x190   :  { %v2164_v58 = vadd.f32 %v2163_v56, %v2162_v53  ;;  %v1561_v62 = vpop.f32.mrb[77].mxu1  ;;  %v2165_v2 = vpop.f32.mrb[78].mxu0 }
 0x191   :  { %v1562_v3 = vadd.f32 %v1561_v62, %v1417_v9  ;;  %v2247_v4 = vpop.f32.mrb[78].mxu1  ;;  %v2166_v45 = vpop.f32.mrb[79].mxu0 }
 0x192   :  { %v1425_v5 = vadd.f32 %v2164_v58, %v2968_v39  ;;  %v2167_v6 = vadd.f32 %v2166_v45, %v2165_v2  ;;  %v1564_v8 = vpop.f32.mrb[79].mxu1 }
 0x193   :  { %v1643_v23 = vmax.f32 %v3017_v0, %v1562_v3  ;;  %v1565_v47 = vadd.f32 %v1564_v8, %v1420_v52 }
 0x194   :  { %v3031_v12 = vadd.f32 %v2246_v54, %v1425_v5  ;;  %v1428_v25 = vadd.f32 %v2167_v6, %v2970_v41 }
 0x195   :  { %v1646_v14 = vmax.f32 %v3010_v13, %v1565_v47 }
 0x196   :  { %v3035_v15 = vadd.f32 %v2247_v4, %v1428_v25  ;;  %v2168_v16 = vpop.f32.mrb[80].mxu0  ;;  %v1649_v20 = vmax.f32 %v3014_v59, %v3031_v12 }
 0x197   :  { %v2169_v28 = vpop.f32.mrb[81].mxu0  ;;  %v2250_v29 = vpop.f32.mrb[80].mxu1 }
 0x198   :  { %v2170_v39 = vadd.f32 %v2169_v28, %v2168_v16  ;;  %v2171_v60 = vpop.f32.mrb[82].mxu0  ;;  %v1577_v30 = vpop.f32.mrb[81].mxu1  ;;  %v1652_v61 = vmax.f32 %v3022_v48, %v3035_v15 }
 0x199   :  { %v2172_v0 = vpop.f32.mrb[83].mxu0  ;;  %v2251_v32 = vpop.f32.mrb[82].mxu1 }
 0x19a   :  { %v2173_v34 = vadd.f32 %v2172_v0, %v2171_v60  ;;  %v1433_v41 = vadd.f32 %v2170_v39, %v2972_v55  ;;  %v1580_v13 = vpop.f32.mrb[83].mxu1 }
 0x19c   :  { %v3042_v35 = vadd.f32 %v1577_v30, %v1433_v41  ;;  %v1436_v36 = vadd.f32 %v2173_v34, %v2974_v57 }
 0x19e   :  { %v1655_v59 = vmax.f32 %v3025_v22, %v3042_v35  ;;  %v3047_v42 = vadd.f32 %v1580_v13, %v1436_v36  ;;  %v2174_v18 = vpop.f32.mrb[84].mxu0 }
 0x19f   :  { %v2175_v44 = vpop.f32.mrb[85].mxu0  ;;  %v2254_v31 = vpop.f32.mrb[84].mxu1 }
 0x1a0   :  { %v1658_v49 = vmax.f32 %v3020_v38, %v3047_v42  ;;  %v2176_v33 = vadd.f32 %v2175_v44, %v2174_v18  ;;  %v2177_v50 = vpop.f32.mrb[86].mxu0  ;;  %v1593_v51 = vpop.f32.mrb[85].mxu1 }
 0x1a1   :  { %v2178_v55 = vpop.f32.mrb[87].mxu0  ;;  %v2255_v9 = vpop.f32.mrb[86].mxu1 }
 0x1a2   :  { %v1441_v52 = vadd.f32 %v2176_v33, %v2976_v7  ;;  %v2179_v53 = vadd.f32 %v2178_v55, %v2177_v50  ;;  %v1596_v57 = vpop.f32.mrb[87].mxu1 }
 0x1a4   :  { %v1586_v54 = vadd.f32 %v2250_v29, %v1441_v52  ;;  %v1444_v56 = vadd.f32 %v2179_v53, %v2978_v10 }
 0x1a6   :  { %v3053_v58 = vmax.f32 %v1640_v11, %v1586_v54  ;;  %v1589_v62 = vadd.f32 %v2251_v32, %v1444_v56  ;;  %v2180_v2 = vpop.f32.mrb[88].mxu0 }
 0x1a7   :  { %v2258_v3 = vpop.f32.mrb[88].mxu1  ;;  %v2181_v4 = vpop.f32.mrb[89].mxu0 }
 0x1a8   :  { %v3056_v45 = vadd.f32 %v2258_v3, %v2993_v21  ;;  %v3058_v5 = vmax.f32 %v1643_v23, %v1589_v62  ;;  %v2182_v6 = vadd.f32 %v2181_v4, %v2180_v2  ;;  %v1609_v8 = vpop.f32.mrb[89].mxu1  ;;  %v2183_v47 = vpop.f32.mrb[90].mxu0 }
 0x1a9   :  { %v2259_v7 = vpop.f32.mrb[90].mxu1  ;;  %v2184_v12 = vpop.f32.mrb[91].mxu0 }
 0x1aa   :  { %v1645_v25 = vmax.f32 %v3058_v5, %v3056_v45  ;;  %v1449_v10 = vadd.f32 %v2182_v6, %v2980_v24  ;;  %v1621_v11 = vadd.f32 %v2259_v7, %v2996_v26  ;;  %v2185_v16 = vadd.f32 %v2184_v12, %v2183_v47  ;;  %v1612_v28 = vpop.f32.mrb[91].mxu1 }
 0x1ac   :  { %v1594_v29 = vadd.f32 %v1593_v51, %v1449_v10  ;;  %v1452_v21 = vadd.f32 %v2185_v16, %v2982_v27  ;;  %v1884_v27 = vld [vmem:[%s3100_s2] ss:$0 sm:$0xff] }
 0x1ad   :  { %v1669_v7 = vadd.f32 %v1884_v27, %v1645_v25 }
 0x1ae   :  { %v1647_v39 = vmax.f32 %v1646_v14, %v1594_v29  ;;  %v1597_v23 = vadd.f32 %v1596_v57, %v1452_v21  ;;  %v2186_v60 = vpop.f32.mrb[92].mxu0 }
 0x1af   :  { %v2262_v30 = vpop.f32.mrb[92].mxu1  ;;  %v2187_v0 = vpop.f32.mrb[93].mxu0  ;;  %v1676_v16 = vmax.f32 %v1669_v7, 0.0 }
 0x1b0   :  { %v1648_v32 = vmax.f32 %v1647_v39, %v1621_v11  ;;  %v1634_v34 = vadd.f32 %v2262_v30, %v3005_v37  ;;  %v2188_v41 = vadd.f32 %v2187_v0, %v2186_v60  ;;  %v1625_v13 = vpop.f32.mrb[93].mxu1  ;;  %v1650_v36 = vmax.f32 %v1649_v20, %v1597_v23  ;;  %v2189_v18 = vpop.f32.mrb[94].mxu0 }
 0x1b1   :  { %v1626_v24 = vadd.f32 %v1625_v13, %v2999_v17  ;;  %v2263_v26 = vpop.f32.mrb[94].mxu1  ;;  %v2190_v44 = vpop.f32.mrb[95].mxu0 }
 0x1b2   :  { %v1457_v14 = vadd.f32 %v2188_v41, %v2984_v43  ;;  %v1637_v33 = vadd.f32 %v2263_v26, %v3008_v40  ;;  %v2191_v50 = vadd.f32 %v2190_v44, %v2189_v18  ;;  %v1628_v51 = vpop.f32.mrb[95].mxu1  ;;  %v1670_v55 = vadd.f32 %v1884_v27, %v1648_v32 }
 0x1b3   :  { %v1651_v37 = vmax.f32 %v1650_v36, %v1626_v24  ;;  %v1629_v52 = vadd.f32 %v1628_v51, %v3002_v19 }
 0x1b4   :  { %v1602_v20 = vadd.f32 %v2254_v31, %v1457_v14  ;;  %v1460_v53 = vadd.f32 %v2191_v50, %v2986_v46  ;;  %v1677_v62 = vmax.f32 %v1670_v55, 0.0 }
 0x1b5   :  { %v1671_v17 = vadd.f32 %v1884_v27, %v1651_v37 }
 0x1b6   :  { %v1605_v57 = vadd.f32 %v2255_v9, %v1460_v53  ;;  %v1653_v54 = vmax.f32 %v1652_v61, %v1602_v20  ;;  %v2192_v56 = vpop.f32.mrb[96].mxu0 }
 0x1b7   :  { %v1678_v43 = vmax.f32 %v1671_v17, 0.0  ;;  %v2193_v2 = vpop.f32.mrb[97].mxu0 }
 0x1b8   :  { %v1656_v40 = vmax.f32 %v1655_v59, %v1605_v57  ;;  %v1654_v3 = vmax.f32 %v1653_v54, %v1629_v52  ;;  %v2194_v4 = vadd.f32 %v2193_v2, %v2192_v56  ;;  %v2195_v19 = vpop.f32.mrb[98].mxu0 }
 0x1b9   :  { %v1907_v31 = vpack.c.bf16 %v1678_v43, %v1677_v62  ;;  %v2196_v45 = vpop.f32.mrb[99].mxu0 }
 0x1ba   :  { %v1657_v46 = vmax.f32 %v1656_v40, %v1634_v34  ;;  %v1672_v5 = vadd.f32 %v1884_v27, %v1654_v3  ;;  %v1465_v9 = vadd.f32 %v2194_v4, %v2988_v63  ;;  %v2197_v6 = vadd.f32 %v2196_v45, %v2195_v19 }
 0x1bb   :  { %1914 = vst [vmem:[%s3101_s3 + $0x8] sm:$0xff] %v1907_v31  }
 0x1bc   :  { %v1673_v48 = vadd.f32 %v1884_v27, %v1657_v46  ;;  %v1610_v15 = vadd.f32 %v1609_v8, %v1465_v9  ;;  %v1468_v61 = vadd.f32 %v2197_v6, %v2990_v1  ;;  %v1679_v22 = vmax.f32 %v1672_v5, 0.0 }
 0x1be   :  { %v1680_v35 = vmax.f32 %v1673_v48, 0.0  ;;  %v1659_v59 = vmax.f32 %v1658_v49, %v1610_v15  ;;  %v1613_v47 = vadd.f32 %v1612_v28, %v1468_v61 }
 0x1c0   :  { %v1912_v12 = vpack.c.bf16 %v1680_v35, %v1679_v22  ;;  %v1660_v10 = vmax.f32 %v1659_v59, %v1637_v33  ;;  %v1642_v63 = vmax.f32 %v3053_v58, %v1613_v47 }
 0x1c2   :  { %1915 = vst [vmem:[%s3101_s3 + $0x10] sm:$0xff] %v1912_v12   ;;  %v1674_v11 = vadd.f32 %v1884_v27, %v1660_v10  ;;  %v1668_v8 = vadd.f32 %v1884_v27, %v1642_v63 }
 0x1c4   :  { %v1681_v1 = vmax.f32 %v1674_v11, 0.0  ;;  %v1675_v29 = vmax.f32 %v1668_v8, 0.0 }
 0x1c6   :  { %v1898_v21 = vpack.c.bf16 %v1681_v1, %v1681_v1  ;;  %v1902_v39 = vpack.c.bf16 %v1676_v16, %v1675_v29 }
 0x1c8   :  { %1717 = vst [vmem:[%s3101_s3 + $0x18] sm:$0xf] %v1898_v21  ;;  %1903 = vst [vmem:[%s3101_s3] sm:$0xff] %v1902_v39  }

// kernel: net_forward.5
= control target key start
LH: loop header
LB: loop body
LE: loop exit
PB: predicated region body
PF: predicated region fallthrough
CT: control target
= control target key end

     0   :  { %12 = vsyncpa [#allocation4], 0  ;;  %s13091_s0 = inlined_call_operand.vmem [shape: bf16[2,3200], index: 0, kind: input, shape index: {}]   ;;  %s13092_s1 = inlined_call_operand.vmem [shape: bf16[3200,2048], index: 1, kind: input, shape index: {}]   ;;  %s13093_s2 = inlined_call_operand.vmem [shape: f32[1,2048], index: 2, kind: input, shape index: {}]   ;;  %s13094_s3 = inlined_call_operand.hbm [shape: bf16[2048,512], index: 3, kind: input, shape index: {}]   ;;  %s13095_s4 = inlined_call_operand.vmem [shape: f32[1,512], index: 4, kind: input, shape index: {}]   ;;  %s13096_s5 = inlined_call_operand.vmem [shape: bf16[512,128], index: 5, kind: input, shape index: {}]   ;;  %s13097_s6 = inlined_call_operand.vmem [shape: f32[1,128], index: 6, kind: input, shape index: {}]   ;;  %s13098_s7 = inlined_call_operand.hbm [shape: f32[2,128], index: 7, kind: output, shape index: {}]  }
   0x1   :  { %13 = vsyncpa [#allocation5], 0  ;;  %s12032_s24 = smov 0  }
   0x2 LB: > { %s12038_s25 = sadd.s32 4294967295, %s11982_s24   ;;  %p9713_p0 = scmp.ge.s32.totalorder %s11982_s24, 1  ;;  %s11982_s24 = sphi %s12032_s24, %s19_s24  }
   0x3   : > { %p202_p1 = scmp.lt.s32.totalorder %s11982_s24, 6  ;;  %s11984_s26 = smov [#allocation3]  }
   0x4   : > { %s217_s27 = sshll.u32 %s11984_s26, 4  ;;  %p13099_p4 = scmp.eq.s32.totalorder %s12038_s25, 0  ;;  %s218_s27 = int_to_ptr.vmem [resolvable:$true] %s217_s27 }
   0x5   : > { %p12043_p3 = pnand %p9713_p0, %p202_p1  ;;  %s11914_s9 = scalar_lea.hbm %s13094_s3, 65536 }
   0x6   : > { %p11915_p7 = scmp.ne.s32.totalorder %s13094_s3, %s11914_s9  ;;  %p11921_p11 = scmp.lt.u32.totalorder %s11914_s9, %s13094_s3 }
   0x7   : > { %s13101_s28 = scalar_select %p12043_p3, 1, 0 }
   0x8   : > { %p11088_p5 = pneg %p12043_p3 }
   0xa   : > { %p12052_p6 = pnand %p13099_p4, %p11088_p5 }
   0xc   : > { %p11916_p8 = pneg %p12052_p6 }
   0xe   : > { %p11917_p9 = pnand %p11916_p8, %p11915_p7 }
  0x10   : > { %p11918_p10 = pneg %p11917_p9 }
  0x12   : > { %p11923_p12 = pnand %p11921_p11, %p11918_p10 }
  0x14   : > { %11926 = shalt.err (!%p11923_p12)
}
  0x15   : > { %s11927_s14 = scalar_lea.vmem %s218_s27, 65536  ;;  %p11935_p5 = scmp.lt.s32.totalorder %s218_s27, %s218_s27 }
  0x16   : > { %p11928_p13 = scmp.ne.s32.totalorder %s218_s27, %s11927_s14  ;;  %p11936_p2 = scmp.lt.s32.totalorder %s11927_s14, %s11927_s14 }
  0x18   : > { %p11930_p0 = pnand %p11928_p13, %p11916_p8  ;;  %p11937_p4 = por %p11936_p2, %p11935_p5 }
  0x1a   : > { %p11931_p1 = pneg %p11930_p0 }
  0x1c   : > { %p11938_p3 = pnand %p11937_p4, %p11931_p1 }
  0x1e   : > { %11941 = shalt.err (!%p11938_p3)
}
  0x1f   : > { %s11985_s15 = smov 256   ;;  %s11986_s16 = smov 16  }
  0x20   : > { %11091 = dma.hbm_to_vmem [thread:$0]  (!%p12052_p6), %s13094_s3, 65536, %s218_s27, [#allocation4], %s11985_s15, %s11985_s15, %s11986_s16  }
  0x21   : > { %p13103_p7 = scmp.ne.s32.totalorder %s13101_s28, 0 }
  0x22   : > { %p13104_p9 = scmp.eq.s32.totalorder (!%p13103_p7), %s12038_s25, 0 }
  0x23   : > { %260 = sbr.rel (%p13103_p7) target bundleno = 1846 (0x736), region = 48 }
  0x2a   : > { %11973 = dma.done.wait (%p13104_p9), [#allocation4], 65536   ;;  %p13105_p8 = pmov %p13104_p9 }
  0x2b   : > { %s292_s19 = smul.u32 5, %s12038_s25  ;;  %p13106_p4 = scmp.ne.s32.totalorder %s12038_s25, 0 }
  0x2c   : > { %11975 = vsyncadd (%p13105_p8), [#allocation4], 4294901760  ;;  %s297_s20 = smul.u32 80, %s12038_s25  ;;  %v11987_v0 = vmov (!%p13106_p4), 0.0  }
  0x2d   : > { %p293_p2 = scmp.lt.s32.totalorder %s292_s19, 24  ;;  %308 = sbr.rel (%p13106_p4) target bundleno = 52 (0x34), region = 56  ;;  %309 = vst [vmem:[#allocation2] sm:$0xff] (!%p13106_p4), %v11987_v0  ;;  %310 = vst [vmem:[#allocation2 + $0x8] sm:$0xff] (!%p13106_p4), %v11987_v0 }
  0x2e   : > { %p298_p3 = scmp.lt.s32.totalorder %s297_s20, 399  ;;  %311 = vst [vmem:[#allocation2 + $0x10] sm:$0xff] (!%p13106_p4), %v11987_v0  ;;  %312 = vst [vmem:[#allocation2 + $0x18] sm:$0xff] (!%p13106_p4), %v11987_v0 }
  0x2f   : > { %s13108_s19 = smov (!%p293_p2, %s292_s19), 24 }
  0x30   : > { %s13110_s20 = smov (!%p298_p3, %s297_s20), 399  ;;  %s295_s23 = scalar_lea.vmem %s13091_s0, %s13108_s19 }
  0x31   : > { %s10911_s26 = sshll.u32 %s13110_s20, 6 }
  0x32   : > { %s12089_s29 = scalar_lea.vmem %s13092_s1, %s10911_s26 }
  0x34 PF: > { %v318_v1 = vld [vmem:[%s12089_s29] sm:$0xff]  ;;  %v319_v3 = vld [vmem:[%s12089_s29 + $0x8] sm:$0xff]  ;;  %v11988_v33 = vmov 1966171168   ;;  %v963_v35 = vlaneseq  ;;  %p10361_p6 = scmp.ne.s32.totalorder %s12038_s25, 4 }
  0x35   : > { %v326_v2 = vld [vmem:[%s12089_s29 + $0x40] sm:$0xff]  ;;  %v327_v5 = vld [vmem:[%s12089_s29 + $0x48] sm:$0xff]  ;;  %v961_v34 = vunpack.c.l.s4 %v11988_v33 }
  0x36   : > { %v9722_v4 = vcombine.high %v318_v1, %v326_v2  ;;  %v9721_v6 = vcombine.low %v318_v1, %v326_v2  ;;  %v334_v7 = vld [vmem:[%s12089_s29 + $0x80] sm:$0xff]  ;;  %v9724_v9 = vcombine.high %v319_v3, %v327_v5  ;;  %v9723_v10 = vcombine.low %v319_v3, %v327_v5  ;;  %v335_v12 = vld [vmem:[%s12089_s29 + $0x88] sm:$0xff] }
  0x37   : > { %v342_v8 = vld [vmem:[%s12089_s29 + $0xc0] sm:$0xff]  ;;  %v343_v13 = vld [vmem:[%s12089_s29 + $0xc8] sm:$0xff]  ;;  %v962_v44 = vunpack.c.0.s8 %v961_v34  ;;  %v12115_v45 = vshrl.u32 %v963_v35, 7 }
  0x38   : > { %v9738_v11 = vcombine.high %v334_v7, %v342_v8  ;;  %v350_v14 = vld [vmem:[%s12089_s29 + $0x100] sm:$0xff]  ;;  %4203 = vmatprep.subr.bf16.mxu0 %v9722_v4  ;;  %v9740_v15 = vcombine.high %v335_v12, %v343_v13  ;;  %v351_v17 = vld [vmem:[%s12089_s29 + $0x108] sm:$0xff]  ;;  %4326 = vmatprep.subr.bf16.mxu1 %v9724_v9  ;;  %v9737_v19 = vcombine.low %v334_v7, %v342_v8 }
  0x39   : > { %v358_v16 = vld [vmem:[%s12089_s29 + $0x140] sm:$0xff]  ;;  %v359_v18 = vld [vmem:[%s12089_s29 + $0x148] sm:$0xff]  ;;  %4204 = vmatpush1.bf16.msra.mxu0 %v9721_v6  ;;  %4327 = vmatpush1.bf16.msra.mxu1 %v9723_v10  ;;  %v9739_v20 = vcombine.low %v335_v12, %v343_v13  ;;  %v12122_v54 = vsub.s32 %v962_v44, %v12115_v45 }
  0x3a   : > { %4205 = vmatprep.subr.bf16.mxu0 %v9738_v11  ;;  %v9754_v21 = vcombine.high %v350_v14, %v358_v16  ;;  %4328 = vmatprep.subr.bf16.mxu1 %v9740_v15  ;;  %v9756_v22 = vcombine.high %v351_v17, %v359_v18  ;;  %v366_v23 = vld [vmem:[%s12089_s29 + $0x180] sm:$0xff]  ;;  %v367_v25 = vld [vmem:[%s12089_s29 + $0x188] sm:$0xff]  ;;  %v9753_v27 = vcombine.low %v350_v14, %v358_v16 }
  0x3b   : > { %v374_v24 = vld [vmem:[%s12089_s29 + $0x1c0] sm:$0xff]  ;;  %v375_v26 = vld [vmem:[%s12089_s29 + $0x1c8] sm:$0xff]  ;;  %v9755_v28 = vcombine.low %v351_v17, %v359_v18 }
  0x3c   : > { %v9770_v29 = vcombine.high %v366_v23, %v374_v24  ;;  %v9772_v30 = vcombine.high %v367_v25, %v375_v26  ;;  %v382_v31 = vld [vmem:[%s12089_s29 + $0x200] sm:$0xff]  ;;  %v383_v36 = vld [vmem:[%s12089_s29 + $0x208] sm:$0xff]  ;;  %v9769_v38 = vcombine.low %v366_v23, %v374_v24  ;;  %v9771_v39 = vcombine.low %v367_v25, %v375_v26 }
  0x3d   : > { %4206 = vmatpush1.bf16.msra.mxu0 %v9737_v19  ;;  %4329 = vmatpush1.bf16.msra.mxu1 %v9739_v20  ;;  %v390_v32 = vld [vmem:[%s12089_s29 + $0x240] sm:$0xff]  ;;  %v391_v37 = vld [vmem:[%s12089_s29 + $0x248] sm:$0xff] }
  0x3e   : > { %4207 = vmatprep.subr.bf16.mxu0 %v9754_v21  ;;  %4330 = vmatprep.subr.bf16.mxu1 %v9756_v22  ;;  %v9786_v40 = vcombine.high %v382_v31, %v390_v32  ;;  %v9788_v41 = vcombine.high %v383_v36, %v391_v37  ;;  %v398_v42 = vld [vmem:[%s12089_s29 + $0x280] sm:$0xff]  ;;  %v399_v46 = vld [vmem:[%s12089_s29 + $0x288] sm:$0xff]  ;;  %v9785_v48 = vcombine.low %v382_v31, %v390_v32 }
  0x3f   : > { %v406_v43 = vld [vmem:[%s12089_s29 + $0x2c0] sm:$0xff]  ;;  %v407_v47 = vld [vmem:[%s12089_s29 + $0x2c8] sm:$0xff]  ;;  %v9787_v49 = vcombine.low %v383_v36, %v391_v37 }
  0x40   : > { %v9802_v50 = vcombine.high %v398_v42, %v406_v43  ;;  %v9804_v51 = vcombine.high %v399_v46, %v407_v47  ;;  %v414_v52 = vld [vmem:[%s12089_s29 + $0x300] sm:$0xff]  ;;  %v415_v55 = vld [vmem:[%s12089_s29 + $0x308] sm:$0xff]  ;;  %v9801_v57 = vcombine.low %v398_v42, %v406_v43  ;;  %v9803_v58 = vcombine.low %v399_v46, %v407_v47 }
  0x41   : > { %4208 = vmatpush1.bf16.msra.mxu0 %v9753_v27  ;;  %4331 = vmatpush1.bf16.msra.mxu1 %v9755_v28  ;;  %v422_v53 = vld [vmem:[%s12089_s29 + $0x340] sm:$0xff]  ;;  %v423_v56 = vld [vmem:[%s12089_s29 + $0x348] sm:$0xff] }
  0x42   : > { %4209 = vmatprep.subr.bf16.mxu0 %v9770_v29  ;;  %4332 = vmatprep.subr.bf16.mxu1 %v9772_v30  ;;  %v9818_v59 = vcombine.high %v414_v52, %v422_v53  ;;  %v317_v60 = vld [vmem:[%s295_s23] sm:$0x1f]  ;;  %v9820_v61 = vcombine.high %v415_v55, %v423_v56  ;;  %v431_v1 = vld [vmem:[%s12089_s29 + $0x388] sm:$0xff]  ;;  %v9817_v3 = vcombine.low %v414_v52, %v422_v53 }
  0x43   : > { %v430_v62 = vld [vmem:[%s12089_s29 + $0x380] sm:$0xff]  ;;  %v12134_v0 = vrot.slane %v317_v60, %v12122_v54  ;;  %v439_v2 = vld [vmem:[%s12089_s29 + $0x3c8] sm:$0xff]  ;;  %v9819_v5 = vcombine.low %v415_v55, %v423_v56  ;;  %v959_v22 = vcombine.high %v317_v60, %v317_v60 }
  0x44   : > { %v438_v63 = vld [vmem:[%s12089_s29 + $0x3c0] sm:$0xff]  ;;  %v9836_v7 = vcombine.high %v431_v1, %v439_v2  ;;  %v447_v11 = vld [vmem:[%s12089_s29 + $0x408] sm:$0xff]  ;;  %v9835_v14 = vcombine.low %v431_v1, %v439_v2 }
  0x45   : > { %4210 = vmatpush1.bf16.msra.mxu0 %v9769_v38  ;;  %4333 = vmatpush1.bf16.msra.mxu1 %v9771_v39  ;;  %v974_v4 = vcombine.high %v12134_v0, %v12134_v0  ;;  %v9834_v6 = vcombine.high %v430_v62, %v438_v63  ;;  %v446_v8 = vld [vmem:[%s12089_s29 + $0x400] sm:$0xff]  ;;  %v455_v12 = vld [vmem:[%s12089_s29 + $0x448] sm:$0xff]  ;;  %v9833_v13 = vcombine.low %v430_v62, %v438_v63 }
  0x46   : > { %4211 = vmatprep.subr.bf16.mxu0 %v9786_v40  ;;  %4334 = vmatprep.subr.bf16.mxu1 %v9788_v41  ;;  %v454_v9 = vld [vmem:[%s12089_s29 + $0x440] sm:$0xff]  ;;  %v9852_v16 = vcombine.high %v447_v11, %v455_v12  ;;  %v463_v19 = vld [vmem:[%s12089_s29 + $0x488] sm:$0xff]  ;;  %v9851_v23 = vcombine.low %v447_v11, %v455_v12  ;;  %v973_v28 = vrot.slane %v959_v22, %v12122_v54 }
  0x47   : > { %v12143_v10 = vrot.slane %v974_v4, %v12122_v54  ;;  %v9850_v15 = vcombine.high %v446_v8, %v454_v9  ;;  %v462_v17 = vld [vmem:[%s12089_s29 + $0x480] sm:$0xff]  ;;  %v471_v20 = vld [vmem:[%s12089_s29 + $0x4c8] sm:$0xff]  ;;  %v9849_v21 = vcombine.low %v446_v8, %v454_v9 }
  0x48   : > { %v470_v18 = vld [vmem:[%s12089_s29 + $0x4c0] sm:$0xff]  ;;  %v9868_v25 = vcombine.high %v463_v19, %v471_v20  ;;  %v479_v29 = vld [vmem:[%s12089_s29 + $0x508] sm:$0xff]  ;;  %v12159_v32 = vrot.slane %v973_v28, %v12122_v54  ;;  %v9867_v33 = vcombine.low %v463_v19, %v471_v20 }
  0x49   : > { %4212 = vmatpush1.bf16.msra.mxu0 %v9785_v48  ;;  %4335 = vmatpush1.bf16.msra.mxu1 %v9787_v49  ;;  %v9866_v24 = vcombine.high %v462_v17, %v470_v18  ;;  %v478_v26 = vld [vmem:[%s12089_s29 + $0x500] sm:$0xff]  ;;  %v487_v30 = vld [vmem:[%s12089_s29 + $0x548] sm:$0xff]  ;;  %v9865_v31 = vcombine.low %v462_v17, %v470_v18 }
  0x4a   : > { %4213 = vmatprep.subr.bf16.mxu0 %v9802_v50  ;;  %4336 = vmatprep.subr.bf16.mxu1 %v9804_v51  ;;  %v486_v27 = vld [vmem:[%s12089_s29 + $0x540] sm:$0xff]  ;;  %v9884_v35 = vcombine.high %v479_v29, %v487_v30  ;;  %v495_v38 = vld [vmem:[%s12089_s29 + $0x588] sm:$0xff]  ;;  %v9883_v41 = vcombine.low %v479_v29, %v487_v30 }
  0x4b   : > { %4235 = vmatprep.mubr.bf16.mxu0 %v12143_v10  ;;  %4358 = vmatprep.mubr.bf16.mxu1 %v12143_v10  ;;  %v9882_v34 = vcombine.high %v478_v26, %v486_v27  ;;  %v494_v36 = vld [vmem:[%s12089_s29 + $0x580] sm:$0xff]  ;;  %v503_v39 = vld [vmem:[%s12089_s29 + $0x5c8] sm:$0xff]  ;;  %v9881_v40 = vcombine.low %v478_v26, %v486_v27  ;;  %v12189_v26 = vrot.slane %v12134_v0, %v12122_v54 }
  0x4c   : > { %v502_v37 = vld [vmem:[%s12089_s29 + $0x5c0] sm:$0xff]  ;;  %v9900_v43 = vcombine.high %v495_v38, %v503_v39  ;;  %v511_v47 = vld [vmem:[%s12089_s29 + $0x608] sm:$0xff]  ;;  %v9899_v50 = vcombine.low %v495_v38, %v503_v39 }
  0x4d   : > { %4214 = vmatpush1.bf16.msra.mxu0 %v9801_v57  ;;  %4337 = vmatpush1.bf16.msra.mxu1 %v9803_v58  ;;  %v9898_v42 = vcombine.high %v494_v36, %v502_v37  ;;  %v510_v44 = vld [vmem:[%s12089_s29 + $0x600] sm:$0xff]  ;;  %v519_v48 = vld [vmem:[%s12089_s29 + $0x648] sm:$0xff]  ;;  %v9897_v49 = vcombine.low %v494_v36, %v502_v37  ;;  %v12197_v36 = vcombine.high %v12143_v10, %v12143_v10 }
  0x4e   : > { %4215 = vmatprep.subr.bf16.mxu0 %v9818_v59  ;;  %4338 = vmatprep.subr.bf16.mxu1 %v9820_v61  ;;  %v518_v46 = vld [vmem:[%s12089_s29 + $0x640] sm:$0xff]  ;;  %v9916_v52 = vcombine.high %v511_v47, %v519_v48  ;;  %v527_v56 = vld [vmem:[%s12089_s29 + $0x688] sm:$0xff]  ;;  %v9915_v59 = vcombine.low %v511_v47, %v519_v48 }
  0x4f   : > { %v9914_v51 = vcombine.high %v510_v44, %v518_v46  ;;  %v526_v53 = vld [vmem:[%s12089_s29 + $0x680] sm:$0xff]  ;;  %v535_v57 = vld [vmem:[%s12089_s29 + $0x6c8] sm:$0xff]  ;;  %v9913_v58 = vcombine.low %v510_v44, %v518_v46 }
  0x50   : > { %v534_v55 = vld [vmem:[%s12089_s29 + $0x6c0] sm:$0xff]  ;;  %v9932_v61 = vcombine.high %v527_v56, %v535_v57  ;;  %v543_v1 = vld [vmem:[%s12089_s29 + $0x708] sm:$0xff]  ;;  %v9931_v4 = vcombine.low %v527_v56, %v535_v57 }
  0x51   : > { %4216 = vmatpush1.bf16.msra.mxu0 %v9817_v3  ;;  %4339 = vmatpush1.bf16.msra.mxu1 %v9819_v5  ;;  %v9930_v60 = vcombine.high %v526_v53, %v534_v55  ;;  %v542_v62 = vld [vmem:[%s12089_s29 + $0x700] sm:$0xff]  ;;  %v551_v2 = vld [vmem:[%s12089_s29 + $0x748] sm:$0xff]  ;;  %v9929_v3 = vcombine.low %v526_v53, %v534_v55 }
  0x52   : > { %4217 = vmatprep.subr.bf16.mxu0 %v9834_v6  ;;  %4340 = vmatprep.subr.bf16.mxu1 %v9836_v7  ;;  %v550_v63 = vld [vmem:[%s12089_s29 + $0x740] sm:$0xff]  ;;  %v9948_v6 = vcombine.high %v543_v1, %v551_v2  ;;  %v559_v9 = vld [vmem:[%s12089_s29 + $0x788] sm:$0xff] }
  0x53   : > { %v9946_v5 = vcombine.high %v542_v62, %v550_v63  ;;  %v558_v7 = vld [vmem:[%s12089_s29 + $0x780] sm:$0xff]  ;;  %v567_v11 = vld [vmem:[%s12089_s29 + $0x7c8] sm:$0xff]  ;;  %v9945_v12 = vcombine.low %v542_v62, %v550_v63 }
  0x54   : > { %v566_v8 = vld [vmem:[%s12089_s29 + $0x7c0] sm:$0xff]  ;;  %v575_v18 = vld [vmem:[%s12089_s29 + $0x808] sm:$0xff] }
  0x55   : > { %4218 = vmatpush1.bf16.msra.mxu0 %v9833_v13  ;;  %4341 = vmatpush1.bf16.msra.mxu1 %v9835_v14  ;;  %v9947_v13 = vcombine.low %v543_v1, %v551_v2  ;;  %v9962_v14 = vcombine.high %v558_v7, %v566_v8  ;;  %v582_v17 = vld [vmem:[%s12089_s29 + $0x840] sm:$0xff]  ;;  %v583_v19 = vld [vmem:[%s12089_s29 + $0x848] sm:$0xff]  ;;  %v9961_v20 = vcombine.low %v558_v7, %v566_v8 }
  0x56   : > { %4219 = vmatprep.subr.bf16.mxu0 %v9850_v15  ;;  %4342 = vmatprep.subr.bf16.mxu1 %v9852_v16  ;;  %v9964_v15 = vcombine.high %v559_v9, %v567_v11  ;;  %v574_v16 = vld [vmem:[%s12089_s29 + $0x800] sm:$0xff]  ;;  %v591_v27 = vld [vmem:[%s12089_s29 + $0x888] sm:$0xff]  ;;  %v9979_v30 = vcombine.low %v575_v18, %v583_v19 }
  0x57   : > { %v9978_v22 = vcombine.high %v574_v16, %v582_v17  ;;  %v599_v28 = vld [vmem:[%s12089_s29 + $0x8c8] sm:$0xff]  ;;  %v9977_v29 = vcombine.low %v574_v16, %v582_v17 }
  0x58   : > { %v607_v54 = vld [vmem:[%s12089_s29 + $0x908] sm:$0xff]  ;;  %v9995_v38 = vcombine.low %v591_v27, %v599_v28 }
  0x59   : > { %4220 = vmatpush1.bf16.msra.mxu0 %v9849_v21  ;;  %4343 = vmatpush1.bf16.msra.mxu1 %v9851_v23  ;;  %v9963_v21 = vcombine.low %v559_v9, %v567_v11  ;;  %v9980_v23 = vcombine.high %v575_v18, %v583_v19  ;;  %v615_v0 = vld [vmem:[%s12089_s29 + $0x948] sm:$0xff] }
  0x5a   : > { %4221 = vmatprep.subr.bf16.mxu0 %v9866_v24  ;;  %4344 = vmatprep.subr.bf16.mxu1 %v9868_v25  ;;  %v590_v24 = vld [vmem:[%s12089_s29 + $0x880] sm:$0xff]  ;;  %v631_v44 = vld [vmem:[%s12089_s29 + $0x9c8] sm:$0xff]  ;;  %v10011_v47 = vcombine.low %v607_v54, %v615_v0 }
  0x5b   : > { %v598_v25 = vld [vmem:[%s12089_s29 + $0x8c0] sm:$0xff]  ;;  %v647_v53 = vld [vmem:[%s12089_s29 + $0xa48] sm:$0xff] }
  0x5c   : > { %v9993_v37 = vcombine.low %v590_v24, %v598_v25  ;;  %v663_v62 = vld [vmem:[%s12089_s29 + $0xac8] sm:$0xff] }
  0x5d   : > { %4222 = vmatpush1.bf16.msra.mxu0 %v9865_v31  ;;  %4345 = vmatpush1.bf16.msra.mxu1 %v9867_v33  ;;  %v9994_v31 = vcombine.high %v590_v24, %v598_v25  ;;  %v9996_v33 = vcombine.high %v591_v27, %v599_v28  ;;  %v679_v7 = vld [vmem:[%s12089_s29 + $0xb48] sm:$0xff] }
  0x5e   : > { %4223 = vmatprep.subr.bf16.mxu0 %v9882_v34  ;;  %4346 = vmatprep.subr.bf16.mxu1 %v9884_v35  ;;  %v606_v34 = vld [vmem:[%s12089_s29 + $0x900] sm:$0xff]  ;;  %v695_v16 = vld [vmem:[%s12089_s29 + $0xbc8] sm:$0xff] }
  0x5f   : > { %v614_v35 = vld [vmem:[%s12089_s29 + $0x940] sm:$0xff]  ;;  %v711_v24 = vld [vmem:[%s12089_s29 + $0xc48] sm:$0xff] }
  0x60   : > { %v10010_v39 = vcombine.high %v606_v34, %v614_v35  ;;  %v10009_v46 = vcombine.low %v606_v34, %v614_v35  ;;  %v727_v34 = vld [vmem:[%s12089_s29 + $0xcc8] sm:$0xff] }
  0x61   : > { %4224 = vmatpush1.bf16.msra.mxu0 %v9881_v40  ;;  %4347 = vmatpush1.bf16.msra.mxu1 %v9883_v41  ;;  %v10012_v40 = vcombine.high %v607_v54, %v615_v0  ;;  %v622_v41 = vld [vmem:[%s12089_s29 + $0x980] sm:$0xff] }
  0x62   : > { %4225 = vmatprep.subr.bf16.mxu0 %v9898_v42  ;;  %4348 = vmatprep.subr.bf16.mxu1 %v9900_v43  ;;  %v630_v42 = vld [vmem:[%s12089_s29 + $0x9c0] sm:$0xff]  ;;  %v623_v43 = vld [vmem:[%s12089_s29 + $0x988] sm:$0xff] }
  0x63   : > { %v10026_v48 = vcombine.high %v622_v41, %v630_v42  ;;  %v10025_v55 = vcombine.low %v622_v41, %v630_v42  ;;  %v10027_v56 = vcombine.low %v623_v43, %v631_v44  ;;  %v743_v41 = vld [vmem:[%s12089_s29 + $0xd48] sm:$0xff] }
  0x65   : > { %4226 = vmatpush1.bf16.msra.mxu0 %v9897_v49  ;;  %4349 = vmatpush1.bf16.msra.mxu1 %v9899_v50  ;;  %v10028_v49 = vcombine.high %v623_v43, %v631_v44  ;;  %v638_v50 = vld [vmem:[%s12089_s29 + $0xa00] sm:$0xff] }
  0x66   : > { %4227 = vmatprep.subr.bf16.mxu0 %v9914_v51  ;;  %4350 = vmatprep.subr.bf16.mxu1 %v9916_v52  ;;  %v646_v51 = vld [vmem:[%s12089_s29 + $0xa40] sm:$0xff]  ;;  %v639_v52 = vld [vmem:[%s12089_s29 + $0xa08] sm:$0xff] }
  0x67   : > { %v10042_v57 = vcombine.high %v638_v50, %v646_v51  ;;  %v10041_v63 = vcombine.low %v638_v50, %v646_v51  ;;  %v10043_v1 = vcombine.low %v639_v52, %v647_v53  ;;  %v759_v50 = vld [vmem:[%s12089_s29 + $0xdc8] sm:$0xff] }
  0x69   : > { %4228 = vmatpush1.bf16.msra.mxu0 %v9913_v58  ;;  %4351 = vmatpush1.bf16.msra.mxu1 %v9915_v59  ;;  %v10044_v58 = vcombine.high %v639_v52, %v647_v53  ;;  %v654_v59 = vld [vmem:[%s12089_s29 + $0xa80] sm:$0xff] }
  0x6a   : > { %4229 = vmatprep.subr.bf16.mxu0 %v9930_v60  ;;  %4352 = vmatprep.subr.bf16.mxu1 %v9932_v61  ;;  %v662_v60 = vld [vmem:[%s12089_s29 + $0xac0] sm:$0xff]  ;;  %v655_v61 = vld [vmem:[%s12089_s29 + $0xa88] sm:$0xff] }
  0x6b   : > { %v10058_v2 = vcombine.high %v654_v59, %v662_v60  ;;  %v10057_v8 = vcombine.low %v654_v59, %v662_v60  ;;  %v10059_v9 = vcombine.low %v655_v61, %v663_v62  ;;  %v775_v59 = vld [vmem:[%s12089_s29 + $0xe48] sm:$0xff] }
  0x6d   : > { %4230 = vmatpush1.bf16.msra.mxu0 %v9929_v3  ;;  %4353 = vmatpush1.bf16.msra.mxu1 %v9931_v4  ;;  %v10060_v3 = vcombine.high %v655_v61, %v663_v62  ;;  %v670_v4 = vld [vmem:[%s12089_s29 + $0xb00] sm:$0xff] }
  0x6e   : > { %4231 = vmatprep.subr.bf16.mxu0 %v9946_v5  ;;  %4354 = vmatprep.subr.bf16.mxu1 %v9948_v6  ;;  %v678_v5 = vld [vmem:[%s12089_s29 + $0xb40] sm:$0xff]  ;;  %v671_v6 = vld [vmem:[%s12089_s29 + $0xb08] sm:$0xff] }
  0x6f   : > { %v10074_v11 = vcombine.high %v670_v4, %v678_v5  ;;  %v10073_v17 = vcombine.low %v670_v4, %v678_v5  ;;  %v10075_v18 = vcombine.low %v671_v6, %v679_v7  ;;  %v791_v4 = vld [vmem:[%s12089_s29 + $0xec8] sm:$0xff] }
  0x71   : > { %4232 = vmatpush1.bf16.msra.mxu0 %v9945_v12  ;;  %4355 = vmatpush1.bf16.msra.mxu1 %v9947_v13  ;;  %v10076_v12 = vcombine.high %v671_v6, %v679_v7  ;;  %v686_v13 = vld [vmem:[%s12089_s29 + $0xb80] sm:$0xff] }
  0x72   : > { %4233 = vmatprep.subr.bf16.mxu0 %v9962_v14  ;;  %4356 = vmatprep.subr.bf16.mxu1 %v9964_v15  ;;  %v694_v14 = vld [vmem:[%s12089_s29 + $0xbc0] sm:$0xff]  ;;  %v687_v15 = vld [vmem:[%s12089_s29 + $0xb88] sm:$0xff] }
  0x73   : > { %v10090_v19 = vcombine.high %v686_v13, %v694_v14  ;;  %v10089_v25 = vcombine.low %v686_v13, %v694_v14  ;;  %v10091_v27 = vcombine.low %v687_v15, %v695_v16  ;;  %v807_v13 = vld [vmem:[%s12089_s29 + $0xf48] sm:$0xff] }
  0x75   : > { %4234 = vmatpush1.bf16.msra.mxu0 %v9961_v20  ;;  %4357 = vmatpush1.bf16.msra.mxu1 %v9963_v21  ;;  %v10092_v20 = vcombine.high %v687_v15, %v695_v16  ;;  %v702_v21 = vld [vmem:[%s12089_s29 + $0xc00] sm:$0xff] }
  0x76   : > { %4244 = vmatprep.subr.bf16.mxu0 %v9978_v22  ;;  %4367 = vmatprep.subr.bf16.mxu1 %v9980_v23  ;;  %v710_v22 = vld [vmem:[%s12089_s29 + $0xc40] sm:$0xff]  ;;  %v703_v23 = vld [vmem:[%s12089_s29 + $0xc08] sm:$0xff] }
  0x77   : > { %v10106_v28 = vcombine.high %v702_v21, %v710_v22  ;;  %v10105_v35 = vcombine.low %v702_v21, %v710_v22  ;;  %v10107_v54 = vcombine.low %v703_v23, %v711_v24  ;;  %v823_v21 = vld [vmem:[%s12089_s29 + $0xfc8] sm:$0xff] }
  0x78   : > { %4236 = vmatmul.mubr.bf16.vlgmr.msra.gmra.mrb[0].mxu0 %v12189_v26  ;;  %4359 = vmatmul.mubr.bf16.vlgmr.msra.gmra.mrb[0].mxu1 %v12189_v26 }
  0x79   : > { %4245 = vmatpush1.bf16.msra.mxu0 %v9977_v29  ;;  %4368 = vmatpush1.bf16.msra.mxu1 %v9979_v30  ;;  %v10108_v29 = vcombine.high %v703_v23, %v711_v24  ;;  %v718_v30 = vld [vmem:[%s12089_s29 + $0xc80] sm:$0xff] }
  0x7a   : > { %4246 = vmatprep.subr.bf16.mxu0 %v9994_v31  ;;  %4369 = vmatprep.subr.bf16.mxu1 %v9996_v33  ;;  %v726_v31 = vld [vmem:[%s12089_s29 + $0xcc0] sm:$0xff]  ;;  %v719_v33 = vld [vmem:[%s12089_s29 + $0xc88] sm:$0xff] }
  0x7b   : > { %4276 = vmatprep.mubr.bf16.mxu0 %v12197_v36  ;;  %4399 = vmatprep.mubr.bf16.mxu1 %v12197_v36  ;;  %v10122_v0 = vcombine.high %v718_v30, %v726_v31  ;;  %v10121_v42 = vcombine.low %v718_v30, %v726_v31  ;;  %v10123_v43 = vcombine.low %v719_v33, %v727_v34  ;;  %v839_v30 = vld [vmem:[%s12089_s29 + $0x1048] sm:$0xff] }
  0x7d   : > { %4247 = vmatpush1.bf16.msra.mxu0 %v9993_v37  ;;  %4370 = vmatpush1.bf16.msra.mxu1 %v9995_v38  ;;  %v10124_v37 = vcombine.high %v719_v33, %v727_v34  ;;  %v734_v38 = vld [vmem:[%s12089_s29 + $0xd00] sm:$0xff] }
  0x7e   : > { %4248 = vmatprep.subr.bf16.mxu0 %v10010_v39  ;;  %4371 = vmatprep.subr.bf16.mxu1 %v10012_v40  ;;  %v742_v39 = vld [vmem:[%s12089_s29 + $0xd40] sm:$0xff]  ;;  %v735_v40 = vld [vmem:[%s12089_s29 + $0xd08] sm:$0xff] }
  0x7f   : > { %v10138_v44 = vcombine.high %v734_v38, %v742_v39  ;;  %v10137_v51 = vcombine.low %v734_v38, %v742_v39  ;;  %v10139_v52 = vcombine.low %v735_v40, %v743_v41  ;;  %v847_v38 = vld [vmem:[%s12089_s29 + $0x1088] sm:$0xff] }
  0x80   : > { %v855_v39 = vld [vmem:[%s12089_s29 + $0x10c8] sm:$0xff] }
  0x81   : > { %4249 = vmatpush1.bf16.msra.mxu0 %v10009_v46  ;;  %4372 = vmatpush1.bf16.msra.mxu1 %v10011_v47  ;;  %v10140_v46 = vcombine.high %v735_v40, %v743_v41  ;;  %v750_v47 = vld [vmem:[%s12089_s29 + $0xd80] sm:$0xff] }
  0x82   : > { %4250 = vmatprep.subr.bf16.mxu0 %v10026_v48  ;;  %4373 = vmatprep.subr.bf16.mxu1 %v10028_v49  ;;  %v758_v48 = vld [vmem:[%s12089_s29 + $0xdc0] sm:$0xff]  ;;  %v751_v49 = vld [vmem:[%s12089_s29 + $0xd88] sm:$0xff] }
  0x83   : > { %v10154_v53 = vcombine.high %v750_v47, %v758_v48  ;;  %v10153_v60 = vcombine.low %v750_v47, %v758_v48  ;;  %v10155_v61 = vcombine.low %v751_v49, %v759_v50  ;;  %v863_v47 = vld [vmem:[%s12089_s29 + $0x1108] sm:$0xff] }
  0x84   : > { %v871_v48 = vld [vmem:[%s12089_s29 + $0x1148] sm:$0xff] }
  0x85   : > { %4251 = vmatpush1.bf16.msra.mxu0 %v10025_v55  ;;  %4374 = vmatpush1.bf16.msra.mxu1 %v10027_v56  ;;  %v10156_v55 = vcombine.high %v751_v49, %v759_v50  ;;  %v766_v56 = vld [vmem:[%s12089_s29 + $0xe00] sm:$0xff]  ;;  %v10251_v50 = vcombine.low %v847_v38, %v855_v39 }
  0x86   : > { %4252 = vmatprep.subr.bf16.mxu0 %v10042_v57  ;;  %4375 = vmatprep.subr.bf16.mxu1 %v10044_v58  ;;  %v774_v57 = vld [vmem:[%s12089_s29 + $0xe40] sm:$0xff]  ;;  %v767_v58 = vld [vmem:[%s12089_s29 + $0xe08] sm:$0xff] }
  0x87   : > { %v10170_v62 = vcombine.high %v766_v56, %v774_v57  ;;  %v10169_v5 = vcombine.low %v766_v56, %v774_v57  ;;  %v10171_v6 = vcombine.low %v767_v58, %v775_v59  ;;  %v11989_v56 = vmov 0   ;;  %v879_v57 = vld [vmem:[%s12089_s29 + $0x1188] sm:$0xff] }
  0x89   : > { %4253 = vmatpush1.bf16.msra.mxu0 %v10041_v63  ;;  %4376 = vmatpush1.bf16.msra.mxu1 %v10043_v1  ;;  %v10172_v63 = vcombine.high %v767_v58, %v775_v59  ;;  %v782_v1 = vld [vmem:[%s12089_s29 + $0xe80] sm:$0xff]  ;;  %v887_v58 = vld [vmem:[%s12089_s29 + $0x11c8] sm:$0xff] }
  0x8a   : > { %4254 = vmatprep.subr.bf16.mxu0 %v10058_v2  ;;  %4377 = vmatprep.subr.bf16.mxu1 %v10060_v3  ;;  %v790_v2 = vld [vmem:[%s12089_s29 + $0xec0] sm:$0xff]  ;;  %v783_v3 = vld [vmem:[%s12089_s29 + $0xe88] sm:$0xff] }
  0x8b   : > { %v10186_v7 = vcombine.high %v782_v1, %v790_v2  ;;  %v10185_v14 = vcombine.low %v782_v1, %v790_v2  ;;  %v10187_v15 = vcombine.low %v783_v3, %v791_v4  ;;  %v902_v1 = vld [vmem:[%s12089_s29 + $0x1240] sm:$0xff]  ;;  %v895_v2 = vld [vmem:[%s12089_s29 + $0x1208] sm:$0xff] }
  0x8d   : > { %4255 = vmatpush1.bf16.msra.mxu0 %v10057_v8  ;;  %4378 = vmatpush1.bf16.msra.mxu1 %v10059_v9  ;;  %v10188_v8 = vcombine.high %v783_v3, %v791_v4  ;;  %v798_v9 = vld [vmem:[%s12089_s29 + $0xf00] sm:$0xff]  ;;  %v903_v3 = vld [vmem:[%s12089_s29 + $0x1248] sm:$0xff] }
  0x8e   : > { %4256 = vmatprep.subr.bf16.mxu0 %v10074_v11  ;;  %4379 = vmatprep.subr.bf16.mxu1 %v10076_v12  ;;  %v806_v11 = vld [vmem:[%s12089_s29 + $0xf40] sm:$0xff]  ;;  %v799_v12 = vld [vmem:[%s12089_s29 + $0xf08] sm:$0xff] }
  0x8f   : > { %v10202_v16 = vcombine.high %v798_v9, %v806_v11  ;;  %v10201_v22 = vcombine.low %v798_v9, %v806_v11  ;;  %v10203_v23 = vcombine.low %v799_v12, %v807_v13  ;;  %v918_v9 = vld [vmem:[%s12089_s29 + $0x12c0] sm:$0xff]  ;;  %v911_v11 = vld [vmem:[%s12089_s29 + $0x1288] sm:$0xff] }
  0x91   : > { %4257 = vmatpush1.bf16.msra.mxu0 %v10073_v17  ;;  %4380 = vmatpush1.bf16.msra.mxu1 %v10075_v18  ;;  %v10204_v17 = vcombine.high %v799_v12, %v807_v13  ;;  %v814_v18 = vld [vmem:[%s12089_s29 + $0xf80] sm:$0xff]  ;;  %v919_v12 = vld [vmem:[%s12089_s29 + $0x12c8] sm:$0xff] }
  0x92   : > { %4258 = vmatprep.subr.bf16.mxu0 %v10090_v19  ;;  %4381 = vmatprep.subr.bf16.mxu1 %v10092_v20  ;;  %v822_v19 = vld [vmem:[%s12089_s29 + $0xfc0] sm:$0xff]  ;;  %v815_v20 = vld [vmem:[%s12089_s29 + $0xf88] sm:$0xff] }
  0x93   : > { %v10218_v24 = vcombine.high %v814_v18, %v822_v19  ;;  %v10217_v31 = vcombine.low %v814_v18, %v822_v19  ;;  %v10219_v33 = vcombine.low %v815_v20, %v823_v21  ;;  %v934_v18 = vld [vmem:[%s12089_s29 + $0x1340] sm:$0xff]  ;;  %v927_v19 = vld [vmem:[%s12089_s29 + $0x1308] sm:$0xff] }
  0x95   : > { %4259 = vmatpush1.bf16.msra.mxu0 %v10089_v25  ;;  %4382 = vmatpush1.bf16.msra.mxu1 %v10091_v27  ;;  %v10220_v25 = vcombine.high %v815_v20, %v823_v21  ;;  %v830_v27 = vld [vmem:[%s12089_s29 + $0x1000] sm:$0xff]  ;;  %v935_v20 = vld [vmem:[%s12089_s29 + $0x1348] sm:$0xff] }
  0x96   : > { %4260 = vmatprep.subr.bf16.mxu0 %v10106_v28  ;;  %4383 = vmatprep.subr.bf16.mxu1 %v10108_v29  ;;  %v838_v28 = vld [vmem:[%s12089_s29 + $0x1040] sm:$0xff]  ;;  %v831_v29 = vld [vmem:[%s12089_s29 + $0x1008] sm:$0xff] }
  0x97   : > { %v10234_v34 = vcombine.high %v830_v27, %v838_v28  ;;  %v10233_v40 = vcombine.low %v830_v27, %v838_v28  ;;  %v10235_v41 = vcombine.low %v831_v29, %v839_v30  ;;  %v950_v27 = vld [vmem:[%s12089_s29 + $0x13c0] sm:$0xff]  ;;  %v943_v28 = vld [vmem:[%s12089_s29 + $0x1388] sm:$0xff] }
  0x99   : > { %4261 = vmatpush1.bf16.msra.mxu0 %v10105_v35  ;;  %4384 = vmatpush1.bf16.msra.mxu1 %v10107_v54  ;;  %v10236_v35 = vcombine.high %v831_v29, %v839_v30  ;;  %v846_v54 = vld [vmem:[%s12089_s29 + $0x1080] sm:$0xff]  ;;  %v951_v29 = vld [vmem:[%s12089_s29 + $0x13c8] sm:$0xff] }
  0x9a   : > { %4262 = vmatprep.subr.bf16.mxu0 %v10122_v0  ;;  %4385 = vmatprep.subr.bf16.mxu1 %v10124_v37  ;;  %v854_v0 = vld [vmem:[%s12089_s29 + $0x10c0] sm:$0xff]  ;;  %v12265_v37 = vcombine.high %v12189_v26, %v12189_v26 }
  0x9b   : > { %v10249_v49 = vcombine.low %v846_v54, %v854_v0 }
  0x9d   : > { %4263 = vmatpush1.bf16.msra.mxu0 %v10121_v42  ;;  %4386 = vmatpush1.bf16.msra.mxu1 %v10123_v43  ;;  %v10250_v42 = vcombine.high %v846_v54, %v854_v0  ;;  %v10252_v43 = vcombine.high %v847_v38, %v855_v39  ;;  %v328_v54 = vld [vmem:[%s12089_s29 + $0x50] sm:$0xff]  ;;  %v321_v0 = vld [vmem:[%s12089_s29 + $0x18] sm:$0xff] }
  0x9e   : > { %4264 = vmatprep.subr.bf16.mxu0 %v10138_v44  ;;  %4387 = vmatprep.subr.bf16.mxu1 %v10140_v46  ;;  %v862_v44 = vld [vmem:[%s12089_s29 + $0x1100] sm:$0xff]  ;;  %v329_v38 = vld [vmem:[%s12089_s29 + $0x58] sm:$0xff] }
  0x9f   : > { %v870_v46 = vld [vmem:[%s12089_s29 + $0x1140] sm:$0xff] }
  0xa0   : > { %v10265_v59 = vcombine.low %v862_v44, %v870_v46 }
  0xa1   : > { %4265 = vmatpush1.bf16.msra.mxu0 %v10137_v51  ;;  %4388 = vmatpush1.bf16.msra.mxu1 %v10139_v52  ;;  %v10266_v51 = vcombine.high %v862_v44, %v870_v46  ;;  %v10268_v52 = vcombine.high %v863_v47, %v871_v48  ;;  %v344_v44 = vld [vmem:[%s12089_s29 + $0xd0] sm:$0xff]  ;;  %v337_v46 = vld [vmem:[%s12089_s29 + $0x98] sm:$0xff] }
  0xa2   : > { %4266 = vmatprep.subr.bf16.mxu0 %v10154_v53  ;;  %4389 = vmatprep.subr.bf16.mxu1 %v10156_v55  ;;  %v878_v53 = vld [vmem:[%s12089_s29 + $0x1180] sm:$0xff] }
  0xa3   : > { %v886_v55 = vld [vmem:[%s12089_s29 + $0x11c0] sm:$0xff] }
  0xa4   : > { %v10281_v4 = vcombine.low %v878_v53, %v886_v55 }
  0xa5   : > { %4267 = vmatpush1.bf16.msra.mxu0 %v10153_v60  ;;  %4390 = vmatpush1.bf16.msra.mxu1 %v10155_v61  ;;  %v10267_v60 = vcombine.low %v863_v47, %v871_v48  ;;  %v10282_v61 = vcombine.high %v878_v53, %v886_v55  ;;  %v345_v47 = vld [vmem:[%s12089_s29 + $0xd8] sm:$0xff]  ;;  %v360_v53 = vld [vmem:[%s12089_s29 + $0x150] sm:$0xff] }
  0xa6   : > { %4268 = vmatprep.subr.bf16.mxu0 %v10170_v62  ;;  %4391 = vmatprep.subr.bf16.mxu1 %v10172_v63  ;;  %v10284_v62 = vcombine.high %v879_v57, %v887_v58  ;;  %v894_v63 = vld [vmem:[%s12089_s29 + $0x1200] sm:$0xff]  ;;  %v353_v55 = vld [vmem:[%s12089_s29 + $0x118] sm:$0xff] }
  0xa7   : > { %v10297_v13 = vcombine.low %v894_v63, %v902_v1 }
  0xa9   : > { %4269 = vmatpush1.bf16.msra.mxu0 %v10169_v5  ;;  %4392 = vmatpush1.bf16.msra.mxu1 %v10171_v6  ;;  %v10283_v5 = vcombine.low %v879_v57, %v887_v58  ;;  %v10298_v6 = vcombine.high %v894_v63, %v902_v1  ;;  %v361_v57 = vld [vmem:[%s12089_s29 + $0x158] sm:$0xff]  ;;  %v376_v63 = vld [vmem:[%s12089_s29 + $0x1d0] sm:$0xff] }
  0xaa   : > { %4270 = vmatprep.subr.bf16.mxu0 %v10186_v7  ;;  %4393 = vmatprep.subr.bf16.mxu1 %v10188_v8  ;;  %v10300_v7 = vcombine.high %v895_v2, %v903_v3  ;;  %v910_v8 = vld [vmem:[%s12089_s29 + $0x1280] sm:$0xff]  ;;  %v369_v1 = vld [vmem:[%s12089_s29 + $0x198] sm:$0xff] }
  0xab   : > { %v10313_v21 = vcombine.low %v910_v8, %v918_v9 }
  0xad   : > { %4271 = vmatpush1.bf16.msra.mxu0 %v10185_v14  ;;  %4394 = vmatpush1.bf16.msra.mxu1 %v10187_v15  ;;  %v10299_v14 = vcombine.low %v895_v2, %v903_v3  ;;  %v10314_v15 = vcombine.high %v910_v8, %v918_v9  ;;  %v377_v2 = vld [vmem:[%s12089_s29 + $0x1d8] sm:$0xff]  ;;  %v392_v8 = vld [vmem:[%s12089_s29 + $0x250] sm:$0xff] }
  0xae   : > { %4272 = vmatprep.subr.bf16.mxu0 %v10202_v16  ;;  %4395 = vmatprep.subr.bf16.mxu1 %v10204_v17  ;;  %v10316_v16 = vcombine.high %v911_v11, %v919_v12  ;;  %v926_v17 = vld [vmem:[%s12089_s29 + $0x1300] sm:$0xff]  ;;  %v385_v9 = vld [vmem:[%s12089_s29 + $0x218] sm:$0xff] }
  0xaf   : > { %v10329_v30 = vcombine.low %v926_v17, %v934_v18 }
  0xb1   : > { %4273 = vmatpush1.bf16.msra.mxu0 %v10201_v22  ;;  %4396 = vmatpush1.bf16.msra.mxu1 %v10203_v23  ;;  %v10315_v22 = vcombine.low %v911_v11, %v919_v12  ;;  %v10330_v23 = vcombine.high %v926_v17, %v934_v18  ;;  %v393_v11 = vld [vmem:[%s12089_s29 + $0x258] sm:$0xff]  ;;  %v408_v17 = vld [vmem:[%s12089_s29 + $0x2d0] sm:$0xff] }
  0xb2   : > { %4274 = vmatprep.subr.bf16.mxu0 %v10218_v24  ;;  %4397 = vmatprep.subr.bf16.mxu1 %v10220_v25  ;;  %v10332_v24 = vcombine.high %v927_v19, %v935_v20  ;;  %v942_v25 = vld [vmem:[%s12089_s29 + $0x1380] sm:$0xff]  ;;  %v401_v18 = vld [vmem:[%s12089_s29 + $0x298] sm:$0xff] }
  0xb3   : > { %v10345_v39 = vcombine.low %v942_v25, %v950_v27 }
  0xb5   : > { %4275 = vmatpush1.bf16.msra.mxu0 %v10217_v31  ;;  %4398 = vmatpush1.bf16.msra.mxu1 %v10219_v33  ;;  %v10331_v31 = vcombine.low %v927_v19, %v935_v20  ;;  %v10346_v33 = vcombine.high %v942_v25, %v950_v27  ;;  %v409_v19 = vld [vmem:[%s12089_s29 + $0x2d8] sm:$0xff]  ;;  %v424_v25 = vld [vmem:[%s12089_s29 + $0x350] sm:$0xff] }
  0xb6   : > { %4285 = vmatprep.subr.bf16.mxu0 %v10234_v34  ;;  %4408 = vmatprep.subr.bf16.mxu1 %v10236_v35  ;;  %v10348_v34 = vcombine.high %v943_v28, %v951_v29  ;;  %v320_v35 = vld [vmem:[%s12089_s29 + $0x10] sm:$0xff]  ;;  %v417_v27 = vld [vmem:[%s12089_s29 + $0x318] sm:$0xff] }
  0xb7   : > { %v9725_v48 = vcombine.low %v320_v35, %v328_v54 }
  0xb8   : > { %4277 = vmatmul.mubr.bf16.vlgmr.msra.gmra.mrb[0].mxu0 %v12265_v37  ;;  %4400 = vmatmul.mubr.bf16.vlgmr.msra.gmra.mrb[0].mxu1 %v12265_v37 }
  0xb9   : > { %4286 = vmatpush1.bf16.msra.mxu0 %v10233_v40  ;;  %4409 = vmatpush1.bf16.msra.mxu1 %v10235_v41  ;;  %v10347_v40 = vcombine.low %v943_v28, %v951_v29  ;;  %v9726_v41 = vcombine.high %v320_v35, %v328_v54  ;;  %v425_v28 = vld [vmem:[%s12089_s29 + $0x358] sm:$0xff]  ;;  %v440_v35 = vld [vmem:[%s12089_s29 + $0x3d0] sm:$0xff] }
  0xba   : > { %4287 = vmatprep.subr.bf16.mxu0 %v10250_v42  ;;  %4410 = vmatprep.subr.bf16.mxu1 %v10252_v43  ;;  %v9728_v42 = vcombine.high %v321_v0, %v329_v38  ;;  %v336_v43 = vld [vmem:[%s12089_s29 + $0x90] sm:$0xff]  ;;  %v433_v54 = vld [vmem:[%s12089_s29 + $0x398] sm:$0xff] }
  0xbb   : > { %4317 = vmatprep.mubr.bf16.mxu0 %v11989_v56  ;;  %4440 = vmatprep.mubr.bf16.mxu1 %v11989_v56  ;;  %v9741_v58 = vcombine.low %v336_v43, %v344_v44 }
  0xbd   : > { %4288 = vmatpush1.bf16.msra.mxu0 %v10249_v49  ;;  %4411 = vmatpush1.bf16.msra.mxu1 %v10251_v50  ;;  %v9727_v49 = vcombine.low %v321_v0, %v329_v38  ;;  %v9742_v50 = vcombine.high %v336_v43, %v344_v44  ;;  %v441_v0 = vld [vmem:[%s12089_s29 + $0x3d8] sm:$0xff]  ;;  %v456_v43 = vld [vmem:[%s12089_s29 + $0x450] sm:$0xff] }
  0xbe   : > { %4289 = vmatprep.subr.bf16.mxu0 %v10266_v51  ;;  %4412 = vmatprep.subr.bf16.mxu1 %v10268_v52  ;;  %v9744_v51 = vcombine.high %v337_v46, %v345_v47  ;;  %v352_v52 = vld [vmem:[%s12089_s29 + $0x110] sm:$0xff]  ;;  %v449_v44 = vld [vmem:[%s12089_s29 + $0x418] sm:$0xff] }
  0xbf   : > { %v9757_v3 = vcombine.low %v352_v52, %v360_v53 }
  0xc1   : > { %4290 = vmatpush1.bf16.msra.mxu0 %v10265_v59  ;;  %4413 = vmatpush1.bf16.msra.mxu1 %v10267_v60  ;;  %v9743_v59 = vcombine.low %v337_v46, %v345_v47  ;;  %v9758_v60 = vcombine.high %v352_v52, %v360_v53  ;;  %v457_v46 = vld [vmem:[%s12089_s29 + $0x458] sm:$0xff]  ;;  %v472_v52 = vld [vmem:[%s12089_s29 + $0x4d0] sm:$0xff] }
  0xc2   : > { %4291 = vmatprep.subr.bf16.mxu0 %v10282_v61  ;;  %4414 = vmatprep.subr.bf16.mxu1 %v10284_v62  ;;  %v9760_v61 = vcombine.high %v353_v55, %v361_v57  ;;  %v368_v62 = vld [vmem:[%s12089_s29 + $0x190] sm:$0xff]  ;;  %v465_v53 = vld [vmem:[%s12089_s29 + $0x498] sm:$0xff] }
  0xc3   : > { %v9773_v12 = vcombine.low %v368_v62, %v376_v63 }
  0xc5   : > { %4292 = vmatpush1.bf16.msra.mxu0 %v10281_v4  ;;  %4415 = vmatpush1.bf16.msra.mxu1 %v10283_v5  ;;  %v9759_v4 = vcombine.low %v353_v55, %v361_v57  ;;  %v9774_v5 = vcombine.high %v368_v62, %v376_v63  ;;  %v473_v55 = vld [vmem:[%s12089_s29 + $0x4d8] sm:$0xff]  ;;  %v488_v62 = vld [vmem:[%s12089_s29 + $0x550] sm:$0xff] }
  0xc6   : > { %4293 = vmatprep.subr.bf16.mxu0 %v10298_v6  ;;  %4416 = vmatprep.subr.bf16.mxu1 %v10300_v7  ;;  %v9776_v6 = vcombine.high %v369_v1, %v377_v2  ;;  %v384_v7 = vld [vmem:[%s12089_s29 + $0x210] sm:$0xff]  ;;  %v481_v63 = vld [vmem:[%s12089_s29 + $0x518] sm:$0xff] }
  0xc7   : > { %v9789_v20 = vcombine.low %v384_v7, %v392_v8 }
  0xc9   : > { %4294 = vmatpush1.bf16.msra.mxu0 %v10297_v13  ;;  %4417 = vmatpush1.bf16.msra.mxu1 %v10299_v14  ;;  %v9775_v13 = vcombine.low %v369_v1, %v377_v2  ;;  %v9790_v14 = vcombine.high %v384_v7, %v392_v8  ;;  %v489_v1 = vld [vmem:[%s12089_s29 + $0x558] sm:$0xff]  ;;  %v504_v7 = vld [vmem:[%s12089_s29 + $0x5d0] sm:$0xff] }
  0xca   : > { %4295 = vmatprep.subr.bf16.mxu0 %v10314_v15  ;;  %4418 = vmatprep.subr.bf16.mxu1 %v10316_v16  ;;  %v9792_v15 = vcombine.high %v385_v9, %v393_v11  ;;  %v400_v16 = vld [vmem:[%s12089_s29 + $0x290] sm:$0xff]  ;;  %v497_v8 = vld [vmem:[%s12089_s29 + $0x598] sm:$0xff] }
  0xcb   : > { %v9805_v29 = vcombine.low %v400_v16, %v408_v17 }
  0xcd   : > { %4296 = vmatpush1.bf16.msra.mxu0 %v10313_v21  ;;  %4419 = vmatpush1.bf16.msra.mxu1 %v10315_v22  ;;  %v9791_v21 = vcombine.low %v385_v9, %v393_v11  ;;  %v9806_v22 = vcombine.high %v400_v16, %v408_v17  ;;  %v505_v9 = vld [vmem:[%s12089_s29 + $0x5d8] sm:$0xff]  ;;  %v520_v16 = vld [vmem:[%s12089_s29 + $0x650] sm:$0xff] }
  0xce   : > { %4297 = vmatprep.subr.bf16.mxu0 %v10330_v23  ;;  %4420 = vmatprep.subr.bf16.mxu1 %v10332_v24  ;;  %v9808_v23 = vcombine.high %v401_v18, %v409_v19  ;;  %v416_v24 = vld [vmem:[%s12089_s29 + $0x310] sm:$0xff]  ;;  %v513_v17 = vld [vmem:[%s12089_s29 + $0x618] sm:$0xff] }
  0xcf   : > { %v9821_v38 = vcombine.low %v416_v24, %v424_v25 }
  0xd1   : > { %4298 = vmatpush1.bf16.msra.mxu0 %v10329_v30  ;;  %4421 = vmatpush1.bf16.msra.mxu1 %v10331_v31  ;;  %v9807_v30 = vcombine.low %v401_v18, %v409_v19  ;;  %v9822_v31 = vcombine.high %v416_v24, %v424_v25  ;;  %v521_v18 = vld [vmem:[%s12089_s29 + $0x658] sm:$0xff]  ;;  %v536_v24 = vld [vmem:[%s12089_s29 + $0x6d0] sm:$0xff] }
  0xd2   : > { %4299 = vmatprep.subr.bf16.mxu0 %v10346_v33  ;;  %4422 = vmatprep.subr.bf16.mxu1 %v10348_v34  ;;  %v9824_v33 = vcombine.high %v417_v27, %v425_v28  ;;  %v432_v34 = vld [vmem:[%s12089_s29 + $0x390] sm:$0xff]  ;;  %v529_v25 = vld [vmem:[%s12089_s29 + $0x698] sm:$0xff] }
  0xd3   : > { %v9837_v47 = vcombine.low %v432_v34, %v440_v35 }
  0xd5   : > { %4300 = vmatpush1.bf16.msra.mxu0 %v10345_v39  ;;  %4423 = vmatpush1.bf16.msra.mxu1 %v10347_v40  ;;  %v9823_v39 = vcombine.low %v417_v27, %v425_v28  ;;  %v9838_v40 = vcombine.high %v432_v34, %v440_v35  ;;  %v537_v27 = vld [vmem:[%s12089_s29 + $0x6d8] sm:$0xff]  ;;  %v552_v34 = vld [vmem:[%s12089_s29 + $0x750] sm:$0xff] }
  0xd6   : > { %4449 = vmatprep.subr.bf16.mxu0 %v9726_v41  ;;  %4572 = vmatprep.subr.bf16.mxu1 %v9728_v42  ;;  %v9840_v41 = vcombine.high %v433_v54, %v441_v0  ;;  %v448_v42 = vld [vmem:[%s12089_s29 + $0x410] sm:$0xff]  ;;  %v545_v35 = vld [vmem:[%s12089_s29 + $0x718] sm:$0xff] }
  0xd7   : > { %v9853_v57 = vcombine.low %v448_v42, %v456_v43 }
  0xd8   : > { %4318 = vmatmul.mubr.bf16.vlgmr.msra.gmra.mrb[0].mxu0 %v12159_v32  ;;  %4441 = vmatmul.mubr.bf16.vlgmr.msra.gmra.mrb[0].mxu1 %v12159_v32 }
  0xd9   : > { %4450 = vmatpush1.bf16.msra.mxu0 %v9725_v48  ;;  %4573 = vmatpush1.bf16.msra.mxu1 %v9727_v49  ;;  %v9839_v48 = vcombine.low %v433_v54, %v441_v0  ;;  %v9854_v49 = vcombine.high %v448_v42, %v456_v43  ;;  %v553_v54 = vld [vmem:[%s12089_s29 + $0x758] sm:$0xff]  ;;  %v568_v42 = vld [vmem:[%s12089_s29 + $0x7d0] sm:$0xff] }
  0xda   : > { %4451 = vmatprep.subr.bf16.mxu0 %v9742_v50  ;;  %4574 = vmatprep.subr.bf16.mxu1 %v9744_v51  ;;  %v9856_v50 = vcombine.high %v449_v44, %v457_v46  ;;  %v464_v51 = vld [vmem:[%s12089_s29 + $0x490] sm:$0xff]  ;;  %v561_v43 = vld [vmem:[%s12089_s29 + $0x798] sm:$0xff] }
  0xdb   : > { %4481 = vmatprep.mubr.bf16.mxu0 %v12143_v10  ;;  %4604 = vmatprep.mubr.bf16.mxu1 %v12143_v10  ;;  %v9869_v2 = vcombine.low %v464_v51, %v472_v52 }
  0xdd   : > { %4452 = vmatpush1.bf16.msra.mxu0 %v9741_v58  ;;  %4575 = vmatpush1.bf16.msra.mxu1 %v9743_v59  ;;  %v9855_v58 = vcombine.low %v449_v44, %v457_v46  ;;  %v9870_v59 = vcombine.high %v464_v51, %v472_v52  ;;  %v569_v44 = vld [vmem:[%s12089_s29 + $0x7d8] sm:$0xff]  ;;  %v584_v51 = vld [vmem:[%s12089_s29 + $0x850] sm:$0xff] }
  0xde   : > { %4453 = vmatprep.subr.bf16.mxu0 %v9758_v60  ;;  %4576 = vmatprep.subr.bf16.mxu1 %v9760_v61  ;;  %v9872_v60 = vcombine.high %v465_v53, %v473_v55  ;;  %v480_v61 = vld [vmem:[%s12089_s29 + $0x510] sm:$0xff]  ;;  %v577_v52 = vld [vmem:[%s12089_s29 + $0x818] sm:$0xff] }
  0xdf   : > { %v9885_v11 = vcombine.low %v480_v61, %v488_v62 }
  0xe1   : > { %4454 = vmatpush1.bf16.msra.mxu0 %v9757_v3  ;;  %4577 = vmatpush1.bf16.msra.mxu1 %v9759_v4  ;;  %v9871_v3 = vcombine.low %v465_v53, %v473_v55  ;;  %v9886_v4 = vcombine.high %v480_v61, %v488_v62  ;;  %v585_v53 = vld [vmem:[%s12089_s29 + $0x858] sm:$0xff]  ;;  %v600_v61 = vld [vmem:[%s12089_s29 + $0x8d0] sm:$0xff] }
  0xe2   : > { %4455 = vmatprep.subr.bf16.mxu0 %v9774_v5  ;;  %4578 = vmatprep.subr.bf16.mxu1 %v9776_v6  ;;  %v9888_v5 = vcombine.high %v481_v63, %v489_v1  ;;  %v496_v6 = vld [vmem:[%s12089_s29 + $0x590] sm:$0xff]  ;;  %v593_v62 = vld [vmem:[%s12089_s29 + $0x898] sm:$0xff] }
  0xe3   : > { %v9901_v19 = vcombine.low %v496_v6, %v504_v7 }
  0xe5   : > { %4456 = vmatpush1.bf16.msra.mxu0 %v9773_v12  ;;  %4579 = vmatpush1.bf16.msra.mxu1 %v9775_v13  ;;  %v9887_v12 = vcombine.low %v481_v63, %v489_v1  ;;  %v9902_v13 = vcombine.high %v496_v6, %v504_v7  ;;  %v601_v63 = vld [vmem:[%s12089_s29 + $0x8d8] sm:$0xff]  ;;  %v616_v6 = vld [vmem:[%s12089_s29 + $0x950] sm:$0xff] }
  0xe6   : > { %4457 = vmatprep.subr.bf16.mxu0 %v9790_v14  ;;  %4580 = vmatprep.subr.bf16.mxu1 %v9792_v15  ;;  %v9904_v14 = vcombine.high %v497_v8, %v505_v9  ;;  %v512_v15 = vld [vmem:[%s12089_s29 + $0x610] sm:$0xff]  ;;  %v609_v7 = vld [vmem:[%s12089_s29 + $0x918] sm:$0xff] }
  0xe7   : > { %v9917_v28 = vcombine.low %v512_v15, %v520_v16 }
  0xe9   : > { %4458 = vmatpush1.bf16.msra.mxu0 %v9789_v20  ;;  %4581 = vmatpush1.bf16.msra.mxu1 %v9791_v21  ;;  %v9903_v20 = vcombine.low %v497_v8, %v505_v9  ;;  %v9918_v21 = vcombine.high %v512_v15, %v520_v16  ;;  %v617_v8 = vld [vmem:[%s12089_s29 + $0x958] sm:$0xff]  ;;  %v632_v15 = vld [vmem:[%s12089_s29 + $0x9d0] sm:$0xff] }
  0xea   : > { %4459 = vmatprep.subr.bf16.mxu0 %v9806_v22  ;;  %4582 = vmatprep.subr.bf16.mxu1 %v9808_v23  ;;  %v9920_v22 = vcombine.high %v513_v17, %v521_v18  ;;  %v528_v23 = vld [vmem:[%s12089_s29 + $0x690] sm:$0xff]  ;;  %v625_v16 = vld [vmem:[%s12089_s29 + $0x998] sm:$0xff] }
  0xeb   : > { %v9933_v0 = vcombine.low %v528_v23, %v536_v24 }
  0xed   : > { %4460 = vmatpush1.bf16.msra.mxu0 %v9805_v29  ;;  %4583 = vmatpush1.bf16.msra.mxu1 %v9807_v30  ;;  %v9919_v29 = vcombine.low %v513_v17, %v521_v18  ;;  %v9934_v30 = vcombine.high %v528_v23, %v536_v24  ;;  %v633_v17 = vld [vmem:[%s12089_s29 + $0x9d8] sm:$0xff]  ;;  %v648_v23 = vld [vmem:[%s12089_s29 + $0xa50] sm:$0xff] }
  0xee   : > { %4461 = vmatprep.subr.bf16.mxu0 %v9822_v31  ;;  %4584 = vmatprep.subr.bf16.mxu1 %v9824_v33  ;;  %v9936_v31 = vcombine.high %v529_v25, %v537_v27  ;;  %v544_v33 = vld [vmem:[%s12089_s29 + $0x710] sm:$0xff]  ;;  %v641_v24 = vld [vmem:[%s12089_s29 + $0xa18] sm:$0xff] }
  0xef   : > { %v9949_v46 = vcombine.low %v544_v33, %v552_v34 }
  0xf1   : > { %4462 = vmatpush1.bf16.msra.mxu0 %v9821_v38  ;;  %4585 = vmatpush1.bf16.msra.mxu1 %v9823_v39  ;;  %v9935_v38 = vcombine.low %v529_v25, %v537_v27  ;;  %v9950_v39 = vcombine.high %v544_v33, %v552_v34  ;;  %v649_v25 = vld [vmem:[%s12089_s29 + $0xa58] sm:$0xff]  ;;  %v664_v33 = vld [vmem:[%s12089_s29 + $0xad0] sm:$0xff] }
  0xf2   : > { %4463 = vmatprep.subr.bf16.mxu0 %v9838_v40  ;;  %4586 = vmatprep.subr.bf16.mxu1 %v9840_v41  ;;  %v9952_v40 = vcombine.high %v545_v35, %v553_v54  ;;  %v560_v41 = vld [vmem:[%s12089_s29 + $0x790] sm:$0xff]  ;;  %v657_v34 = vld [vmem:[%s12089_s29 + $0xa98] sm:$0xff] }
  0xf3   : > { %v9965_v55 = vcombine.low %v560_v41, %v568_v42 }
  0xf5   : > { %4464 = vmatpush1.bf16.msra.mxu0 %v9837_v47  ;;  %4587 = vmatpush1.bf16.msra.mxu1 %v9839_v48  ;;  %v9951_v47 = vcombine.low %v545_v35, %v553_v54  ;;  %v9966_v48 = vcombine.high %v560_v41, %v568_v42  ;;  %v665_v35 = vld [vmem:[%s12089_s29 + $0xad8] sm:$0xff]  ;;  %v680_v41 = vld [vmem:[%s12089_s29 + $0xb50] sm:$0xff] }
  0xf6   : > { %4465 = vmatprep.subr.bf16.mxu0 %v9854_v49  ;;  %4588 = vmatprep.subr.bf16.mxu1 %v9856_v50  ;;  %v9968_v49 = vcombine.high %v561_v43, %v569_v44  ;;  %v576_v50 = vld [vmem:[%s12089_s29 + $0x810] sm:$0xff]  ;;  %v673_v42 = vld [vmem:[%s12089_s29 + $0xb18] sm:$0xff] }
  0xf7   : > { %v9981_v1 = vcombine.low %v576_v50, %v584_v51 }
  0xf9   : > { %4466 = vmatpush1.bf16.msra.mxu0 %v9853_v57  ;;  %4589 = vmatpush1.bf16.msra.mxu1 %v9855_v58  ;;  %v9967_v57 = vcombine.low %v561_v43, %v569_v44  ;;  %v9982_v58 = vcombine.high %v576_v50, %v584_v51  ;;  %v681_v43 = vld [vmem:[%s12089_s29 + $0xb58] sm:$0xff]  ;;  %v696_v50 = vld [vmem:[%s12089_s29 + $0xbd0] sm:$0xff] }
  0xfa   : > { %4467 = vmatprep.subr.bf16.mxu0 %v9870_v59  ;;  %4590 = vmatprep.subr.bf16.mxu1 %v9872_v60  ;;  %v9984_v59 = vcombine.high %v577_v52, %v585_v53  ;;  %v592_v60 = vld [vmem:[%s12089_s29 + $0x890] sm:$0xff]  ;;  %v689_v51 = vld [vmem:[%s12089_s29 + $0xb98] sm:$0xff] }
  0xfb   : > { %v9997_v9 = vcombine.low %v592_v60, %v600_v61 }
  0xfd   : > { %4468 = vmatpush1.bf16.msra.mxu0 %v9869_v2  ;;  %4591 = vmatpush1.bf16.msra.mxu1 %v9871_v3  ;;  %v9983_v2 = vcombine.low %v577_v52, %v585_v53  ;;  %v9998_v3 = vcombine.high %v592_v60, %v600_v61  ;;  %v697_v52 = vld [vmem:[%s12089_s29 + $0xbd8] sm:$0xff]  ;;  %v712_v60 = vld [vmem:[%s12089_s29 + $0xc50] sm:$0xff] }
  0xfe   : > { %4469 = vmatprep.subr.bf16.mxu0 %v9886_v4  ;;  %4592 = vmatprep.subr.bf16.mxu1 %v9888_v5  ;;  %v10000_v4 = vcombine.high %v593_v62, %v601_v63  ;;  %v608_v5 = vld [vmem:[%s12089_s29 + $0x910] sm:$0xff]  ;;  %v705_v61 = vld [vmem:[%s12089_s29 + $0xc18] sm:$0xff] }
  0xff   : > { %v10013_v18 = vcombine.low %v608_v5, %v616_v6 }
 0x101   : > { %4470 = vmatpush1.bf16.msra.mxu0 %v9885_v11  ;;  %4593 = vmatpush1.bf16.msra.mxu1 %v9887_v12  ;;  %v9999_v11 = vcombine.low %v593_v62, %v601_v63  ;;  %v10014_v12 = vcombine.high %v608_v5, %v616_v6  ;;  %v713_v62 = vld [vmem:[%s12089_s29 + $0xc58] sm:$0xff]  ;;  %v728_v5 = vld [vmem:[%s12089_s29 + $0xcd0] sm:$0xff] }
 0x102   : > { %4471 = vmatprep.subr.bf16.mxu0 %v9902_v13  ;;  %4594 = vmatprep.subr.bf16.mxu1 %v9904_v14  ;;  %v10016_v13 = vcombine.high %v609_v7, %v617_v8  ;;  %v624_v14 = vld [vmem:[%s12089_s29 + $0x990] sm:$0xff]  ;;  %v721_v6 = vld [vmem:[%s12089_s29 + $0xc98] sm:$0xff] }
 0x103   : > { %v10029_v27 = vcombine.low %v624_v14, %v632_v15 }
 0x105   : > { %4472 = vmatpush1.bf16.msra.mxu0 %v9901_v19  ;;  %4595 = vmatpush1.bf16.msra.mxu1 %v9903_v20  ;;  %v10015_v19 = vcombine.low %v609_v7, %v617_v8  ;;  %v10030_v20 = vcombine.high %v624_v14, %v632_v15  ;;  %v729_v7 = vld [vmem:[%s12089_s29 + $0xcd8] sm:$0xff]  ;;  %v744_v14 = vld [vmem:[%s12089_s29 + $0xd50] sm:$0xff] }
 0x106   : > { %4473 = vmatprep.subr.bf16.mxu0 %v9918_v21  ;;  %4596 = vmatprep.subr.bf16.mxu1 %v9920_v22  ;;  %v10032_v21 = vcombine.high %v625_v16, %v633_v17  ;;  %v640_v22 = vld [vmem:[%s12089_s29 + $0xa10] sm:$0xff]  ;;  %v737_v15 = vld [vmem:[%s12089_s29 + $0xd18] sm:$0xff] }
 0x107   : > { %v10045_v54 = vcombine.low %v640_v22, %v648_v23 }
 0x109   : > { %4474 = vmatpush1.bf16.msra.mxu0 %v9917_v28  ;;  %4597 = vmatpush1.bf16.msra.mxu1 %v9919_v29  ;;  %v10031_v28 = vcombine.low %v625_v16, %v633_v17  ;;  %v10046_v29 = vcombine.high %v640_v22, %v648_v23  ;;  %v745_v16 = vld [vmem:[%s12089_s29 + $0xd58] sm:$0xff]  ;;  %v760_v22 = vld [vmem:[%s12089_s29 + $0xdd0] sm:$0xff] }
 0x10a   : > { %4475 = vmatprep.subr.bf16.mxu0 %v9934_v30  ;;  %4598 = vmatprep.subr.bf16.mxu1 %v9936_v31  ;;  %v10048_v30 = vcombine.high %v641_v24, %v649_v25  ;;  %v656_v31 = vld [vmem:[%s12089_s29 + $0xa90] sm:$0xff]  ;;  %v753_v23 = vld [vmem:[%s12089_s29 + $0xd98] sm:$0xff] }
 0x10b   : > { %v10061_v44 = vcombine.low %v656_v31, %v664_v33 }
 0x10d   : > { %4476 = vmatpush1.bf16.msra.mxu0 %v9933_v0  ;;  %4599 = vmatpush1.bf16.msra.mxu1 %v9935_v38  ;;  %v10047_v0 = vcombine.low %v641_v24, %v649_v25  ;;  %v10062_v38 = vcombine.high %v656_v31, %v664_v33  ;;  %v761_v24 = vld [vmem:[%s12089_s29 + $0xdd8] sm:$0xff]  ;;  %v776_v31 = vld [vmem:[%s12089_s29 + $0xe50] sm:$0xff] }
 0x10e   : > { %4477 = vmatprep.subr.bf16.mxu0 %v9950_v39  ;;  %4600 = vmatprep.subr.bf16.mxu1 %v9952_v40  ;;  %v10064_v39 = vcombine.high %v657_v34, %v665_v35  ;;  %v672_v40 = vld [vmem:[%s12089_s29 + $0xb10] sm:$0xff]  ;;  %v769_v33 = vld [vmem:[%s12089_s29 + $0xe18] sm:$0xff] }
 0x10f   : > { %v10077_v53 = vcombine.low %v672_v40, %v680_v41 }
 0x111   : > { %4478 = vmatpush1.bf16.msra.mxu0 %v9949_v46  ;;  %4601 = vmatpush1.bf16.msra.mxu1 %v9951_v47  ;;  %v10063_v46 = vcombine.low %v657_v34, %v665_v35  ;;  %v10078_v47 = vcombine.high %v672_v40, %v680_v41  ;;  %v777_v34 = vld [vmem:[%s12089_s29 + $0xe58] sm:$0xff]  ;;  %v792_v40 = vld [vmem:[%s12089_s29 + $0xed0] sm:$0xff] }
 0x112   : > { %4479 = vmatprep.subr.bf16.mxu0 %v9966_v48  ;;  %4602 = vmatprep.subr.bf16.mxu1 %v9968_v49  ;;  %v10080_v48 = vcombine.high %v673_v42, %v681_v43  ;;  %v688_v49 = vld [vmem:[%s12089_s29 + $0xb90] sm:$0xff]  ;;  %v785_v41 = vld [vmem:[%s12089_s29 + $0xe98] sm:$0xff] }
 0x113   : > { %v10093_v63 = vcombine.low %v688_v49, %v696_v50 }
 0x115   : > { %4480 = vmatpush1.bf16.msra.mxu0 %v9965_v55  ;;  %4603 = vmatpush1.bf16.msra.mxu1 %v9967_v57  ;;  %v10079_v55 = vcombine.low %v673_v42, %v681_v43  ;;  %v10094_v57 = vcombine.high %v688_v49, %v696_v50  ;;  %v793_v42 = vld [vmem:[%s12089_s29 + $0xed8] sm:$0xff]  ;;  %v808_v49 = vld [vmem:[%s12089_s29 + $0xf50] sm:$0xff] }
 0x116   : > { %4490 = vmatprep.subr.bf16.mxu0 %v9982_v58  ;;  %4613 = vmatprep.subr.bf16.mxu1 %v9984_v59  ;;  %v10096_v58 = vcombine.high %v689_v51, %v697_v52  ;;  %v704_v59 = vld [vmem:[%s12089_s29 + $0xc10] sm:$0xff]  ;;  %v801_v50 = vld [vmem:[%s12089_s29 + $0xf18] sm:$0xff] }
 0x117   : > { %v10109_v8 = vcombine.low %v704_v59, %v712_v60 }
 0x118   : > { %4482 = vmatmul.mubr.bf16.vlgmr.msra.gmra.mrb[4].mxu0 %v12189_v26  ;;  %4605 = vmatmul.mubr.bf16.vlgmr.msra.gmra.mrb[4].mxu1 %v12189_v26 }
 0x119   : > { %4491 = vmatpush1.bf16.msra.mxu0 %v9981_v1  ;;  %4614 = vmatpush1.bf16.msra.mxu1 %v9983_v2  ;;  %v10095_v1 = vcombine.low %v689_v51, %v697_v52  ;;  %v10110_v2 = vcombine.high %v704_v59, %v712_v60  ;;  %v809_v51 = vld [vmem:[%s12089_s29 + $0xf58] sm:$0xff]  ;;  %v824_v59 = vld [vmem:[%s12089_s29 + $0xfd0] sm:$0xff] }
 0x11a   : > { %4492 = vmatprep.subr.bf16.mxu0 %v9998_v3  ;;  %4615 = vmatprep.subr.bf16.mxu1 %v10000_v4  ;;  %v10112_v3 = vcombine.high %v705_v61, %v713_v62  ;;  %v720_v4 = vld [vmem:[%s12089_s29 + $0xc90] sm:$0xff]  ;;  %v817_v60 = vld [vmem:[%s12089_s29 + $0xf98] sm:$0xff] }
 0x11b   : > { %4522 = vmatprep.mubr.bf16.mxu0 %v12197_v36  ;;  %4645 = vmatprep.mubr.bf16.mxu1 %v12197_v36  ;;  %v10125_v17 = vcombine.low %v720_v4, %v728_v5 }
 0x11d   : > { %4493 = vmatpush1.bf16.msra.mxu0 %v9997_v9  ;;  %4616 = vmatpush1.bf16.msra.mxu1 %v9999_v11  ;;  %v10111_v9 = vcombine.low %v705_v61, %v713_v62  ;;  %v10126_v11 = vcombine.high %v720_v4, %v728_v5  ;;  %v825_v61 = vld [vmem:[%s12089_s29 + $0xfd8] sm:$0xff]  ;;  %v840_v4 = vld [vmem:[%s12089_s29 + $0x1050] sm:$0xff] }
 0x11e   : > { %4494 = vmatprep.subr.bf16.mxu0 %v10014_v12  ;;  %4617 = vmatprep.subr.bf16.mxu1 %v10016_v13  ;;  %v10128_v12 = vcombine.high %v721_v6, %v729_v7  ;;  %v736_v13 = vld [vmem:[%s12089_s29 + $0xd10] sm:$0xff]  ;;  %v833_v5 = vld [vmem:[%s12089_s29 + $0x1018] sm:$0xff] }
 0x11f   : > { %v10141_v25 = vcombine.low %v736_v13, %v744_v14 }
 0x121   : > { %4495 = vmatpush1.bf16.msra.mxu0 %v10013_v18  ;;  %4618 = vmatpush1.bf16.msra.mxu1 %v10015_v19  ;;  %v10127_v18 = vcombine.low %v721_v6, %v729_v7  ;;  %v10142_v19 = vcombine.high %v736_v13, %v744_v14  ;;  %v841_v6 = vld [vmem:[%s12089_s29 + $0x1058] sm:$0xff]  ;;  %v856_v13 = vld [vmem:[%s12089_s29 + $0x10d0] sm:$0xff] }
 0x122   : > { %4496 = vmatprep.subr.bf16.mxu0 %v10030_v20  ;;  %4619 = vmatprep.subr.bf16.mxu1 %v10032_v21  ;;  %v10144_v20 = vcombine.high %v737_v15, %v745_v16  ;;  %v752_v21 = vld [vmem:[%s12089_s29 + $0xd90] sm:$0xff]  ;;  %v849_v14 = vld [vmem:[%s12089_s29 + $0x1098] sm:$0xff] }
 0x123   : > { %v10157_v35 = vcombine.low %v752_v21, %v760_v22 }
 0x125   : > { %4497 = vmatpush1.bf16.msra.mxu0 %v10029_v27  ;;  %4620 = vmatpush1.bf16.msra.mxu1 %v10031_v28  ;;  %v10143_v27 = vcombine.low %v737_v15, %v745_v16  ;;  %v10158_v28 = vcombine.high %v752_v21, %v760_v22  ;;  %v857_v15 = vld [vmem:[%s12089_s29 + $0x10d8] sm:$0xff]  ;;  %v872_v21 = vld [vmem:[%s12089_s29 + $0x1150] sm:$0xff] }
 0x126   : > { %4498 = vmatprep.subr.bf16.mxu0 %v10046_v29  ;;  %4621 = vmatprep.subr.bf16.mxu1 %v10048_v30  ;;  %v10160_v29 = vcombine.high %v753_v23, %v761_v24  ;;  %v768_v30 = vld [vmem:[%s12089_s29 + $0xe10] sm:$0xff]  ;;  %v865_v22 = vld [vmem:[%s12089_s29 + $0x1118] sm:$0xff] }
 0x127   : > { %v10173_v43 = vcombine.low %v768_v30, %v776_v31 }
 0x129   : > { %4499 = vmatpush1.bf16.msra.mxu0 %v10045_v54  ;;  %4622 = vmatpush1.bf16.msra.mxu1 %v10047_v0  ;;  %v10159_v54 = vcombine.low %v753_v23, %v761_v24  ;;  %v10174_v0 = vcombine.high %v768_v30, %v776_v31  ;;  %v873_v23 = vld [vmem:[%s12089_s29 + $0x1158] sm:$0xff]  ;;  %v888_v30 = vld [vmem:[%s12089_s29 + $0x11d0] sm:$0xff] }
 0x12a   : > { %4500 = vmatprep.subr.bf16.mxu0 %v10062_v38  ;;  %4623 = vmatprep.subr.bf16.mxu1 %v10064_v39  ;;  %v10176_v38 = vcombine.high %v769_v33, %v777_v34  ;;  %v784_v39 = vld [vmem:[%s12089_s29 + $0xe90] sm:$0xff]  ;;  %v881_v31 = vld [vmem:[%s12089_s29 + $0x1198] sm:$0xff] }
 0x12b   : > { %v10189_v52 = vcombine.low %v784_v39, %v792_v40 }
 0x12d   : > { %4501 = vmatpush1.bf16.msra.mxu0 %v10061_v44  ;;  %4624 = vmatpush1.bf16.msra.mxu1 %v10063_v46  ;;  %v10175_v44 = vcombine.low %v769_v33, %v777_v34  ;;  %v10190_v46 = vcombine.high %v784_v39, %v792_v40  ;;  %v889_v33 = vld [vmem:[%s12089_s29 + $0x11d8] sm:$0xff]  ;;  %v904_v39 = vld [vmem:[%s12089_s29 + $0x1250] sm:$0xff] }
 0x12e   : > { %4502 = vmatprep.subr.bf16.mxu0 %v10078_v47  ;;  %4625 = vmatprep.subr.bf16.mxu1 %v10080_v48  ;;  %v10192_v47 = vcombine.high %v785_v41, %v793_v42  ;;  %v800_v48 = vld [vmem:[%s12089_s29 + $0xf10] sm:$0xff]  ;;  %v897_v40 = vld [vmem:[%s12089_s29 + $0x1218] sm:$0xff] }
 0x12f   : > { %v10205_v62 = vcombine.low %v800_v48, %v808_v49 }
 0x131   : > { %4503 = vmatpush1.bf16.msra.mxu0 %v10077_v53  ;;  %4626 = vmatpush1.bf16.msra.mxu1 %v10079_v55  ;;  %v10191_v53 = vcombine.low %v785_v41, %v793_v42  ;;  %v10206_v55 = vcombine.high %v800_v48, %v808_v49  ;;  %v905_v41 = vld [vmem:[%s12089_s29 + $0x1258] sm:$0xff]  ;;  %v920_v48 = vld [vmem:[%s12089_s29 + $0x12d0] sm:$0xff] }
 0x132   : > { %4504 = vmatprep.subr.bf16.mxu0 %v10094_v57  ;;  %4627 = vmatprep.subr.bf16.mxu1 %v10096_v58  ;;  %v10208_v57 = vcombine.high %v801_v50, %v809_v51  ;;  %v816_v58 = vld [vmem:[%s12089_s29 + $0xf90] sm:$0xff]  ;;  %v913_v49 = vld [vmem:[%s12089_s29 + $0x1298] sm:$0xff] }
 0x133   : > { %v10221_v7 = vcombine.low %v816_v58, %v824_v59 }
 0x135   : > { %4505 = vmatpush1.bf16.msra.mxu0 %v10093_v63  ;;  %4628 = vmatpush1.bf16.msra.mxu1 %v10095_v1  ;;  %v10207_v63 = vcombine.low %v801_v50, %v809_v51  ;;  %v10222_v1 = vcombine.high %v816_v58, %v824_v59  ;;  %v921_v50 = vld [vmem:[%s12089_s29 + $0x12d8] sm:$0xff]  ;;  %v936_v58 = vld [vmem:[%s12089_s29 + $0x1350] sm:$0xff] }
 0x136   : > { %4506 = vmatprep.subr.bf16.mxu0 %v10110_v2  ;;  %4629 = vmatprep.subr.bf16.mxu1 %v10112_v3  ;;  %v10224_v2 = vcombine.high %v817_v60, %v825_v61  ;;  %v832_v3 = vld [vmem:[%s12089_s29 + $0x1010] sm:$0xff]  ;;  %v929_v59 = vld [vmem:[%s12089_s29 + $0x1318] sm:$0xff] }
 0x137   : > { %v10237_v16 = vcombine.low %v832_v3, %v840_v4 }
 0x139   : > { %4507 = vmatpush1.bf16.msra.mxu0 %v10109_v8  ;;  %4630 = vmatpush1.bf16.msra.mxu1 %v10111_v9  ;;  %v10223_v8 = vcombine.low %v817_v60, %v825_v61  ;;  %v10238_v9 = vcombine.high %v832_v3, %v840_v4  ;;  %v937_v60 = vld [vmem:[%s12089_s29 + $0x1358] sm:$0xff]  ;;  %v952_v3 = vld [vmem:[%s12089_s29 + $0x13d0] sm:$0xff] }
 0x13a   : > { %4508 = vmatprep.subr.bf16.mxu0 %v10126_v11  ;;  %4631 = vmatprep.subr.bf16.mxu1 %v10128_v12  ;;  %v10240_v11 = vcombine.high %v833_v5, %v841_v6  ;;  %v848_v12 = vld [vmem:[%s12089_s29 + $0x1090] sm:$0xff]  ;;  %v945_v4 = vld [vmem:[%s12089_s29 + $0x1398] sm:$0xff] }
 0x13b   : > { %v10253_v24 = vcombine.low %v848_v12, %v856_v13 }
 0x13d   : > { %4509 = vmatpush1.bf16.msra.mxu0 %v10125_v17  ;;  %4632 = vmatpush1.bf16.msra.mxu1 %v10127_v18  ;;  %v10239_v17 = vcombine.low %v833_v5, %v841_v6  ;;  %v10254_v18 = vcombine.high %v848_v12, %v856_v13  ;;  %v953_v5 = vld [vmem:[%s12089_s29 + $0x13d8] sm:$0xff]  ;;  %v330_v12 = vld [vmem:[%s12089_s29 + $0x60] sm:$0xff]  ;;  %v323_v13 = vld [vmem:[%s12089_s29 + $0x28] sm:$0xff] }
 0x13e   : > { %4510 = vmatprep.subr.bf16.mxu0 %v10142_v19  ;;  %4633 = vmatprep.subr.bf16.mxu1 %v10144_v20  ;;  %v10256_v19 = vcombine.high %v849_v14, %v857_v15  ;;  %v864_v20 = vld [vmem:[%s12089_s29 + $0x1110] sm:$0xff] }
 0x13f   : > { %v10269_v34 = vcombine.low %v864_v20, %v872_v21 }
 0x141   : > { %4511 = vmatpush1.bf16.msra.mxu0 %v10141_v25  ;;  %4634 = vmatpush1.bf16.msra.mxu1 %v10143_v27  ;;  %v10255_v25 = vcombine.low %v849_v14, %v857_v15  ;;  %v10270_v27 = vcombine.high %v864_v20, %v872_v21  ;;  %v331_v14 = vld [vmem:[%s12089_s29 + $0x68] sm:$0xff]  ;;  %v346_v20 = vld [vmem:[%s12089_s29 + $0xe0] sm:$0xff] }
 0x142   : > { %4512 = vmatprep.subr.bf16.mxu0 %v10158_v28  ;;  %4635 = vmatprep.subr.bf16.mxu1 %v10160_v29  ;;  %v10272_v28 = vcombine.high %v865_v22, %v873_v23  ;;  %v880_v29 = vld [vmem:[%s12089_s29 + $0x1190] sm:$0xff]  ;;  %v339_v21 = vld [vmem:[%s12089_s29 + $0xa8] sm:$0xff] }
 0x143   : > { %v10285_v42 = vcombine.low %v880_v29, %v888_v30 }
 0x145   : > { %4513 = vmatpush1.bf16.msra.mxu0 %v10157_v35  ;;  %4636 = vmatpush1.bf16.msra.mxu1 %v10159_v54  ;;  %v10271_v35 = vcombine.low %v865_v22, %v873_v23  ;;  %v10286_v54 = vcombine.high %v880_v29, %v888_v30  ;;  %v347_v22 = vld [vmem:[%s12089_s29 + $0xe8] sm:$0xff]  ;;  %v362_v29 = vld [vmem:[%s12089_s29 + $0x160] sm:$0xff] }
 0x146   : > { %4514 = vmatprep.subr.bf16.mxu0 %v10174_v0  ;;  %4637 = vmatprep.subr.bf16.mxu1 %v10176_v38  ;;  %v10288_v0 = vcombine.high %v881_v31, %v889_v33  ;;  %v896_v38 = vld [vmem:[%s12089_s29 + $0x1210] sm:$0xff]  ;;  %v355_v30 = vld [vmem:[%s12089_s29 + $0x128] sm:$0xff] }
 0x147   : > { %v10301_v51 = vcombine.low %v896_v38, %v904_v39 }
 0x149   : > { %4515 = vmatpush1.bf16.msra.mxu0 %v10173_v43  ;;  %4638 = vmatpush1.bf16.msra.mxu1 %v10175_v44  ;;  %v10287_v43 = vcombine.low %v881_v31, %v889_v33  ;;  %v10302_v44 = vcombine.high %v896_v38, %v904_v39  ;;  %v363_v31 = vld [vmem:[%s12089_s29 + $0x168] sm:$0xff]  ;;  %v378_v38 = vld [vmem:[%s12089_s29 + $0x1e0] sm:$0xff] }
 0x14a   : > { %4516 = vmatprep.subr.bf16.mxu0 %v10190_v46  ;;  %4639 = vmatprep.subr.bf16.mxu1 %v10192_v47  ;;  %v10304_v46 = vcombine.high %v897_v40, %v905_v41  ;;  %v912_v47 = vld [vmem:[%s12089_s29 + $0x1290] sm:$0xff]  ;;  %v371_v39 = vld [vmem:[%s12089_s29 + $0x1a8] sm:$0xff] }
 0x14b   : > { %v10317_v61 = vcombine.low %v912_v47, %v920_v48 }
 0x14d   : > { %4517 = vmatpush1.bf16.msra.mxu0 %v10189_v52  ;;  %4640 = vmatpush1.bf16.msra.mxu1 %v10191_v53  ;;  %v10303_v52 = vcombine.low %v897_v40, %v905_v41  ;;  %v10318_v53 = vcombine.high %v912_v47, %v920_v48  ;;  %v379_v40 = vld [vmem:[%s12089_s29 + $0x1e8] sm:$0xff]  ;;  %v394_v47 = vld [vmem:[%s12089_s29 + $0x260] sm:$0xff] }
 0x14e   : > { %4518 = vmatprep.subr.bf16.mxu0 %v10206_v55  ;;  %4641 = vmatprep.subr.bf16.mxu1 %v10208_v57  ;;  %v10320_v55 = vcombine.high %v913_v49, %v921_v50  ;;  %v928_v57 = vld [vmem:[%s12089_s29 + $0x1310] sm:$0xff]  ;;  %v387_v48 = vld [vmem:[%s12089_s29 + $0x228] sm:$0xff] }
 0x14f   : > { %v10333_v6 = vcombine.low %v928_v57, %v936_v58 }
 0x151   : > { %4519 = vmatpush1.bf16.msra.mxu0 %v10205_v62  ;;  %4642 = vmatpush1.bf16.msra.mxu1 %v10207_v63  ;;  %v10319_v62 = vcombine.low %v913_v49, %v921_v50  ;;  %v10334_v63 = vcombine.high %v928_v57, %v936_v58  ;;  %v395_v49 = vld [vmem:[%s12089_s29 + $0x268] sm:$0xff]  ;;  %v410_v57 = vld [vmem:[%s12089_s29 + $0x2e0] sm:$0xff] }
 0x152   : > { %4520 = vmatprep.subr.bf16.mxu0 %v10222_v1  ;;  %4643 = vmatprep.subr.bf16.mxu1 %v10224_v2  ;;  %v10336_v1 = vcombine.high %v929_v59, %v937_v60  ;;  %v944_v2 = vld [vmem:[%s12089_s29 + $0x1390] sm:$0xff]  ;;  %v403_v58 = vld [vmem:[%s12089_s29 + $0x2a8] sm:$0xff] }
 0x153   : > { %v10349_v15 = vcombine.low %v944_v2, %v952_v3 }
 0x155   : > { %4521 = vmatpush1.bf16.msra.mxu0 %v10221_v7  ;;  %4644 = vmatpush1.bf16.msra.mxu1 %v10223_v8  ;;  %v10335_v7 = vcombine.low %v929_v59, %v937_v60  ;;  %v10350_v8 = vcombine.high %v944_v2, %v952_v3  ;;  %v411_v59 = vld [vmem:[%s12089_s29 + $0x2e8] sm:$0xff]  ;;  %v426_v2 = vld [vmem:[%s12089_s29 + $0x360] sm:$0xff] }
 0x156   : > { %4531 = vmatprep.subr.bf16.mxu0 %v10238_v9  ;;  %4654 = vmatprep.subr.bf16.mxu1 %v10240_v11  ;;  %v10352_v9 = vcombine.high %v945_v4, %v953_v5  ;;  %v322_v11 = vld [vmem:[%s12089_s29 + $0x20] sm:$0xff]  ;;  %v419_v3 = vld [vmem:[%s12089_s29 + $0x328] sm:$0xff] }
 0x157   : > { %v9729_v23 = vcombine.low %v322_v11, %v330_v12 }
 0x158   : > { %4523 = vmatmul.mubr.bf16.vlgmr.msra.gmra.mrb[4].mxu0 %v12265_v37  ;;  %4646 = vmatmul.mubr.bf16.vlgmr.msra.gmra.mrb[4].mxu1 %v12265_v37 }
 0x159   : > { %4532 = vmatpush1.bf16.msra.mxu0 %v10237_v16  ;;  %4655 = vmatpush1.bf16.msra.mxu1 %v10239_v17  ;;  %v10351_v16 = vcombine.low %v945_v4, %v953_v5  ;;  %v9730_v17 = vcombine.high %v322_v11, %v330_v12  ;;  %v427_v4 = vld [vmem:[%s12089_s29 + $0x368] sm:$0xff]  ;;  %v442_v11 = vld [vmem:[%s12089_s29 + $0x3e0] sm:$0xff] }
 0x15a   : > { %4533 = vmatprep.subr.bf16.mxu0 %v10254_v18  ;;  %4656 = vmatprep.subr.bf16.mxu1 %v10256_v19  ;;  %v9732_v18 = vcombine.high %v323_v13, %v331_v14  ;;  %v338_v19 = vld [vmem:[%s12089_s29 + $0xa0] sm:$0xff]  ;;  %v435_v12 = vld [vmem:[%s12089_s29 + $0x3a8] sm:$0xff] }
 0x15b   : > { %4563 = vmatprep.mubr.bf16.mxu0 %v11989_v56  ;;  %4686 = vmatprep.mubr.bf16.mxu1 %v11989_v56  ;;  %v9745_v33 = vcombine.low %v338_v19, %v346_v20 }
 0x15d   : > { %4534 = vmatpush1.bf16.msra.mxu0 %v10253_v24  ;;  %4657 = vmatpush1.bf16.msra.mxu1 %v10255_v25  ;;  %v9731_v24 = vcombine.low %v323_v13, %v331_v14  ;;  %v9746_v25 = vcombine.high %v338_v19, %v346_v20  ;;  %v443_v13 = vld [vmem:[%s12089_s29 + $0x3e8] sm:$0xff]  ;;  %v458_v19 = vld [vmem:[%s12089_s29 + $0x460] sm:$0xff] }
 0x15e   : > { %4535 = vmatprep.subr.bf16.mxu0 %v10270_v27  ;;  %4658 = vmatprep.subr.bf16.mxu1 %v10272_v28  ;;  %v9748_v27 = vcombine.high %v339_v21, %v347_v22  ;;  %v354_v28 = vld [vmem:[%s12089_s29 + $0x120] sm:$0xff]  ;;  %v451_v20 = vld [vmem:[%s12089_s29 + $0x428] sm:$0xff] }
 0x15f   : > { %v9761_v41 = vcombine.low %v354_v28, %v362_v29 }
 0x161   : > { %4536 = vmatpush1.bf16.msra.mxu0 %v10269_v34  ;;  %4659 = vmatpush1.bf16.msra.mxu1 %v10271_v35  ;;  %v9747_v34 = vcombine.low %v339_v21, %v347_v22  ;;  %v9762_v35 = vcombine.high %v354_v28, %v362_v29  ;;  %v459_v21 = vld [vmem:[%s12089_s29 + $0x468] sm:$0xff]  ;;  %v474_v28 = vld [vmem:[%s12089_s29 + $0x4e0] sm:$0xff] }
 0x162   : > { %4537 = vmatprep.subr.bf16.mxu0 %v10286_v54  ;;  %4660 = vmatprep.subr.bf16.mxu1 %v10288_v0  ;;  %v9764_v54 = vcombine.high %v355_v30, %v363_v31  ;;  %v370_v0 = vld [vmem:[%s12089_s29 + $0x1a0] sm:$0xff]  ;;  %v467_v29 = vld [vmem:[%s12089_s29 + $0x4a8] sm:$0xff] }
 0x163   : > { %v9777_v50 = vcombine.low %v370_v0, %v378_v38 }
 0x165   : > { %4538 = vmatpush1.bf16.msra.mxu0 %v10285_v42  ;;  %4661 = vmatpush1.bf16.msra.mxu1 %v10287_v43  ;;  %v9763_v42 = vcombine.low %v355_v30, %v363_v31  ;;  %v9778_v43 = vcombine.high %v370_v0, %v378_v38  ;;  %v475_v30 = vld [vmem:[%s12089_s29 + $0x4e8] sm:$0xff]  ;;  %v490_v0 = vld [vmem:[%s12089_s29 + $0x560] sm:$0xff] }
 0x166   : > { %4539 = vmatprep.subr.bf16.mxu0 %v10302_v44  ;;  %4662 = vmatprep.subr.bf16.mxu1 %v10304_v46  ;;  %v9780_v44 = vcombine.high %v371_v39, %v379_v40  ;;  %v386_v46 = vld [vmem:[%s12089_s29 + $0x220] sm:$0xff]  ;;  %v483_v38 = vld [vmem:[%s12089_s29 + $0x528] sm:$0xff] }
 0x167   : > { %v9793_v60 = vcombine.low %v386_v46, %v394_v47 }
 0x169   : > { %4540 = vmatpush1.bf16.msra.mxu0 %v10301_v51  ;;  %4663 = vmatpush1.bf16.msra.mxu1 %v10303_v52  ;;  %v9779_v51 = vcombine.low %v371_v39, %v379_v40  ;;  %v9794_v52 = vcombine.high %v386_v46, %v394_v47  ;;  %v491_v39 = vld [vmem:[%s12089_s29 + $0x568] sm:$0xff]  ;;  %v506_v46 = vld [vmem:[%s12089_s29 + $0x5e0] sm:$0xff] }
 0x16a   : > { %4541 = vmatprep.subr.bf16.mxu0 %v10318_v53  ;;  %4664 = vmatprep.subr.bf16.mxu1 %v10320_v55  ;;  %v9796_v53 = vcombine.high %v387_v48, %v395_v49  ;;  %v402_v55 = vld [vmem:[%s12089_s29 + $0x2a0] sm:$0xff]  ;;  %v499_v47 = vld [vmem:[%s12089_s29 + $0x5a8] sm:$0xff] }
 0x16b   : > { %v9809_v5 = vcombine.low %v402_v55, %v410_v57 }
 0x16d   : > { %4542 = vmatpush1.bf16.msra.mxu0 %v10317_v61  ;;  %4665 = vmatpush1.bf16.msra.mxu1 %v10319_v62  ;;  %v9795_v61 = vcombine.low %v387_v48, %v395_v49  ;;  %v9810_v62 = vcombine.high %v402_v55, %v410_v57  ;;  %v507_v48 = vld [vmem:[%s12089_s29 + $0x5e8] sm:$0xff]  ;;  %v522_v55 = vld [vmem:[%s12089_s29 + $0x660] sm:$0xff] }
 0x16e   : > { %4543 = vmatprep.subr.bf16.mxu0 %v10334_v63  ;;  %4666 = vmatprep.subr.bf16.mxu1 %v10336_v1  ;;  %v9812_v63 = vcombine.high %v403_v58, %v411_v59  ;;  %v418_v1 = vld [vmem:[%s12089_s29 + $0x320] sm:$0xff]  ;;  %v515_v57 = vld [vmem:[%s12089_s29 + $0x628] sm:$0xff] }
 0x16f   : > { %v9825_v14 = vcombine.low %v418_v1, %v426_v2 }
 0x171   : > { %4544 = vmatpush1.bf16.msra.mxu0 %v10333_v6  ;;  %4667 = vmatpush1.bf16.msra.mxu1 %v10335_v7  ;;  %v9811_v6 = vcombine.low %v403_v58, %v411_v59  ;;  %v9826_v7 = vcombine.high %v418_v1, %v426_v2  ;;  %v523_v58 = vld [vmem:[%s12089_s29 + $0x668] sm:$0xff]  ;;  %v530_v2 = vld [vmem:[%s12089_s29 + $0x6a0] sm:$0xff] }
 0x172   : > { %4545 = vmatprep.subr.bf16.mxu0 %v10350_v8  ;;  %4668 = vmatprep.subr.bf16.mxu1 %v10352_v9  ;;  %v9828_v8 = vcombine.high %v419_v3, %v427_v4  ;;  %v434_v9 = vld [vmem:[%s12089_s29 + $0x3a0] sm:$0xff] }
 0x173   : > { %v9841_v22 = vcombine.low %v434_v9, %v442_v11 }
 0x175   : > { %4546 = vmatpush1.bf16.msra.mxu0 %v10349_v15  ;;  %4669 = vmatpush1.bf16.msra.mxu1 %v10351_v16  ;;  %v9827_v15 = vcombine.low %v419_v3, %v427_v4  ;;  %v9842_v16 = vcombine.high %v434_v9, %v442_v11  ;;  %v538_v3 = vld [vmem:[%s12089_s29 + $0x6e0] sm:$0xff]  ;;  %v531_v4 = vld [vmem:[%s12089_s29 + $0x6a8] sm:$0xff] }
 0x176   : > { %4695 = vmatprep.subr.bf16.mxu0 %v9730_v17  ;;  %4818 = vmatprep.subr.bf16.mxu1 %v9732_v18  ;;  %v9844_v17 = vcombine.high %v435_v12, %v443_v13  ;;  %v450_v18 = vld [vmem:[%s12089_s29 + $0x420] sm:$0xff] }
 0x177   : > { %v9857_v31 = vcombine.low %v450_v18, %v458_v19 }
 0x178   : > { %4564 = vmatmul.mubr.bf16.vlgmr.msra.gmra.mrb[4].mxu0 %v12159_v32  ;;  %4687 = vmatmul.mubr.bf16.vlgmr.msra.gmra.mrb[4].mxu1 %v12159_v32 }
 0x179   : > { %4696 = vmatpush1.bf16.msra.mxu0 %v9729_v23  ;;  %4819 = vmatpush1.bf16.msra.mxu1 %v9731_v24  ;;  %v9843_v23 = vcombine.low %v435_v12, %v443_v13  ;;  %v9858_v24 = vcombine.high %v450_v18, %v458_v19  ;;  %v546_v12 = vld [vmem:[%s12089_s29 + $0x720] sm:$0xff] }
 0x17a   : > { %4697 = vmatprep.subr.bf16.mxu0 %v9746_v25  ;;  %4820 = vmatprep.subr.bf16.mxu1 %v9748_v27  ;;  %v9860_v25 = vcombine.high %v451_v20, %v459_v21  ;;  %v466_v27 = vld [vmem:[%s12089_s29 + $0x4a0] sm:$0xff] }
 0x17b   : > { %4727 = vmatprep.mubr.bf16.mxu0 %v12143_v10  ;;  %4850 = vmatprep.mubr.bf16.mxu1 %v12143_v10  ;;  %v9873_v40 = vcombine.low %v466_v27, %v474_v28  ;;  %v554_v13 = vld [vmem:[%s12089_s29 + $0x760] sm:$0xff] }
 0x17c   : > { %v9954_v18 = vcombine.high %v546_v12, %v554_v13 }
 0x17d   : > { %4698 = vmatpush1.bf16.msra.mxu0 %v9745_v33  ;;  %4821 = vmatpush1.bf16.msra.mxu1 %v9747_v34  ;;  %v9859_v33 = vcombine.low %v451_v20, %v459_v21  ;;  %v9874_v34 = vcombine.high %v466_v27, %v474_v28  ;;  %v563_v27 = vld [vmem:[%s12089_s29 + $0x7a8] sm:$0xff] }
 0x17e   : > { %4699 = vmatprep.subr.bf16.mxu0 %v9762_v35  ;;  %4822 = vmatprep.subr.bf16.mxu1 %v9764_v54  ;;  %v9876_v35 = vcombine.high %v467_v29, %v475_v30  ;;  %v482_v54 = vld [vmem:[%s12089_s29 + $0x520] sm:$0xff]  ;;  %v571_v28 = vld [vmem:[%s12089_s29 + $0x7e8] sm:$0xff] }
 0x17f   : > { %v9889_v49 = vcombine.low %v482_v54, %v490_v0 }
 0x181   : > { %4700 = vmatpush1.bf16.msra.mxu0 %v9761_v41  ;;  %4823 = vmatpush1.bf16.msra.mxu1 %v9763_v42  ;;  %v9875_v41 = vcombine.low %v467_v29, %v475_v30  ;;  %v9890_v42 = vcombine.high %v482_v54, %v490_v0 }
 0x182   : > { %4701 = vmatprep.subr.bf16.mxu0 %v9778_v43  ;;  %4824 = vmatprep.subr.bf16.mxu1 %v9780_v44  ;;  %v9892_v43 = vcombine.high %v483_v38, %v491_v39  ;;  %v498_v44 = vld [vmem:[%s12089_s29 + $0x5a0] sm:$0xff] }
 0x183   : > { %v9905_v59 = vcombine.low %v498_v44, %v506_v46 }
 0x185   : > { %4702 = vmatpush1.bf16.msra.mxu0 %v9777_v50  ;;  %4825 = vmatpush1.bf16.msra.mxu1 %v9779_v51  ;;  %v9891_v50 = vcombine.low %v483_v38, %v491_v39  ;;  %v9906_v51 = vcombine.high %v498_v44, %v506_v46  ;;  %v579_v46 = vld [vmem:[%s12089_s29 + $0x828] sm:$0xff] }
 0x186   : > { %4703 = vmatprep.subr.bf16.mxu0 %v9794_v52  ;;  %4826 = vmatprep.subr.bf16.mxu1 %v9796_v53  ;;  %v9908_v52 = vcombine.high %v499_v47, %v507_v48  ;;  %v514_v53 = vld [vmem:[%s12089_s29 + $0x620] sm:$0xff] }
 0x189   : > { %4704 = vmatpush1.bf16.msra.mxu0 %v9793_v60  ;;  %4827 = vmatpush1.bf16.msra.mxu1 %v9795_v61  ;;  %v9907_v60 = vcombine.low %v499_v47, %v507_v48  ;;  %v9922_v61 = vcombine.high %v514_v53, %v522_v55  ;;  %v587_v47 = vld [vmem:[%s12089_s29 + $0x868] sm:$0xff]  ;;  %v313_v48 = vld [vmem:[#allocation2] sm:$0xff] }
 0x18a   : > { %4705 = vmatprep.subr.bf16.mxu0 %v9810_v62  ;;  %4828 = vmatprep.subr.bf16.mxu1 %v9812_v63  ;;  %v9924_v62 = vcombine.high %v515_v57, %v523_v58  ;;  %v11990_v63 = vmov 1983009808  }
 0x18b   : > { %v5206_v1 = vunpack.c.l.s4 %v11990_v63 }
 0x18d   : > { %4706 = vmatpush1.bf16.msra.mxu0 %v9809_v5  ;;  %4829 = vmatpush1.bf16.msra.mxu1 %v9811_v6  ;;  %v539_v5 = vld [vmem:[%s12089_s29 + $0x6e8] sm:$0xff]  ;;  %v9921_v6 = vcombine.low %v514_v53, %v522_v55  ;;  %v5207_v9 = vunpack.c.0.s8 %v5206_v1  ;;  %v9988_v53 = vcombine.high %v579_v46, %v587_v47  ;;  %v594_v55 = vld [vmem:[%s12089_s29 + $0x8a0] sm:$0xff] }
 0x18e   : > { %4707 = vmatprep.subr.bf16.mxu0 %v9826_v7  ;;  %4830 = vmatprep.subr.bf16.mxu1 %v9828_v8  ;;  %v9923_v7 = vcombine.low %v515_v57, %v523_v58  ;;  %v9938_v8 = vcombine.high %v530_v2, %v538_v3  ;;  %v9940_v11 = vcombine.high %v531_v4, %v539_v5  ;;  %v602_v57 = vld [vmem:[%s12089_s29 + $0x8e0] sm:$0xff] }
 0x18f   : > { %v12534_v20 = vsub.s32 %v5207_v9, %v12115_v45  ;;  %v10002_v63 = vcombine.high %v594_v55, %v602_v57 }
 0x191   : > { %4708 = vmatpush1.bf16.msra.mxu0 %v9825_v14  ;;  %4831 = vmatpush1.bf16.msra.mxu1 %v9827_v15  ;;  %v547_v14 = vld [vmem:[%s12089_s29 + $0x728] sm:$0xff] }
 0x192   : > { %4709 = vmatprep.subr.bf16.mxu0 %v9842_v16  ;;  %4832 = vmatprep.subr.bf16.mxu1 %v9844_v17  ;;  %v555_v15 = vld [vmem:[%s12089_s29 + $0x768] sm:$0xff]  ;;  %v9937_v16 = vcombine.low %v530_v2, %v538_v3  ;;  %v9939_v17 = vcombine.low %v531_v4, %v539_v5  ;;  %v610_v2 = vld [vmem:[%s12089_s29 + $0x920] sm:$0xff] }
 0x193   : > { %v9956_v21 = vcombine.high %v547_v14, %v555_v15  ;;  %v9955_v0 = vcombine.low %v547_v14, %v555_v15  ;;  %v618_v3 = vld [vmem:[%s12089_s29 + $0x960] sm:$0xff]  ;;  %v611_v4 = vld [vmem:[%s12089_s29 + $0x928] sm:$0xff] }
 0x194   : > { %v619_v5 = vld [vmem:[%s12089_s29 + $0x968] sm:$0xff]  ;;  %v10017_v15 = vcombine.low %v610_v2, %v618_v3 }
 0x195   : > { %4710 = vmatpush1.bf16.msra.mxu0 %v9841_v22  ;;  %4833 = vmatpush1.bf16.msra.mxu1 %v9843_v23  ;;  %v562_v22 = vld [vmem:[%s12089_s29 + $0x7a0] sm:$0xff]  ;;  %v10020_v9 = vcombine.high %v611_v4, %v619_v5  ;;  %v635_v14 = vld [vmem:[%s12089_s29 + $0x9e8] sm:$0xff] }
 0x196   : > { %4711 = vmatprep.subr.bf16.mxu0 %v9858_v24  ;;  %4834 = vmatprep.subr.bf16.mxu1 %v9860_v25  ;;  %v570_v23 = vld [vmem:[%s12089_s29 + $0x7e0] sm:$0xff] }
 0x197   : > { %v9970_v38 = vcombine.high %v562_v22, %v570_v23 }
 0x199   : > { %4712 = vmatpush1.bf16.msra.mxu0 %v9857_v31  ;;  %4835 = vmatpush1.bf16.msra.mxu1 %v9859_v33  ;;  %v9953_v33 = vcombine.low %v546_v12, %v554_v13  ;;  %v634_v12 = vld [vmem:[%s12089_s29 + $0x9e0] sm:$0xff]  ;;  %v627_v13 = vld [vmem:[%s12089_s29 + $0x9a8] sm:$0xff] }
 0x19a   : > { %4713 = vmatprep.subr.bf16.mxu0 %v9874_v34  ;;  %4836 = vmatprep.subr.bf16.mxu1 %v9876_v35 }
 0x19d   : > { %4714 = vmatpush1.bf16.msra.mxu0 %v9873_v40  ;;  %4837 = vmatpush1.bf16.msra.mxu1 %v9875_v41  ;;  %v9972_v41 = vcombine.high %v563_v27, %v571_v28 }
 0x19e   : > { %4715 = vmatprep.subr.bf16.mxu0 %v9890_v42  ;;  %4838 = vmatprep.subr.bf16.mxu1 %v9892_v43  ;;  %v578_v42 = vld [vmem:[%s12089_s29 + $0x820] sm:$0xff] }
 0x19f   : > { %v586_v43 = vld [vmem:[%s12089_s29 + $0x860] sm:$0xff] }
 0x1a1   : > { %4716 = vmatpush1.bf16.msra.mxu0 %v9889_v49  ;;  %4839 = vmatpush1.bf16.msra.mxu1 %v9891_v50  ;;  %v9969_v49 = vcombine.low %v562_v22, %v570_v23  ;;  %v643_v22 = vld [vmem:[%s12089_s29 + $0xa28] sm:$0xff] }
 0x1a2   : > { %4717 = vmatprep.subr.bf16.mxu0 %v9906_v51  ;;  %4840 = vmatprep.subr.bf16.mxu1 %v9908_v52  ;;  %v9971_v51 = vcombine.low %v563_v27, %v571_v28  ;;  %v9986_v52 = vcombine.high %v578_v42, %v586_v43  ;;  %v651_v23 = vld [vmem:[%s12089_s29 + $0xa68] sm:$0xff] }
 0x1a3   : > { %v10052_v28 = vcombine.high %v643_v22, %v651_v23 }
 0x1a5   : > { %4718 = vmatpush1.bf16.msra.mxu0 %v9905_v59  ;;  %4841 = vmatpush1.bf16.msra.mxu1 %v9907_v60  ;;  %v595_v59 = vld [vmem:[%s12089_s29 + $0x8a8] sm:$0xff] }
 0x1a6   : > { %4719 = vmatprep.subr.bf16.mxu0 %v9922_v61  ;;  %4842 = vmatprep.subr.bf16.mxu1 %v9924_v62  ;;  %v603_v60 = vld [vmem:[%s12089_s29 + $0x8e8] sm:$0xff]  ;;  %v9985_v61 = vcombine.low %v578_v42, %v586_v43  ;;  %v9987_v62 = vcombine.low %v579_v46, %v587_v47  ;;  %v690_v47 = vld [vmem:[%s12089_s29 + $0xba0] sm:$0xff] }
 0x1a7   : > { %v10004_v1 = vcombine.high %v595_v59, %v603_v60 }
 0x1a9   : > { %4720 = vmatpush1.bf16.msra.mxu0 %v9921_v6  ;;  %4843 = vmatpush1.bf16.msra.mxu1 %v9923_v7  ;;  %v10001_v6 = vcombine.low %v594_v55, %v602_v57  ;;  %v10003_v7 = vcombine.low %v595_v59, %v603_v60  ;;  %v706_v57 = vld [vmem:[%s12089_s29 + $0xc20] sm:$0xff]  ;;  %v707_v59 = vld [vmem:[%s12089_s29 + $0xc28] sm:$0xff] }
 0x1aa   : > { %4721 = vmatprep.subr.bf16.mxu0 %v9938_v8  ;;  %4844 = vmatprep.subr.bf16.mxu1 %v9940_v11  ;;  %v10018_v8 = vcombine.high %v610_v2, %v618_v3  ;;  %v626_v11 = vld [vmem:[%s12089_s29 + $0x9a0] sm:$0xff]  ;;  %v715_v60 = vld [vmem:[%s12089_s29 + $0xc68] sm:$0xff] }
 0x1ab   : > { %v4319_v19 = vpop.f32.mrb[0].mxu0  ;;  %v4442_v24 = vpop.f32.mrb[0].mxu1  ;;  %v722_v2 = vld [vmem:[%s12089_s29 + $0xca0] sm:$0xff] }
 0x1ac   : > { %v4321_v25 = vpop.f32.mrb[1].mxu0  ;;  %v4444_v30 = vpop.f32.mrb[1].mxu1  ;;  %v730_v3 = vld [vmem:[%s12089_s29 + $0xce0] sm:$0xff] }
 0x1ad   : > { %v5203_v29 = vcombine.low %v4319_v19, %v4321_v25  ;;  %v4323_v31 = vpop.f32.mrb[2].mxu0  ;;  %4722 = vmatpush1.bf16.msra.mxu0 %v9937_v16  ;;  %v5204_v34 = vcombine.low %v4442_v24, %v4444_v30  ;;  %v4446_v35 = vpop.f32.mrb[2].mxu1  ;;  %4845 = vmatpush1.bf16.msra.mxu1 %v9939_v17  ;;  %v10019_v16 = vcombine.low %v611_v4, %v619_v5  ;;  %v642_v19 = vld [vmem:[%s12089_s29 + $0xa20] sm:$0xff]  ;;  %v723_v4 = vld [vmem:[%s12089_s29 + $0xca8] sm:$0xff] }
 0x1ae   : > { %v4324_v54 = vpop.f32.mrb[3].mxu0  ;;  %4723 = vmatprep.subr.bf16.mxu0 %v9954_v18  ;;  %v4447_v40 = vpop.f32.mrb[3].mxu1  ;;  %4846 = vmatprep.subr.bf16.mxu1 %v9956_v21  ;;  %v10034_v17 = vcombine.high %v626_v11, %v634_v12  ;;  %v10036_v18 = vcombine.high %v627_v13, %v635_v14  ;;  %v650_v21 = vld [vmem:[%s12089_s29 + $0xa60] sm:$0xff]  ;;  %v10033_v24 = vcombine.low %v626_v11, %v634_v12  ;;  %v659_v31 = vld [vmem:[%s12089_s29 + $0xaa8] sm:$0xff] }
 0x1af   : > { %v5211_v39 = vrot.slane %v5203_v29, %v12534_v20  ;;  %v5218_v44 = vrot.slane %v5204_v34, %v12534_v20  ;;  %v10035_v25 = vcombine.low %v627_v13, %v635_v14  ;;  %v10050_v27 = vcombine.high %v642_v19, %v650_v21  ;;  %v658_v29 = vld [vmem:[%s12089_s29 + $0xaa0] sm:$0xff]  ;;  %v675_v40 = vld [vmem:[%s12089_s29 + $0xb28] sm:$0xff] }
 0x1b0   : > { %v666_v30 = vld [vmem:[%s12089_s29 + $0xae0] sm:$0xff]  ;;  %v10049_v34 = vcombine.low %v642_v19, %v650_v21  ;;  %v10051_v35 = vcombine.low %v643_v22, %v651_v23  ;;  %v731_v5 = vld [vmem:[%s12089_s29 + $0xce8] sm:$0xff] }
 0x1b1   : > { %4724 = vmatpush1.bf16.msra.mxu0 %v9953_v33  ;;  %v5219_v50 = vcombine.low %v5211_v39, %v5218_v44  ;;  %4847 = vmatpush1.bf16.msra.mxu1 %v9955_v0  ;;  %v667_v33 = vld [vmem:[%s12089_s29 + $0xae8] sm:$0xff]  ;;  %v10066_v54 = vcombine.high %v658_v29, %v666_v30  ;;  %v682_v39 = vld [vmem:[%s12089_s29 + $0xb60] sm:$0xff]  ;;  %v10065_v42 = vcombine.low %v658_v29, %v666_v30 }
 0x1b2   : > { %4725 = vmatprep.subr.bf16.mxu0 %v9970_v38  ;;  %4848 = vmatprep.subr.bf16.mxu1 %v9972_v41  ;;  %v10068_v0 = vcombine.high %v659_v31, %v667_v33  ;;  %v674_v38 = vld [vmem:[%s12089_s29 + $0xb20] sm:$0xff]  ;;  %v683_v41 = vld [vmem:[%s12089_s29 + $0xb68] sm:$0xff]  ;;  %v10067_v43 = vcombine.low %v659_v31, %v667_v33 }
 0x1b3   : > { %v5275_v58 = vadd.f32 %v5219_v50, %v313_v48  ;;  %v10082_v44 = vcombine.high %v674_v38, %v682_v39  ;;  %v10084_v46 = vcombine.high %v675_v40, %v683_v41  ;;  %v698_v48 = vld [vmem:[%s12089_s29 + $0xbe0] sm:$0xff]  ;;  %v699_v50 = vld [vmem:[%s12089_s29 + $0xbe8] sm:$0xff] }
 0x1b4   : > { %v738_v11 = vld [vmem:[%s12089_s29 + $0xd20] sm:$0xff]  ;;  %v739_v13 = vld [vmem:[%s12089_s29 + $0xd28] sm:$0xff] }
 0x1b5   : > { %4726 = vmatpush1.bf16.msra.mxu0 %v9969_v49  ;;  %5279 = vst [vmem:[#allocation2] sm:$0xff] %v5275_v58  ;;  %4849 = vmatpush1.bf16.msra.mxu1 %v9971_v51  ;;  %v691_v49 = vld [vmem:[%s12089_s29 + $0xba8] sm:$0xff]  ;;  %v10081_v51 = vcombine.low %v674_v38, %v682_v39  ;;  %v714_v58 = vld [vmem:[%s12089_s29 + $0xc60] sm:$0xff] }
 0x1b6   : > { %4736 = vmatprep.subr.bf16.mxu0 %v9986_v52  ;;  %4859 = vmatprep.subr.bf16.mxu1 %v9988_v53  ;;  %v10083_v52 = vcombine.low %v675_v40, %v683_v41  ;;  %v10098_v53 = vcombine.high %v690_v47, %v698_v48  ;;  %v10100_v55 = vcombine.high %v691_v49, %v699_v50  ;;  %v746_v12 = vld [vmem:[%s12089_s29 + $0xd60] sm:$0xff]  ;;  %v747_v14 = vld [vmem:[%s12089_s29 + $0xd68] sm:$0xff] }
 0x1b7   : > { %v754_v19 = vld [vmem:[%s12089_s29 + $0xda0] sm:$0xff]  ;;  %v755_v22 = vld [vmem:[%s12089_s29 + $0xda8] sm:$0xff] }
 0x1b8   : > { %4728 = vmatmul.mubr.bf16.vlgmr.msra.gmra.mrb[8].mxu0 %v12189_v26  ;;  %4851 = vmatmul.mubr.bf16.vlgmr.msra.gmra.mrb[8].mxu1 %v12189_v26  ;;  %v762_v21 = vld [vmem:[%s12089_s29 + $0xde0] sm:$0xff]  ;;  %v763_v23 = vld [vmem:[%s12089_s29 + $0xde8] sm:$0xff] }
 0x1b9   : > { %4737 = vmatpush1.bf16.msra.mxu0 %v9985_v61  ;;  %4860 = vmatpush1.bf16.msra.mxu1 %v9987_v62  ;;  %v10097_v61 = vcombine.low %v690_v47, %v698_v48  ;;  %v10099_v62 = vcombine.low %v691_v49, %v699_v50  ;;  %v770_v29 = vld [vmem:[%s12089_s29 + $0xe20] sm:$0xff]  ;;  %v771_v31 = vld [vmem:[%s12089_s29 + $0xe28] sm:$0xff] }
 0x1ba   : > { %4738 = vmatprep.subr.bf16.mxu0 %v10002_v63  ;;  %4861 = vmatprep.subr.bf16.mxu1 %v10004_v1  ;;  %v10114_v63 = vcombine.high %v706_v57, %v714_v58  ;;  %v10116_v1 = vcombine.high %v707_v59, %v715_v60  ;;  %v778_v30 = vld [vmem:[%s12089_s29 + $0xe60] sm:$0xff]  ;;  %v779_v33 = vld [vmem:[%s12089_s29 + $0xe68] sm:$0xff] }
 0x1bb   : > { %4768 = vmatprep.mubr.bf16.mxu0 %v12197_v36  ;;  %4891 = vmatprep.mubr.bf16.mxu1 %v12197_v36  ;;  %v786_v38 = vld [vmem:[%s12089_s29 + $0xea0] sm:$0xff]  ;;  %v787_v40 = vld [vmem:[%s12089_s29 + $0xea8] sm:$0xff] }
 0x1bc   : > { %v794_v39 = vld [vmem:[%s12089_s29 + $0xee0] sm:$0xff]  ;;  %v795_v41 = vld [vmem:[%s12089_s29 + $0xee8] sm:$0xff] }
 0x1bd   : > { %4739 = vmatpush1.bf16.msra.mxu0 %v10001_v6  ;;  %4862 = vmatpush1.bf16.msra.mxu1 %v10003_v7  ;;  %v10113_v6 = vcombine.low %v706_v57, %v714_v58  ;;  %v10115_v7 = vcombine.low %v707_v59, %v715_v60  ;;  %v802_v47 = vld [vmem:[%s12089_s29 + $0xf20] sm:$0xff]  ;;  %v803_v49 = vld [vmem:[%s12089_s29 + $0xf28] sm:$0xff] }
 0x1be   : > { %4740 = vmatprep.subr.bf16.mxu0 %v10018_v8  ;;  %4863 = vmatprep.subr.bf16.mxu1 %v10020_v9  ;;  %v10130_v8 = vcombine.high %v722_v2, %v730_v3  ;;  %v10132_v9 = vcombine.high %v723_v4, %v731_v5  ;;  %v810_v48 = vld [vmem:[%s12089_s29 + $0xf60] sm:$0xff]  ;;  %v811_v50 = vld [vmem:[%s12089_s29 + $0xf68] sm:$0xff] }
 0x1bf   : > { %v818_v57 = vld [vmem:[%s12089_s29 + $0xfa0] sm:$0xff]  ;;  %v819_v59 = vld [vmem:[%s12089_s29 + $0xfa8] sm:$0xff] }
 0x1c0   : > { %v826_v58 = vld [vmem:[%s12089_s29 + $0xfe0] sm:$0xff]  ;;  %v827_v60 = vld [vmem:[%s12089_s29 + $0xfe8] sm:$0xff] }
 0x1c1   : > { %4741 = vmatpush1.bf16.msra.mxu0 %v10017_v15  ;;  %4864 = vmatpush1.bf16.msra.mxu1 %v10019_v16  ;;  %v10129_v15 = vcombine.low %v722_v2, %v730_v3  ;;  %v10131_v16 = vcombine.low %v723_v4, %v731_v5  ;;  %v834_v2 = vld [vmem:[%s12089_s29 + $0x1020] sm:$0xff]  ;;  %v835_v4 = vld [vmem:[%s12089_s29 + $0x1028] sm:$0xff] }
 0x1c2   : > { %4742 = vmatprep.subr.bf16.mxu0 %v10034_v17  ;;  %4865 = vmatprep.subr.bf16.mxu1 %v10036_v18  ;;  %v10146_v17 = vcombine.high %v738_v11, %v746_v12  ;;  %v10148_v18 = vcombine.high %v739_v13, %v747_v14  ;;  %v842_v3 = vld [vmem:[%s12089_s29 + $0x1060] sm:$0xff]  ;;  %v843_v5 = vld [vmem:[%s12089_s29 + $0x1068] sm:$0xff] }
 0x1c5   : > { %4743 = vmatpush1.bf16.msra.mxu0 %v10033_v24  ;;  %4866 = vmatpush1.bf16.msra.mxu1 %v10035_v25  ;;  %v10145_v24 = vcombine.low %v738_v11, %v746_v12  ;;  %v10147_v25 = vcombine.low %v739_v13, %v747_v14  ;;  %v850_v11 = vld [vmem:[%s12089_s29 + $0x10a0] sm:$0xff]  ;;  %v851_v13 = vld [vmem:[%s12089_s29 + $0x10a8] sm:$0xff] }
 0x1c6   : > { %4744 = vmatprep.subr.bf16.mxu0 %v10050_v27  ;;  %4867 = vmatprep.subr.bf16.mxu1 %v10052_v28  ;;  %v10162_v27 = vcombine.high %v754_v19, %v762_v21  ;;  %v10164_v28 = vcombine.high %v755_v22, %v763_v23  ;;  %v858_v12 = vld [vmem:[%s12089_s29 + $0x10e0] sm:$0xff]  ;;  %v859_v14 = vld [vmem:[%s12089_s29 + $0x10e8] sm:$0xff] }
 0x1c9   : > { %4745 = vmatpush1.bf16.msra.mxu0 %v10049_v34  ;;  %4868 = vmatpush1.bf16.msra.mxu1 %v10051_v35  ;;  %v10161_v34 = vcombine.low %v754_v19, %v762_v21  ;;  %v10163_v35 = vcombine.low %v755_v22, %v763_v23  ;;  %v866_v19 = vld [vmem:[%s12089_s29 + $0x1120] sm:$0xff]  ;;  %v867_v22 = vld [vmem:[%s12089_s29 + $0x1128] sm:$0xff] }
 0x1ca   : > { %4746 = vmatprep.subr.bf16.mxu0 %v10066_v54  ;;  %4869 = vmatprep.subr.bf16.mxu1 %v10068_v0  ;;  %v10178_v54 = vcombine.high %v770_v29, %v778_v30  ;;  %v10180_v0 = vcombine.high %v771_v31, %v779_v33  ;;  %v874_v21 = vld [vmem:[%s12089_s29 + $0x1160] sm:$0xff]  ;;  %v875_v23 = vld [vmem:[%s12089_s29 + $0x1168] sm:$0xff] }
 0x1cd   : > { %4747 = vmatpush1.bf16.msra.mxu0 %v10065_v42  ;;  %4870 = vmatpush1.bf16.msra.mxu1 %v10067_v43  ;;  %v10177_v42 = vcombine.low %v770_v29, %v778_v30  ;;  %v10179_v43 = vcombine.low %v771_v31, %v779_v33  ;;  %v882_v29 = vld [vmem:[%s12089_s29 + $0x11a0] sm:$0xff]  ;;  %v883_v31 = vld [vmem:[%s12089_s29 + $0x11a8] sm:$0xff] }
 0x1ce   : > { %4748 = vmatprep.subr.bf16.mxu0 %v10082_v44  ;;  %4871 = vmatprep.subr.bf16.mxu1 %v10084_v46  ;;  %v10194_v44 = vcombine.high %v786_v38, %v794_v39  ;;  %v10196_v46 = vcombine.high %v787_v40, %v795_v41  ;;  %v890_v30 = vld [vmem:[%s12089_s29 + $0x11e0] sm:$0xff]  ;;  %v891_v33 = vld [vmem:[%s12089_s29 + $0x11e8] sm:$0xff] }
 0x1d1   : > { %4749 = vmatpush1.bf16.msra.mxu0 %v10081_v51  ;;  %4872 = vmatpush1.bf16.msra.mxu1 %v10083_v52  ;;  %v10193_v51 = vcombine.low %v786_v38, %v794_v39  ;;  %v10195_v52 = vcombine.low %v787_v40, %v795_v41  ;;  %v898_v38 = vld [vmem:[%s12089_s29 + $0x1220] sm:$0xff]  ;;  %v899_v40 = vld [vmem:[%s12089_s29 + $0x1228] sm:$0xff] }
 0x1d2   : > { %4750 = vmatprep.subr.bf16.mxu0 %v10098_v53  ;;  %4873 = vmatprep.subr.bf16.mxu1 %v10100_v55  ;;  %v10210_v53 = vcombine.high %v802_v47, %v810_v48  ;;  %v10212_v55 = vcombine.high %v803_v49, %v811_v50  ;;  %v906_v39 = vld [vmem:[%s12089_s29 + $0x1260] sm:$0xff]  ;;  %v907_v41 = vld [vmem:[%s12089_s29 + $0x1268] sm:$0xff] }
 0x1d5   : > { %4751 = vmatpush1.bf16.msra.mxu0 %v10097_v61  ;;  %4874 = vmatpush1.bf16.msra.mxu1 %v10099_v62  ;;  %v10209_v61 = vcombine.low %v802_v47, %v810_v48  ;;  %v10211_v62 = vcombine.low %v803_v49, %v811_v50  ;;  %v914_v47 = vld [vmem:[%s12089_s29 + $0x12a0] sm:$0xff]  ;;  %v915_v49 = vld [vmem:[%s12089_s29 + $0x12a8] sm:$0xff] }
 0x1d6   : > { %4752 = vmatprep.subr.bf16.mxu0 %v10114_v63  ;;  %4875 = vmatprep.subr.bf16.mxu1 %v10116_v1  ;;  %v10226_v63 = vcombine.high %v818_v57, %v826_v58  ;;  %v10228_v1 = vcombine.high %v819_v59, %v827_v60  ;;  %v922_v48 = vld [vmem:[%s12089_s29 + $0x12e0] sm:$0xff]  ;;  %v923_v50 = vld [vmem:[%s12089_s29 + $0x12e8] sm:$0xff] }
 0x1d9   : > { %4753 = vmatpush1.bf16.msra.mxu0 %v10113_v6  ;;  %4876 = vmatpush1.bf16.msra.mxu1 %v10115_v7  ;;  %v10225_v6 = vcombine.low %v818_v57, %v826_v58  ;;  %v10227_v7 = vcombine.low %v819_v59, %v827_v60  ;;  %v930_v57 = vld [vmem:[%s12089_s29 + $0x1320] sm:$0xff]  ;;  %v931_v59 = vld [vmem:[%s12089_s29 + $0x1328] sm:$0xff] }
 0x1da   : > { %4754 = vmatprep.subr.bf16.mxu0 %v10130_v8  ;;  %4877 = vmatprep.subr.bf16.mxu1 %v10132_v9  ;;  %v10242_v8 = vcombine.high %v834_v2, %v842_v3  ;;  %v10244_v9 = vcombine.high %v835_v4, %v843_v5  ;;  %v938_v58 = vld [vmem:[%s12089_s29 + $0x1360] sm:$0xff]  ;;  %v939_v60 = vld [vmem:[%s12089_s29 + $0x1368] sm:$0xff] }
 0x1dd   : > { %4755 = vmatpush1.bf16.msra.mxu0 %v10129_v15  ;;  %4878 = vmatpush1.bf16.msra.mxu1 %v10131_v16  ;;  %v10241_v15 = vcombine.low %v834_v2, %v842_v3  ;;  %v10243_v16 = vcombine.low %v835_v4, %v843_v5  ;;  %v946_v2 = vld [vmem:[%s12089_s29 + $0x13a0] sm:$0xff]  ;;  %v947_v4 = vld [vmem:[%s12089_s29 + $0x13a8] sm:$0xff] }
 0x1de   : > { %4756 = vmatprep.subr.bf16.mxu0 %v10146_v17  ;;  %4879 = vmatprep.subr.bf16.mxu1 %v10148_v18  ;;  %v10258_v17 = vcombine.high %v850_v11, %v858_v12  ;;  %v10260_v18 = vcombine.high %v851_v13, %v859_v14  ;;  %v954_v3 = vld [vmem:[%s12089_s29 + $0x13e0] sm:$0xff]  ;;  %v955_v5 = vld [vmem:[%s12089_s29 + $0x13e8] sm:$0xff] }
 0x1e1   : > { %4757 = vmatpush1.bf16.msra.mxu0 %v10145_v24  ;;  %4880 = vmatpush1.bf16.msra.mxu1 %v10147_v25  ;;  %v10257_v24 = vcombine.low %v850_v11, %v858_v12  ;;  %v10259_v25 = vcombine.low %v851_v13, %v859_v14  ;;  %v324_v11 = vld [vmem:[%s12089_s29 + $0x30] sm:$0xff]  ;;  %v325_v13 = vld [vmem:[%s12089_s29 + $0x38] sm:$0xff] }
 0x1e2   : > { %4758 = vmatprep.subr.bf16.mxu0 %v10162_v27  ;;  %4881 = vmatprep.subr.bf16.mxu1 %v10164_v28  ;;  %v10274_v27 = vcombine.high %v866_v19, %v874_v21  ;;  %v10276_v28 = vcombine.high %v867_v22, %v875_v23  ;;  %v332_v12 = vld [vmem:[%s12089_s29 + $0x70] sm:$0xff]  ;;  %v333_v14 = vld [vmem:[%s12089_s29 + $0x78] sm:$0xff] }
 0x1e5   : > { %4759 = vmatpush1.bf16.msra.mxu0 %v10161_v34  ;;  %4882 = vmatpush1.bf16.msra.mxu1 %v10163_v35  ;;  %v10273_v34 = vcombine.low %v866_v19, %v874_v21  ;;  %v10275_v35 = vcombine.low %v867_v22, %v875_v23  ;;  %v340_v19 = vld [vmem:[%s12089_s29 + $0xb0] sm:$0xff]  ;;  %v341_v22 = vld [vmem:[%s12089_s29 + $0xb8] sm:$0xff] }
 0x1e6   : > { %4760 = vmatprep.subr.bf16.mxu0 %v10178_v54  ;;  %4883 = vmatprep.subr.bf16.mxu1 %v10180_v0  ;;  %v10290_v54 = vcombine.high %v882_v29, %v890_v30  ;;  %v10292_v0 = vcombine.high %v883_v31, %v891_v33  ;;  %v348_v21 = vld [vmem:[%s12089_s29 + $0xf0] sm:$0xff]  ;;  %v349_v23 = vld [vmem:[%s12089_s29 + $0xf8] sm:$0xff] }
 0x1e9   : > { %4761 = vmatpush1.bf16.msra.mxu0 %v10177_v42  ;;  %4884 = vmatpush1.bf16.msra.mxu1 %v10179_v43  ;;  %v10289_v42 = vcombine.low %v882_v29, %v890_v30  ;;  %v10291_v43 = vcombine.low %v883_v31, %v891_v33  ;;  %v356_v29 = vld [vmem:[%s12089_s29 + $0x130] sm:$0xff]  ;;  %v357_v31 = vld [vmem:[%s12089_s29 + $0x138] sm:$0xff] }
 0x1ea   : > { %4762 = vmatprep.subr.bf16.mxu0 %v10194_v44  ;;  %4885 = vmatprep.subr.bf16.mxu1 %v10196_v46  ;;  %v10306_v44 = vcombine.high %v898_v38, %v906_v39  ;;  %v10308_v46 = vcombine.high %v899_v40, %v907_v41  ;;  %v364_v30 = vld [vmem:[%s12089_s29 + $0x170] sm:$0xff]  ;;  %v365_v33 = vld [vmem:[%s12089_s29 + $0x178] sm:$0xff] }
 0x1ed   : > { %4763 = vmatpush1.bf16.msra.mxu0 %v10193_v51  ;;  %4886 = vmatpush1.bf16.msra.mxu1 %v10195_v52  ;;  %v10305_v51 = vcombine.low %v898_v38, %v906_v39  ;;  %v10307_v52 = vcombine.low %v899_v40, %v907_v41  ;;  %v372_v38 = vld [vmem:[%s12089_s29 + $0x1b0] sm:$0xff]  ;;  %v373_v40 = vld [vmem:[%s12089_s29 + $0x1b8] sm:$0xff] }
 0x1ee   : > { %4764 = vmatprep.subr.bf16.mxu0 %v10210_v53  ;;  %4887 = vmatprep.subr.bf16.mxu1 %v10212_v55  ;;  %v10322_v53 = vcombine.high %v914_v47, %v922_v48  ;;  %v10324_v55 = vcombine.high %v915_v49, %v923_v50  ;;  %v380_v39 = vld [vmem:[%s12089_s29 + $0x1f0] sm:$0xff]  ;;  %v381_v41 = vld [vmem:[%s12089_s29 + $0x1f8] sm:$0xff] }
 0x1f1   : > { %4765 = vmatpush1.bf16.msra.mxu0 %v10209_v61  ;;  %4888 = vmatpush1.bf16.msra.mxu1 %v10211_v62  ;;  %v10321_v61 = vcombine.low %v914_v47, %v922_v48  ;;  %v10323_v62 = vcombine.low %v915_v49, %v923_v50  ;;  %v388_v47 = vld [vmem:[%s12089_s29 + $0x230] sm:$0xff]  ;;  %v389_v49 = vld [vmem:[%s12089_s29 + $0x238] sm:$0xff] }
 0x1f2   : > { %4766 = vmatprep.subr.bf16.mxu0 %v10226_v63  ;;  %4889 = vmatprep.subr.bf16.mxu1 %v10228_v1  ;;  %v10338_v63 = vcombine.high %v930_v57, %v938_v58  ;;  %v10340_v1 = vcombine.high %v931_v59, %v939_v60  ;;  %v396_v48 = vld [vmem:[%s12089_s29 + $0x270] sm:$0xff]  ;;  %v397_v50 = vld [vmem:[%s12089_s29 + $0x278] sm:$0xff] }
 0x1f5   : > { %4767 = vmatpush1.bf16.msra.mxu0 %v10225_v6  ;;  %4890 = vmatpush1.bf16.msra.mxu1 %v10227_v7  ;;  %v10337_v6 = vcombine.low %v930_v57, %v938_v58  ;;  %v10339_v7 = vcombine.low %v931_v59, %v939_v60  ;;  %v412_v57 = vld [vmem:[%s12089_s29 + $0x2f0] sm:$0xff]  ;;  %v405_v58 = vld [vmem:[%s12089_s29 + $0x2b8] sm:$0xff]  ;;  %v9797_v60 = vcombine.low %v388_v47, %v396_v48 }
 0x1f6   : > { %4777 = vmatprep.subr.bf16.mxu0 %v10242_v8  ;;  %4900 = vmatprep.subr.bf16.mxu1 %v10244_v9  ;;  %v10354_v8 = vcombine.high %v946_v2, %v954_v3  ;;  %v10356_v9 = vcombine.high %v947_v4, %v955_v5  ;;  %v413_v59 = vld [vmem:[%s12089_s29 + $0x2f8] sm:$0xff] }
 0x1f8   : > { %4769 = vmatmul.mubr.bf16.vlgmr.msra.gmra.mrb[8].mxu0 %v12265_v37  ;;  %4892 = vmatmul.mubr.bf16.vlgmr.msra.gmra.mrb[8].mxu1 %v12265_v37 }
 0x1f9   : > { %4778 = vmatpush1.bf16.msra.mxu0 %v10241_v15  ;;  %4901 = vmatpush1.bf16.msra.mxu1 %v10243_v16  ;;  %v10353_v15 = vcombine.low %v946_v2, %v954_v3  ;;  %v10355_v16 = vcombine.low %v947_v4, %v955_v5  ;;  %v428_v2 = vld [vmem:[%s12089_s29 + $0x370] sm:$0xff]  ;;  %v421_v3 = vld [vmem:[%s12089_s29 + $0x338] sm:$0xff] }
 0x1fa   : > { %4779 = vmatprep.subr.bf16.mxu0 %v10258_v17  ;;  %4902 = vmatprep.subr.bf16.mxu1 %v10260_v18  ;;  %v9734_v17 = vcombine.high %v324_v11, %v332_v12  ;;  %v9736_v18 = vcombine.high %v325_v13, %v333_v14  ;;  %v429_v4 = vld [vmem:[%s12089_s29 + $0x378] sm:$0xff] }
 0x1fb   : > { %4809 = vmatprep.mubr.bf16.mxu0 %v11989_v56  ;;  %4932 = vmatprep.mubr.bf16.mxu1 %v11989_v56 }
 0x1fd   : > { %4780 = vmatpush1.bf16.msra.mxu0 %v10257_v24  ;;  %4903 = vmatpush1.bf16.msra.mxu1 %v10259_v25  ;;  %v9733_v24 = vcombine.low %v324_v11, %v332_v12  ;;  %v9735_v25 = vcombine.low %v325_v13, %v333_v14  ;;  %v444_v11 = vld [vmem:[%s12089_s29 + $0x3f0] sm:$0xff]  ;;  %v437_v12 = vld [vmem:[%s12089_s29 + $0x3b8] sm:$0xff] }
 0x1fe   : > { %4781 = vmatprep.subr.bf16.mxu0 %v10274_v27  ;;  %4904 = vmatprep.subr.bf16.mxu1 %v10276_v28  ;;  %v9750_v27 = vcombine.high %v340_v19, %v348_v21  ;;  %v9752_v28 = vcombine.high %v341_v22, %v349_v23  ;;  %v445_v13 = vld [vmem:[%s12089_s29 + $0x3f8] sm:$0xff] }
 0x201   : > { %4782 = vmatpush1.bf16.msra.mxu0 %v10273_v34  ;;  %4905 = vmatpush1.bf16.msra.mxu1 %v10275_v35  ;;  %v9749_v34 = vcombine.low %v340_v19, %v348_v21  ;;  %v9751_v35 = vcombine.low %v341_v22, %v349_v23  ;;  %v460_v19 = vld [vmem:[%s12089_s29 + $0x470] sm:$0xff]  ;;  %v453_v21 = vld [vmem:[%s12089_s29 + $0x438] sm:$0xff] }
 0x202   : > { %4783 = vmatprep.subr.bf16.mxu0 %v10290_v54  ;;  %4906 = vmatprep.subr.bf16.mxu1 %v10292_v0  ;;  %v9766_v54 = vcombine.high %v356_v29, %v364_v30  ;;  %v9768_v0 = vcombine.high %v357_v31, %v365_v33  ;;  %v461_v22 = vld [vmem:[%s12089_s29 + $0x478] sm:$0xff] }
 0x205   : > { %4784 = vmatpush1.bf16.msra.mxu0 %v10289_v42  ;;  %4907 = vmatpush1.bf16.msra.mxu1 %v10291_v43  ;;  %v9765_v42 = vcombine.low %v356_v29, %v364_v30  ;;  %v9767_v43 = vcombine.low %v357_v31, %v365_v33  ;;  %v476_v29 = vld [vmem:[%s12089_s29 + $0x4f0] sm:$0xff]  ;;  %v469_v30 = vld [vmem:[%s12089_s29 + $0x4b8] sm:$0xff] }
 0x206   : > { %4785 = vmatprep.subr.bf16.mxu0 %v10306_v44  ;;  %4908 = vmatprep.subr.bf16.mxu1 %v10308_v46  ;;  %v9782_v44 = vcombine.high %v372_v38, %v380_v39  ;;  %v9784_v46 = vcombine.high %v373_v40, %v381_v41  ;;  %v477_v31 = vld [vmem:[%s12089_s29 + $0x4f8] sm:$0xff] }
 0x209   : > { %4786 = vmatpush1.bf16.msra.mxu0 %v10305_v51  ;;  %4909 = vmatpush1.bf16.msra.mxu1 %v10307_v52  ;;  %v9781_v51 = vcombine.low %v372_v38, %v380_v39  ;;  %v9798_v52 = vcombine.high %v388_v47, %v396_v48  ;;  %v492_v38 = vld [vmem:[%s12089_s29 + $0x570] sm:$0xff]  ;;  %v485_v39 = vld [vmem:[%s12089_s29 + $0x538] sm:$0xff] }
 0x20a   : > { %4787 = vmatprep.subr.bf16.mxu0 %v10322_v53  ;;  %4910 = vmatprep.subr.bf16.mxu1 %v10324_v55  ;;  %v9800_v53 = vcombine.high %v389_v49, %v397_v50  ;;  %v404_v55 = vld [vmem:[%s12089_s29 + $0x2b0] sm:$0xff]  ;;  %v501_v48 = vld [vmem:[%s12089_s29 + $0x5b8] sm:$0xff] }
 0x20b   : > { %v9813_v5 = vcombine.low %v404_v55, %v412_v57  ;;  %v508_v47 = vld [vmem:[%s12089_s29 + $0x5f0] sm:$0xff] }
 0x20d   : > { %4788 = vmatpush1.bf16.msra.mxu0 %v10321_v61  ;;  %4911 = vmatpush1.bf16.msra.mxu1 %v10323_v62  ;;  %v9799_v61 = vcombine.low %v389_v49, %v397_v50  ;;  %v9814_v62 = vcombine.high %v404_v55, %v412_v57  ;;  %v509_v49 = vld [vmem:[%s12089_s29 + $0x5f8] sm:$0xff]  ;;  %v524_v55 = vld [vmem:[%s12089_s29 + $0x670] sm:$0xff] }
 0x20e   : > { %4789 = vmatprep.subr.bf16.mxu0 %v10338_v63  ;;  %4912 = vmatprep.subr.bf16.mxu1 %v10340_v1  ;;  %v9816_v63 = vcombine.high %v405_v58, %v413_v59  ;;  %v420_v1 = vld [vmem:[%s12089_s29 + $0x330] sm:$0xff]  ;;  %v517_v57 = vld [vmem:[%s12089_s29 + $0x638] sm:$0xff] }
 0x20f   : > { %v9829_v14 = vcombine.low %v420_v1, %v428_v2 }
 0x211   : > { %4790 = vmatpush1.bf16.msra.mxu0 %v10337_v6  ;;  %4913 = vmatpush1.bf16.msra.mxu1 %v10339_v7  ;;  %v9815_v6 = vcombine.low %v405_v58, %v413_v59  ;;  %v9830_v7 = vcombine.high %v420_v1, %v428_v2  ;;  %v525_v58 = vld [vmem:[%s12089_s29 + $0x678] sm:$0xff]  ;;  %v540_v1 = vld [vmem:[%s12089_s29 + $0x6f0] sm:$0xff] }
 0x212   : > { %4791 = vmatprep.subr.bf16.mxu0 %v10354_v8  ;;  %4914 = vmatprep.subr.bf16.mxu1 %v10356_v9  ;;  %v9832_v8 = vcombine.high %v421_v3, %v429_v4  ;;  %v436_v9 = vld [vmem:[%s12089_s29 + $0x3b0] sm:$0xff]  ;;  %v533_v2 = vld [vmem:[%s12089_s29 + $0x6b8] sm:$0xff] }
 0x213   : > { %v9845_v23 = vcombine.low %v436_v9, %v444_v11 }
 0x215   : > { %4792 = vmatpush1.bf16.msra.mxu0 %v10353_v15  ;;  %4915 = vmatpush1.bf16.msra.mxu1 %v10355_v16  ;;  %v9831_v15 = vcombine.low %v421_v3, %v429_v4  ;;  %v9846_v16 = vcombine.high %v436_v9, %v444_v11  ;;  %v541_v3 = vld [vmem:[%s12089_s29 + $0x6f8] sm:$0xff]  ;;  %v556_v9 = vld [vmem:[%s12089_s29 + $0x770] sm:$0xff] }
 0x216   : > { %4941 = vmatprep.subr.bf16.mxu0 %v9734_v17  ;;  %5064 = vmatprep.subr.bf16.mxu1 %v9736_v18  ;;  %v9848_v17 = vcombine.high %v437_v12, %v445_v13  ;;  %v452_v18 = vld [vmem:[%s12089_s29 + $0x430] sm:$0xff]  ;;  %v549_v11 = vld [vmem:[%s12089_s29 + $0x738] sm:$0xff] }
 0x217   : > { %v9861_v33 = vcombine.low %v452_v18, %v460_v19 }
 0x218   : > { %4810 = vmatmul.mubr.bf16.vlgmr.msra.gmra.mrb[8].mxu0 %v12159_v32  ;;  %4933 = vmatmul.mubr.bf16.vlgmr.msra.gmra.mrb[8].mxu1 %v12159_v32 }
 0x219   : > { %4942 = vmatpush1.bf16.msra.mxu0 %v9733_v24  ;;  %5065 = vmatpush1.bf16.msra.mxu1 %v9735_v25  ;;  %v9847_v24 = vcombine.low %v437_v12, %v445_v13  ;;  %v9862_v25 = vcombine.high %v452_v18, %v460_v19  ;;  %v557_v12 = vld [vmem:[%s12089_s29 + $0x778] sm:$0xff]  ;;  %v564_v18 = vld [vmem:[%s12089_s29 + $0x7b0] sm:$0xff] }
 0x21a   : > { %4943 = vmatprep.subr.bf16.mxu0 %v9750_v27  ;;  %5066 = vmatprep.subr.bf16.mxu1 %v9752_v28  ;;  %v9864_v27 = vcombine.high %v453_v21, %v461_v22  ;;  %v468_v28 = vld [vmem:[%s12089_s29 + $0x4b0] sm:$0xff] }
 0x21b   : > { %4973 = vmatprep.mubr.bf16.mxu0 %v12143_v10  ;;  %5096 = vmatprep.mubr.bf16.mxu1 %v12143_v10  ;;  %v9783_v10 = vcombine.low %v373_v40, %v381_v41  ;;  %v493_v40 = vld [vmem:[%s12089_s29 + $0x578] sm:$0xff]  ;;  %v9877_v41 = vcombine.low %v468_v28, %v476_v29  ;;  %v572_v19 = vld [vmem:[%s12089_s29 + $0x7f0] sm:$0xff] }
 0x21d   : > { %4944 = vmatpush1.bf16.msra.mxu0 %v9749_v34  ;;  %5067 = vmatpush1.bf16.msra.mxu1 %v9751_v35  ;;  %v9863_v34 = vcombine.low %v453_v21, %v461_v22  ;;  %v9878_v35 = vcombine.high %v468_v28, %v476_v29 }
 0x21e   : > { %4945 = vmatprep.subr.bf16.mxu0 %v9766_v54  ;;  %5068 = vmatprep.subr.bf16.mxu1 %v9768_v0  ;;  %v9880_v54 = vcombine.high %v469_v30, %v477_v31  ;;  %v484_v0 = vld [vmem:[%s12089_s29 + $0x530] sm:$0xff] }
 0x21f   : > { %v9893_v50 = vcombine.low %v484_v0, %v492_v38 }
 0x221   : > { %4946 = vmatpush1.bf16.msra.mxu0 %v9765_v42  ;;  %5069 = vmatpush1.bf16.msra.mxu1 %v9767_v43  ;;  %v9879_v42 = vcombine.low %v469_v30, %v477_v31  ;;  %v9894_v43 = vcombine.high %v484_v0, %v492_v38 }
 0x222   : > { %4947 = vmatprep.subr.bf16.mxu0 %v9782_v44  ;;  %5070 = vmatprep.subr.bf16.mxu1 %v9784_v46  ;;  %v9896_v44 = vcombine.high %v485_v39, %v493_v40  ;;  %v500_v46 = vld [vmem:[%s12089_s29 + $0x5b0] sm:$0xff] }
 0x223   : > { %v9909_v59 = vcombine.low %v500_v46, %v508_v47 }
 0x225   : > { %4948 = vmatpush1.bf16.msra.mxu0 %v9781_v51  ;;  %5071 = vmatpush1.bf16.msra.mxu1 %v9783_v10  ;;  %v9895_v51 = vcombine.low %v485_v39, %v493_v40  ;;  %v9910_v10 = vcombine.high %v500_v46, %v508_v47  ;;  %v580_v39 = vld [vmem:[%s12089_s29 + $0x830] sm:$0xff]  ;;  %v9973_v46 = vcombine.low %v564_v18, %v572_v19 }
 0x226   : > { %4949 = vmatprep.subr.bf16.mxu0 %v9798_v52  ;;  %5072 = vmatprep.subr.bf16.mxu1 %v9800_v53  ;;  %v9912_v52 = vcombine.high %v501_v48, %v509_v49  ;;  %v516_v53 = vld [vmem:[%s12089_s29 + $0x630] sm:$0xff] }
 0x227   : > { %v9925_v4 = vcombine.low %v516_v53, %v524_v55  ;;  %v588_v40 = vld [vmem:[%s12089_s29 + $0x870] sm:$0xff] }
 0x229   : > { %4950 = vmatpush1.bf16.msra.mxu0 %v9797_v60  ;;  %5073 = vmatpush1.bf16.msra.mxu1 %v9799_v61  ;;  %v9911_v60 = vcombine.low %v501_v48, %v509_v49  ;;  %v9926_v61 = vcombine.high %v516_v53, %v524_v55  ;;  %v9990_v49 = vcombine.high %v580_v39, %v588_v40  ;;  %v597_v53 = vld [vmem:[%s12089_s29 + $0x8b8] sm:$0xff] }
 0x22a   : > { %4951 = vmatprep.subr.bf16.mxu0 %v9814_v62  ;;  %5074 = vmatprep.subr.bf16.mxu1 %v9816_v63  ;;  %v9928_v62 = vcombine.high %v517_v57, %v525_v58  ;;  %v532_v63 = vld [vmem:[%s12089_s29 + $0x6b0] sm:$0xff]  ;;  %v605_v55 = vld [vmem:[%s12089_s29 + $0x8f8] sm:$0xff] }
 0x22b   : > { %v9941_v13 = vcombine.low %v532_v63, %v540_v1 }
 0x22d   : > { %4952 = vmatpush1.bf16.msra.mxu0 %v9813_v5  ;;  %5075 = vmatpush1.bf16.msra.mxu1 %v9815_v6  ;;  %v9927_v5 = vcombine.low %v517_v57, %v525_v58  ;;  %v9942_v6 = vcombine.high %v532_v63, %v540_v1  ;;  %v9989_v57 = vcombine.low %v580_v39, %v588_v40  ;;  %v613_v63 = vld [vmem:[%s12089_s29 + $0x938] sm:$0xff]  ;;  %v692_v40 = vld [vmem:[%s12089_s29 + $0xbb0] sm:$0xff] }
 0x22e   : > { %4953 = vmatprep.subr.bf16.mxu0 %v9830_v7  ;;  %5076 = vmatprep.subr.bf16.mxu1 %v9832_v8  ;;  %v9944_v7 = vcombine.high %v533_v2, %v541_v3  ;;  %v548_v8 = vld [vmem:[%s12089_s29 + $0x730] sm:$0xff]  ;;  %v621_v1 = vld [vmem:[%s12089_s29 + $0x978] sm:$0xff] }
 0x22f   : > { %v9957_v29 = vcombine.low %v548_v8, %v556_v9 }
 0x231   : > { %4954 = vmatpush1.bf16.msra.mxu0 %v9829_v14  ;;  %5077 = vmatpush1.bf16.msra.mxu1 %v9831_v15  ;;  %v9943_v14 = vcombine.low %v533_v2, %v541_v3  ;;  %v9958_v15 = vcombine.high %v548_v8, %v556_v9  ;;  %v10007_v3 = vcombine.low %v597_v53, %v605_v55  ;;  %v629_v8 = vld [vmem:[%s12089_s29 + $0x9b8] sm:$0xff] }
 0x232   : > { %4955 = vmatprep.subr.bf16.mxu0 %v9846_v16  ;;  %5078 = vmatprep.subr.bf16.mxu1 %v9848_v17  ;;  %v9960_v17 = vcombine.high %v549_v11, %v557_v12  ;;  %v637_v9 = vld [vmem:[%s12089_s29 + $0x9f8] sm:$0xff] }
 0x235   : > { %4956 = vmatpush1.bf16.msra.mxu0 %v9845_v23  ;;  %5079 = vmatpush1.bf16.msra.mxu1 %v9847_v24  ;;  %v565_v23 = vld [vmem:[%s12089_s29 + $0x7b8] sm:$0xff] }
 0x236   : > { %4957 = vmatprep.subr.bf16.mxu0 %v9862_v25  ;;  %5080 = vmatprep.subr.bf16.mxu1 %v9864_v27  ;;  %v573_v24 = vld [vmem:[%s12089_s29 + $0x7f8] sm:$0xff] }
 0x237   : > { %v9976_v38 = vcombine.high %v565_v23, %v573_v24  ;;  %v9975_v48 = vcombine.low %v565_v23, %v573_v24  ;;  %v668_v23 = vld [vmem:[%s12089_s29 + $0xaf0] sm:$0xff]  ;;  %v661_v24 = vld [vmem:[%s12089_s29 + $0xab8] sm:$0xff] }
 0x239   : > { %4958 = vmatpush1.bf16.msra.mxu0 %v9861_v33  ;;  %5081 = vmatpush1.bf16.msra.mxu1 %v9863_v34  ;;  %v9959_v34 = vcombine.low %v549_v11, %v557_v12  ;;  %v10023_v11 = vcombine.low %v613_v63, %v621_v1 }
 0x23a   : > { %4959 = vmatprep.subr.bf16.mxu0 %v9878_v35  ;;  %5082 = vmatprep.subr.bf16.mxu1 %v9880_v54  ;;  %v9974_v35 = vcombine.high %v564_v18, %v572_v19 }
 0x23d   : > { %4960 = vmatpush1.bf16.msra.mxu0 %v9877_v41  ;;  %5083 = vmatpush1.bf16.msra.mxu1 %v9879_v42  ;;  %v581_v42 = vld [vmem:[%s12089_s29 + $0x838] sm:$0xff] }
 0x23e   : > { %4961 = vmatprep.subr.bf16.mxu0 %v9894_v43  ;;  %5084 = vmatprep.subr.bf16.mxu1 %v9896_v44  ;;  %v589_v43 = vld [vmem:[%s12089_s29 + $0x878] sm:$0xff]  ;;  %v314_v44 = vld [vmem:[#allocation2 + $0x8] sm:$0xff] }
 0x23f   : > { %v9991_v58 = vcombine.low %v581_v42, %v589_v43 }
 0x241   : > { %4962 = vmatpush1.bf16.msra.mxu0 %v9893_v50  ;;  %5085 = vmatpush1.bf16.msra.mxu1 %v9895_v51  ;;  %v9992_v50 = vcombine.high %v581_v42, %v589_v43  ;;  %v596_v51 = vld [vmem:[%s12089_s29 + $0x8b0] sm:$0xff]  ;;  %v693_v42 = vld [vmem:[%s12089_s29 + $0xbb8] sm:$0xff] }
 0x242   : > { %4963 = vmatprep.subr.bf16.mxu0 %v9910_v10  ;;  %5086 = vmatprep.subr.bf16.mxu1 %v9912_v52  ;;  %v604_v10 = vld [vmem:[%s12089_s29 + $0x8f0] sm:$0xff]  ;;  %v701_v43 = vld [vmem:[%s12089_s29 + $0xbf8] sm:$0xff] }
 0x243   : > { %v10005_v2 = vcombine.low %v596_v51, %v604_v10 }
 0x245   : > { %4964 = vmatpush1.bf16.msra.mxu0 %v9909_v59  ;;  %5087 = vmatpush1.bf16.msra.mxu1 %v9911_v60  ;;  %v10006_v59 = vcombine.high %v596_v51, %v604_v10  ;;  %v10008_v60 = vcombine.high %v597_v53, %v605_v55  ;;  %v709_v51 = vld [vmem:[%s12089_s29 + $0xc38] sm:$0xff]  ;;  %v10103_v53 = vcombine.low %v693_v42, %v701_v43 }
 0x246   : > { %4965 = vmatprep.subr.bf16.mxu0 %v9926_v61  ;;  %5088 = vmatprep.subr.bf16.mxu1 %v9928_v62  ;;  %v612_v61 = vld [vmem:[%s12089_s29 + $0x930] sm:$0xff]  ;;  %v717_v10 = vld [vmem:[%s12089_s29 + $0xc78] sm:$0xff] }
 0x247   : > { %v620_v62 = vld [vmem:[%s12089_s29 + $0x970] sm:$0xff] }
 0x249   : > { %4966 = vmatpush1.bf16.msra.mxu0 %v9925_v4  ;;  %5089 = vmatpush1.bf16.msra.mxu1 %v9927_v5  ;;  %v10022_v4 = vcombine.high %v612_v61, %v620_v62  ;;  %v10024_v5 = vcombine.high %v613_v63, %v621_v1  ;;  %v10119_v63 = vcombine.low %v709_v51, %v717_v10 }
 0x24a   : > { %4967 = vmatprep.subr.bf16.mxu0 %v9942_v6  ;;  %5090 = vmatprep.subr.bf16.mxu1 %v9944_v7  ;;  %v628_v6 = vld [vmem:[%s12089_s29 + $0x9b0] sm:$0xff] }
 0x24b   : > { %v4565_v16 = vpop.f32.mrb[4].mxu0  ;;  %v4688_v21 = vpop.f32.mrb[4].mxu1  ;;  %v636_v7 = vld [vmem:[%s12089_s29 + $0x9f0] sm:$0xff] }
 0x24c   : > { %v4567_v22 = vpop.f32.mrb[5].mxu0  ;;  %v4690_v27 = vpop.f32.mrb[5].mxu1  ;;  %v10038_v12 = vcombine.high %v628_v6, %v636_v7  ;;  %v10037_v18 = vcombine.low %v628_v6, %v636_v7  ;;  %v749_v6 = vld [vmem:[%s12089_s29 + $0xd78] sm:$0xff] }
 0x24d   : > { %v5220_v25 = vcombine.low %v4565_v16, %v4567_v22  ;;  %v4569_v28 = vpop.f32.mrb[6].mxu0  ;;  %4968 = vmatpush1.bf16.msra.mxu0 %v9941_v13  ;;  %v5221_v30 = vcombine.low %v4688_v21, %v4690_v27  ;;  %v4692_v31 = vpop.f32.mrb[6].mxu1  ;;  %5091 = vmatpush1.bf16.msra.mxu1 %v9943_v14  ;;  %v10040_v13 = vcombine.high %v629_v8, %v637_v9  ;;  %v644_v14 = vld [vmem:[%s12089_s29 + $0xa30] sm:$0xff]  ;;  %v645_v16 = vld [vmem:[%s12089_s29 + $0xa38] sm:$0xff] }
 0x24e   : > { %v4570_v33 = vpop.f32.mrb[7].mxu0  ;;  %4969 = vmatprep.subr.bf16.mxu0 %v9958_v15  ;;  %v4693_v0 = vpop.f32.mrb[7].mxu1  ;;  %5092 = vmatprep.subr.bf16.mxu1 %v9960_v17  ;;  %v652_v15 = vld [vmem:[%s12089_s29 + $0xa70] sm:$0xff]  ;;  %v653_v17 = vld [vmem:[%s12089_s29 + $0xa78] sm:$0xff] }
 0x24f   : > { %v5228_v54 = vrot.slane %v5220_v25, %v12534_v20  ;;  %v5235_v41 = vrot.slane %v5221_v30, %v12534_v20  ;;  %v10054_v19 = vcombine.high %v644_v14, %v652_v15  ;;  %v10056_v21 = vcombine.high %v645_v16, %v653_v17  ;;  %v660_v22 = vld [vmem:[%s12089_s29 + $0xab0] sm:$0xff]  ;;  %v669_v25 = vld [vmem:[%s12089_s29 + $0xaf8] sm:$0xff] }
 0x250   : > { %v10053_v27 = vcombine.low %v644_v14, %v652_v15  ;;  %v10055_v28 = vcombine.low %v645_v16, %v653_v17  ;;  %v10072_v30 = vcombine.high %v661_v24, %v669_v25  ;;  %v676_v31 = vld [vmem:[%s12089_s29 + $0xb30] sm:$0xff]  ;;  %v10071_v0 = vcombine.low %v661_v24, %v669_v25  ;;  %v765_v14 = vld [vmem:[%s12089_s29 + $0xdf8] sm:$0xff] }
 0x251   : > { %4970 = vmatpush1.bf16.msra.mxu0 %v9957_v29  ;;  %v5236_v47 = vcombine.low %v5228_v54, %v5235_v41  ;;  %5093 = vmatpush1.bf16.msra.mxu1 %v9959_v34  ;;  %v10070_v29 = vcombine.high %v660_v22, %v668_v23  ;;  %v684_v33 = vld [vmem:[%s12089_s29 + $0xb70] sm:$0xff]  ;;  %v677_v34 = vld [vmem:[%s12089_s29 + $0xb38] sm:$0xff]  ;;  %v10069_v54 = vcombine.low %v660_v22, %v668_v23 }
 0x252   : > { %4971 = vmatprep.subr.bf16.mxu0 %v9974_v35  ;;  %5094 = vmatprep.subr.bf16.mxu1 %v9976_v38  ;;  %v685_v35 = vld [vmem:[%s12089_s29 + $0xb78] sm:$0xff]  ;;  %v10086_v38 = vcombine.high %v676_v31, %v684_v33  ;;  %v700_v41 = vld [vmem:[%s12089_s29 + $0xbf0] sm:$0xff] }
 0x253   : > { %v5276_v52 = vadd.f32 %v5236_v47, %v314_v44  ;;  %v10088_v39 = vcombine.high %v677_v34, %v685_v35  ;;  %v10085_v44 = vcombine.low %v676_v31, %v684_v33  ;;  %v10102_v47 = vcombine.high %v692_v40, %v700_v41  ;;  %v781_v22 = vld [vmem:[%s12089_s29 + $0xe78] sm:$0xff] }
 0x254   : > { %v797_v31 = vld [vmem:[%s12089_s29 + $0xef8] sm:$0xff] }
 0x255   : > { %4972 = vmatpush1.bf16.msra.mxu0 %v9973_v46  ;;  %5280 = vst [vmem:[#allocation2 + $0x8] sm:$0xff] %v5276_v52  ;;  %5095 = vmatpush1.bf16.msra.mxu1 %v9975_v48  ;;  %v10087_v46 = vcombine.low %v677_v34, %v685_v35  ;;  %v10104_v48 = vcombine.high %v693_v42, %v701_v43 }
 0x256   : > { %4982 = vmatprep.subr.bf16.mxu0 %v9990_v49  ;;  %5105 = vmatprep.subr.bf16.mxu1 %v9992_v50  ;;  %v708_v49 = vld [vmem:[%s12089_s29 + $0xc30] sm:$0xff]  ;;  %v10101_v52 = vcombine.low %v692_v40, %v700_v41  ;;  %v813_v40 = vld [vmem:[%s12089_s29 + $0xf78] sm:$0xff] }
 0x257   : > { %v716_v50 = vld [vmem:[%s12089_s29 + $0xc70] sm:$0xff] }
 0x258   : > { %4974 = vmatmul.mubr.bf16.vlgmr.msra.gmra.mrb[12].mxu0 %v12189_v26  ;;  %5097 = vmatmul.mubr.bf16.vlgmr.msra.gmra.mrb[12].mxu1 %v12189_v26  ;;  %v10021_v26 = vcombine.low %v612_v61, %v620_v62  ;;  %v10118_v55 = vcombine.high %v708_v49, %v716_v50  ;;  %v733_v61 = vld [vmem:[%s12089_s29 + $0xcf8] sm:$0xff]  ;;  %v10117_v62 = vcombine.low %v708_v49, %v716_v50 }
 0x259   : > { %4983 = vmatpush1.bf16.msra.mxu0 %v9989_v57  ;;  %5106 = vmatpush1.bf16.msra.mxu1 %v9991_v58  ;;  %v10120_v57 = vcombine.high %v709_v51, %v717_v10  ;;  %v724_v58 = vld [vmem:[%s12089_s29 + $0xcb0] sm:$0xff]  ;;  %v829_v49 = vld [vmem:[%s12089_s29 + $0xff8] sm:$0xff] }
 0x25a   : > { %4984 = vmatprep.subr.bf16.mxu0 %v10006_v59  ;;  %5107 = vmatprep.subr.bf16.mxu1 %v10008_v60  ;;  %v732_v59 = vld [vmem:[%s12089_s29 + $0xcf0] sm:$0xff]  ;;  %v725_v60 = vld [vmem:[%s12089_s29 + $0xcb8] sm:$0xff] }
 0x25b   : > { %5014 = vmatprep.mubr.bf16.mxu0 %v12197_v36  ;;  %5137 = vmatprep.mubr.bf16.mxu1 %v12197_v36  ;;  %v10039_v36 = vcombine.low %v629_v8, %v637_v9  ;;  %v10134_v1 = vcombine.high %v724_v58, %v732_v59  ;;  %v10133_v7 = vcombine.low %v724_v58, %v732_v59  ;;  %v845_v58 = vld [vmem:[%s12089_s29 + $0x1078] sm:$0xff] }
 0x25c   : > { %v10135_v8 = vcombine.low %v725_v60, %v733_v61 }
 0x25d   : > { %4985 = vmatpush1.bf16.msra.mxu0 %v10005_v2  ;;  %5108 = vmatpush1.bf16.msra.mxu1 %v10007_v3  ;;  %v10136_v2 = vcombine.high %v725_v60, %v733_v61  ;;  %v740_v3 = vld [vmem:[%s12089_s29 + $0xd30] sm:$0xff] }
 0x25e   : > { %4986 = vmatprep.subr.bf16.mxu0 %v10022_v4  ;;  %5109 = vmatprep.subr.bf16.mxu1 %v10024_v5  ;;  %v748_v4 = vld [vmem:[%s12089_s29 + $0xd70] sm:$0xff]  ;;  %v741_v5 = vld [vmem:[%s12089_s29 + $0xd38] sm:$0xff] }
 0x25f   : > { %v10150_v9 = vcombine.high %v740_v3, %v748_v4  ;;  %v10149_v15 = vcombine.low %v740_v3, %v748_v4  ;;  %v10151_v16 = vcombine.low %v741_v5, %v749_v6  ;;  %v861_v3 = vld [vmem:[%s12089_s29 + $0x10f8] sm:$0xff] }
 0x261   : > { %4987 = vmatpush1.bf16.msra.mxu0 %v10021_v26  ;;  %5110 = vmatpush1.bf16.msra.mxu1 %v10023_v11  ;;  %v10152_v26 = vcombine.high %v741_v5, %v749_v6  ;;  %v756_v11 = vld [vmem:[%s12089_s29 + $0xdb0] sm:$0xff] }
 0x262   : > { %4988 = vmatprep.subr.bf16.mxu0 %v10038_v12  ;;  %5111 = vmatprep.subr.bf16.mxu1 %v10040_v13  ;;  %v764_v12 = vld [vmem:[%s12089_s29 + $0xdf0] sm:$0xff]  ;;  %v757_v13 = vld [vmem:[%s12089_s29 + $0xdb8] sm:$0xff] }
 0x263   : > { %v10166_v17 = vcombine.high %v756_v11, %v764_v12  ;;  %v10165_v23 = vcombine.low %v756_v11, %v764_v12  ;;  %v10167_v24 = vcombine.low %v757_v13, %v765_v14  ;;  %v877_v11 = vld [vmem:[%s12089_s29 + $0x1178] sm:$0xff] }
 0x265   : > { %4989 = vmatpush1.bf16.msra.mxu0 %v10037_v18  ;;  %5112 = vmatpush1.bf16.msra.mxu1 %v10039_v36  ;;  %v10168_v18 = vcombine.high %v757_v13, %v765_v14  ;;  %v772_v36 = vld [vmem:[%s12089_s29 + $0xe30] sm:$0xff] }
 0x266   : > { %4990 = vmatprep.subr.bf16.mxu0 %v10054_v19  ;;  %5113 = vmatprep.subr.bf16.mxu1 %v10056_v21  ;;  %v780_v19 = vld [vmem:[%s12089_s29 + $0xe70] sm:$0xff]  ;;  %v773_v21 = vld [vmem:[%s12089_s29 + $0xe38] sm:$0xff] }
 0x267   : > { %v10182_v25 = vcombine.high %v772_v36, %v780_v19  ;;  %v10181_v33 = vcombine.low %v772_v36, %v780_v19  ;;  %v10183_v34 = vcombine.low %v773_v21, %v781_v22  ;;  %v893_v36 = vld [vmem:[%s12089_s29 + $0x11f8] sm:$0xff] }
 0x269   : > { %4991 = vmatpush1.bf16.msra.mxu0 %v10053_v27  ;;  %5114 = vmatpush1.bf16.msra.mxu1 %v10055_v28  ;;  %v10184_v27 = vcombine.high %v773_v21, %v781_v22  ;;  %v788_v28 = vld [vmem:[%s12089_s29 + $0xeb0] sm:$0xff] }
 0x26a   : > { %4992 = vmatprep.subr.bf16.mxu0 %v10070_v29  ;;  %5115 = vmatprep.subr.bf16.mxu1 %v10072_v30  ;;  %v796_v29 = vld [vmem:[%s12089_s29 + $0xef0] sm:$0xff]  ;;  %v789_v30 = vld [vmem:[%s12089_s29 + $0xeb8] sm:$0xff] }
 0x26b   : > { %v10198_v35 = vcombine.high %v788_v28, %v796_v29  ;;  %v10197_v41 = vcombine.low %v788_v28, %v796_v29  ;;  %v10199_v42 = vcombine.low %v789_v30, %v797_v31 }
 0x26d   : > { %4993 = vmatpush1.bf16.msra.mxu0 %v10069_v54  ;;  %5116 = vmatpush1.bf16.msra.mxu1 %v10071_v0  ;;  %v10200_v54 = vcombine.high %v789_v30, %v797_v31  ;;  %v804_v0 = vld [vmem:[%s12089_s29 + $0xf30] sm:$0xff] }
 0x26e   : > { %4994 = vmatprep.subr.bf16.mxu0 %v10086_v38  ;;  %5117 = vmatprep.subr.bf16.mxu1 %v10088_v39  ;;  %v812_v38 = vld [vmem:[%s12089_s29 + $0xf70] sm:$0xff]  ;;  %v805_v39 = vld [vmem:[%s12089_s29 + $0xf38] sm:$0xff] }
 0x26f   : > { %v10214_v43 = vcombine.high %v804_v0, %v812_v38  ;;  %v10213_v50 = vcombine.low %v804_v0, %v812_v38  ;;  %v10215_v51 = vcombine.low %v805_v39, %v813_v40  ;;  %v916_v31 = vld [vmem:[%s12089_s29 + $0x12b0] sm:$0xff] }
 0x271   : > { %4995 = vmatpush1.bf16.msra.mxu0 %v10085_v44  ;;  %5118 = vmatpush1.bf16.msra.mxu1 %v10087_v46  ;;  %v10216_v44 = vcombine.high %v805_v39, %v813_v40  ;;  %v820_v46 = vld [vmem:[%s12089_s29 + $0xfb0] sm:$0xff] }
 0x272   : > { %4996 = vmatprep.subr.bf16.mxu0 %v10102_v47  ;;  %5119 = vmatprep.subr.bf16.mxu1 %v10104_v48  ;;  %v828_v47 = vld [vmem:[%s12089_s29 + $0xff0] sm:$0xff]  ;;  %v821_v48 = vld [vmem:[%s12089_s29 + $0xfb8] sm:$0xff] }
 0x273   : > { %v10230_v10 = vcombine.high %v820_v46, %v828_v47  ;;  %v10229_v59 = vcombine.low %v820_v46, %v828_v47  ;;  %v10231_v60 = vcombine.low %v821_v48, %v829_v49  ;;  %v932_v40 = vld [vmem:[%s12089_s29 + $0x1330] sm:$0xff] }
 0x275   : > { %4997 = vmatpush1.bf16.msra.mxu0 %v10101_v52  ;;  %5120 = vmatpush1.bf16.msra.mxu1 %v10103_v53  ;;  %v10232_v52 = vcombine.high %v821_v48, %v829_v49  ;;  %v836_v53 = vld [vmem:[%s12089_s29 + $0x1030] sm:$0xff] }
 0x276   : > { %4998 = vmatprep.subr.bf16.mxu0 %v10118_v55  ;;  %5121 = vmatprep.subr.bf16.mxu1 %v10120_v57  ;;  %v844_v55 = vld [vmem:[%s12089_s29 + $0x1070] sm:$0xff]  ;;  %v837_v57 = vld [vmem:[%s12089_s29 + $0x1038] sm:$0xff] }
 0x277   : > { %v10246_v61 = vcombine.high %v836_v53, %v844_v55  ;;  %v10245_v4 = vcombine.low %v836_v53, %v844_v55  ;;  %v10247_v5 = vcombine.low %v837_v57, %v845_v58  ;;  %v948_v49 = vld [vmem:[%s12089_s29 + $0x13b0] sm:$0xff] }
 0x279   : > { %4999 = vmatpush1.bf16.msra.mxu0 %v10117_v62  ;;  %5122 = vmatpush1.bf16.msra.mxu1 %v10119_v63  ;;  %v10248_v62 = vcombine.high %v837_v57, %v845_v58  ;;  %v852_v63 = vld [vmem:[%s12089_s29 + $0x10b0] sm:$0xff] }
 0x27a   : > { %5000 = vmatprep.subr.bf16.mxu0 %v10134_v1  ;;  %5123 = vmatprep.subr.bf16.mxu1 %v10136_v2  ;;  %v860_v1 = vld [vmem:[%s12089_s29 + $0x10f0] sm:$0xff]  ;;  %v853_v2 = vld [vmem:[%s12089_s29 + $0x10b8] sm:$0xff] }
 0x27b   : > { %v10262_v6 = vcombine.high %v852_v63, %v860_v1  ;;  %v10261_v12 = vcombine.low %v852_v63, %v860_v1  ;;  %v10263_v13 = vcombine.low %v853_v2, %v861_v3 }
 0x27d   : > { %5001 = vmatpush1.bf16.msra.mxu0 %v10133_v7  ;;  %5124 = vmatpush1.bf16.msra.mxu1 %v10135_v8  ;;  %v10264_v7 = vcombine.high %v853_v2, %v861_v3  ;;  %v868_v8 = vld [vmem:[%s12089_s29 + $0x1130] sm:$0xff] }
 0x27e   : > { %5002 = vmatprep.subr.bf16.mxu0 %v10150_v9  ;;  %5125 = vmatprep.subr.bf16.mxu1 %v10152_v26  ;;  %v876_v9 = vld [vmem:[%s12089_s29 + $0x1170] sm:$0xff]  ;;  %v869_v26 = vld [vmem:[%s12089_s29 + $0x1138] sm:$0xff] }
 0x27f   : > { %v10278_v14 = vcombine.high %v868_v8, %v876_v9  ;;  %v10279_v19 = vcombine.low %v869_v26, %v877_v11 }
 0x281   : > { %5003 = vmatpush1.bf16.msra.mxu0 %v10149_v15  ;;  %5126 = vmatpush1.bf16.msra.mxu1 %v10151_v16  ;;  %v10280_v15 = vcombine.high %v869_v26, %v877_v11  ;;  %v884_v16 = vld [vmem:[%s12089_s29 + $0x11b0] sm:$0xff] }
 0x282   : > { %5004 = vmatprep.subr.bf16.mxu0 %v10166_v17  ;;  %5127 = vmatprep.subr.bf16.mxu1 %v10168_v18  ;;  %v892_v17 = vld [vmem:[%s12089_s29 + $0x11f0] sm:$0xff]  ;;  %v885_v18 = vld [vmem:[%s12089_s29 + $0x11b8] sm:$0xff] }
 0x283   : > { %v10294_v21 = vcombine.high %v884_v16, %v892_v17  ;;  %v10296_v22 = vcombine.high %v885_v18, %v893_v36  ;;  %v10293_v28 = vcombine.low %v884_v16, %v892_v17 }
 0x285   : > { %5005 = vmatpush1.bf16.msra.mxu0 %v10165_v23  ;;  %5128 = vmatpush1.bf16.msra.mxu1 %v10167_v24  ;;  %v900_v23 = vld [vmem:[%s12089_s29 + $0x1230] sm:$0xff] }
 0x286   : > { %5006 = vmatprep.subr.bf16.mxu0 %v10182_v25  ;;  %5129 = vmatprep.subr.bf16.mxu1 %v10184_v27  ;;  %v908_v24 = vld [vmem:[%s12089_s29 + $0x1270] sm:$0xff]  ;;  %v901_v25 = vld [vmem:[%s12089_s29 + $0x1238] sm:$0xff] }
 0x287   : > { %v909_v27 = vld [vmem:[%s12089_s29 + $0x1278] sm:$0xff]  ;;  %v10310_v29 = vcombine.high %v900_v23, %v908_v24 }
 0x288   : > { %v10312_v30 = vcombine.high %v901_v25, %v909_v27  ;;  %v10311_v0 = vcombine.low %v901_v25, %v909_v27  ;;  %v11113_v25 = vld [vmem:[#allocation3 + $0x4] ss:$16 sps:$4 sm:$0xff] (!%p10361_p6)   ;;  %v11115_v27 = vld [vmem:[#allocation3 + $0xc] ss:$16 sps:$4 sm:$0xff] (!%p10361_p6)  }
 0x289   : > { %5007 = vmatpush1.bf16.msra.mxu0 %v10181_v33  ;;  %5130 = vmatpush1.bf16.msra.mxu1 %v10183_v34  ;;  %v924_v33 = vld [vmem:[%s12089_s29 + $0x12f0] sm:$0xff]  ;;  %v917_v34 = vld [vmem:[%s12089_s29 + $0x12b8] sm:$0xff] }
 0x28a   : > { %5008 = vmatprep.subr.bf16.mxu0 %v10198_v35  ;;  %5131 = vmatprep.subr.bf16.mxu1 %v10200_v54  ;;  %v925_v35 = vld [vmem:[%s12089_s29 + $0x12f8] sm:$0xff]  ;;  %v10309_v54 = vcombine.low %v900_v23, %v908_v24  ;;  %v10326_v38 = vcombine.high %v916_v31, %v924_v33 }
 0x28b   : > { %v10328_v39 = vcombine.high %v917_v34, %v925_v35  ;;  %v10327_v46 = vcombine.low %v917_v34, %v925_v35  ;;  %v11125_v34 = vld [vmem:[#allocation3 + $0x44] ss:$16 sps:$4 sm:$0xff] (!%p10361_p6)   ;;  %v11127_v35 = vld [vmem:[#allocation3 + $0x4c] ss:$16 sps:$4 sm:$0xff] (!%p10361_p6)  }
 0x28d   : > { %5009 = vmatpush1.bf16.msra.mxu0 %v10197_v41  ;;  %5132 = vmatpush1.bf16.msra.mxu1 %v10199_v42  ;;  %v940_v41 = vld [vmem:[%s12089_s29 + $0x1370] sm:$0xff]  ;;  %v933_v42 = vld [vmem:[%s12089_s29 + $0x1338] sm:$0xff] }
 0x28e   : > { %5010 = vmatprep.subr.bf16.mxu0 %v10214_v43  ;;  %5133 = vmatprep.subr.bf16.mxu1 %v10216_v44  ;;  %v941_v43 = vld [vmem:[%s12089_s29 + $0x1378] sm:$0xff]  ;;  %v10325_v44 = vcombine.low %v916_v31, %v924_v33  ;;  %v10342_v47 = vcombine.high %v932_v40, %v940_v41  ;;  %v11123_v31 = vld [vmem:[#allocation3 + $0x20] ss:$16 sps:$4 sm:$0xff] (!%p10361_p6)  }
 0x28f   : > { %v10344_v48 = vcombine.high %v933_v42, %v941_v43  ;;  %v10343_v53 = vcombine.low %v933_v42, %v941_v43  ;;  %v11124_v33 = vld [vmem:[#allocation3 + $0x28] ss:$16 sps:$4 sm:$0xff] (!%p10361_p6)   ;;  %v11137_v42 = vld [vmem:[#allocation3 + $0x84] ss:$16 sps:$4 sm:$0xff] (!%p10361_p6)   ;;  %v11139_v43 = vld [vmem:[#allocation3 + $0x8c] ss:$16 sps:$4 sm:$0xff] (!%p10361_p6)  }
 0x291   : > { %5011 = vmatpush1.bf16.msra.mxu0 %v10213_v50  ;;  %5134 = vmatpush1.bf16.msra.mxu1 %v10215_v51  ;;  %v956_v50 = vld [vmem:[%s12089_s29 + $0x13f0] sm:$0xff]  ;;  %v949_v51 = vld [vmem:[%s12089_s29 + $0x13b8] sm:$0xff] }
 0x292   : > { %5012 = vmatprep.subr.bf16.mxu0 %v10230_v10  ;;  %5135 = vmatprep.subr.bf16.mxu1 %v10232_v52  ;;  %v957_v10 = vld [vmem:[%s12089_s29 + $0x13f8] sm:$0xff]  ;;  %v10341_v52 = vcombine.low %v932_v40, %v940_v41  ;;  %v10358_v55 = vcombine.high %v948_v49, %v956_v50  ;;  %v10357_v58 = vcombine.low %v948_v49, %v956_v50  ;;  %v11135_v40 = vld [vmem:[#allocation3 + $0x60] ss:$16 sps:$4 sm:$0xff] (!%p10361_p6)  }
 0x293   : > { %v10360_v57 = vcombine.high %v949_v51, %v957_v10  ;;  %v11136_v41 = vld [vmem:[#allocation3 + $0x68] ss:$16 sps:$4 sm:$0xff] (!%p10361_p6)   ;;  %v11147_v49 = vld [vmem:[#allocation3 + $0xa0] ss:$16 sps:$4 sm:$0xff] (!%p10361_p6)  }
 0x294   : > { %v11148_v50 = vld [vmem:[#allocation3 + $0xa8] ss:$16 sps:$4 sm:$0xff] (!%p10361_p6)  }
 0x295   : > { %5013 = vmatpush1.bf16.msra.mxu0 %v10229_v59  ;;  %5136 = vmatpush1.bf16.msra.mxu1 %v10231_v60  ;;  %v10359_v59 = vcombine.low %v949_v51, %v957_v10  ;;  %v11149_v51 = vld [vmem:[#allocation3 + $0xc4] ss:$16 sps:$4 sm:$0xff] (!%p10361_p6)   ;;  %v11151_v10 = vld [vmem:[#allocation3 + $0xcc] ss:$16 sps:$4 sm:$0xff] (!%p10361_p6)  }
 0x296   : > { %5023 = vmatprep.subr.bf16.mxu0 %v10246_v61  ;;  %5146 = vmatprep.subr.bf16.mxu1 %v10248_v62 }
 0x298   : > { %5015 = vmatmul.mubr.bf16.vlgmr.msra.gmra.mrb[12].mxu0 %v12265_v37  ;;  %5138 = vmatmul.mubr.bf16.vlgmr.msra.gmra.mrb[12].mxu1 %v12265_v37  ;;  %v10277_v37 = vcombine.low %v868_v8, %v876_v9  ;;  %v315_v9 = vld [vmem:[#allocation2 + $0x10] sm:$0xff] }
 0x299   : > { %5024 = vmatpush1.bf16.msra.mxu0 %v10245_v4  ;;  %5147 = vmatpush1.bf16.msra.mxu1 %v10247_v5 }
 0x29a   : > { %5025 = vmatprep.subr.bf16.mxu0 %v10262_v6  ;;  %5148 = vmatprep.subr.bf16.mxu1 %v10264_v7 }
 0x29b   : > { %5055 = vmatprep.mubr.bf16.mxu0 %v11989_v56  ;;  %5178 = vmatprep.mubr.bf16.mxu1 %v11989_v56  ;;  %v10295_v56 = vcombine.low %v885_v18, %v893_v36 }
 0x29d   : > { %5026 = vmatpush1.bf16.msra.mxu0 %v10261_v12  ;;  %5149 = vmatpush1.bf16.msra.mxu1 %v10263_v13 }
 0x29e   : > { %5027 = vmatprep.subr.bf16.mxu0 %v10278_v14  ;;  %5150 = vmatprep.subr.bf16.mxu1 %v10280_v15 }
 0x2a1   : > { %5028 = vmatpush1.bf16.msra.mxu0 %v10277_v37  ;;  %5151 = vmatpush1.bf16.msra.mxu1 %v10279_v19 }
 0x2a2   : > { %5029 = vmatprep.subr.bf16.mxu0 %v10294_v21  ;;  %5152 = vmatprep.subr.bf16.mxu1 %v10296_v22  ;;  %v316_v22 = vld [vmem:[#allocation2 + $0x18] sm:$0xff] }
 0x2a5   : > { %5030 = vmatpush1.bf16.msra.mxu0 %v10293_v28  ;;  %5153 = vmatpush1.bf16.msra.mxu1 %v10295_v56  ;;  %v11117_v28 = vld [vmem:[#allocation3] ss:$16 sps:$4 sm:$0xff] (!%p10361_p6)   ;;  %v11118_v56 = vld [vmem:[#allocation3 + $0x8] ss:$16 sps:$4 sm:$0xff] (!%p10361_p6)  }
 0x2a6   : > { %5031 = vmatprep.subr.bf16.mxu0 %v10310_v29  ;;  %5154 = vmatprep.subr.bf16.mxu1 %v10312_v30  ;;  %v11119_v29 = vld [vmem:[#allocation3 + $0x24] ss:$16 sps:$4 sm:$0xff] (!%p10361_p6)   ;;  %v11121_v30 = vld [vmem:[#allocation3 + $0x2c] ss:$16 sps:$4 sm:$0xff] (!%p10361_p6)  }
 0x2a9   : > { %5032 = vmatpush1.bf16.msra.mxu0 %v10309_v54  ;;  %5155 = vmatpush1.bf16.msra.mxu1 %v10311_v0  ;;  %v11129_v54 = vld [vmem:[#allocation3 + $0x40] ss:$16 sps:$4 sm:$0xff] (!%p10361_p6)   ;;  %v11130_v0 = vld [vmem:[#allocation3 + $0x48] ss:$16 sps:$4 sm:$0xff] (!%p10361_p6)  }
 0x2aa   : > { %5033 = vmatprep.subr.bf16.mxu0 %v10326_v38  ;;  %5156 = vmatprep.subr.bf16.mxu1 %v10328_v39  ;;  %v11131_v38 = vld [vmem:[#allocation3 + $0x64] ss:$16 sps:$4 sm:$0xff] (!%p10361_p6)   ;;  %v11133_v39 = vld [vmem:[#allocation3 + $0x6c] ss:$16 sps:$4 sm:$0xff] (!%p10361_p6)  }
 0x2ad   : > { %5034 = vmatpush1.bf16.msra.mxu0 %v10325_v44  ;;  %5157 = vmatpush1.bf16.msra.mxu1 %v10327_v46  ;;  %v11141_v44 = vld [vmem:[#allocation3 + $0x80] ss:$16 sps:$4 sm:$0xff] (!%p10361_p6)   ;;  %v11142_v46 = vld [vmem:[#allocation3 + $0x88] ss:$16 sps:$4 sm:$0xff] (!%p10361_p6)  }
 0x2ae   : > { %5035 = vmatprep.subr.bf16.mxu0 %v10342_v47  ;;  %5158 = vmatprep.subr.bf16.mxu1 %v10344_v48  ;;  %v11143_v47 = vld [vmem:[#allocation3 + $0xa4] ss:$16 sps:$4 sm:$0xff] (!%p10361_p6)   ;;  %v11145_v48 = vld [vmem:[#allocation3 + $0xac] ss:$16 sps:$4 sm:$0xff] (!%p10361_p6)  }
 0x2b1   : > { %5036 = vmatpush1.bf16.msra.mxu0 %v10341_v52  ;;  %5159 = vmatpush1.bf16.msra.mxu1 %v10343_v53  ;;  %v11153_v52 = vld [vmem:[#allocation3 + $0xc0] ss:$16 sps:$4 sm:$0xff] (!%p10361_p6)   ;;  %v11154_v53 = vld [vmem:[#allocation3 + $0xc8] ss:$16 sps:$4 sm:$0xff] (!%p10361_p6)  }
 0x2b2   : > { %5037 = vmatprep.subr.bf16.mxu0 %v10358_v55  ;;  %5160 = vmatprep.subr.bf16.mxu1 %v10360_v57  ;;  %v11155_v55 = vld [vmem:[#allocation3 + $0xe4] ss:$16 sps:$4 sm:$0xff] (!%p10361_p6)   ;;  %v11157_v57 = vld [vmem:[#allocation3 + $0xec] ss:$16 sps:$4 sm:$0xff] (!%p10361_p6)  }
 0x2b5   : > { %5038 = vmatpush1.bf16.msra.mxu0 %v10357_v58  ;;  %5161 = vmatpush1.bf16.msra.mxu1 %v10359_v59  ;;  %v11159_v58 = vld [vmem:[#allocation3 + $0xe0] ss:$16 sps:$4 sm:$0xff] (!%p10361_p6)   ;;  %v11160_v59 = vld [vmem:[#allocation3 + $0xe8] ss:$16 sps:$4 sm:$0xff] (!%p10361_p6)  }
 0x2b6   : > { %8637 = vmatprep.subr.bf16.mxu0 (!%p10361_p6), %v11113_v25  ;;  %8965 = vmatprep.subr.bf16.mxu1 (!%p10361_p6), %v11115_v27  ;;  %v11190_v25 = vld [vmem:[#allocation3 + $0x188] ss:$16 sps:$4 sm:$0xff] (!%p10361_p6)  }
 0x2b8   : > { %5056 = vmatmul.mubr.bf16.vlgmr.msra.gmra.mrb[12].mxu0 %v12159_v32  ;;  %5179 = vmatmul.mubr.bf16.vlgmr.msra.gmra.mrb[12].mxu1 %v12159_v32 }
 0x2b9   : > { %8638 = vmatpush1.bf16.msra.mxu0 (!%p10361_p6), %v11117_v28  ;;  %8966 = vmatpush1.bf16.msra.mxu1 (!%p10361_p6), %v11118_v56  ;;  %v11191_v28 = vld [vmem:[#allocation3 + $0x1a4] ss:$16 sps:$4 sm:$0xff] (!%p10361_p6)   ;;  %v11193_v56 = vld [vmem:[#allocation3 + $0x1ac] ss:$16 sps:$4 sm:$0xff] (!%p10361_p6)  }
 0x2ba   : > { %8639 = vmatprep.subr.bf16.mxu0 (!%p10361_p6), %v11119_v29  ;;  %8967 = vmatprep.subr.bf16.mxu1 (!%p10361_p6), %v11121_v30  ;;  %v5287_v30 = vld [vmem:[#allocation2] sm:$0xff] (!%p10361_p6) }
 0x2bd   : > { %8640 = vmatpush1.bf16.msra.mxu0 (!%p10361_p6), %v11123_v31  ;;  %8968 = vmatpush1.bf16.msra.mxu1 (!%p10361_p6), %v11124_v33  ;;  %v11195_v33 = vld [vmem:[#allocation3 + $0x1a0] ss:$16 sps:$4 sm:$0xff] (!%p10361_p6)  }
 0x2be   : > { %8641 = vmatprep.subr.bf16.mxu0 (!%p10361_p6), %v11125_v34  ;;  %8969 = vmatprep.subr.bf16.mxu1 (!%p10361_p6), %v11127_v35  ;;  %v11196_v34 = vld [vmem:[#allocation3 + $0x1a8] ss:$16 sps:$4 sm:$0xff] (!%p10361_p6)   ;;  %v11197_v35 = vld [vmem:[#allocation3 + $0x1c4] ss:$16 sps:$4 sm:$0xff] (!%p10361_p6)  }
 0x2c1   : > { %8642 = vmatpush1.bf16.msra.mxu0 (!%p10361_p6), %v11129_v54  ;;  %8970 = vmatpush1.bf16.msra.mxu1 (!%p10361_p6), %v11130_v0  ;;  %v11199_v54 = vld [vmem:[#allocation3 + $0x1cc] ss:$16 sps:$4 sm:$0xff] (!%p10361_p6)  }
 0x2c2   : > { %8643 = vmatprep.subr.bf16.mxu0 (!%p10361_p6), %v11131_v38  ;;  %8971 = vmatprep.subr.bf16.mxu1 (!%p10361_p6), %v11133_v39  ;;  %v11201_v39 = vld [vmem:[#allocation3 + $0x1c0] ss:$16 sps:$4 sm:$0xff] (!%p10361_p6)  }
 0x2c5   : > { %8644 = vmatpush1.bf16.msra.mxu0 (!%p10361_p6), %v11135_v40  ;;  %8972 = vmatpush1.bf16.msra.mxu1 (!%p10361_p6), %v11136_v41  ;;  %v11202_v40 = vld [vmem:[#allocation3 + $0x1c8] ss:$16 sps:$4 sm:$0xff] (!%p10361_p6)   ;;  %v11203_v41 = vld [vmem:[#allocation3 + $0x1e4] ss:$16 sps:$4 sm:$0xff] (!%p10361_p6)  }
 0x2c6   : > { %8645 = vmatprep.subr.bf16.mxu0 (!%p10361_p6), %v11137_v42  ;;  %8973 = vmatprep.subr.bf16.mxu1 (!%p10361_p6), %v11139_v43  ;;  %v11205_v42 = vld [vmem:[#allocation3 + $0x1ec] ss:$16 sps:$4 sm:$0xff] (!%p10361_p6)  }
 0x2c9   : > { %8646 = vmatpush1.bf16.msra.mxu0 (!%p10361_p6), %v11141_v44  ;;  %8974 = vmatpush1.bf16.msra.mxu1 (!%p10361_p6), %v11142_v46 }
 0x2ca   : > { %8647 = vmatprep.subr.bf16.mxu0 (!%p10361_p6), %v11143_v47  ;;  %8975 = vmatprep.subr.bf16.mxu1 (!%p10361_p6), %v11145_v48  ;;  %v11207_v48 = vld [vmem:[#allocation3 + $0x1e0] ss:$16 sps:$4 sm:$0xff] (!%p10361_p6)  }
 0x2cd   : > { %8648 = vmatpush1.bf16.msra.mxu0 (!%p10361_p6), %v11147_v49  ;;  %8976 = vmatpush1.bf16.msra.mxu1 (!%p10361_p6), %v11148_v50  ;;  %v11208_v49 = vld [vmem:[#allocation3 + $0x1e8] ss:$16 sps:$4 sm:$0xff] (!%p10361_p6)  }
 0x2ce   : > { %8649 = vmatprep.subr.bf16.mxu0 (!%p10361_p6), %v11149_v51  ;;  %8977 = vmatprep.subr.bf16.mxu1 (!%p10361_p6), %v11151_v10  ;;  %v11211_v51 = vld [vmem:[#allocation3 + $0x204] ss:$16 sps:$4 sm:$0xff] (!%p10361_p6)   ;;  %v11214_v10 = vld [vmem:[#allocation3 + $0x20c] ss:$16 sps:$4 sm:$0xff] (!%p10361_p6)  }
 0x2d1   : > { %8650 = vmatpush1.bf16.msra.mxu0 (!%p10361_p6), %v11153_v52  ;;  %8978 = vmatpush1.bf16.msra.mxu1 (!%p10361_p6), %v11154_v53 }
 0x2d2   : > { %8651 = vmatprep.subr.bf16.mxu0 (!%p10361_p6), %v11155_v55  ;;  %8979 = vmatprep.subr.bf16.mxu1 (!%p10361_p6), %v11157_v57  ;;  %v11209_v55 = vld [vmem:[#allocation3 + $0x200] ss:$16 sps:$4 sm:$0xff] (!%p10361_p6)   ;;  %v11212_v57 = vld [vmem:[#allocation3 + $0x208] ss:$16 sps:$4 sm:$0xff] (!%p10361_p6)  }
 0x2d5   : > { %8652 = vmatpush1.bf16.msra.mxu0 (!%p10361_p6), %v11159_v58  ;;  %8980 = vmatpush1.bf16.msra.mxu1 (!%p10361_p6), %v11160_v59  ;;  %v11217_v58 = vld [vmem:[#allocation3 + $0x224] ss:$16 sps:$4 sm:$0xff] (!%p10361_p6)   ;;  %v11220_v59 = vld [vmem:[#allocation3 + $0x22c] ss:$16 sps:$4 sm:$0xff] (!%p10361_p6)  }
 0x2eb   : > { %v4811_v60 = vpop.f32.mrb[8].mxu0  ;;  %v4934_v61 = vpop.f32.mrb[8].mxu1 }
 0x2ec   : > { %v4813_v62 = vpop.f32.mrb[9].mxu0  ;;  %v4936_v1 = vpop.f32.mrb[9].mxu1 }
 0x2ed   : > { %v5237_v63 = vcombine.low %v4811_v60, %v4813_v62  ;;  %v4815_v2 = vpop.f32.mrb[10].mxu0  ;;  %v5238_v3 = vcombine.low %v4934_v61, %v4936_v1  ;;  %v4938_v4 = vpop.f32.mrb[10].mxu1  ;;  %v11161_v60 = vld [vmem:[#allocation3 + $0x104] ss:$16 sps:$4 sm:$0xff] (!%p10361_p6)   ;;  %v11163_v61 = vld [vmem:[#allocation3 + $0x10c] ss:$16 sps:$4 sm:$0xff] (!%p10361_p6)  }
 0x2ee   : > { %v4816_v5 = vpop.f32.mrb[11].mxu0  ;;  %v4939_v7 = vpop.f32.mrb[11].mxu1  ;;  %v11165_v62 = vld [vmem:[#allocation3 + $0x100] ss:$16 sps:$4 sm:$0xff] (!%p10361_p6)   ;;  %v11167_v1 = vld [vmem:[#allocation3 + $0x124] ss:$16 sps:$4 sm:$0xff] (!%p10361_p6)   ;;  %8653 = vmatprep.subr.bf16.mxu0 (!%p10361_p6), %v11161_v60  ;;  %8981 = vmatprep.subr.bf16.mxu1 (!%p10361_p6), %v11163_v61 }
 0x2ef   : > { %v5245_v6 = vrot.slane %v5237_v63, %v12534_v20  ;;  %v5252_v8 = vrot.slane %v5238_v3, %v12534_v20  ;;  %v11166_v63 = vld [vmem:[#allocation3 + $0x108] ss:$16 sps:$4 sm:$0xff] (!%p10361_p6)   ;;  %v11169_v2 = vld [vmem:[#allocation3 + $0x12c] ss:$16 sps:$4 sm:$0xff] (!%p10361_p6)   ;;  %v11171_v3 = vld [vmem:[#allocation3 + $0x120] ss:$16 sps:$4 sm:$0xff] (!%p10361_p6)   ;;  %8654 = vmatpush1.bf16.msra.mxu0 (!%p10361_p6), %v11165_v62 }
 0x2f0   : > { %8982 = vmatpush1.bf16.msra.mxu1 (!%p10361_p6), %v11166_v63  ;;  %v11172_v4 = vld [vmem:[#allocation3 + $0x128] ss:$16 sps:$4 sm:$0xff] (!%p10361_p6)   ;;  %v11173_v5 = vld [vmem:[#allocation3 + $0x144] ss:$16 sps:$4 sm:$0xff] (!%p10361_p6)   ;;  %8655 = vmatprep.subr.bf16.mxu0 (!%p10361_p6), %v11167_v1  ;;  %v11177_v7 = vld [vmem:[#allocation3 + $0x140] ss:$16 sps:$4 sm:$0xff] (!%p10361_p6)  }
 0x2f1   : > { %v5253_v26 = vcombine.low %v5245_v6, %v5252_v8  ;;  %8983 = vmatprep.subr.bf16.mxu1 (!%p10361_p6), %v11169_v2  ;;  %v11175_v6 = vld [vmem:[#allocation3 + $0x14c] ss:$16 sps:$4 sm:$0xff] (!%p10361_p6)   ;;  %v11178_v8 = vld [vmem:[#allocation3 + $0x148] ss:$16 sps:$4 sm:$0xff] (!%p10361_p6)   ;;  %v11215_v61 = vld [vmem:[#allocation3 + $0x220] ss:$16 sps:$4 sm:$0xff] (!%p10361_p6)  }
 0x2f2   : > { %v11218_v62 = vld [vmem:[#allocation3 + $0x228] ss:$16 sps:$4 sm:$0xff] (!%p10361_p6)   ;;  %v11223_v63 = vld [vmem:[#allocation3 + $0x244] ss:$16 sps:$4 sm:$0xff] (!%p10361_p6)   ;;  %v11226_v1 = vld [vmem:[#allocation3 + $0x24c] ss:$16 sps:$4 sm:$0xff] (!%p10361_p6)  }
 0x2f3   : > { %v5277_v11 = vadd.f32 %v5253_v26, %v315_v9  ;;  %v12828_v9 = vsub.s32 (!%p10361_p6), 0, %v12115_v45  ;;  %8656 = vmatpush1.bf16.msra.mxu0 (!%p10361_p6), %v11171_v3  ;;  %v11179_v26 = vld [vmem:[#allocation3 + $0x164] ss:$16 sps:$4 sm:$0xff] (!%p10361_p6)   ;;  %v11221_v2 = vld [vmem:[#allocation3 + $0x240] ss:$16 sps:$4 sm:$0xff] (!%p10361_p6)  }
 0x2f4   : > { %8984 = vmatpush1.bf16.msra.mxu1 (!%p10361_p6), %v11172_v4  ;;  %8657 = vmatprep.subr.bf16.mxu0 (!%p10361_p6), %v11173_v5  ;;  %v11224_v3 = vld [vmem:[#allocation3 + $0x248] ss:$16 sps:$4 sm:$0xff] (!%p10361_p6)   ;;  %v11229_v4 = vld [vmem:[#allocation3 + $0x264] ss:$16 sps:$4 sm:$0xff] (!%p10361_p6)   ;;  %v11232_v5 = vld [vmem:[#allocation3 + $0x26c] ss:$16 sps:$4 sm:$0xff] (!%p10361_p6)  }
 0x2f5   : > { %5281 = vst [vmem:[#allocation2 + $0x10] sm:$0xff] %v5277_v11  ;;  %v12831_v11 = vsub.s32 (!%p10361_p6), 1, %v12115_v45  ;;  %8985 = vmatprep.subr.bf16.mxu1 (!%p10361_p6), %v11175_v6  ;;  %v11227_v6 = vld [vmem:[#allocation3 + $0x260] ss:$16 sps:$4 sm:$0xff] (!%p10361_p6)  }
 0x2f7   : > { %8658 = vmatpush1.bf16.msra.mxu0 (!%p10361_p6), %v11177_v7  ;;  %v11230_v7 = vld [vmem:[#allocation3 + $0x268] ss:$16 sps:$4 sm:$0xff] (!%p10361_p6)  }
 0x2f8   : > { %8986 = vmatpush1.bf16.msra.mxu1 (!%p10361_p6), %v11178_v8  ;;  %8659 = vmatprep.subr.bf16.mxu0 (!%p10361_p6), %v11179_v26  ;;  %v11235_v8 = vld [vmem:[#allocation3 + $0x284] ss:$16 sps:$4 sm:$0xff] (!%p10361_p6)   ;;  %v11238_v26 = vld [vmem:[#allocation3 + $0x28c] ss:$16 sps:$4 sm:$0xff] (!%p10361_p6)  }
 0x38b   : > { %v5057_v12 = vpop.f32.mrb[12].mxu0  ;;  %v5180_v32 = vpop.f32.mrb[12].mxu1 }
 0x38c   : > { %v5059_v13 = vpop.f32.mrb[13].mxu0  ;;  %v5182_v15 = vpop.f32.mrb[13].mxu1 }
 0x38d   : > { %v5254_v14 = vcombine.low %v5057_v12, %v5059_v13  ;;  %v5061_v16 = vpop.f32.mrb[14].mxu0  ;;  %v5255_v17 = vcombine.low %v5180_v32, %v5182_v15  ;;  %v5184_v18 = vpop.f32.mrb[14].mxu1  ;;  %v12834_v12 = vsub.s32 (!%p10361_p6), 2, %v12115_v45  ;;  %v11181_v32 = vld [vmem:[#allocation3 + $0x16c] ss:$16 sps:$4 sm:$0xff] (!%p10361_p6)   ;;  %v12837_v13 = vsub.s32 (!%p10361_p6), 3, %v12115_v45 }
 0x38e   : > { %v5062_v36 = vpop.f32.mrb[15].mxu0  ;;  %v5185_v19 = vpop.f32.mrb[15].mxu1  ;;  %v11183_v15 = vld [vmem:[#allocation3 + $0x160] ss:$16 sps:$4 sm:$0xff] (!%p10361_p6)   ;;  %v11184_v16 = vld [vmem:[#allocation3 + $0x168] ss:$16 sps:$4 sm:$0xff] (!%p10361_p6)   ;;  %8987 = vmatprep.subr.bf16.mxu1 (!%p10361_p6), %v11181_v32 }
 0x38f   : > { %v5262_v37 = vrot.slane %v5254_v14, %v12534_v20  ;;  %v5269_v21 = vrot.slane %v5255_v17, %v12534_v20  ;;  %5286 = sbr.rel (%p10361_p6) target bundleno = 1821 (0x71d), region = 60  ;;  %v12842_v14 = vld [vmem:[%s13093_s2] sm:$0xff] (!%p10361_p6)  ;;  %v11187_v19 = vld [vmem:[#allocation3 + $0x18c] ss:$16 sps:$4 sm:$0xff] (!%p10361_p6)   ;;  %8660 = vmatpush1.bf16.msra.mxu0 (!%p10361_p6), %v11183_v15  ;;  %8988 = vmatpush1.bf16.msra.mxu1 (!%p10361_p6), %v11184_v16  ;;  %v11236_v15 = vld [vmem:[#allocation3 + $0x288] ss:$16 sps:$4 sm:$0xff] (!%p10361_p6)  }
 0x390   : > { %v5298_v17 = vrot.slane (!%p10361_p6), %v12842_v14, %v12828_v9  ;;  %v5302_v18 = vrot.slane (!%p10361_p6), %v12842_v14, %v12831_v11  ;;  %v5306_v36 = vrot.slane (!%p10361_p6), %v12842_v14, %v12834_v12  ;;  %8989 = vmatprep.subr.bf16.mxu1 (!%p10361_p6), %v11187_v19  ;;  %v11233_v32 = vld [vmem:[#allocation3 + $0x280] ss:$16 sps:$4 sm:$0xff] (!%p10361_p6)   ;;  %v11241_v16 = vld [vmem:[#allocation3 + $0x2a4] ss:$16 sps:$4 sm:$0xff] (!%p10361_p6)   ;;  %v11250_v19 = vld [vmem:[#allocation3 + $0x2cc] ss:$16 sps:$4 sm:$0xff] (!%p10361_p6)  }
 0x391   : > { %v5270_v23 = vcombine.low %v5262_v37, %v5269_v21  ;;  %v11185_v37 = vld [vmem:[#allocation3 + $0x184] ss:$16 sps:$4 sm:$0xff] (!%p10361_p6)   ;;  %v5310_v21 = vrot.slane (!%p10361_p6), %v12842_v14, %v12837_v13 }
 0x392   : > { %8661 = vmatprep.subr.bf16.mxu0 (!%p10361_p6), %v11185_v37  ;;  %v11247_v37 = vld [vmem:[#allocation3 + $0x2c4] ss:$16 sps:$4 sm:$0xff] (!%p10361_p6)  }
 0x393   : > { %v5278_v24 = vadd.f32 %v5270_v23, %v316_v22  ;;  %v5359_v22 = vcombine.low (!%p10361_p6), %v5298_v17, %v5302_v18  ;;  %v5360_v23 = vcombine.low (!%p10361_p6), %v5306_v36, %v5310_v21  ;;  %8990 = vmatpush1.bf16.msra.mxu1 (!%p10361_p6), %v11190_v25  ;;  %v11244_v17 = vld [vmem:[#allocation3 + $0x2ac] ss:$16 sps:$4 sm:$0xff] (!%p10361_p6)   ;;  %v11239_v18 = vld [vmem:[#allocation3 + $0x2a0] ss:$16 sps:$4 sm:$0xff] (!%p10361_p6)   ;;  %v11242_v36 = vld [vmem:[#allocation3 + $0x2a8] ss:$16 sps:$4 sm:$0xff] (!%p10361_p6)  }
 0x394   : > { %8991 = vmatprep.subr.bf16.mxu1 (!%p10361_p6), %v11193_v56  ;;  %v11245_v21 = vld [vmem:[#allocation3 + $0x2c0] ss:$16 sps:$4 sm:$0xff] (!%p10361_p6)   ;;  %v11262_v56 = vld [vmem:[#allocation3 + $0x30c] ss:$16 sps:$4 sm:$0xff] (!%p10361_p6)  }
 0x395   : > { %5282 = vst [vmem:[#allocation2 + $0x18] sm:$0xff] %v5278_v24  ;;  %v11189_v24 = vld [vmem:[#allocation3 + $0x180] ss:$16 sps:$4 sm:$0xff] (!%p10361_p6)   ;;  %v5367_v27 = vrot.slane (!%p10361_p6), %v5359_v22, %v12534_v20  ;;  %v5374_v29 = vrot.slane (!%p10361_p6), %v5360_v23, %v12534_v20  ;;  %v11248_v22 = vld [vmem:[#allocation3 + $0x2c8] ss:$16 sps:$4 sm:$0xff] (!%p10361_p6)  }
 0x396   : > { %8662 = vmatpush1.bf16.msra.mxu0 %v11189_v24  ;;  %v11253_v23 = vld [vmem:[#allocation3 + $0x2e4] ss:$16 sps:$4 sm:$0xff]   ;;  %v11256_v24 = vld [vmem:[#allocation3 + $0x2ec] ss:$16 sps:$4 sm:$0xff]   ;;  %v11251_v25 = vld [vmem:[#allocation3 + $0x2e0] ss:$16 sps:$4 sm:$0xff]  }
 0x397   : > { %v5375_v31 = vcombine.low %v5367_v27, %v5374_v29  ;;  %8663 = vmatprep.subr.bf16.mxu0 %v11191_v28  ;;  %8992 = vmatpush1.bf16.msra.mxu1 %v11196_v34  ;;  %v11254_v27 = vld [vmem:[#allocation3 + $0x2e8] ss:$16 sps:$4 sm:$0xff]   ;;  %v11259_v28 = vld [vmem:[#allocation3 + $0x304] ss:$16 sps:$4 sm:$0xff]   ;;  %v11257_v29 = vld [vmem:[#allocation3 + $0x300] ss:$16 sps:$4 sm:$0xff]  }
 0x398   : > { %8993 = vmatprep.subr.bf16.mxu1 %v11199_v54  ;;  %v11263_v34 = vld [vmem:[#allocation3 + $0x320] ss:$16 sps:$4 sm:$0xff]   ;;  %v11271_v54 = vld [vmem:[#allocation3 + $0x344] ss:$16 sps:$4 sm:$0xff]  }
 0x399   : > { %v5431_v0 = vadd.f32 %v5375_v31, %v5287_v30  ;;  %v11260_v30 = vld [vmem:[#allocation3 + $0x308] ss:$16 sps:$4 sm:$0xff]   ;;  %v11265_v31 = vld [vmem:[#allocation3 + $0x324] ss:$16 sps:$4 sm:$0xff]  }
 0x39a   : > { %8664 = vmatpush1.bf16.msra.mxu0 %v11195_v33  ;;  %v11268_v33 = vld [vmem:[#allocation3 + $0x32c] ss:$16 sps:$4 sm:$0xff]  }
 0x39b   : > { %v5435_v38 = vmax.f32 %v5431_v0, 0.0  ;;  %8665 = vmatprep.subr.bf16.mxu0 %v11197_v35  ;;  %8994 = vmatpush1.bf16.msra.mxu1 %v11202_v40  ;;  %v11266_v35 = vld [vmem:[#allocation3 + $0x328] ss:$16 sps:$4 sm:$0xff]   ;;  %v11274_v0 = vld [vmem:[#allocation3 + $0x34c] ss:$16 sps:$4 sm:$0xff]  }
 0x39c   : > { %8995 = vmatprep.subr.bf16.mxu1 %v11205_v42  ;;  %v11277_v40 = vld [vmem:[#allocation3 + $0x364] ss:$16 sps:$4 sm:$0xff]   ;;  %v5313_v42 = vsub.s32 4, %v12115_v45 }
 0x39d   : > { %v5450_v43 = vrot.slane %v5435_v38, %v12534_v20  ;;  %v5443_v44 = vcombine.high %v5435_v38, %v5435_v38  ;;  %v11269_v38 = vld [vmem:[#allocation3 + $0x340] ss:$16 sps:$4 sm:$0xff]  }
 0x39e   : > { %8666 = vmatpush1.bf16.msra.mxu0 %v11201_v39  ;;  %v11272_v39 = vld [vmem:[#allocation3 + $0x348] ss:$16 sps:$4 sm:$0xff]  }
 0x39f   : > { %v5458_v46 = vcombine.high %v5450_v43, %v5450_v43  ;;  %v12856_v47 = vrot.slane %v5443_v44, %v12534_v20  ;;  %8667 = vmatprep.subr.bf16.mxu0 %v11203_v41  ;;  %v5527_v53 = vpack.c.bf16 %v5450_v43, %v5450_v43  ;;  %8996 = vmatpush1.bf16.msra.mxu1 %v11208_v49  ;;  %v11280_v41 = vld [vmem:[#allocation3 + $0x36c] ss:$16 sps:$4 sm:$0xff]   ;;  %v5317_v43 = vsub.s32 5, %v12115_v45  ;;  %v11275_v44 = vld [vmem:[#allocation3 + $0x360] ss:$16 sps:$4 sm:$0xff]  }
 0x3a0   : > { %9006 = vmatprep.subr.bf16.mxu1 %v11214_v10  ;;  %v11283_v49 = vld [vmem:[#allocation3 + $0x384] ss:$16 sps:$4 sm:$0xff]   ;;  %v11281_v10 = vld [vmem:[#allocation3 + $0x380] ss:$16 sps:$4 sm:$0xff]  }
 0x3a1   : > { %v5528_v50 = vpack.c.bf16 %v5458_v46, %v5458_v46  ;;  %v5459_v52 = vcombine.high %v12856_v47, %v12856_v47  ;;  %v11278_v46 = vld [vmem:[#allocation3 + $0x368] ss:$16 sps:$4 sm:$0xff]  }
 0x3a2   : > { %8668 = vmatpush1.bf16.msra.mxu0 %v11207_v48  ;;  %v5321_v48 = vsub.s32 6, %v12115_v45 }
 0x3a3   : > { %8669 = vmatprep.mubr.bf16.mxu0 %v5528_v50  ;;  %8997 = vmatprep.mubr.bf16.mxu1 %v5528_v50  ;;  %v5530_v60 = vpack.c.bf16 %v5459_v52, %v5459_v52  ;;  %v11286_v50 = vld [vmem:[#allocation3 + $0x38c] ss:$16 sps:$4 sm:$0xff]   ;;  %v11284_v52 = vld [vmem:[#allocation3 + $0x388] ss:$16 sps:$4 sm:$0xff]  }
 0x3a4   : > { %8678 = vmatprep.subr.bf16.mxu0 %v11211_v51  ;;  %8998 = vmatmul.mubr.bf16.vlgmr.msra.gmra.mrb[0].mxu1 %v5527_v53  ;;  %v5325_v51 = vsub.s32 7, %v12115_v45 }
 0x3a5   : > { %8670 = vmatmul.mubr.bf16.vlgmr.msra.gmra.mrb[0].mxu0 %v5527_v53  ;;  %9007 = vmatpush1.bf16.msra.mxu1 %v11212_v57  ;;  %v5314_v53 = vrot.slane %v12842_v14, %v5313_v42  ;;  %v11292_v57 = vld [vmem:[#allocation3 + $0x3ac] ss:$16 sps:$4 sm:$0xff]  }
 0x3a6   : > { %8679 = vmatpush1.bf16.msra.mxu0 %v11209_v55  ;;  %9008 = vmatprep.subr.bf16.mxu1 %v11220_v59  ;;  %v11289_v55 = vld [vmem:[#allocation3 + $0x3a4] ss:$16 sps:$4 sm:$0xff]   ;;  %v5322_v59 = vrot.slane %v12842_v14, %v5321_v48 }
 0x3a7   : > { %8680 = vmatprep.subr.bf16.mxu0 %v11217_v58  ;;  %8710 = vmatprep.mubr.bf16.mxu0 %v5530_v60  ;;  %v5318_v58 = vrot.slane %v12842_v14, %v5317_v43 }
 0x3a8   : > { %9038 = vmatprep.mubr.bf16.mxu1 %v5530_v60  ;;  %v5326_v60 = vrot.slane %v12842_v14, %v5325_v51 }
 0x3a9   : > { %9009 = vmatpush1.bf16.msra.mxu1 %v11218_v62  ;;  %v11290_v62 = vld [vmem:[#allocation3 + $0x3a8] ss:$16 sps:$4 sm:$0xff]  }
 0x3aa   : > { %8681 = vmatpush1.bf16.msra.mxu0 %v11215_v61  ;;  %9010 = vmatprep.subr.bf16.mxu1 %v11226_v1  ;;  %v11287_v61 = vld [vmem:[#allocation3 + $0x3a0] ss:$16 sps:$4 sm:$0xff]   ;;  %v11298_v1 = vld [vmem:[#allocation3 + $0x3cc] ss:$16 sps:$4 sm:$0xff]  }
 0x3ab   : > { %8682 = vmatprep.subr.bf16.mxu0 %v11223_v63  ;;  %v11295_v63 = vld [vmem:[#allocation3 + $0x3c4] ss:$16 sps:$4 sm:$0xff]  }
 0x3ad   : > { %9011 = vmatpush1.bf16.msra.mxu1 %v11224_v3  ;;  %v5377_v3 = vcombine.low %v5322_v59, %v5326_v60  ;;  %v11347_v59 = vld [vmem:[#allocation3 + $0x4e0] ss:$16 sps:$4 sm:$0xff]   ;;  %v11350_v60 = vld [vmem:[#allocation3 + $0x4e8] ss:$16 sps:$4 sm:$0xff]  }
 0x3ae   : > { %8683 = vmatpush1.bf16.msra.mxu0 %v11221_v2  ;;  %9012 = vmatprep.subr.bf16.mxu1 %v11232_v5  ;;  %v5376_v2 = vcombine.low %v5314_v53, %v5318_v58  ;;  %v11296_v5 = vld [vmem:[#allocation3 + $0x3c8] ss:$16 sps:$4 sm:$0xff]   ;;  %v11341_v53 = vld [vmem:[#allocation3 + $0x4c0] ss:$16 sps:$4 sm:$0xff]   ;;  %v11352_v58 = vld [vmem:[#allocation3 + $0x4ec] ss:$16 sps:$4 sm:$0xff]  }
 0x3af   : > { %8684 = vmatprep.subr.bf16.mxu0 %v11229_v4  ;;  %v11293_v4 = vld [vmem:[#allocation3 + $0x3c0] ss:$16 sps:$4 sm:$0xff]  }
 0x3b0   : > { %v5384_v14 = vrot.slane %v5376_v2, %v12534_v20  ;;  %v11361_v2 = vld [vmem:[#allocation3 + $0x524] ss:$16 sps:$4 sm:$0xff]  }
 0x3b1   : > { %9013 = vmatpush1.bf16.msra.mxu1 %v11230_v7  ;;  %v11304_v7 = vld [vmem:[#allocation3 + $0x3ec] ss:$16 sps:$4 sm:$0xff]  }
 0x3b2   : > { %8685 = vmatpush1.bf16.msra.mxu0 %v11227_v6  ;;  %9014 = vmatprep.subr.bf16.mxu1 %v11238_v26  ;;  %v11301_v6 = vld [vmem:[#allocation3 + $0x3e4] ss:$16 sps:$4 sm:$0xff]   ;;  %v11299_v26 = vld [vmem:[#allocation3 + $0x3e0] ss:$16 sps:$4 sm:$0xff]  }
 0x3b3   : > { %8686 = vmatprep.subr.bf16.mxu0 %v11235_v8  ;;  %v5391_v8 = vrot.slane %v5377_v3, %v12534_v20  ;;  %v11364_v3 = vld [vmem:[#allocation3 + $0x52c] ss:$16 sps:$4 sm:$0xff]  }
 0x3b5   : > { %9015 = vmatpush1.bf16.msra.mxu1 %v11236_v15  ;;  %v11307_v15 = vld [vmem:[#allocation3 + $0x404] ss:$16 sps:$4 sm:$0xff]  }
 0x3b6   : > { %8687 = vmatpush1.bf16.msra.mxu0 %v11233_v32  ;;  %9016 = vmatprep.subr.bf16.mxu1 %v11244_v17  ;;  %v11302_v32 = vld [vmem:[#allocation3 + $0x3e8] ss:$16 sps:$4 sm:$0xff]   ;;  %v5392_v17 = vcombine.low %v5384_v14, %v5391_v8  ;;  %v11365_v14 = vld [vmem:[#allocation3 + $0x540] ss:$16 sps:$4 sm:$0xff]  }
 0x3b7   : > { %8688 = vmatprep.subr.bf16.mxu0 %v11241_v16  ;;  %v11310_v16 = vld [vmem:[#allocation3 + $0x40c] ss:$16 sps:$4 sm:$0xff]   ;;  %v11368_v8 = vld [vmem:[#allocation3 + $0x548] ss:$16 sps:$4 sm:$0xff]  }
 0x3b9   : > { %9017 = vmatpush1.bf16.msra.mxu1 %v11242_v36  ;;  %v5529_v36 = vpack.c.bf16 %v12856_v47, %v12856_v47  ;;  %v11322_v47 = vld [vmem:[#allocation3 + $0x44c] ss:$16 sps:$4 sm:$0xff]  }
 0x3ba   : > { %8689 = vmatpush1.bf16.msra.mxu0 %v11239_v18  ;;  %9018 = vmatprep.subr.bf16.mxu1 %v11250_v19  ;;  %v11305_v18 = vld [vmem:[#allocation3 + $0x400] ss:$16 sps:$4 sm:$0xff]   ;;  %v11313_v19 = vld [vmem:[#allocation3 + $0x424] ss:$16 sps:$4 sm:$0xff]  }
 0x3bb   : > { %8690 = vmatprep.subr.bf16.mxu0 %v11247_v37  ;;  %v11308_v37 = vld [vmem:[#allocation3 + $0x408] ss:$16 sps:$4 sm:$0xff]  }
 0x3bd   : > { %9019 = vmatpush1.bf16.msra.mxu1 %v11248_v22  ;;  %v11316_v22 = vld [vmem:[#allocation3 + $0x42c] ss:$16 sps:$4 sm:$0xff]  }
 0x3be   : > { %8691 = vmatpush1.bf16.msra.mxu0 %v11245_v21  ;;  %9020 = vmatprep.subr.bf16.mxu1 %v11256_v24  ;;  %v5288_v21 = vld [vmem:[#allocation2 + $0x8] sm:$0xff]  ;;  %v11311_v24 = vld [vmem:[#allocation3 + $0x420] ss:$16 sps:$4 sm:$0xff]  }
 0x3bf   : > { %8692 = vmatprep.subr.bf16.mxu0 %v11253_v23  ;;  %v5432_v23 = vadd.f32 %v5392_v17, %v5288_v21  ;;  %v11379_v17 = vld [vmem:[#allocation3 + $0x584] ss:$16 sps:$4 sm:$0xff]   ;;  %v11388_v21 = vld [vmem:[#allocation3 + $0x5ac] ss:$16 sps:$4 sm:$0xff]  }
 0x3c1   : > { %9021 = vmatpush1.bf16.msra.mxu1 %v11254_v27  ;;  %v11314_v27 = vld [vmem:[#allocation3 + $0x428] ss:$16 sps:$4 sm:$0xff]  }
 0x3c2   : > { %8693 = vmatpush1.bf16.msra.mxu0 %v11251_v25  ;;  %9022 = vmatprep.subr.bf16.mxu1 %v11262_v56  ;;  %v12880_v25 = vmax.f32 %v5432_v23, 0.0  ;;  %v11386_v23 = vld [vmem:[#allocation3 + $0x5a8] ss:$16 sps:$4 sm:$0xff]  }
 0x3c3   : > { %8694 = vmatprep.subr.bf16.mxu0 %v11259_v28  ;;  %v11319_v28 = vld [vmem:[#allocation3 + $0x444] ss:$16 sps:$4 sm:$0xff]  }
 0x3c4   : > { %v12884_v56 = vrot.slane %v12880_v25, %v12534_v20 }
 0x3c5   : > { %9023 = vmatpush1.bf16.msra.mxu1 %v11260_v30 }
 0x3c6   : > { %8695 = vmatpush1.bf16.msra.mxu0 %v11257_v29  ;;  %9024 = vmatprep.subr.bf16.mxu1 %v11268_v33  ;;  %v11317_v29 = vld [vmem:[#allocation3 + $0x440] ss:$16 sps:$4 sm:$0xff]   ;;  %v5475_v30 = vcombine.high %v12884_v56, %v12884_v56  ;;  %v11325_v33 = vld [vmem:[#allocation3 + $0x464] ss:$16 sps:$4 sm:$0xff]  }
 0x3c7   : > { %8696 = vmatprep.subr.bf16.mxu0 %v11265_v31  ;;  %v11320_v31 = vld [vmem:[#allocation3 + $0x448] ss:$16 sps:$4 sm:$0xff]  }
 0x3c9   : > { %9025 = vmatpush1.bf16.msra.mxu1 %v11266_v35  ;;  %v5532_v35 = vpack.c.bf16 %v5475_v30, %v5475_v30  ;;  %v11397_v30 = vld [vmem:[#allocation3 + $0x5e4] ss:$16 sps:$4 sm:$0xff]  }
 0x3ca   : > { %8697 = vmatpush1.bf16.msra.mxu0 %v11263_v34  ;;  %9026 = vmatprep.subr.bf16.mxu1 %v11274_v0  ;;  %v11328_v34 = vld [vmem:[#allocation3 + $0x46c] ss:$16 sps:$4 sm:$0xff]   ;;  %v11326_v0 = vld [vmem:[#allocation3 + $0x468] ss:$16 sps:$4 sm:$0xff]  }
 0x3cb   : > { %8698 = vmatprep.subr.bf16.mxu0 %v11271_v54  ;;  %v11323_v54 = vld [vmem:[#allocation3 + $0x460] ss:$16 sps:$4 sm:$0xff]  }
 0x3cd   : > { %9027 = vmatpush1.bf16.msra.mxu1 %v11272_v39  ;;  %v11334_v39 = vld [vmem:[#allocation3 + $0x48c] ss:$16 sps:$4 sm:$0xff]  }
 0x3ce   : > { %8699 = vmatpush1.bf16.msra.mxu0 %v11269_v38  ;;  %9028 = vmatprep.subr.bf16.mxu1 %v11280_v41  ;;  %v11331_v38 = vld [vmem:[#allocation3 + $0x484] ss:$16 sps:$4 sm:$0xff]   ;;  %v11332_v41 = vld [vmem:[#allocation3 + $0x488] ss:$16 sps:$4 sm:$0xff]  }
 0x3cf   : > { %8700 = vmatprep.subr.bf16.mxu0 %v11277_v40  ;;  %v11329_v40 = vld [vmem:[#allocation3 + $0x480] ss:$16 sps:$4 sm:$0xff]  }
 0x3d1   : > { %9029 = vmatpush1.bf16.msra.mxu1 %v11278_v46  ;;  %v11340_v46 = vld [vmem:[#allocation3 + $0x4ac] ss:$16 sps:$4 sm:$0xff]  }
 0x3d2   : > { %8701 = vmatpush1.bf16.msra.mxu0 %v11275_v44  ;;  %9030 = vmatprep.subr.bf16.mxu1 %v11286_v50  ;;  %v11337_v44 = vld [vmem:[#allocation3 + $0x4a4] ss:$16 sps:$4 sm:$0xff]   ;;  %v11338_v50 = vld [vmem:[#allocation3 + $0x4a8] ss:$16 sps:$4 sm:$0xff]  }
 0x3d3   : > { %8702 = vmatprep.subr.bf16.mxu0 %v11283_v49  ;;  %v11335_v49 = vld [vmem:[#allocation3 + $0x4a0] ss:$16 sps:$4 sm:$0xff]  }
 0x3d5   : > { %9031 = vmatpush1.bf16.msra.mxu1 %v11284_v52  ;;  %v11346_v52 = vld [vmem:[#allocation3 + $0x4cc] ss:$16 sps:$4 sm:$0xff]  }
 0x3d6   : > { %8703 = vmatpush1.bf16.msra.mxu0 %v11281_v10  ;;  %9032 = vmatprep.subr.bf16.mxu1 %v11292_v57  ;;  %v11343_v10 = vld [vmem:[#allocation3 + $0x4c4] ss:$16 sps:$4 sm:$0xff]  }
 0x3d7   : > { %8704 = vmatprep.subr.bf16.mxu0 %v11289_v55  ;;  %v11344_v55 = vld [vmem:[#allocation3 + $0x4c8] ss:$16 sps:$4 sm:$0xff]   ;;  %v11349_v57 = vld [vmem:[#allocation3 + $0x4e4] ss:$16 sps:$4 sm:$0xff]  }
 0x3d9   : > { %9033 = vmatpush1.bf16.msra.mxu1 %v11290_v62  ;;  %v11358_v62 = vld [vmem:[#allocation3 + $0x50c] ss:$16 sps:$4 sm:$0xff]  }
 0x3da   : > { %8705 = vmatpush1.bf16.msra.mxu0 %v11287_v61  ;;  %9034 = vmatprep.subr.bf16.mxu1 %v11298_v1  ;;  %v11355_v61 = vld [vmem:[#allocation3 + $0x504] ss:$16 sps:$4 sm:$0xff]   ;;  %v11356_v1 = vld [vmem:[#allocation3 + $0x508] ss:$16 sps:$4 sm:$0xff]  }
 0x3db   : > { %8706 = vmatprep.subr.bf16.mxu0 %v11295_v63  ;;  %v11353_v63 = vld [vmem:[#allocation3 + $0x500] ss:$16 sps:$4 sm:$0xff]  }
 0x3dd   : > { %9035 = vmatpush1.bf16.msra.mxu1 %v11296_v5  ;;  %v11362_v5 = vld [vmem:[#allocation3 + $0x528] ss:$16 sps:$4 sm:$0xff]  }
 0x3de   : > { %8707 = vmatpush1.bf16.msra.mxu0 %v11293_v4  ;;  %9036 = vmatprep.subr.bf16.mxu1 %v11304_v7  ;;  %v11359_v4 = vld [vmem:[#allocation3 + $0x520] ss:$16 sps:$4 sm:$0xff]   ;;  %v11370_v7 = vld [vmem:[#allocation3 + $0x54c] ss:$16 sps:$4 sm:$0xff]  }
 0x3df   : > { %8708 = vmatprep.subr.bf16.mxu0 %v11301_v6  ;;  %v11367_v6 = vld [vmem:[#allocation3 + $0x544] ss:$16 sps:$4 sm:$0xff]  }
 0x3e1   : > { %9037 = vmatpush1.bf16.msra.mxu1 %v11302_v32  ;;  %v11376_v32 = vld [vmem:[#allocation3 + $0x56c] ss:$16 sps:$4 sm:$0xff]  }
 0x3e2   : > { %8709 = vmatpush1.bf16.msra.mxu0 %v11299_v26  ;;  %9047 = vmatprep.subr.bf16.mxu1 %v11310_v16  ;;  %v11373_v26 = vld [vmem:[#allocation3 + $0x564] ss:$16 sps:$4 sm:$0xff]   ;;  %v11374_v16 = vld [vmem:[#allocation3 + $0x568] ss:$16 sps:$4 sm:$0xff]  }
 0x3e3   : > { %8719 = vmatprep.subr.bf16.mxu0 %v11307_v15  ;;  %v11371_v15 = vld [vmem:[#allocation3 + $0x560] ss:$16 sps:$4 sm:$0xff]  }
 0x3e4   : > { %9039 = vmatmul.mubr.bf16.vlgmr.msra.gmra.mrb[0].mxu1 %v5529_v36 }
 0x3e5   : > { %8711 = vmatmul.mubr.bf16.vlgmr.msra.gmra.mrb[0].mxu0 %v5529_v36  ;;  %9048 = vmatpush1.bf16.msra.mxu1 %v11308_v37  ;;  %v11377_v36 = vld [vmem:[#allocation3 + $0x580] ss:$16 sps:$4 sm:$0xff]   ;;  %v11380_v37 = vld [vmem:[#allocation3 + $0x588] ss:$16 sps:$4 sm:$0xff]  }
 0x3e6   : > { %8720 = vmatpush1.bf16.msra.mxu0 %v11305_v18  ;;  %9049 = vmatprep.subr.bf16.mxu1 %v11316_v22  ;;  %v11382_v18 = vld [vmem:[#allocation3 + $0x58c] ss:$16 sps:$4 sm:$0xff]   ;;  %v11383_v22 = vld [vmem:[#allocation3 + $0x5a0] ss:$16 sps:$4 sm:$0xff]  }
 0x3e7   : > { %8721 = vmatprep.subr.bf16.mxu0 %v11313_v19  ;;  %8751 = vmatprep.mubr.bf16.mxu0 %v5532_v35  ;;  %v11385_v19 = vld [vmem:[#allocation3 + $0x5a4] ss:$16 sps:$4 sm:$0xff]  }
 0x3e8   : > { %9079 = vmatprep.mubr.bf16.mxu1 %v5532_v35  ;;  %v11398_v35 = vld [vmem:[#allocation3 + $0x5e8] ss:$16 sps:$4 sm:$0xff]  }
 0x3e9   : > { %9050 = vmatpush1.bf16.msra.mxu1 %v11314_v27  ;;  %v11394_v27 = vld [vmem:[#allocation3 + $0x5cc] ss:$16 sps:$4 sm:$0xff]  }
 0x3ea   : > { %8722 = vmatpush1.bf16.msra.mxu0 %v11311_v24  ;;  %9051 = vmatprep.subr.bf16.mxu1 %v11322_v47  ;;  %v11391_v24 = vld [vmem:[#allocation3 + $0x5c4] ss:$16 sps:$4 sm:$0xff]   ;;  %v11389_v47 = vld [vmem:[#allocation3 + $0x5c0] ss:$16 sps:$4 sm:$0xff]  }
 0x3eb   : > { %8723 = vmatprep.subr.bf16.mxu0 %v11319_v28  ;;  %v5460_v28 = vcombine.high %v12880_v25, %v12880_v25 }
 0x3ed   : > { %9052 = vmatpush1.bf16.msra.mxu1 %v11320_v31  ;;  %v11400_v31 = vld [vmem:[#allocation3 + $0x5ec] ss:$16 sps:$4 sm:$0xff]  }
 0x3ee   : > { %8724 = vmatpush1.bf16.msra.mxu0 %v11317_v29  ;;  %9053 = vmatprep.subr.bf16.mxu1 %v11328_v34  ;;  %v11392_v29 = vld [vmem:[#allocation3 + $0x5c8] ss:$16 sps:$4 sm:$0xff]   ;;  %v11395_v34 = vld [vmem:[#allocation3 + $0x5e0] ss:$16 sps:$4 sm:$0xff]  }
 0x3ef   : > { %8725 = vmatprep.subr.bf16.mxu0 %v11325_v33  ;;  %v12891_v33 = vrot.slane %v5460_v28, %v12534_v20  ;;  %v11455_v28 = vld [vmem:[#allocation3 + $0x720] ss:$16 sps:$4 sm:$0xff]  }
 0x3f1   : > { %9054 = vmatpush1.bf16.msra.mxu1 %v11326_v0  ;;  %v11406_v0 = vld [vmem:[#allocation3 + $0x60c] ss:$16 sps:$4 sm:$0xff]   ;;  %v5476_v25 = vcombine.high %v12891_v33, %v12891_v33 }
 0x3f2   : > { %8726 = vmatpush1.bf16.msra.mxu0 %v11323_v54  ;;  %9055 = vmatprep.subr.bf16.mxu1 %v11334_v39  ;;  %v11403_v54 = vld [vmem:[#allocation3 + $0x604] ss:$16 sps:$4 sm:$0xff]   ;;  %v5531_v39 = vpack.c.bf16 %v12884_v56, %v12884_v56  ;;  %v11413_v56 = vld [vmem:[#allocation3 + $0x640] ss:$16 sps:$4 sm:$0xff]  }
 0x3f3   : > { %8727 = vmatprep.subr.bf16.mxu0 %v11331_v38  ;;  %v11401_v38 = vld [vmem:[#allocation3 + $0x600] ss:$16 sps:$4 sm:$0xff]  }
 0x3f5   : > { %9056 = vmatpush1.bf16.msra.mxu1 %v11332_v41  ;;  %v11409_v41 = vld [vmem:[#allocation3 + $0x624] ss:$16 sps:$4 sm:$0xff]  }
 0x3f6   : > { %8728 = vmatpush1.bf16.msra.mxu0 %v11329_v40  ;;  %9057 = vmatprep.subr.bf16.mxu1 %v11340_v46  ;;  %v11404_v40 = vld [vmem:[#allocation3 + $0x608] ss:$16 sps:$4 sm:$0xff]   ;;  %v5534_v46 = vpack.c.bf16 %v5476_v25, %v5476_v25  ;;  %v11472_v25 = vld [vmem:[#allocation3 + $0x76c] ss:$16 sps:$4 sm:$0xff]  }
 0x3f7   : > { %8729 = vmatprep.subr.bf16.mxu0 %v11337_v44  ;;  %v11412_v44 = vld [vmem:[#allocation3 + $0x62c] ss:$16 sps:$4 sm:$0xff]  }
 0x3f9   : > { %9058 = vmatpush1.bf16.msra.mxu1 %v11338_v50  ;;  %v11410_v50 = vld [vmem:[#allocation3 + $0x628] ss:$16 sps:$4 sm:$0xff]  }
 0x3fa   : > { %8730 = vmatpush1.bf16.msra.mxu0 %v11335_v49  ;;  %9059 = vmatprep.subr.bf16.mxu1 %v11346_v52  ;;  %v11407_v49 = vld [vmem:[#allocation3 + $0x620] ss:$16 sps:$4 sm:$0xff]   ;;  %v11418_v52 = vld [vmem:[#allocation3 + $0x64c] ss:$16 sps:$4 sm:$0xff]  }
 0x3fb   : > { %8731 = vmatprep.subr.bf16.mxu0 %v11343_v10  ;;  %v11415_v10 = vld [vmem:[#allocation3 + $0x644] ss:$16 sps:$4 sm:$0xff]  }
 0x3fd   : > { %9060 = vmatpush1.bf16.msra.mxu1 %v11344_v55  ;;  %v11421_v55 = vld [vmem:[#allocation3 + $0x664] ss:$16 sps:$4 sm:$0xff]  }
 0x3fe   : > { %8732 = vmatpush1.bf16.msra.mxu0 %v11341_v53  ;;  %9061 = vmatprep.subr.bf16.mxu1 %v11352_v58  ;;  %v11416_v53 = vld [vmem:[#allocation3 + $0x648] ss:$16 sps:$4 sm:$0xff]   ;;  %v11419_v58 = vld [vmem:[#allocation3 + $0x660] ss:$16 sps:$4 sm:$0xff]  }
 0x3ff   : > { %8733 = vmatprep.subr.bf16.mxu0 %v11349_v57  ;;  %v11424_v57 = vld [vmem:[#allocation3 + $0x66c] ss:$16 sps:$4 sm:$0xff]  }
 0x401   : > { %9062 = vmatpush1.bf16.msra.mxu1 %v11350_v60  ;;  %v11427_v60 = vld [vmem:[#allocation3 + $0x684] ss:$16 sps:$4 sm:$0xff]  }
 0x402   : > { %8734 = vmatpush1.bf16.msra.mxu0 %v11347_v59  ;;  %9063 = vmatprep.subr.bf16.mxu1 %v11358_v62  ;;  %v11422_v59 = vld [vmem:[#allocation3 + $0x668] ss:$16 sps:$4 sm:$0xff]   ;;  %v11425_v62 = vld [vmem:[#allocation3 + $0x680] ss:$16 sps:$4 sm:$0xff]  }
 0x403   : > { %8735 = vmatprep.subr.bf16.mxu0 %v11355_v61  ;;  %v11430_v61 = vld [vmem:[#allocation3 + $0x68c] ss:$16 sps:$4 sm:$0xff]  }
 0x405   : > { %9064 = vmatpush1.bf16.msra.mxu1 %v11356_v1  ;;  %v11433_v1 = vld [vmem:[#allocation3 + $0x6a4] ss:$16 sps:$4 sm:$0xff]  }
 0x406   : > { %8736 = vmatpush1.bf16.msra.mxu0 %v11353_v63  ;;  %9065 = vmatprep.subr.bf16.mxu1 %v11364_v3  ;;  %v11428_v63 = vld [vmem:[#allocation3 + $0x688] ss:$16 sps:$4 sm:$0xff]   ;;  %v11431_v3 = vld [vmem:[#allocation3 + $0x6a0] ss:$16 sps:$4 sm:$0xff]  }
 0x407   : > { %8737 = vmatprep.subr.bf16.mxu0 %v11361_v2  ;;  %v11436_v2 = vld [vmem:[#allocation3 + $0x6ac] ss:$16 sps:$4 sm:$0xff]  }
 0x409   : > { %9066 = vmatpush1.bf16.msra.mxu1 %v11362_v5  ;;  %v11439_v5 = vld [vmem:[#allocation3 + $0x6c4] ss:$16 sps:$4 sm:$0xff]  }
 0x40a   : > { %8738 = vmatpush1.bf16.msra.mxu0 %v11359_v4  ;;  %9067 = vmatprep.subr.bf16.mxu1 %v11370_v7  ;;  %v11434_v4 = vld [vmem:[#allocation3 + $0x6a8] ss:$16 sps:$4 sm:$0xff]   ;;  %v11437_v7 = vld [vmem:[#allocation3 + $0x6c0] ss:$16 sps:$4 sm:$0xff]  }
 0x40b   : > { %8739 = vmatprep.subr.bf16.mxu0 %v11367_v6  ;;  %v11442_v6 = vld [vmem:[#allocation3 + $0x6cc] ss:$16 sps:$4 sm:$0xff]  }
 0x40d   : > { %9068 = vmatpush1.bf16.msra.mxu1 %v11368_v8  ;;  %v11445_v8 = vld [vmem:[#allocation3 + $0x6e4] ss:$16 sps:$4 sm:$0xff]  }
 0x40e   : > { %8740 = vmatpush1.bf16.msra.mxu0 %v11365_v14  ;;  %9069 = vmatprep.subr.bf16.mxu1 %v11376_v32  ;;  %v11440_v14 = vld [vmem:[#allocation3 + $0x6c8] ss:$16 sps:$4 sm:$0xff]   ;;  %v11443_v32 = vld [vmem:[#allocation3 + $0x6e0] ss:$16 sps:$4 sm:$0xff]  }
 0x40f   : > { %8741 = vmatprep.subr.bf16.mxu0 %v11373_v26  ;;  %v11448_v26 = vld [vmem:[#allocation3 + $0x6ec] ss:$16 sps:$4 sm:$0xff]  }
 0x411   : > { %9070 = vmatpush1.bf16.msra.mxu1 %v11374_v16  ;;  %v11451_v16 = vld [vmem:[#allocation3 + $0x704] ss:$16 sps:$4 sm:$0xff]  }
 0x412   : > { %8742 = vmatpush1.bf16.msra.mxu0 %v11371_v15  ;;  %9071 = vmatprep.subr.bf16.mxu1 %v11382_v18  ;;  %v11446_v15 = vld [vmem:[#allocation3 + $0x6e8] ss:$16 sps:$4 sm:$0xff]   ;;  %v11449_v18 = vld [vmem:[#allocation3 + $0x700] ss:$16 sps:$4 sm:$0xff]  }
 0x413   : > { %8743 = vmatprep.subr.bf16.mxu0 %v11379_v17  ;;  %v11454_v17 = vld [vmem:[#allocation3 + $0x70c] ss:$16 sps:$4 sm:$0xff]  }
 0x415   : > { %9072 = vmatpush1.bf16.msra.mxu1 %v11380_v37  ;;  %v11452_v37 = vld [vmem:[#allocation3 + $0x708] ss:$16 sps:$4 sm:$0xff]  }
 0x416   : > { %8744 = vmatpush1.bf16.msra.mxu0 %v11377_v36  ;;  %9073 = vmatprep.subr.bf16.mxu1 %v11388_v21  ;;  %v5292_v36 = vld [vmem:[%s13093_s2 + $0x8] sm:$0xff] }
 0x417   : > { %8745 = vmatprep.subr.bf16.mxu0 %v11385_v19  ;;  %v11457_v19 = vld [vmem:[#allocation3 + $0x724] ss:$16 sps:$4 sm:$0xff]   ;;  %v11460_v21 = vld [vmem:[#allocation3 + $0x72c] ss:$16 sps:$4 sm:$0xff]  }
 0x419   : > { %9074 = vmatpush1.bf16.msra.mxu1 %v11386_v23  ;;  %v5334_v23 = vrot.slane %v5292_v36, %v12831_v11 }
 0x41a   : > { %8746 = vmatpush1.bf16.msra.mxu0 %v11383_v22  ;;  %9075 = vmatprep.subr.bf16.mxu1 %v11394_v27  ;;  %v5330_v22 = vrot.slane %v5292_v36, %v12828_v9  ;;  %v5342_v27 = vrot.slane %v5292_v36, %v12837_v13 }
 0x41b   : > { %8747 = vmatprep.subr.bf16.mxu0 %v11391_v24  ;;  %v5338_v24 = vrot.slane %v5292_v36, %v12834_v12  ;;  %v11506_v36 = vld [vmem:[#allocation3 + $0x828] ss:$16 sps:$4 sm:$0xff]  }
 0x41d   : > { %9076 = vmatpush1.bf16.msra.mxu1 %v11392_v29  ;;  %v11463_v29 = vld [vmem:[#allocation3 + $0x744] ss:$16 sps:$4 sm:$0xff]  }
 0x41e   : > { %8748 = vmatpush1.bf16.msra.mxu0 %v11389_v47  ;;  %9077 = vmatprep.subr.bf16.mxu1 %v11400_v31  ;;  %v11458_v47 = vld [vmem:[#allocation3 + $0x728] ss:$16 sps:$4 sm:$0xff]   ;;  %v5393_v31 = vcombine.low %v5330_v22, %v5334_v23  ;;  %v11517_v22 = vld [vmem:[#allocation3 + $0x864] ss:$16 sps:$4 sm:$0xff]   ;;  %v11520_v23 = vld [vmem:[#allocation3 + $0x86c] ss:$16 sps:$4 sm:$0xff]  }
 0x41f   : > { %8749 = vmatprep.subr.bf16.mxu0 %v11397_v30  ;;  %v11466_v30 = vld [vmem:[#allocation3 + $0x74c] ss:$16 sps:$4 sm:$0xff]  }
 0x421   : > { %9078 = vmatpush1.bf16.msra.mxu1 %v11398_v35  ;;  %v11461_v35 = vld [vmem:[#allocation3 + $0x740] ss:$16 sps:$4 sm:$0xff]  }
 0x422   : > { %8750 = vmatpush1.bf16.msra.mxu0 %v11395_v34  ;;  %9088 = vmatprep.subr.bf16.mxu1 %v11406_v0  ;;  %v5394_v34 = vcombine.low %v5338_v24, %v5342_v27  ;;  %v11469_v0 = vld [vmem:[#allocation3 + $0x764] ss:$16 sps:$4 sm:$0xff]   ;;  %v11515_v24 = vld [vmem:[#allocation3 + $0x860] ss:$16 sps:$4 sm:$0xff]   ;;  %v11518_v27 = vld [vmem:[#allocation3 + $0x868] ss:$16 sps:$4 sm:$0xff]  }
 0x423   : > { %8760 = vmatprep.subr.bf16.mxu0 %v11403_v54  ;;  %v11464_v54 = vld [vmem:[#allocation3 + $0x748] ss:$16 sps:$4 sm:$0xff]  }
 0x424   : > { %9080 = vmatmul.mubr.bf16.vlgmr.msra.gmra.mrb[0].mxu1 %v5531_v39 }
 0x425   : > { %8752 = vmatmul.mubr.bf16.vlgmr.msra.gmra.mrb[0].mxu0 %v5531_v39  ;;  %9089 = vmatpush1.bf16.msra.mxu1 %v11404_v40  ;;  %v5408_v39 = vrot.slane %v5394_v34, %v12534_v20  ;;  %v11467_v40 = vld [vmem:[#allocation3 + $0x760] ss:$16 sps:$4 sm:$0xff]   ;;  %v11532_v34 = vld [vmem:[#allocation3 + $0x8ac] ss:$16 sps:$4 sm:$0xff]  }
 0x426   : > { %8761 = vmatpush1.bf16.msra.mxu0 %v11401_v38  ;;  %9090 = vmatprep.subr.bf16.mxu1 %v11412_v44  ;;  %v5401_v38 = vrot.slane %v5393_v31, %v12534_v20  ;;  %v11475_v44 = vld [vmem:[#allocation3 + $0x784] ss:$16 sps:$4 sm:$0xff]  }
 0x427   : > { %8762 = vmatprep.subr.bf16.mxu0 %v11409_v41  ;;  %8792 = vmatprep.mubr.bf16.mxu0 %v5534_v46  ;;  %v11470_v41 = vld [vmem:[#allocation3 + $0x768] ss:$16 sps:$4 sm:$0xff]   ;;  %v11529_v31 = vld [vmem:[#allocation3 + $0x8a4] ss:$16 sps:$4 sm:$0xff]  }
 0x428   : > { %9120 = vmatprep.mubr.bf16.mxu1 %v5534_v46  ;;  %v11478_v46 = vld [vmem:[#allocation3 + $0x78c] ss:$16 sps:$4 sm:$0xff]  }
 0x429   : > { %9091 = vmatpush1.bf16.msra.mxu1 %v11410_v50  ;;  %v5409_v50 = vcombine.low %v5401_v38, %v5408_v39  ;;  %v11533_v38 = vld [vmem:[#allocation3 + $0x8c0] ss:$16 sps:$4 sm:$0xff]   ;;  %v11536_v39 = vld [vmem:[#allocation3 + $0x8c8] ss:$16 sps:$4 sm:$0xff]  }
 0x42a   : > { %8763 = vmatpush1.bf16.msra.mxu0 %v11407_v49  ;;  %9092 = vmatprep.subr.bf16.mxu1 %v11418_v52  ;;  %v11473_v49 = vld [vmem:[#allocation3 + $0x780] ss:$16 sps:$4 sm:$0xff]   ;;  %v11476_v52 = vld [vmem:[#allocation3 + $0x788] ss:$16 sps:$4 sm:$0xff]  }
 0x42b   : > { %8764 = vmatprep.subr.bf16.mxu0 %v11415_v10  ;;  %v5289_v10 = vld [vmem:[#allocation2 + $0x10] sm:$0xff] }
 0x42d   : > { %9093 = vmatpush1.bf16.msra.mxu1 %v11416_v53  ;;  %v11484_v53 = vld [vmem:[#allocation3 + $0x7ac] ss:$16 sps:$4 sm:$0xff]  }
 0x42e   : > { %8765 = vmatpush1.bf16.msra.mxu0 %v11413_v56  ;;  %9094 = vmatprep.subr.bf16.mxu1 %v11424_v57  ;;  %v11481_v56 = vld [vmem:[#allocation3 + $0x7a4] ss:$16 sps:$4 sm:$0xff]   ;;  %v11479_v57 = vld [vmem:[#allocation3 + $0x7a0] ss:$16 sps:$4 sm:$0xff]  }
 0x42f   : > { %8766 = vmatprep.subr.bf16.mxu0 %v11421_v55  ;;  %v5433_v55 = vadd.f32 %v5409_v50, %v5289_v10  ;;  %v11550_v50 = vld [vmem:[#allocation3 + $0x90c] ss:$16 sps:$4 sm:$0xff]   ;;  %v11545_v10 = vld [vmem:[#allocation3 + $0x900] ss:$16 sps:$4 sm:$0xff]  }
 0x431   : > { %9095 = vmatpush1.bf16.msra.mxu1 %v11422_v59  ;;  %v11487_v59 = vld [vmem:[#allocation3 + $0x7c4] ss:$16 sps:$4 sm:$0xff]  }
 0x432   : > { %8767 = vmatpush1.bf16.msra.mxu0 %v11419_v58  ;;  %9096 = vmatprep.subr.bf16.mxu1 %v11430_v61  ;;  %v11482_v58 = vld [vmem:[#allocation3 + $0x7a8] ss:$16 sps:$4 sm:$0xff]   ;;  %v12906_v61 = vmax.f32 %v5433_v55, 0.0  ;;  %v11551_v55 = vld [vmem:[#allocation3 + $0x920] ss:$16 sps:$4 sm:$0xff]  }
 0x433   : > { %8768 = vmatprep.subr.bf16.mxu0 %v11427_v60  ;;  %v11490_v60 = vld [vmem:[#allocation3 + $0x7cc] ss:$16 sps:$4 sm:$0xff]  }
 0x435   : > { %9097 = vmatpush1.bf16.msra.mxu1 %v11428_v63  ;;  %v11488_v63 = vld [vmem:[#allocation3 + $0x7c8] ss:$16 sps:$4 sm:$0xff]  }
 0x436   : > { %8769 = vmatpush1.bf16.msra.mxu0 %v11425_v62  ;;  %9098 = vmatprep.subr.bf16.mxu1 %v11436_v2  ;;  %v11485_v62 = vld [vmem:[#allocation3 + $0x7c0] ss:$16 sps:$4 sm:$0xff]   ;;  %v11496_v2 = vld [vmem:[#allocation3 + $0x7ec] ss:$16 sps:$4 sm:$0xff]  }
 0x437   : > { %8770 = vmatprep.subr.bf16.mxu0 %v11433_v1  ;;  %v11493_v1 = vld [vmem:[#allocation3 + $0x7e4] ss:$16 sps:$4 sm:$0xff]  }
 0x439   : > { %9099 = vmatpush1.bf16.msra.mxu1 %v11434_v4  ;;  %v11491_v4 = vld [vmem:[#allocation3 + $0x7e0] ss:$16 sps:$4 sm:$0xff]  }
 0x43a   : > { %8771 = vmatpush1.bf16.msra.mxu0 %v11431_v3  ;;  %9100 = vmatprep.subr.bf16.mxu1 %v11442_v6  ;;  %v12910_v3 = vrot.slane %v12906_v61, %v12534_v20  ;;  %v11499_v6 = vld [vmem:[#allocation3 + $0x804] ss:$16 sps:$4 sm:$0xff]  }
 0x43b   : > { %8772 = vmatprep.subr.bf16.mxu0 %v11439_v5  ;;  %v11494_v5 = vld [vmem:[#allocation3 + $0x7e8] ss:$16 sps:$4 sm:$0xff]  }
 0x43d   : > { %9101 = vmatpush1.bf16.msra.mxu1 %v11440_v14  ;;  %v5492_v14 = vcombine.high %v12910_v3, %v12910_v3 }
 0x43e   : > { %8773 = vmatpush1.bf16.msra.mxu0 %v11437_v7  ;;  %9102 = vmatprep.subr.bf16.mxu1 %v11448_v26  ;;  %v11502_v7 = vld [vmem:[#allocation3 + $0x80c] ss:$16 sps:$4 sm:$0xff]   ;;  %v5533_v26 = vpack.c.bf16 %v12891_v33, %v12891_v33  ;;  %v11509_v33 = vld [vmem:[#allocation3 + $0x840] ss:$16 sps:$4 sm:$0xff]  }
 0x43f   : > { %8774 = vmatprep.subr.bf16.mxu0 %v11445_v8  ;;  %v11497_v8 = vld [vmem:[#allocation3 + $0x800] ss:$16 sps:$4 sm:$0xff]  }
 0x441   : > { %9103 = vmatpush1.bf16.msra.mxu1 %v11446_v15  ;;  %v11505_v15 = vld [vmem:[#allocation3 + $0x824] ss:$16 sps:$4 sm:$0xff]  }
 0x442   : > { %8775 = vmatpush1.bf16.msra.mxu0 %v11443_v32  ;;  %9104 = vmatprep.subr.bf16.mxu1 %v11454_v17  ;;  %v11500_v32 = vld [vmem:[#allocation3 + $0x808] ss:$16 sps:$4 sm:$0xff]   ;;  %v5536_v17 = vpack.c.bf16 %v5492_v14, %v5492_v14 }
 0x443   : > { %8776 = vmatprep.subr.bf16.mxu0 %v11451_v16  ;;  %v11508_v16 = vld [vmem:[#allocation3 + $0x82c] ss:$16 sps:$4 sm:$0xff]   ;;  %v11572_v14 = vld [vmem:[#allocation3 + $0x988] ss:$16 sps:$4 sm:$0xff]  }
 0x445   : > { %9105 = vmatpush1.bf16.msra.mxu1 %v11452_v37  ;;  %v11511_v37 = vld [vmem:[#allocation3 + $0x844] ss:$16 sps:$4 sm:$0xff]  }
 0x446   : > { %8777 = vmatpush1.bf16.msra.mxu0 %v11449_v18  ;;  %9106 = vmatprep.subr.bf16.mxu1 %v11460_v21  ;;  %v11503_v18 = vld [vmem:[#allocation3 + $0x820] ss:$16 sps:$4 sm:$0xff]   ;;  %v11512_v21 = vld [vmem:[#allocation3 + $0x848] ss:$16 sps:$4 sm:$0xff]  }
 0x447   : > { %8778 = vmatprep.subr.bf16.mxu0 %v11457_v19  ;;  %v11514_v19 = vld [vmem:[#allocation3 + $0x84c] ss:$16 sps:$4 sm:$0xff]  }
 0x449   : > { %9107 = vmatpush1.bf16.msra.mxu1 %v11458_v47  ;;  %v11526_v47 = vld [vmem:[#allocation3 + $0x88c] ss:$16 sps:$4 sm:$0xff]  }
 0x44a   : > { %8779 = vmatpush1.bf16.msra.mxu0 %v11455_v28  ;;  %9108 = vmatprep.subr.bf16.mxu1 %v11466_v30  ;;  %v11523_v28 = vld [vmem:[#allocation3 + $0x884] ss:$16 sps:$4 sm:$0xff]   ;;  %v11524_v30 = vld [vmem:[#allocation3 + $0x888] ss:$16 sps:$4 sm:$0xff]  }
 0x44b   : > { %8780 = vmatprep.subr.bf16.mxu0 %v11463_v29  ;;  %v11521_v29 = vld [vmem:[#allocation3 + $0x880] ss:$16 sps:$4 sm:$0xff]  }
 0x44d   : > { %9109 = vmatpush1.bf16.msra.mxu1 %v11464_v54  ;;  %v11530_v54 = vld [vmem:[#allocation3 + $0x8a8] ss:$16 sps:$4 sm:$0xff]  }
 0x44e   : > { %8781 = vmatpush1.bf16.msra.mxu0 %v11461_v35  ;;  %9110 = vmatprep.subr.bf16.mxu1 %v11472_v25  ;;  %v11527_v35 = vld [vmem:[#allocation3 + $0x8a0] ss:$16 sps:$4 sm:$0xff]   ;;  %v11538_v25 = vld [vmem:[#allocation3 + $0x8cc] ss:$16 sps:$4 sm:$0xff]  }
 0x44f   : > { %8782 = vmatprep.subr.bf16.mxu0 %v11469_v0  ;;  %v11535_v0 = vld [vmem:[#allocation3 + $0x8c4] ss:$16 sps:$4 sm:$0xff]  }
 0x451   : > { %9111 = vmatpush1.bf16.msra.mxu1 %v11470_v41  ;;  %v11544_v41 = vld [vmem:[#allocation3 + $0x8ec] ss:$16 sps:$4 sm:$0xff]  }
 0x452   : > { %8783 = vmatpush1.bf16.msra.mxu0 %v11467_v40  ;;  %9112 = vmatprep.subr.bf16.mxu1 %v11478_v46  ;;  %v11541_v40 = vld [vmem:[#allocation3 + $0x8e4] ss:$16 sps:$4 sm:$0xff]   ;;  %v11542_v46 = vld [vmem:[#allocation3 + $0x8e8] ss:$16 sps:$4 sm:$0xff]  }
 0x453   : > { %8784 = vmatprep.subr.bf16.mxu0 %v11475_v44  ;;  %v11539_v44 = vld [vmem:[#allocation3 + $0x8e0] ss:$16 sps:$4 sm:$0xff]  }
 0x455   : > { %9113 = vmatpush1.bf16.msra.mxu1 %v11476_v52  ;;  %v11548_v52 = vld [vmem:[#allocation3 + $0x908] ss:$16 sps:$4 sm:$0xff]  }
 0x456   : > { %8785 = vmatpush1.bf16.msra.mxu0 %v11473_v49  ;;  %9114 = vmatprep.subr.bf16.mxu1 %v11484_v53  ;;  %v11547_v49 = vld [vmem:[#allocation3 + $0x904] ss:$16 sps:$4 sm:$0xff]   ;;  %v11556_v53 = vld [vmem:[#allocation3 + $0x92c] ss:$16 sps:$4 sm:$0xff]  }
 0x457   : > { %8786 = vmatprep.subr.bf16.mxu0 %v11481_v56  ;;  %v11553_v56 = vld [vmem:[#allocation3 + $0x924] ss:$16 sps:$4 sm:$0xff]  }
 0x459   : > { %9115 = vmatpush1.bf16.msra.mxu1 %v11482_v58  ;;  %v11559_v58 = vld [vmem:[#allocation3 + $0x944] ss:$16 sps:$4 sm:$0xff]  }
 0x45a   : > { %8787 = vmatpush1.bf16.msra.mxu0 %v11479_v57  ;;  %9116 = vmatprep.subr.bf16.mxu1 %v11490_v60  ;;  %v11554_v57 = vld [vmem:[#allocation3 + $0x928] ss:$16 sps:$4 sm:$0xff]   ;;  %v11557_v60 = vld [vmem:[#allocation3 + $0x940] ss:$16 sps:$4 sm:$0xff]  }
 0x45b   : > { %8788 = vmatprep.subr.bf16.mxu0 %v11487_v59  ;;  %v11562_v59 = vld [vmem:[#allocation3 + $0x94c] ss:$16 sps:$4 sm:$0xff]  }
 0x45d   : > { %9117 = vmatpush1.bf16.msra.mxu1 %v11488_v63  ;;  %v11565_v63 = vld [vmem:[#allocation3 + $0x964] ss:$16 sps:$4 sm:$0xff]  }
 0x45e   : > { %8789 = vmatpush1.bf16.msra.mxu0 %v11485_v62  ;;  %9118 = vmatprep.subr.bf16.mxu1 %v11496_v2  ;;  %v11560_v62 = vld [vmem:[#allocation3 + $0x948] ss:$16 sps:$4 sm:$0xff]   ;;  %v11563_v2 = vld [vmem:[#allocation3 + $0x960] ss:$16 sps:$4 sm:$0xff]  }
 0x45f   : > { %8790 = vmatprep.subr.bf16.mxu0 %v11493_v1  ;;  %v11568_v1 = vld [vmem:[#allocation3 + $0x96c] ss:$16 sps:$4 sm:$0xff]  }
 0x461   : > { %9119 = vmatpush1.bf16.msra.mxu1 %v11494_v5  ;;  %v11571_v5 = vld [vmem:[#allocation3 + $0x984] ss:$16 sps:$4 sm:$0xff]  }
 0x462   : > { %8791 = vmatpush1.bf16.msra.mxu0 %v11491_v4  ;;  %9129 = vmatprep.subr.bf16.mxu1 %v11502_v7  ;;  %v11566_v4 = vld [vmem:[#allocation3 + $0x968] ss:$16 sps:$4 sm:$0xff]   ;;  %v11569_v7 = vld [vmem:[#allocation3 + $0x980] ss:$16 sps:$4 sm:$0xff]  }
 0x463   : > { %8801 = vmatprep.subr.bf16.mxu0 %v11499_v6  ;;  %v11574_v6 = vld [vmem:[#allocation3 + $0x98c] ss:$16 sps:$4 sm:$0xff]  }
 0x464   : > { %9121 = vmatmul.mubr.bf16.vlgmr.msra.gmra.mrb[0].mxu1 %v5533_v26 }
 0x465   : > { %8793 = vmatmul.mubr.bf16.vlgmr.msra.gmra.mrb[0].mxu0 %v5533_v26  ;;  %9130 = vmatpush1.bf16.msra.mxu1 %v11500_v32  ;;  %v11580_v26 = vld [vmem:[#allocation3 + $0x9ac] ss:$16 sps:$4 sm:$0xff]   ;;  %v11575_v32 = vld [vmem:[#allocation3 + $0x9a0] ss:$16 sps:$4 sm:$0xff]  }
 0x466   : > { %8802 = vmatpush1.bf16.msra.mxu0 %v11497_v8  ;;  %9131 = vmatprep.subr.bf16.mxu1 %v11508_v16  ;;  %v11577_v8 = vld [vmem:[#allocation3 + $0x9a4] ss:$16 sps:$4 sm:$0xff]  }
 0x467   : > { %8803 = vmatprep.subr.bf16.mxu0 %v11505_v15  ;;  %8833 = vmatprep.mubr.bf16.mxu0 %v5536_v17  ;;  %v11578_v15 = vld [vmem:[#allocation3 + $0x9a8] ss:$16 sps:$4 sm:$0xff]   ;;  %v11583_v16 = vld [vmem:[#allocation3 + $0x9c4] ss:$16 sps:$4 sm:$0xff]  }
 0x468   : > { %9161 = vmatprep.mubr.bf16.mxu1 %v5536_v17  ;;  %v11586_v17 = vld [vmem:[#allocation3 + $0x9cc] ss:$16 sps:$4 sm:$0xff]  }
 0x469   : > { %9132 = vmatpush1.bf16.msra.mxu1 %v11506_v36  ;;  %v11581_v36 = vld [vmem:[#allocation3 + $0x9c0] ss:$16 sps:$4 sm:$0xff]  }
 0x46a   : > { %8804 = vmatpush1.bf16.msra.mxu0 %v11503_v18  ;;  %9133 = vmatprep.subr.bf16.mxu1 %v11514_v19  ;;  %v5477_v18 = vcombine.high %v12906_v61, %v12906_v61  ;;  %v11589_v19 = vld [vmem:[#allocation3 + $0x9e4] ss:$16 sps:$4 sm:$0xff]  }
 0x46b   : > { %8805 = vmatprep.subr.bf16.mxu0 %v11511_v37  ;;  %v11584_v37 = vld [vmem:[#allocation3 + $0x9c8] ss:$16 sps:$4 sm:$0xff]  }
 0x46d   : > { %9134 = vmatpush1.bf16.msra.mxu1 %v11512_v21  ;;  %v12919_v21 = vrot.slane %v5477_v18, %v12534_v20  ;;  %v11647_v18 = vld [vmem:[#allocation3 + $0xb20] ss:$16 sps:$4 sm:$0xff]  }
 0x46e   : > { %8806 = vmatpush1.bf16.msra.mxu0 %v11509_v33  ;;  %9135 = vmatprep.subr.bf16.mxu1 %v11520_v23  ;;  %v11592_v33 = vld [vmem:[#allocation3 + $0x9ec] ss:$16 sps:$4 sm:$0xff]   ;;  %v11590_v23 = vld [vmem:[#allocation3 + $0x9e8] ss:$16 sps:$4 sm:$0xff]  }
 0x46f   : > { %8807 = vmatprep.subr.bf16.mxu0 %v11517_v22  ;;  %v11587_v22 = vld [vmem:[#allocation3 + $0x9e0] ss:$16 sps:$4 sm:$0xff]   ;;  %v5493_v61 = vcombine.high %v12919_v21, %v12919_v21 }
 0x471   : > { %9136 = vmatpush1.bf16.msra.mxu1 %v11518_v27  ;;  %v11598_v27 = vld [vmem:[#allocation3 + $0xa0c] ss:$16 sps:$4 sm:$0xff]  }
 0x472   : > { %8808 = vmatpush1.bf16.msra.mxu0 %v11515_v24  ;;  %9137 = vmatprep.subr.bf16.mxu1 %v11526_v47  ;;  %v11595_v24 = vld [vmem:[#allocation3 + $0xa04] ss:$16 sps:$4 sm:$0xff]   ;;  %v11593_v47 = vld [vmem:[#allocation3 + $0xa00] ss:$16 sps:$4 sm:$0xff]  }
 0x473   : > { %8809 = vmatprep.subr.bf16.mxu0 %v11523_v28  ;;  %v5535_v28 = vpack.c.bf16 %v12910_v3, %v12910_v3  ;;  %v11605_v3 = vld [vmem:[#allocation3 + $0xa40] ss:$16 sps:$4 sm:$0xff]  }
 0x475   : > { %9138 = vmatpush1.bf16.msra.mxu1 %v11524_v30  ;;  %v11601_v30 = vld [vmem:[#allocation3 + $0xa24] ss:$16 sps:$4 sm:$0xff]  }
 0x476   : > { %8810 = vmatpush1.bf16.msra.mxu0 %v11521_v29  ;;  %9139 = vmatprep.subr.bf16.mxu1 %v11532_v34  ;;  %v11596_v29 = vld [vmem:[#allocation3 + $0xa08] ss:$16 sps:$4 sm:$0xff]   ;;  %v5538_v34 = vpack.c.bf16 %v5493_v61, %v5493_v61  ;;  %v11667_v61 = vld [vmem:[#allocation3 + $0xb84] ss:$16 sps:$4 sm:$0xff]  }
 0x477   : > { %8811 = vmatprep.subr.bf16.mxu0 %v11529_v31  ;;  %v11604_v31 = vld [vmem:[#allocation3 + $0xa2c] ss:$16 sps:$4 sm:$0xff]  }
 0x479   : > { %9140 = vmatpush1.bf16.msra.mxu1 %v11530_v54  ;;  %v11602_v54 = vld [vmem:[#allocation3 + $0xa28] ss:$16 sps:$4 sm:$0xff]  }
 0x47a   : > { %8812 = vmatpush1.bf16.msra.mxu0 %v11527_v35  ;;  %9141 = vmatprep.subr.bf16.mxu1 %v11538_v25  ;;  %v11599_v35 = vld [vmem:[#allocation3 + $0xa20] ss:$16 sps:$4 sm:$0xff]   ;;  %v11610_v25 = vld [vmem:[#allocation3 + $0xa4c] ss:$16 sps:$4 sm:$0xff]  }
 0x47b   : > { %8813 = vmatprep.subr.bf16.mxu0 %v11535_v0  ;;  %v11607_v0 = vld [vmem:[#allocation3 + $0xa44] ss:$16 sps:$4 sm:$0xff]  }
 0x47d   : > { %9142 = vmatpush1.bf16.msra.mxu1 %v11536_v39  ;;  %v11613_v39 = vld [vmem:[#allocation3 + $0xa64] ss:$16 sps:$4 sm:$0xff]  }
 0x47e   : > { %8814 = vmatpush1.bf16.msra.mxu0 %v11533_v38  ;;  %9143 = vmatprep.subr.bf16.mxu1 %v11544_v41  ;;  %v11608_v38 = vld [vmem:[#allocation3 + $0xa48] ss:$16 sps:$4 sm:$0xff]   ;;  %v11611_v41 = vld [vmem:[#allocation3 + $0xa60] ss:$16 sps:$4 sm:$0xff]  }
 0x47f   : > { %8815 = vmatprep.subr.bf16.mxu0 %v11541_v40  ;;  %v11616_v40 = vld [vmem:[#allocation3 + $0xa6c] ss:$16 sps:$4 sm:$0xff]  }
 0x481   : > { %9144 = vmatpush1.bf16.msra.mxu1 %v11542_v46  ;;  %v11619_v46 = vld [vmem:[#allocation3 + $0xa84] ss:$16 sps:$4 sm:$0xff]  }
 0x482   : > { %8816 = vmatpush1.bf16.msra.mxu0 %v11539_v44  ;;  %9145 = vmatprep.subr.bf16.mxu1 %v11550_v50  ;;  %v11614_v44 = vld [vmem:[#allocation3 + $0xa68] ss:$16 sps:$4 sm:$0xff]   ;;  %v11617_v50 = vld [vmem:[#allocation3 + $0xa80] ss:$16 sps:$4 sm:$0xff]  }
 0x483   : > { %8817 = vmatprep.subr.bf16.mxu0 %v11547_v49  ;;  %v11622_v49 = vld [vmem:[#allocation3 + $0xa8c] ss:$16 sps:$4 sm:$0xff]  }
 0x485   : > { %9146 = vmatpush1.bf16.msra.mxu1 %v11548_v52  ;;  %v11625_v52 = vld [vmem:[#allocation3 + $0xaa4] ss:$16 sps:$4 sm:$0xff]  }
 0x486   : > { %8818 = vmatpush1.bf16.msra.mxu0 %v11545_v10  ;;  %9147 = vmatprep.subr.bf16.mxu1 %v11556_v53  ;;  %v11620_v10 = vld [vmem:[#allocation3 + $0xa88] ss:$16 sps:$4 sm:$0xff]   ;;  %v11623_v53 = vld [vmem:[#allocation3 + $0xaa0] ss:$16 sps:$4 sm:$0xff]  }
 0x487   : > { %8819 = vmatprep.subr.bf16.mxu0 %v11553_v56  ;;  %v11628_v56 = vld [vmem:[#allocation3 + $0xaac] ss:$16 sps:$4 sm:$0xff]  }
 0x489   : > { %9148 = vmatpush1.bf16.msra.mxu1 %v11554_v57  ;;  %v11631_v57 = vld [vmem:[#allocation3 + $0xac4] ss:$16 sps:$4 sm:$0xff]  }
 0x48a   : > { %8820 = vmatpush1.bf16.msra.mxu0 %v11551_v55  ;;  %9149 = vmatprep.subr.bf16.mxu1 %v11562_v59  ;;  %v11626_v55 = vld [vmem:[#allocation3 + $0xaa8] ss:$16 sps:$4 sm:$0xff]   ;;  %v11629_v59 = vld [vmem:[#allocation3 + $0xac0] ss:$16 sps:$4 sm:$0xff]  }
 0x48b   : > { %8821 = vmatprep.subr.bf16.mxu0 %v11559_v58  ;;  %v11634_v58 = vld [vmem:[#allocation3 + $0xacc] ss:$16 sps:$4 sm:$0xff]  }
 0x48d   : > { %9150 = vmatpush1.bf16.msra.mxu1 %v11560_v62  ;;  %v11637_v62 = vld [vmem:[#allocation3 + $0xae4] ss:$16 sps:$4 sm:$0xff]  }
 0x48e   : > { %8822 = vmatpush1.bf16.msra.mxu0 %v11557_v60  ;;  %9151 = vmatprep.subr.bf16.mxu1 %v11568_v1  ;;  %v11632_v60 = vld [vmem:[#allocation3 + $0xac8] ss:$16 sps:$4 sm:$0xff]   ;;  %v11635_v1 = vld [vmem:[#allocation3 + $0xae0] ss:$16 sps:$4 sm:$0xff]  }
 0x48f   : > { %8823 = vmatprep.subr.bf16.mxu0 %v11565_v63  ;;  %v11640_v63 = vld [vmem:[#allocation3 + $0xaec] ss:$16 sps:$4 sm:$0xff]  }
 0x491   : > { %9152 = vmatpush1.bf16.msra.mxu1 %v11566_v4  ;;  %v11643_v4 = vld [vmem:[#allocation3 + $0xb04] ss:$16 sps:$4 sm:$0xff]  }
 0x492   : > { %8824 = vmatpush1.bf16.msra.mxu0 %v11563_v2  ;;  %9153 = vmatprep.subr.bf16.mxu1 %v11574_v6  ;;  %v11638_v2 = vld [vmem:[#allocation3 + $0xae8] ss:$16 sps:$4 sm:$0xff]   ;;  %v11641_v6 = vld [vmem:[#allocation3 + $0xb00] ss:$16 sps:$4 sm:$0xff]  }
 0x493   : > { %8825 = vmatprep.subr.bf16.mxu0 %v11571_v5  ;;  %v11646_v5 = vld [vmem:[#allocation3 + $0xb0c] ss:$16 sps:$4 sm:$0xff]  }
 0x495   : > { %9154 = vmatpush1.bf16.msra.mxu1 %v11572_v14  ;;  %v11649_v14 = vld [vmem:[#allocation3 + $0xb24] ss:$16 sps:$4 sm:$0xff]  }
 0x496   : > { %8826 = vmatpush1.bf16.msra.mxu0 %v11569_v7  ;;  %9155 = vmatprep.subr.bf16.mxu1 %v11580_v26  ;;  %v11644_v7 = vld [vmem:[#allocation3 + $0xb08] ss:$16 sps:$4 sm:$0xff]  }
 0x497   : > { %8827 = vmatprep.subr.bf16.mxu0 %v11577_v8  ;;  %v11652_v8 = vld [vmem:[#allocation3 + $0xb2c] ss:$16 sps:$4 sm:$0xff]  }
 0x498   : > { %v11913_v26 = vld [vmem:[%s13093_s2 + $0x8] sm:$0xff] }
 0x499   : > { %9156 = vmatpush1.bf16.msra.mxu1 %v11578_v15  ;;  %v5350_v15 = vrot.slane %v11913_v26, %v5317_v43  ;;  %v11656_v43 = vld [vmem:[#allocation3 + $0xb48] ss:$16 sps:$4 sm:$0xff]  }
 0x49a   : > { %8828 = vmatpush1.bf16.msra.mxu0 %v11575_v32  ;;  %9157 = vmatprep.subr.bf16.mxu1 %v11586_v17  ;;  %v5346_v32 = vrot.slane %v11913_v26, %v5313_v42  ;;  %v5358_v17 = vrot.slane %v11913_v26, %v5325_v51  ;;  %v11653_v42 = vld [vmem:[#allocation3 + $0xb40] ss:$16 sps:$4 sm:$0xff]  }
 0x49b   : > { %8829 = vmatprep.subr.bf16.mxu0 %v11583_v16  ;;  %v5354_v16 = vrot.slane %v11913_v26, %v5321_v48  ;;  %v11661_v48 = vld [vmem:[#allocation3 + $0xb64] ss:$16 sps:$4 sm:$0xff]  }
 0x49c   : > { %v11715_v26 = vld [vmem:[#allocation3 + $0xc84] ss:$16 sps:$4 sm:$0xff]  }
 0x49d   : > { %9158 = vmatpush1.bf16.msra.mxu1 %v11584_v37  ;;  %v11655_v37 = vld [vmem:[#allocation3 + $0xb44] ss:$16 sps:$4 sm:$0xff]  }
 0x49e   : > { %8830 = vmatpush1.bf16.msra.mxu0 %v11581_v36  ;;  %9159 = vmatprep.subr.bf16.mxu1 %v11592_v33  ;;  %v11650_v36 = vld [vmem:[#allocation3 + $0xb28] ss:$16 sps:$4 sm:$0xff]   ;;  %v5410_v33 = vcombine.low %v5346_v32, %v5350_v15  ;;  %v11718_v32 = vld [vmem:[#allocation3 + $0xc8c] ss:$16 sps:$4 sm:$0xff]   ;;  %v11713_v15 = vld [vmem:[#allocation3 + $0xc80] ss:$16 sps:$4 sm:$0xff]  }
 0x49f   : > { %8831 = vmatprep.subr.bf16.mxu0 %v11589_v19  ;;  %v11658_v19 = vld [vmem:[#allocation3 + $0xb4c] ss:$16 sps:$4 sm:$0xff]  }
 0x4a0   : > { %v5418_v45 = vrot.slane %v5410_v33, %v12534_v20  ;;  %v11730_v33 = vld [vmem:[#allocation3 + $0xccc] ss:$16 sps:$4 sm:$0xff]  }
 0x4a1   : > { %9160 = vmatpush1.bf16.msra.mxu1 %v11590_v23  ;;  %v11664_v23 = vld [vmem:[#allocation3 + $0xb6c] ss:$16 sps:$4 sm:$0xff]  }
 0x4a2   : > { %8832 = vmatpush1.bf16.msra.mxu0 %v11587_v22  ;;  %9170 = vmatprep.subr.bf16.mxu1 %v11598_v27  ;;  %v5411_v22 = vcombine.low %v5354_v16, %v5358_v17  ;;  %v11662_v27 = vld [vmem:[#allocation3 + $0xb68] ss:$16 sps:$4 sm:$0xff]   ;;  %v11721_v17 = vld [vmem:[#allocation3 + $0xca4] ss:$16 sps:$4 sm:$0xff]  }
 0x4a3   : > { %8842 = vmatprep.subr.bf16.mxu0 %v11595_v24  ;;  %v11659_v24 = vld [vmem:[#allocation3 + $0xb60] ss:$16 sps:$4 sm:$0xff]   ;;  %v11716_v16 = vld [vmem:[#allocation3 + $0xc88] ss:$16 sps:$4 sm:$0xff]  }
 0x4a4   : > { %9162 = vmatmul.mubr.bf16.vlgmr.msra.gmra.mrb[0].mxu1 %v5535_v28  ;;  %v5425_v51 = vrot.slane %v5411_v22, %v12534_v20  ;;  %v11725_v22 = vld [vmem:[#allocation3 + $0xcc0] ss:$16 sps:$4 sm:$0xff]  }
 0x4a5   : > { %8834 = vmatmul.mubr.bf16.vlgmr.msra.gmra.mrb[0].mxu0 %v5535_v28  ;;  %9171 = vmatpush1.bf16.msra.mxu1 %v11596_v29  ;;  %v11670_v28 = vld [vmem:[#allocation3 + $0xb8c] ss:$16 sps:$4 sm:$0xff]  }
 0x4a6   : > { %8843 = vmatpush1.bf16.msra.mxu0 %v11593_v47  ;;  %9172 = vmatprep.subr.bf16.mxu1 %v11604_v31  ;;  %v5426_v47 = vcombine.low %v5418_v45, %v5425_v51  ;;  %v5290_v29 = vld [vmem:[#allocation2 + $0x18] sm:$0xff]  ;;  %v11739_v51 = vld [vmem:[#allocation3 + $0xd04] ss:$16 sps:$4 sm:$0xff]  }
 0x4a7   : > { %8844 = vmatprep.subr.bf16.mxu0 %v11601_v30  ;;  %8874 = vmatprep.mubr.bf16.mxu0 %v5538_v34  ;;  %v11665_v30 = vld [vmem:[#allocation3 + $0xb80] ss:$16 sps:$4 sm:$0xff]   ;;  %v11668_v31 = vld [vmem:[#allocation3 + $0xb88] ss:$16 sps:$4 sm:$0xff]  }
 0x4a8   : > { %9202 = vmatprep.mubr.bf16.mxu1 %v5538_v34  ;;  %v11673_v34 = vld [vmem:[#allocation3 + $0xba4] ss:$16 sps:$4 sm:$0xff]   ;;  %v11734_v45 = vld [vmem:[#allocation3 + $0xce8] ss:$16 sps:$4 sm:$0xff]  }
 0x4a9   : > { %9173 = vmatpush1.bf16.msra.mxu1 %v11602_v54  ;;  %v5434_v54 = vadd.f32 %v5426_v47, %v5290_v29  ;;  %v11748_v47 = vld [vmem:[#allocation3 + $0xd2c] ss:$16 sps:$4 sm:$0xff]   ;;  %v11743_v29 = vld [vmem:[#allocation3 + $0xd20] ss:$16 sps:$4 sm:$0xff]  }
 0x4aa   : > { %8845 = vmatpush1.bf16.msra.mxu0 %v11599_v35  ;;  %9174 = vmatprep.subr.bf16.mxu1 %v11610_v25  ;;  %v11676_v35 = vld [vmem:[#allocation3 + $0xbac] ss:$16 sps:$4 sm:$0xff]   ;;  %v11674_v25 = vld [vmem:[#allocation3 + $0xba8] ss:$16 sps:$4 sm:$0xff]  }
 0x4ab   : > { %8846 = vmatprep.subr.bf16.mxu0 %v11607_v0  ;;  %v11671_v0 = vld [vmem:[#allocation3 + $0xba0] ss:$16 sps:$4 sm:$0xff]  }
 0x4ad   : > { %9175 = vmatpush1.bf16.msra.mxu1 %v11608_v38  ;;  %v11682_v38 = vld [vmem:[#allocation3 + $0xbcc] ss:$16 sps:$4 sm:$0xff]  }
 0x4ae   : > { %8847 = vmatpush1.bf16.msra.mxu0 %v11605_v3  ;;  %9176 = vmatprep.subr.bf16.mxu1 %v11616_v40  ;;  %v11679_v3 = vld [vmem:[#allocation3 + $0xbc4] ss:$16 sps:$4 sm:$0xff]   ;;  %v11677_v40 = vld [vmem:[#allocation3 + $0xbc0] ss:$16 sps:$4 sm:$0xff]  }
 0x4af   : > { %8848 = vmatprep.subr.bf16.mxu0 %v11613_v39  ;;  %v12938_v39 = vmax.f32 %v5434_v54, 0.0  ;;  %v11752_v54 = vld [vmem:[#allocation3 + $0xd48] ss:$16 sps:$4 sm:$0xff]  }
 0x4b1   : > { %9177 = vmatpush1.bf16.msra.mxu1 %v11614_v44  ;;  %v11685_v44 = vld [vmem:[#allocation3 + $0xbe4] ss:$16 sps:$4 sm:$0xff]  }
 0x4b2   : > { %8849 = vmatpush1.bf16.msra.mxu0 %v11611_v41  ;;  %9178 = vmatprep.subr.bf16.mxu1 %v11622_v49  ;;  %v11680_v41 = vld [vmem:[#allocation3 + $0xbc8] ss:$16 sps:$4 sm:$0xff]   ;;  %v12942_v49 = vrot.slane %v12938_v39, %v12534_v20 }
 0x4b3   : > { %8850 = vmatprep.subr.bf16.mxu0 %v11619_v46  ;;  %v11688_v46 = vld [vmem:[#allocation3 + $0xbec] ss:$16 sps:$4 sm:$0xff]  }
 0x4b5   : > { %9179 = vmatpush1.bf16.msra.mxu1 %v11620_v10  ;;  %v11686_v10 = vld [vmem:[#allocation3 + $0xbe8] ss:$16 sps:$4 sm:$0xff]  }
 0x4b6   : > { %8851 = vmatpush1.bf16.msra.mxu0 %v11617_v50  ;;  %9180 = vmatprep.subr.bf16.mxu1 %v11628_v56  ;;  %v11683_v50 = vld [vmem:[#allocation3 + $0xbe0] ss:$16 sps:$4 sm:$0xff]   ;;  %v11694_v56 = vld [vmem:[#allocation3 + $0xc0c] ss:$16 sps:$4 sm:$0xff]  }
 0x4b7   : > { %8852 = vmatprep.subr.bf16.mxu0 %v11625_v52  ;;  %v11691_v52 = vld [vmem:[#allocation3 + $0xc04] ss:$16 sps:$4 sm:$0xff]  }
 0x4b9   : > { %9181 = vmatpush1.bf16.msra.mxu1 %v11626_v55  ;;  %v5537_v55 = vpack.c.bf16 %v12919_v21, %v12919_v21  ;;  %v11701_v21 = vld [vmem:[#allocation3 + $0xc40] ss:$16 sps:$4 sm:$0xff]  }
 0x4ba   : > { %8853 = vmatpush1.bf16.msra.mxu0 %v11623_v53  ;;  %9182 = vmatprep.subr.bf16.mxu1 %v11634_v58  ;;  %v5509_v53 = vcombine.high %v12942_v49, %v12942_v49  ;;  %v11692_v58 = vld [vmem:[#allocation3 + $0xc08] ss:$16 sps:$4 sm:$0xff]  }
 0x4bb   : > { %8854 = vmatprep.subr.bf16.mxu0 %v11631_v57  ;;  %v11689_v57 = vld [vmem:[#allocation3 + $0xc00] ss:$16 sps:$4 sm:$0xff]  }
 0x4bd   : > { %9183 = vmatpush1.bf16.msra.mxu1 %v11632_v60  ;;  %v11700_v60 = vld [vmem:[#allocation3 + $0xc2c] ss:$16 sps:$4 sm:$0xff]  }
 0x4be   : > { %8855 = vmatpush1.bf16.msra.mxu0 %v11629_v59  ;;  %9184 = vmatprep.subr.bf16.mxu1 %v11640_v63  ;;  %v11697_v59 = vld [vmem:[#allocation3 + $0xc24] ss:$16 sps:$4 sm:$0xff]   ;;  %v11695_v63 = vld [vmem:[#allocation3 + $0xc20] ss:$16 sps:$4 sm:$0xff]  }
 0x4bf   : > { %8856 = vmatprep.subr.bf16.mxu0 %v11637_v62  ;;  %v5540_v62 = vpack.c.bf16 %v5509_v53, %v5509_v53  ;;  %v11775_v53 = vld [vmem:[#allocation3 + $0xdc4] ss:$16 sps:$4 sm:$0xff]  }
 0x4c1   : > { %9185 = vmatpush1.bf16.msra.mxu1 %v11638_v2  ;;  %v11703_v2 = vld [vmem:[#allocation3 + $0xc44] ss:$16 sps:$4 sm:$0xff]  }
 0x4c2   : > { %8857 = vmatpush1.bf16.msra.mxu0 %v11635_v1  ;;  %9186 = vmatprep.subr.bf16.mxu1 %v11646_v5  ;;  %v11698_v1 = vld [vmem:[#allocation3 + $0xc28] ss:$16 sps:$4 sm:$0xff]  }
 0x4c3   : > { %8858 = vmatprep.subr.bf16.mxu0 %v11643_v4  ;;  %v11706_v4 = vld [vmem:[#allocation3 + $0xc4c] ss:$16 sps:$4 sm:$0xff]   ;;  %v11704_v5 = vld [vmem:[#allocation3 + $0xc48] ss:$16 sps:$4 sm:$0xff]  }
 0x4c5   : > { %9187 = vmatpush1.bf16.msra.mxu1 %v11644_v7  ;;  %v11712_v7 = vld [vmem:[#allocation3 + $0xc6c] ss:$16 sps:$4 sm:$0xff]  }
 0x4c6   : > { %8859 = vmatpush1.bf16.msra.mxu0 %v11641_v6  ;;  %9188 = vmatprep.subr.bf16.mxu1 %v11652_v8  ;;  %v11709_v6 = vld [vmem:[#allocation3 + $0xc64] ss:$16 sps:$4 sm:$0xff]   ;;  %v11710_v8 = vld [vmem:[#allocation3 + $0xc68] ss:$16 sps:$4 sm:$0xff]  }
 0x4c7   : > { %8860 = vmatprep.subr.bf16.mxu0 %v11649_v14  ;;  %v11707_v14 = vld [vmem:[#allocation3 + $0xc60] ss:$16 sps:$4 sm:$0xff]  }
 0x4c9   : > { %9189 = vmatpush1.bf16.msra.mxu1 %v11650_v36  ;;  %v11719_v36 = vld [vmem:[#allocation3 + $0xca0] ss:$16 sps:$4 sm:$0xff]  }
 0x4ca   : > { %8861 = vmatpush1.bf16.msra.mxu0 %v11647_v18  ;;  %9190 = vmatprep.subr.bf16.mxu1 %v11658_v19  ;;  %v11724_v18 = vld [vmem:[#allocation3 + $0xcac] ss:$16 sps:$4 sm:$0xff]   ;;  %v11727_v19 = vld [vmem:[#allocation3 + $0xcc4] ss:$16 sps:$4 sm:$0xff]  }
 0x4cb   : > { %8862 = vmatprep.subr.bf16.mxu0 %v11655_v37  ;;  %v11722_v37 = vld [vmem:[#allocation3 + $0xca8] ss:$16 sps:$4 sm:$0xff]  }
 0x4cd   : > { %9191 = vmatpush1.bf16.msra.mxu1 %v11656_v43  ;;  %v11733_v43 = vld [vmem:[#allocation3 + $0xce4] ss:$16 sps:$4 sm:$0xff]  }
 0x4ce   : > { %8863 = vmatpush1.bf16.msra.mxu0 %v11653_v42  ;;  %9192 = vmatprep.subr.bf16.mxu1 %v11664_v23  ;;  %v11728_v42 = vld [vmem:[#allocation3 + $0xcc8] ss:$16 sps:$4 sm:$0xff]   ;;  %v11731_v23 = vld [vmem:[#allocation3 + $0xce0] ss:$16 sps:$4 sm:$0xff]  }
 0x4cf   : > { %8864 = vmatprep.subr.bf16.mxu0 %v11661_v48  ;;  %v11736_v48 = vld [vmem:[#allocation3 + $0xcec] ss:$16 sps:$4 sm:$0xff]  }
 0x4d1   : > { %9193 = vmatpush1.bf16.msra.mxu1 %v11662_v27  ;;  %v11737_v27 = vld [vmem:[#allocation3 + $0xd00] ss:$16 sps:$4 sm:$0xff]  }
 0x4d2   : > { %8865 = vmatpush1.bf16.msra.mxu0 %v11659_v24  ;;  %9194 = vmatprep.subr.bf16.mxu1 %v11670_v28  ;;  %v11742_v24 = vld [vmem:[#allocation3 + $0xd0c] ss:$16 sps:$4 sm:$0xff]   ;;  %v11745_v28 = vld [vmem:[#allocation3 + $0xd24] ss:$16 sps:$4 sm:$0xff]  }
 0x4d3   : > { %8866 = vmatprep.subr.bf16.mxu0 %v11667_v61  ;;  %v11740_v61 = vld [vmem:[#allocation3 + $0xd08] ss:$16 sps:$4 sm:$0xff]  }
 0x4d5   : > { %9195 = vmatpush1.bf16.msra.mxu1 %v11668_v31  ;;  %v11751_v31 = vld [vmem:[#allocation3 + $0xd44] ss:$16 sps:$4 sm:$0xff]  }
 0x4d6   : > { %8867 = vmatpush1.bf16.msra.mxu0 %v11665_v30  ;;  %9196 = vmatprep.subr.bf16.mxu1 %v11676_v35  ;;  %v11746_v30 = vld [vmem:[#allocation3 + $0xd28] ss:$16 sps:$4 sm:$0xff]   ;;  %v11749_v35 = vld [vmem:[#allocation3 + $0xd40] ss:$16 sps:$4 sm:$0xff]  }
 0x4d7   : > { %8868 = vmatprep.subr.bf16.mxu0 %v11673_v34  ;;  %v11754_v34 = vld [vmem:[#allocation3 + $0xd4c] ss:$16 sps:$4 sm:$0xff]  }
 0x4d9   : > { %9197 = vmatpush1.bf16.msra.mxu1 %v11674_v25  ;;  %v11760_v25 = vld [vmem:[#allocation3 + $0xd6c] ss:$16 sps:$4 sm:$0xff]  }
 0x4da   : > { %8869 = vmatpush1.bf16.msra.mxu0 %v11671_v0  ;;  %9198 = vmatprep.subr.bf16.mxu1 %v11682_v38  ;;  %v11757_v0 = vld [vmem:[#allocation3 + $0xd64] ss:$16 sps:$4 sm:$0xff]   ;;  %v11758_v38 = vld [vmem:[#allocation3 + $0xd68] ss:$16 sps:$4 sm:$0xff]  }
 0x4db   : > { %8870 = vmatprep.subr.bf16.mxu0 %v11679_v3  ;;  %v11755_v3 = vld [vmem:[#allocation3 + $0xd60] ss:$16 sps:$4 sm:$0xff]  }
 0x4dd   : > { %9199 = vmatpush1.bf16.msra.mxu1 %v11680_v41  ;;  %v11766_v41 = vld [vmem:[#allocation3 + $0xd8c] ss:$16 sps:$4 sm:$0xff]  }
 0x4de   : > { %8871 = vmatpush1.bf16.msra.mxu0 %v11677_v40  ;;  %9200 = vmatprep.subr.bf16.mxu1 %v11688_v46  ;;  %v11763_v40 = vld [vmem:[#allocation3 + $0xd84] ss:$16 sps:$4 sm:$0xff]   ;;  %v11764_v46 = vld [vmem:[#allocation3 + $0xd88] ss:$16 sps:$4 sm:$0xff]  }
 0x4df   : > { %8872 = vmatprep.subr.bf16.mxu0 %v11685_v44  ;;  %v11761_v44 = vld [vmem:[#allocation3 + $0xd80] ss:$16 sps:$4 sm:$0xff]  }
 0x4e1   : > { %9201 = vmatpush1.bf16.msra.mxu1 %v11686_v10  ;;  %v11772_v10 = vld [vmem:[#allocation3 + $0xdac] ss:$16 sps:$4 sm:$0xff]  }
 0x4e2   : > { %8873 = vmatpush1.bf16.msra.mxu0 %v11683_v50  ;;  %9211 = vmatprep.subr.bf16.mxu1 %v11694_v56  ;;  %v11769_v50 = vld [vmem:[#allocation3 + $0xda4] ss:$16 sps:$4 sm:$0xff]   ;;  %v11770_v56 = vld [vmem:[#allocation3 + $0xda8] ss:$16 sps:$4 sm:$0xff]  }
 0x4e3   : > { %8883 = vmatprep.subr.bf16.mxu0 %v11691_v52  ;;  %v11767_v52 = vld [vmem:[#allocation3 + $0xda0] ss:$16 sps:$4 sm:$0xff]  }
 0x4e4   : > { %9203 = vmatmul.mubr.bf16.vlgmr.msra.gmra.mrb[0].mxu1 %v5537_v55 }
 0x4e5   : > { %8875 = vmatmul.mubr.bf16.vlgmr.msra.gmra.mrb[0].mxu0 %v5537_v55  ;;  %9212 = vmatpush1.bf16.msra.mxu1 %v11692_v58  ;;  %v11778_v55 = vld [vmem:[#allocation3 + $0xdcc] ss:$16 sps:$4 sm:$0xff]   ;;  %v11773_v58 = vld [vmem:[#allocation3 + $0xdc0] ss:$16 sps:$4 sm:$0xff]  }
 0x4e6   : > { %8884 = vmatpush1.bf16.msra.mxu0 %v11689_v57  ;;  %9213 = vmatprep.subr.bf16.mxu1 %v11700_v60  ;;  %v5494_v57 = vcombine.high %v12938_v39, %v12938_v39  ;;  %v11781_v60 = vld [vmem:[#allocation3 + $0xde4] ss:$16 sps:$4 sm:$0xff]  }
 0x4e7   : > { %8885 = vmatprep.subr.bf16.mxu0 %v11697_v59  ;;  %8915 = vmatprep.mubr.bf16.mxu0 %v5540_v62  ;;  %v11776_v59 = vld [vmem:[#allocation3 + $0xdc8] ss:$16 sps:$4 sm:$0xff]  }
 0x4e8   : > { %9243 = vmatprep.mubr.bf16.mxu1 %v5540_v62  ;;  %v11784_v62 = vld [vmem:[#allocation3 + $0xdec] ss:$16 sps:$4 sm:$0xff]  }
 0x4e9   : > { %9214 = vmatpush1.bf16.msra.mxu1 %v11698_v1  ;;  %v11779_v1 = vld [vmem:[#allocation3 + $0xde0] ss:$16 sps:$4 sm:$0xff]  }
 0x4ea   : > { %8886 = vmatpush1.bf16.msra.mxu0 %v11695_v63  ;;  %9215 = vmatprep.subr.bf16.mxu1 %v11706_v4  ;;  %v12951_v63 = vrot.slane %v5494_v57, %v12534_v20  ;;  %v11787_v4 = vld [vmem:[#allocation3 + $0xe04] ss:$16 sps:$4 sm:$0xff]   ;;  %v11862_v57 = vld [vmem:[#allocation3 + $0xf8c] ss:$16 sps:$4 sm:$0xff]  }
 0x4eb   : > { %8887 = vmatprep.subr.bf16.mxu0 %v11703_v2  ;;  %v11782_v2 = vld [vmem:[#allocation3 + $0xde8] ss:$16 sps:$4 sm:$0xff]   ;;  %v11793_v20 = vld [vmem:[#allocation3 + $0xe24] ss:$16 sps:$4 sm:$0xff]  }
 0x4ec   : > { %v5510_v39 = vcombine.high %v12951_v63, %v12951_v63 }
 0x4ed   : > { %9216 = vmatpush1.bf16.msra.mxu1 %v11704_v5  ;;  %v5539_v5 = vpack.c.bf16 %v12942_v49, %v12942_v49  ;;  %v11797_v49 = vld [vmem:[#allocation3 + $0xe40] ss:$16 sps:$4 sm:$0xff]  }
 0x4ee   : > { %8888 = vmatpush1.bf16.msra.mxu0 %v11701_v21  ;;  %9217 = vmatprep.subr.bf16.mxu1 %v11712_v7  ;;  %v11790_v21 = vld [vmem:[#allocation3 + $0xe0c] ss:$16 sps:$4 sm:$0xff]   ;;  %v11788_v7 = vld [vmem:[#allocation3 + $0xe08] ss:$16 sps:$4 sm:$0xff]  }
 0x4ef   : > { %8889 = vmatprep.subr.bf16.mxu0 %v11709_v6  ;;  %v11785_v6 = vld [vmem:[#allocation3 + $0xe00] ss:$16 sps:$4 sm:$0xff]  }
 0x4f1   : > { %9218 = vmatpush1.bf16.msra.mxu1 %v11710_v8  ;;  %v5542_v8 = vpack.c.bf16 %v5510_v39, %v5510_v39  ;;  %v11869_v39 = vld [vmem:[#allocation3 + $0xfc0] ss:$16 sps:$4 sm:$0xff]  }
 0x4f2   : > { %8890 = vmatpush1.bf16.msra.mxu0 %v11707_v14  ;;  %9219 = vmatprep.subr.bf16.mxu1 %v11718_v32  ;;  %v11796_v14 = vld [vmem:[#allocation3 + $0xe2c] ss:$16 sps:$4 sm:$0xff]   ;;  %v11794_v32 = vld [vmem:[#allocation3 + $0xe28] ss:$16 sps:$4 sm:$0xff]  }
 0x4f3   : > { %8891 = vmatprep.subr.bf16.mxu0 %v11715_v26  ;;  %v11791_v26 = vld [vmem:[#allocation3 + $0xe20] ss:$16 sps:$4 sm:$0xff]  }
 0x4f5   : > { %9220 = vmatpush1.bf16.msra.mxu1 %v11716_v16  ;;  %v11802_v16 = vld [vmem:[#allocation3 + $0xe4c] ss:$16 sps:$4 sm:$0xff]  }
 0x4f6   : > { %8892 = vmatpush1.bf16.msra.mxu0 %v11713_v15  ;;  %9221 = vmatprep.subr.bf16.mxu1 %v11724_v18  ;;  %v11799_v15 = vld [vmem:[#allocation3 + $0xe44] ss:$16 sps:$4 sm:$0xff]  }
 0x4f7   : > { %8893 = vmatprep.subr.bf16.mxu0 %v11721_v17  ;;  %v11800_v17 = vld [vmem:[#allocation3 + $0xe48] ss:$16 sps:$4 sm:$0xff]   ;;  %v11805_v18 = vld [vmem:[#allocation3 + $0xe64] ss:$16 sps:$4 sm:$0xff]  }
 0x4f9   : > { %9222 = vmatpush1.bf16.msra.mxu1 %v11722_v37  ;;  %v11803_v37 = vld [vmem:[#allocation3 + $0xe60] ss:$16 sps:$4 sm:$0xff]  }
 0x4fa   : > { %8894 = vmatpush1.bf16.msra.mxu0 %v11719_v36  ;;  %9223 = vmatprep.subr.bf16.mxu1 %v11730_v33  ;;  %v11808_v36 = vld [vmem:[#allocation3 + $0xe6c] ss:$16 sps:$4 sm:$0xff]   ;;  %v11811_v33 = vld [vmem:[#allocation3 + $0xe84] ss:$16 sps:$4 sm:$0xff]  }
 0x4fb   : > { %8895 = vmatprep.subr.bf16.mxu0 %v11727_v19  ;;  %v11806_v19 = vld [vmem:[#allocation3 + $0xe68] ss:$16 sps:$4 sm:$0xff]  }
 0x4fd   : > { %9224 = vmatpush1.bf16.msra.mxu1 %v11728_v42  ;;  %v11809_v42 = vld [vmem:[#allocation3 + $0xe80] ss:$16 sps:$4 sm:$0xff]  }
 0x4fe   : > { %8896 = vmatpush1.bf16.msra.mxu0 %v11725_v22  ;;  %9225 = vmatprep.subr.bf16.mxu1 %v11736_v48  ;;  %v11814_v22 = vld [vmem:[#allocation3 + $0xe8c] ss:$16 sps:$4 sm:$0xff]   ;;  %v11817_v48 = vld [vmem:[#allocation3 + $0xea4] ss:$16 sps:$4 sm:$0xff]  }
 0x4ff   : > { %8897 = vmatprep.subr.bf16.mxu0 %v11733_v43  ;;  %v11812_v43 = vld [vmem:[#allocation3 + $0xe88] ss:$16 sps:$4 sm:$0xff]  }
 0x501   : > { %9226 = vmatpush1.bf16.msra.mxu1 %v11734_v45  ;;  %v11815_v45 = vld [vmem:[#allocation3 + $0xea0] ss:$16 sps:$4 sm:$0xff]  }
 0x502   : > { %8898 = vmatpush1.bf16.msra.mxu0 %v11731_v23  ;;  %9227 = vmatprep.subr.bf16.mxu1 %v11742_v24  ;;  %v11820_v23 = vld [vmem:[#allocation3 + $0xeac] ss:$16 sps:$4 sm:$0xff]   ;;  %v11823_v24 = vld [vmem:[#allocation3 + $0xec4] ss:$16 sps:$4 sm:$0xff]  }
 0x503   : > { %8899 = vmatprep.subr.bf16.mxu0 %v11739_v51  ;;  %v11818_v51 = vld [vmem:[#allocation3 + $0xea8] ss:$16 sps:$4 sm:$0xff]  }
 0x505   : > { %9228 = vmatpush1.bf16.msra.mxu1 %v11740_v61  ;;  %v11821_v61 = vld [vmem:[#allocation3 + $0xec0] ss:$16 sps:$4 sm:$0xff]  }
 0x506   : > { %8900 = vmatpush1.bf16.msra.mxu0 %v11737_v27  ;;  %9229 = vmatprep.subr.bf16.mxu1 %v11748_v47  ;;  %v11826_v27 = vld [vmem:[#allocation3 + $0xecc] ss:$16 sps:$4 sm:$0xff]   ;;  %v11829_v47 = vld [vmem:[#allocation3 + $0xee4] ss:$16 sps:$4 sm:$0xff]  }
 0x507   : > { %8901 = vmatprep.subr.bf16.mxu0 %v11745_v28  ;;  %v11824_v28 = vld [vmem:[#allocation3 + $0xec8] ss:$16 sps:$4 sm:$0xff]  }
 0x509   : > { %9230 = vmatpush1.bf16.msra.mxu1 %v11746_v30  ;;  %v11827_v30 = vld [vmem:[#allocation3 + $0xee0] ss:$16 sps:$4 sm:$0xff]  }
 0x50a   : > { %8902 = vmatpush1.bf16.msra.mxu0 %v11743_v29  ;;  %9231 = vmatprep.subr.bf16.mxu1 %v11754_v34  ;;  %v11832_v29 = vld [vmem:[#allocation3 + $0xeec] ss:$16 sps:$4 sm:$0xff]   ;;  %v11835_v34 = vld [vmem:[#allocation3 + $0xf04] ss:$16 sps:$4 sm:$0xff]  }
 0x50b   : > { %8903 = vmatprep.subr.bf16.mxu0 %v11751_v31  ;;  %v11830_v31 = vld [vmem:[#allocation3 + $0xee8] ss:$16 sps:$4 sm:$0xff]  }
 0x50d   : > { %9232 = vmatpush1.bf16.msra.mxu1 %v11752_v54  ;;  %v11833_v54 = vld [vmem:[#allocation3 + $0xf00] ss:$16 sps:$4 sm:$0xff]  }
 0x50e   : > { %8904 = vmatpush1.bf16.msra.mxu0 %v11749_v35  ;;  %9233 = vmatprep.subr.bf16.mxu1 %v11760_v25  ;;  %v11838_v35 = vld [vmem:[#allocation3 + $0xf0c] ss:$16 sps:$4 sm:$0xff]   ;;  %v11841_v25 = vld [vmem:[#allocation3 + $0xf24] ss:$16 sps:$4 sm:$0xff]  }
 0x50f   : > { %8905 = vmatprep.subr.bf16.mxu0 %v11757_v0  ;;  %v11836_v0 = vld [vmem:[#allocation3 + $0xf08] ss:$16 sps:$4 sm:$0xff]  }
 0x511   : > { %9234 = vmatpush1.bf16.msra.mxu1 %v11758_v38  ;;  %v11839_v38 = vld [vmem:[#allocation3 + $0xf20] ss:$16 sps:$4 sm:$0xff]  }
 0x512   : > { %8906 = vmatpush1.bf16.msra.mxu0 %v11755_v3  ;;  %9235 = vmatprep.subr.bf16.mxu1 %v11766_v41  ;;  %v11844_v3 = vld [vmem:[#allocation3 + $0xf2c] ss:$16 sps:$4 sm:$0xff]   ;;  %v11847_v41 = vld [vmem:[#allocation3 + $0xf44] ss:$16 sps:$4 sm:$0xff]  }
 0x513   : > { %8907 = vmatprep.subr.bf16.mxu0 %v11763_v40  ;;  %v11842_v40 = vld [vmem:[#allocation3 + $0xf28] ss:$16 sps:$4 sm:$0xff]  }
 0x515   : > { %9236 = vmatpush1.bf16.msra.mxu1 %v11764_v46  ;;  %v11845_v46 = vld [vmem:[#allocation3 + $0xf40] ss:$16 sps:$4 sm:$0xff]  }
 0x516   : > { %8908 = vmatpush1.bf16.msra.mxu0 %v11761_v44  ;;  %9237 = vmatprep.subr.bf16.mxu1 %v11772_v10  ;;  %v11850_v44 = vld [vmem:[#allocation3 + $0xf4c] ss:$16 sps:$4 sm:$0xff]   ;;  %v11853_v10 = vld [vmem:[#allocation3 + $0xf64] ss:$16 sps:$4 sm:$0xff]  }
 0x517   : > { %8909 = vmatprep.subr.bf16.mxu0 %v11769_v50  ;;  %v11848_v50 = vld [vmem:[#allocation3 + $0xf48] ss:$16 sps:$4 sm:$0xff]  }
 0x519   : > { %9238 = vmatpush1.bf16.msra.mxu1 %v11770_v56  ;;  %v11851_v56 = vld [vmem:[#allocation3 + $0xf60] ss:$16 sps:$4 sm:$0xff]  }
 0x51a   : > { %8910 = vmatpush1.bf16.msra.mxu0 %v11767_v52  ;;  %9239 = vmatprep.subr.bf16.mxu1 %v11778_v55  ;;  %v11856_v52 = vld [vmem:[#allocation3 + $0xf6c] ss:$16 sps:$4 sm:$0xff]   ;;  %v11859_v55 = vld [vmem:[#allocation3 + $0xf84] ss:$16 sps:$4 sm:$0xff]  }
 0x51b   : > { %8911 = vmatprep.subr.bf16.mxu0 %v11775_v53  ;;  %v11854_v53 = vld [vmem:[#allocation3 + $0xf68] ss:$16 sps:$4 sm:$0xff]  }
 0x51d   : > { %9240 = vmatpush1.bf16.msra.mxu1 %v11776_v59  ;;  %v11860_v59 = vld [vmem:[#allocation3 + $0xf88] ss:$16 sps:$4 sm:$0xff]  }
 0x51e   : > { %8912 = vmatpush1.bf16.msra.mxu0 %v11773_v58  ;;  %9241 = vmatprep.subr.bf16.mxu1 %v11784_v62  ;;  %v11857_v58 = vld [vmem:[#allocation3 + $0xf80] ss:$16 sps:$4 sm:$0xff]   ;;  %v11868_v62 = vld [vmem:[#allocation3 + $0xfac] ss:$16 sps:$4 sm:$0xff]  }
 0x51f   : > { %8913 = vmatprep.subr.bf16.mxu0 %v11781_v60  ;;  %v11865_v60 = vld [vmem:[#allocation3 + $0xfa4] ss:$16 sps:$4 sm:$0xff]  }
 0x521   : > { %9242 = vmatpush1.bf16.msra.mxu1 %v11782_v2  ;;  %v11866_v2 = vld [vmem:[#allocation3 + $0xfa8] ss:$16 sps:$4 sm:$0xff]  }
 0x522   : > { %8914 = vmatpush1.bf16.msra.mxu0 %v11779_v1  ;;  %9252 = vmatprep.subr.bf16.mxu1 %v11790_v21  ;;  %v11863_v1 = vld [vmem:[#allocation3 + $0xfa0] ss:$16 sps:$4 sm:$0xff]   ;;  %v11874_v21 = vld [vmem:[#allocation3 + $0xfcc] ss:$16 sps:$4 sm:$0xff]  }
 0x523   : > { %8924 = vmatprep.subr.bf16.mxu0 %v11787_v4  ;;  %v11871_v4 = vld [vmem:[#allocation3 + $0xfc4] ss:$16 sps:$4 sm:$0xff]  }
 0x524   : > { %9244 = vmatmul.mubr.bf16.vlgmr.msra.gmra.mrb[0].mxu1 %v5539_v5 }
 0x525   : > { %8916 = vmatmul.mubr.bf16.vlgmr.msra.gmra.mrb[0].mxu0 %v5539_v5  ;;  %9253 = vmatpush1.bf16.msra.mxu1 %v11788_v7  ;;  %v11872_v5 = vld [vmem:[#allocation3 + $0xfc8] ss:$16 sps:$4 sm:$0xff]   ;;  %v11880_v7 = vld [vmem:[#allocation3 + $0xfec] ss:$16 sps:$4 sm:$0xff]  }
 0x526   : > { %8925 = vmatpush1.bf16.msra.mxu0 %v11785_v6  ;;  %9254 = vmatprep.subr.bf16.mxu1 %v11796_v14  ;;  %v11877_v6 = vld [vmem:[#allocation3 + $0xfe4] ss:$16 sps:$4 sm:$0xff]   ;;  %v11878_v14 = vld [vmem:[#allocation3 + $0xfe8] ss:$16 sps:$4 sm:$0xff]  }
 0x527   : > { %8926 = vmatprep.subr.bf16.mxu0 %v11793_v20  ;;  %8956 = vmatprep.mubr.bf16.mxu0 %v5542_v8  ;;  %v11875_v20 = vld [vmem:[#allocation3 + $0xfe0] ss:$16 sps:$4 sm:$0xff]  }
 0x528   : > { %9284 = vmatprep.mubr.bf16.mxu1 %v5542_v8  ;;  %v11881_v8 = vld [vmem:[%s13096_s5 + $0x40] sm:$0xff]  }
 0x529   : > { %9255 = vmatpush1.bf16.msra.mxu1 %v11794_v32  ;;  %v5541_v32 = vpack.c.bf16 %v12951_v63, %v12951_v63  ;;  %v11886_v63 = vld [vmem:[%s13096_s5 + $0xc8] sm:$0xff]  }
 0x52a   : > { %8927 = vmatpush1.bf16.msra.mxu0 %v11791_v26  ;;  %9256 = vmatprep.subr.bf16.mxu1 %v11802_v16  ;;  %v11882_v26 = vld [vmem:[%s13096_s5 + $0xc0] sm:$0xff]  }
 0x52b   : > { %8928 = vmatprep.subr.bf16.mxu0 %v11799_v15  ;;  %v11883_v15 = vld [vmem:[%s13096_s5] sm:$0xff]  }
 0x52c   : > { %v11884_v16 = vld [vmem:[%s13096_s5 + $0x80] sm:$0xff]  }
 0x52d   : > { %9257 = vmatpush1.bf16.msra.mxu1 %v11800_v17  ;;  %v11887_v17 = vld [vmem:[%s13096_s5 + $0x8] sm:$0xff]  }
 0x52e   : > { %8929 = vmatpush1.bf16.msra.mxu0 %v11797_v49  ;;  %9258 = vmatprep.subr.bf16.mxu1 %v11808_v36  ;;  %v11885_v49 = vld [vmem:[%s13096_s5 + $0x48] sm:$0xff]   ;;  %v11889_v36 = vld [vmem:[%s13096_s5 + $0x50] sm:$0xff]  }
 0x52f   : > { %8930 = vmatprep.subr.bf16.mxu0 %v11805_v18  ;;  %v11888_v18 = vld [vmem:[%s13096_s5 + $0x88] sm:$0xff]  }
 0x531   : > { %9259 = vmatpush1.bf16.msra.mxu1 %v11806_v19  ;;  %v11891_v19 = vld [vmem:[%s13096_s5 + $0x10] sm:$0xff]  }
 0x532   : > { %8931 = vmatpush1.bf16.msra.mxu0 %v11803_v37  ;;  %9260 = vmatprep.subr.bf16.mxu1 %v11814_v22  ;;  %v11890_v37 = vld [vmem:[%s13096_s5 + $0xd0] sm:$0xff]   ;;  %v11893_v22 = vld [vmem:[%s13096_s5 + $0x58] sm:$0xff]  }
 0x533   : > { %8932 = vmatprep.subr.bf16.mxu0 %v11811_v33  ;;  %v11892_v33 = vld [vmem:[%s13096_s5 + $0x90] sm:$0xff]  }
 0x535   : > { %9261 = vmatpush1.bf16.msra.mxu1 %v11812_v43  ;;  %v11895_v43 = vld [vmem:[%s13096_s5 + $0x18] sm:$0xff]  }
 0x536   : > { %8933 = vmatpush1.bf16.msra.mxu0 %v11809_v42  ;;  %9262 = vmatprep.subr.bf16.mxu1 %v11820_v23  ;;  %v11894_v42 = vld [vmem:[%s13096_s5 + $0xd8] sm:$0xff]   ;;  %v11897_v23 = vld [vmem:[%s13096_s5 + $0x60] sm:$0xff]  }
 0x537   : > { %8934 = vmatprep.subr.bf16.mxu0 %v11817_v48  ;;  %v11896_v48 = vld [vmem:[%s13096_s5 + $0x98] sm:$0xff]  }
 0x539   : > { %9263 = vmatpush1.bf16.msra.mxu1 %v11818_v51  ;;  %v11899_v51 = vld [vmem:[%s13096_s5 + $0x20] sm:$0xff]  }
 0x53a   : > { %8935 = vmatpush1.bf16.msra.mxu0 %v11815_v45  ;;  %9264 = vmatprep.subr.bf16.mxu1 %v11826_v27  ;;  %v11898_v45 = vld [vmem:[%s13096_s5 + $0xe0] sm:$0xff]   ;;  %v11901_v27 = vld [vmem:[%s13096_s5 + $0x68] sm:$0xff]  }
 0x53b   : > { %8936 = vmatprep.subr.bf16.mxu0 %v11823_v24  ;;  %v11900_v24 = vld [vmem:[%s13096_s5 + $0xa0] sm:$0xff]  }
 0x53d   : > { %9265 = vmatpush1.bf16.msra.mxu1 %v11824_v28  ;;  %v11903_v28 = vld [vmem:[%s13096_s5 + $0x28] sm:$0xff]  }
 0x53e   : > { %8937 = vmatpush1.bf16.msra.mxu0 %v11821_v61  ;;  %9266 = vmatprep.subr.bf16.mxu1 %v11832_v29  ;;  %v11902_v61 = vld [vmem:[%s13096_s5 + $0xe8] sm:$0xff]   ;;  %v11905_v29 = vld [vmem:[%s13096_s5 + $0x70] sm:$0xff]  }
 0x53f   : > { %8938 = vmatprep.subr.bf16.mxu0 %v11829_v47  ;;  %v11904_v47 = vld [vmem:[%s13096_s5 + $0xa8] sm:$0xff]  }
 0x541   : > { %9267 = vmatpush1.bf16.msra.mxu1 %v11830_v31  ;;  %v11907_v31 = vld [vmem:[%s13096_s5 + $0x30] sm:$0xff]  }
 0x542   : > { %8939 = vmatpush1.bf16.msra.mxu0 %v11827_v30  ;;  %9268 = vmatprep.subr.bf16.mxu1 %v11838_v35  ;;  %v11906_v30 = vld [vmem:[%s13096_s5 + $0xf0] sm:$0xff]   ;;  %v11909_v35 = vld [vmem:[%s13096_s5 + $0x78] sm:$0xff]  }
 0x543   : > { %8940 = vmatprep.subr.bf16.mxu0 %v11835_v34  ;;  %v11908_v34 = vld [vmem:[%s13096_s5 + $0xb0] sm:$0xff]  }
 0x545   : > { %9269 = vmatpush1.bf16.msra.mxu1 %v11836_v0  ;;  %v11911_v0 = vld [vmem:[%s13096_s5 + $0x38] sm:$0xff]  }
 0x546   : > { %8941 = vmatpush1.bf16.msra.mxu0 %v11833_v54  ;;  %9270 = vmatprep.subr.bf16.mxu1 %v11844_v3  ;;  %v11910_v54 = vld [vmem:[%s13096_s5 + $0xf8] sm:$0xff]   ;;  %v6055_v3 = vld [vmem:[%s13095_s4] sm:$0xf] }
 0x547   : > { %8942 = vmatprep.subr.bf16.mxu0 %v11841_v25  ;;  %v11912_v25 = vld [vmem:[%s13096_s5 + $0xb8] sm:$0xff]  }
 0x549   : > { %9271 = vmatpush1.bf16.msra.mxu1 %v11842_v40  ;;  %v6068_v40 = vrot.slane %v6055_v3, %v12834_v12 }
 0x54a   : > { %8943 = vmatpush1.bf16.msra.mxu0 %v11839_v38  ;;  %9272 = vmatprep.subr.bf16.mxu1 %v11850_v44  ;;  %v6060_v38 = vrot.slane %v6055_v3, %v12828_v9  ;;  %v6072_v44 = vrot.slane %v6055_v3, %v12837_v13 }
 0x54b   : > { %8944 = vmatprep.subr.bf16.mxu0 %v11847_v41  ;;  %v6064_v41 = vrot.slane %v6055_v3, %v12831_v11 }
 0x54d   : > { %9273 = vmatpush1.bf16.msra.mxu1 %v11848_v50 }
 0x54e   : > { %8945 = vmatpush1.bf16.msra.mxu0 %v11845_v46  ;;  %9274 = vmatprep.subr.bf16.mxu1 %v11856_v52 }
 0x54f   : > { %8946 = vmatprep.subr.bf16.mxu0 %v11853_v10 }
 0x551   : > { %9275 = vmatpush1.bf16.msra.mxu1 %v11854_v53 }
 0x552   : > { %8947 = vmatpush1.bf16.msra.mxu0 %v11851_v56  ;;  %9276 = vmatprep.subr.bf16.mxu1 %v11862_v57 }
 0x553   : > { %8948 = vmatprep.subr.bf16.mxu0 %v11859_v55 }
 0x555   : > { %9277 = vmatpush1.bf16.msra.mxu1 %v11860_v59 }
 0x556   : > { %8949 = vmatpush1.bf16.msra.mxu0 %v11857_v58  ;;  %9278 = vmatprep.subr.bf16.mxu1 %v11868_v62 }
 0x557   : > { %8950 = vmatprep.subr.bf16.mxu0 %v11865_v60 }
 0x559   : > { %9279 = vmatpush1.bf16.msra.mxu1 %v11866_v2 }
 0x55a   : > { %8951 = vmatpush1.bf16.msra.mxu0 %v11863_v1  ;;  %9280 = vmatprep.subr.bf16.mxu1 %v11874_v21 }
 0x55b   : > { %8952 = vmatprep.subr.bf16.mxu0 %v11871_v4 }
 0x55d   : > { %9281 = vmatpush1.bf16.msra.mxu1 %v11872_v5 }
 0x55e   : > { %8953 = vmatpush1.bf16.msra.mxu0 %v11869_v39  ;;  %9282 = vmatprep.subr.bf16.mxu1 %v11880_v7 }
 0x55f   : > { %8954 = vmatprep.subr.bf16.mxu0 %v11877_v6  ;;  %v10874_v6 = vld [vmem:[%s13097_s6] ss:$0 sm:$0xff] }
 0x561   : > { %9283 = vmatpush1.bf16.msra.mxu1 %v11878_v14 }
 0x562   : > { %8955 = vmatpush1.bf16.msra.mxu0 %v11875_v20  ;;  %10934 = vmatprep.subr.bf16.mxu1 %v11882_v26 }
 0x563   : > { %10912 = vmatprep.subr.bf16.mxu0 %v11881_v8 }
 0x564   : > { %9285 = vmatmul.mubr.bf16.vlgmr.msra.gmra.mrb[0].mxu1 %v5541_v32 }
 0x565   : > { %8957 = vmatmul.mubr.bf16.vlgmr.msra.gmra.mrb[0].mxu0 %v5541_v32  ;;  %10935 = vmatpush3.bf16.msra.mxu1 %v11884_v16 }
 0x566   : > { %10913 = vmatpush3.bf16.msra.mxu0 %v11883_v15  ;;  %10936 = vmatprep.subr.bf16.mxu1 %v11886_v63 }
 0x567   : > { %10914 = vmatprep.subr.bf16.mxu0 %v11885_v49 }
 0x569   : > { %10937 = vmatpush3.bf16.msra.mxu1 %v11888_v18 }
 0x56a   : > { %10915 = vmatpush3.bf16.msra.mxu0 %v11887_v17  ;;  %10938 = vmatprep.subr.bf16.mxu1 %v11890_v37 }
 0x56b   : > { %10916 = vmatprep.subr.bf16.mxu0 %v11889_v36 }
 0x56d   : > { %10939 = vmatpush3.bf16.msra.mxu1 %v11892_v33 }
 0x56e   : > { %10917 = vmatpush3.bf16.msra.mxu0 %v11891_v19  ;;  %10940 = vmatprep.subr.bf16.mxu1 %v11894_v42 }
 0x56f   : > { %10918 = vmatprep.subr.bf16.mxu0 %v11893_v22 }
 0x571   : > { %10941 = vmatpush3.bf16.msra.mxu1 %v11896_v48 }
 0x572   : > { %10919 = vmatpush3.bf16.msra.mxu0 %v11895_v43  ;;  %10942 = vmatprep.subr.bf16.mxu1 %v11898_v45 }
 0x573   : > { %10920 = vmatprep.subr.bf16.mxu0 %v11897_v23 }
 0x575   : > { %10943 = vmatpush3.bf16.msra.mxu1 %v11900_v24 }
 0x576   : > { %10921 = vmatpush3.bf16.msra.mxu0 %v11899_v51  ;;  %10944 = vmatprep.subr.bf16.mxu1 %v11902_v61 }
 0x577   : > { %10922 = vmatprep.subr.bf16.mxu0 %v11901_v27 }
 0x579   : > { %10945 = vmatpush3.bf16.msra.mxu1 %v11904_v47 }
 0x57a   : > { %10923 = vmatpush3.bf16.msra.mxu0 %v11903_v28  ;;  %10946 = vmatprep.subr.bf16.mxu1 %v11906_v30 }
 0x57b   : > { %10924 = vmatprep.subr.bf16.mxu0 %v11905_v29 }
 0x57d   : > { %10947 = vmatpush3.bf16.msra.mxu1 %v11908_v34 }
 0x57e   : > { %10925 = vmatpush3.bf16.msra.mxu0 %v11907_v31  ;;  %10948 = vmatprep.subr.bf16.mxu1 %v11910_v54 }
 0x57f   : > { %10926 = vmatprep.subr.bf16.mxu0 %v11909_v35 }
 0x581   : > { %10949 = vmatpush3.bf16.msra.mxu1 %v11912_v25 }
 0x582   : > { %10927 = vmatpush3.bf16.msra.mxu0 %v11911_v0 }
 0x637   : > { %v9286_v50 = vpop.f32.mrb[0].mxu1 }
 0x638   : > { %v8958_v46 = vpop.f32.mrb[0].mxu0  ;;  %v11022_v52 = vadd.f32 %v9286_v50, %v6068_v40  ;;  %v9288_v53 = vpop.f32.mrb[1].mxu1 }
 0x639   : > { %v11020_v10 = vadd.f32 %v8958_v46, %v6060_v38  ;;  %v8960_v56 = vpop.f32.mrb[1].mxu0  ;;  %v11023_v57 = vadd.f32 %v9288_v53, %v6072_v44  ;;  %v9290_v59 = vpop.f32.mrb[2].mxu1 }
 0x63a   : > { %v11021_v55 = vadd.f32 %v8960_v56, %v6064_v41  ;;  %v8962_v58 = vpop.f32.mrb[2].mxu0  ;;  %v9295_v62 = vmax.f32 %v11022_v52, 0.0  ;;  %v9291_v9 = vpop.f32.mrb[3].mxu1 }
 0x63b   : > { %v9293_v60 = vmax.f32 %v11020_v10, 0.0  ;;  %v8963_v1 = vpop.f32.mrb[3].mxu0  ;;  %v9296_v12 = vmax.f32 %v11023_v57, 0.0 }
 0x63c   : > { %v9294_v2 = vmax.f32 %v11021_v55, 0.0  ;;  %v9299_v13 = vpack.c.bf16 %v9295_v62, %v9295_v62 }
 0x63d   : > { %v9300_v11 = vpack.c.bf16 %v9296_v12, %v9296_v12  ;;  %v9297_v21 = vpack.c.bf16 %v9293_v60, %v9293_v60 }
 0x63e   : > { %v9298_v4 = vpack.c.bf16 %v9294_v2, %v9294_v2 }
 0x63f   : > { %9636 = vmatprep.mubr.bf16.mxu1 %v9300_v11 }
 0x640   : > { %9596 = vmatprep.mubr.bf16.mxu0 %v9298_v4  ;;  %9637 = vmatmul.mubr.bf16.vlgmr.msra.gmra.mrb[4].mxu1 %v9299_v13 }
 0x641   : > { %9597 = vmatmul.mubr.bf16.vlgmr.msra.gmra.mrb[4].mxu0 %v9297_v21 }
 0x713   : > { %v10950_v5 = vpop.f32.mrb[4].mxu1 }
 0x714   : > { %v10928_v39 = vpop.f32.mrb[4].mxu0  ;;  %v10951_v20 = vpop.f32.mrb[5].mxu1 }
 0x715   : > { %v10929_v7 = vpop.f32.mrb[5].mxu0  ;;  %v10952_v8 = vadd.f32 %v10951_v20, %v10950_v5  ;;  %v10953_v32 = vpop.f32.mrb[6].mxu1 }
 0x716   : > { %v10930_v14 = vadd.f32 %v10929_v7, %v10928_v39  ;;  %v10931_v26 = vpop.f32.mrb[6].mxu0  ;;  %v10954_v16 = vpop.f32.mrb[7].mxu1 }
 0x717   : > { %v10932_v15 = vpop.f32.mrb[7].mxu0 }
 0x718   : > { %v9599_v49 = vadd.f32 %v10930_v14, %v10874_v6 }
 0x71a   : > { %v9639_v63 = vadd.f32 %v10952_v8, %v9599_v49 }
 0x71c   : > { %9644 = vst [vmem:[#allocation6] sm:$0x3] %v9639_v63 }
 0x71d PF: > { %p11094_p10 = scmp.eq.s32.totalorder %s12038_s25, 4  ;;  %s11991_s20 = smov [#allocation6]  }
 0x71e   : > { %s9652_s21 = sshll.u32 %s11991_s20, 4  ;;  %s9653_s21 = int_to_ptr.vmem [resolvable:$true] %s9652_s21 }
 0x71f   : > { %s11942_s22 = scalar_lea.vmem %s9653_s21, 32  ;;  %p11949_p0 = scmp.lt.s32.totalorder %s9653_s21, %s9653_s21 }
 0x720   : > { %p11943_p11 = scmp.ne.s32.totalorder %s9653_s21, %s11942_s22  ;;  %p11950_p1 = scmp.lt.s32.totalorder %s11942_s22, %s11942_s22 }
 0x722   : > { %p11944_p12 = pnand %p11943_p11, %p11094_p10  ;;  %p11951_p5 = por %p11950_p1, %p11949_p0 }
 0x724   : > { %p11945_p13 = pneg %p11944_p12 }
 0x726   : > { %p11952_p7 = pnand %p11951_p5, %p11945_p13 }
 0x728   : > { %11955 = shalt.err (!%p11952_p7)
}
 0x729   : > { %s11956_s27 = scalar_lea.hbm %s13098_s7, 32 }
 0x72a   : > { %p11957_p9 = scmp.ne.s32.totalorder %s13098_s7, %s11956_s27  ;;  %p11962_p3 = scmp.lt.u32.totalorder %s11956_s27, %s13098_s7 }
 0x72c   : > { %p11958_p8 = pnand %p11957_p9, %p11094_p10 }
 0x72e   : > { %p11959_p2 = pneg %p11958_p8 }
 0x730   : > { %p11964_p4 = pnand %p11962_p3, %p11959_p2 }
 0x732   : > { %11967 = shalt.err (!%p11964_p4)
}
 0x733   : > { %11085 = dma.vmem_to_hbm [thread:$0]  (%p11094_p10), %s9653_s21, 32, %s13098_s7, [#allocation5]  }
 0x734   : > { %11977 = dma.done.wait (%p11094_p10), [#allocation5], 32  }
 0x735   : > { %11979 = vsyncadd (%p11094_p10), [#allocation5], 4294967264 }
 0x736 PF: > { %s19_s24 = sadd.s32 1, %s11982_s24  }
 0x737   : > { %p16_p6 = scmp.ge.s32.totalorder %s19_s24, 7  }
 0x739   :  { %18 = sbr.rel (!%p16_p6) target bundleno = 2 (0x2), region = 91 }
 0x740   :  { %9665 = vsyncpa [#allocation4], 1 }
 0x741   :  { %9667 = vsyncpa [#allocation4 + $0x1], 1 }
 0x742   :  { %9668 = vsyncpa [#allocation5], 1 }
 0x743   :  { %9670 = vsyncpa [#allocation5 + $0x1], 1 }

</bundles_post_ra>
